<compile_context>
chip_gen: v5e
topology: v5e:2x2
jax: 0.10.0
libtpu: 0.0.40
codegen_flags: <defaults>
</compile_context>

<pallas_src>
import functools

import jax
import jax.numpy as jnp
from jax import lax
from jax.experimental import pallas as pl
from jax.experimental.pallas import tpu as pltpu

EPS = 1e-5    # PyTorch BatchNorm2d default eps
LANE = 128    # TPU lane width


def _round_up(x, m):
    return ((x + m - 1) // m) * m


def _fold_bn(gamma, beta, mean, var):
    scale = gamma * lax.rsqrt(var + EPS)
    shift = beta - mean * scale
    return scale, shift


def _pad_last(a, n):
    return jnp.pad(a, [(0, 0)] * (a.ndim - 1) + [(0, n - a.shape[-1])])


# --------------------------------------------------------------------------- kernel
def _convblock_kernel(H, W, Wp,
                      x_ref, s1_ref, t1_ref, w1_ref,
                      s2_ref, t2_ref, w2_ref, b2_ref,
                      o_ref,
                      a1_ref, a2_ref, acc_ref):
    # x_ref   : (1, H*W, Cin_p)   unpadded NHWC rows, channels lane-padded to 128
    # w*_ref  : (9, C, C')        tap-major 3x3 weights, tap k -> (dy, dx) = (k//3, k%3)
    # o_ref   : (1, H*W, Cout_p)  conv2 output, junk-column free, lane-dense
    # a1_ref  : (Np, Cin_p)       zero-padded BN1/ReLU activations (conv1 input)
    # a2_ref  : (Np, Cout_p)      zero-padded BN2/ReLU activations (conv2 input)
    # acc_ref : (Mv, Cout_p) f32  shared conv accumulator in the stride-Wp layout
    Mv = H * Wp

    # One-time zeroing of the padding ring / junk columns.  They are never written
    # afterwards (only interior rows are scattered below), so later grid steps reuse
    # the zeros -> no per-step memset.  Requires sequential grid ("arbitrary").
    @pl.when(pl.program_id(0) == 0)
    def _init():
        a1_ref[...] = jnp.zeros_like(a1_ref)
        a2_ref[...] = jnp.zeros_like(a2_ref)

    # ---- BN1 + ReLU (f32 math), scattered row-by-row into the padded stride-Wp layout.
    s1, t1 = s1_ref[...], t1_ref[...]
    for y in range(H):
        row = x_ref[0, pl.ds(y * W, W), :].astype(jnp.float32)
        a1_ref[pl.ds((y + 1) * Wp + 1, W), :] = jnp.maximum(
            row * s1 + t1, 0.0).astype(a1_ref.dtype)

    # ---- conv1: 9 shifted GEMMs on the MXU, f32 accumulation in VMEM scratch.
    for k in range(9):
        off = (k // 3) * Wp + (k % 3)
        tap = jnp.dot(a1_ref[pl.ds(off, Mv), :], w1_ref[k],
                      preferred_element_type=jnp.float32)
        if k == 0:
            acc_ref[...] = tap
        else:
            acc_ref[...] += tap

    # ---- BN2 + ReLU (conv1 bias already folded into t2), scattered row-by-row into
    #      the conv2 padded layout.  Junk columns are never touched (stay zero).
    s2, t2 = s2_ref[...], t2_ref[...]
    for y in range(H):
        h_row = acc_ref[pl.ds(y * Wp, W), :]
        a2_ref[pl.ds((y + 1) * Wp + 1, W), :] = jnp.maximum(
            h_row * s2 + t2, 0.0).astype(a2_ref.dtype)

    # ---- conv2: 9 shifted GEMMs, reusing the same f32 VMEM accumulator (conv1's
    #      result has already been consumed into a2_ref).
    for k in range(9):
        off = (k // 3) * Wp + (k % 3)
        tap = jnp.dot(a2_ref[pl.ds(off, Mv), :], w2_ref[k],
                      preferred_element_type=jnp.float32)
        if k == 0:
            acc_ref[...] = tap
        else:
            acc_ref[...] += tap

    # ---- bias + store, dropping the junk columns: lane-dense (H*W, Cout_p) output.
    b2 = b2_ref[...]
    for y in range(H):
        o_ref[0, pl.ds(y * W, W), :] = (acc_ref[pl.ds(y * Wp, W), :] + b2
                                        ).astype(o_ref.dtype)


# --------------------------------------------------------------------------- wrapper
def conv_block_forward(params, x_nchw, compute_dtype=jnp.bfloat16):
    """ConvBlock forward. x_nchw: (B, Cin, H, W) -> (B, Cout, H, W).

    compute_dtype selects the MXU operand / activation-scratch dtype (bf16 default,
    f32 debug path); accumulation and BN/ReLU math always stay in f32.
    """
    B, Cin, H, W = x_nchw.shape
    Cout = params["b1"].shape[0]
    Cin_p, Cout_p = _round_up(Cin, LANE), _round_up(Cout, LANE)
    Wp = _round_up(W + 2, 8)          # padded row stride (>= W+2), sublane-aligned
    Np = (H + 3) * Wp                 # padded rows; covers every 9-tap slice window
    HW = H * W
    Mv = H * Wp                       # conv-output rows in the stride-Wp layout

    # ---- glue: NCHW -> flat NHWC rows; cast to compute dtype BEFORE the channel pad.
    #      (bf16 path: input quantized to bf16 before BN1 - covered by the bf16 tol.)
    x = jnp.transpose(x_nchw, (0, 2, 3, 1)).astype(compute_dtype)
    x = jnp.pad(x, ((0, 0), (0, 0), (0, 0), (0, Cin_p - Cin)))
    x = x.reshape(B, HW, Cin_p)

    # ---- fold BN running stats; fold conv1 bias into the BN2 shift (t2' = s2*b1 + t2).
    s1, t1 = _fold_bn(params["g1"], params["be1"], params["mu1"], params["va1"])
    s2, t2 = _fold_bn(params["g2"], params["be2"], params["mu2"], params["va2"])
    t2 = s2 * params["b1"] + t2
    s1 = _pad_last(s1, Cin_p).reshape(1, Cin_p)
    t1 = _pad_last(t1, Cin_p).reshape(1, Cin_p)
    s2 = _pad_last(s2, Cout_p).reshape(1, Cout_p)
    t2 = _pad_last(t2, Cout_p).reshape(1, Cout_p)
    b2 = _pad_last(params["b2"], Cout_p).reshape(1, Cout_p)

    # ---- torch OIHW -> tap-major (9, Cin, Cout), lane-padded, MXU operand dtype.
    w1 = jnp.transpose(params["w1"], (2, 3, 1, 0)).reshape(9, Cin, Cout)
    w2 = jnp.transpose(params["w2"], (2, 3, 1, 0)).reshape(9, Cout, Cout)
    w1 = jnp.pad(w1, ((0, 0), (0, Cin_p - Cin), (0, Cout_p - Cout))).astype(compute_dtype)
    w2 = jnp.pad(w2, ((0, 0), (0, Cout_p - Cout), (0, Cout_p - Cout))).astype(compute_dtype)

    out = pl.pallas_call(
        functools.partial(_convblock_kernel, H, W, Wp),
        out_shape=jax.ShapeDtypeStruct((B, HW, Cout_p), jnp.float32),
        grid=(B,),
        in_specs=[
            pl.BlockSpec((1, HW, Cin_p), lambda b: (b, 0, 0)),       # x (per batch)
            pl.BlockSpec((1, Cin_p), lambda b: (0, 0)),              # bn1 scale
            pl.BlockSpec((1, Cin_p), lambda b: (0, 0)),              # bn1 shift
            pl.BlockSpec((9, Cin_p, Cout_p), lambda b: (0, 0, 0)),   # conv1 weights
            pl.BlockSpec((1, Cout_p), lambda b: (0, 0)),             # bn2 scale
            pl.BlockSpec((1, Cout_p), lambda b: (0, 0)),             # bn2 shift (+ folded conv1 bias)
            pl.BlockSpec((9, Cout_p, Cout_p), lambda b: (0, 0, 0)),  # conv2 weights
            pl.BlockSpec((1, Cout_p), lambda b: (0, 0)),             # conv2 bias
        ],
        out_specs=pl.BlockSpec((1, HW, Cout_p), lambda b: (b, 0, 0)),
        scratch_shapes=[
            pltpu.VMEM((Np, Cin_p), compute_dtype),    # padded conv1 input
            pltpu.VMEM((Np, Cout_p), compute_dtype),   # padded conv2 input
            pltpu.VMEM((Mv, Cout_p), jnp.float32),     # shared f32 accumulator
        ],
        # "arbitrary": the one-time padding-ring init requires sequential grid order.
        # TODO(synk): switch to a row-tiled (B, H//tm) "parallel" grid for v7x megacore.
        compiler_params=pltpu.CompilerParams(dimension_semantics=("arbitrary",)),
    )(x, s1, t1, w1, s2, t2, w2, b2)

    # ---- glue: drop padded channels, back to NCHW (reshape is free; no junk columns).
    y = out.reshape(B, H, W, Cout_p)[..., :Cout]
    return jnp.transpose(y, (0, 3, 1, 2))


# --------------------------------------------------------------------------- reference (pure JAX)
def _ref_forward(params, x_nchw):
    x = jnp.transpose(x_nchw, (0, 2, 3, 1)).astype(jnp.float32)
    s1, t1 = _fold_bn(params["g1"], params["be1"], params["mu1"], params["va1"])
    s2, t2 = _fold_bn(params["g2"], params["be2"], params["mu2"], params["va2"])

    def conv3(a, w_oihw, b):
        w = jnp.transpose(w_oihw, (2, 3, 1, 0))   # HWIO
        y = lax.conv_general_dilated(a, w, (1, 1), ((1, 1), (1, 1)),
                                     dimension_numbers=("NHWC", "HWIO", "NHWC"),
                                     precision=lax.Precision.HIGHEST)
        return y + b.reshape(1, 1, 1, -1)

    a1 = jnp.maximum(x * s1.reshape(1, 1, 1, -1) + t1.reshape(1, 1, 1, -1), 0.0)
    h = conv3(a1, params["w1"], params["b1"])
    a2 = jnp.maximum(h * s2.reshape(1, 1, 1, -1) + t2.reshape(1, 1, 1, -1), 0.0)
    y = conv3(a2, params["w2"], params["b2"])
    return jnp.transpose(y, (0, 3, 1, 2))


# --------------------------------------------------------------------------- params
def _make_params(key, cin, cout):
    k = jax.random.split(key, 14)
    return dict(
        g1=1.0 + 0.1 * jax.random.normal(k[0], (cin,), jnp.float32),
        be1=0.1 * jax.random.normal(k[1], (cin,), jnp.float32),
        mu1=0.1 * jax.random.normal(k[2], (cin,), jnp.float32),
        va1=0.9 + 0.2 * jax.random.uniform(k[3], (cin,), jnp.float32),
        w1=0.1 * jax.random.normal(k[4], (cout, cin, 3, 3), jnp.float32),   # torch OIHW
        b1=0.05 * jax.random.normal(k[5], (cout,), jnp.float32),
        g2=1.0 + 0.1 * jax.random.normal(k[6], (cout,), jnp.float32),
        be2=0.1 * jax.random.normal(k[7], (cout,), jnp.float32),
        mu2=0.1 * jax.random.normal(k[8], (cout,), jnp.float32),
        va2=0.9 + 0.2 * jax.random.uniform(k[9], (cout,), jnp.float32),
        w2=0.1 * jax.random.normal(k[10], (cout, cout, 3, 3), jnp.float32),
        b2=0.05 * jax.random.normal(k[11], (cout,), jnp.float32),
    )


# --------------------------------------------------------------------------- main
if __name__ == "__main__":
    B, CIN, COUT, H, W = 2, 4, 8, 16, 16

    key = jax.random.PRNGKey(0)
    kp, kx = jax.random.split(key)
    params = _make_params(kp, CIN, COUT)
    x = jax.random.normal(kx, (B, CIN, H, W), jnp.float32)

    ref = _ref_forward(params, x)
    fwd = jax.jit(conv_block_forward, static_argnames=("compute_dtype",))

    # f32 MXU-operand debug path (tight tolerance).
    out = jax.block_until_ready(fwd(params, x, compute_dtype=jnp.float32))
    assert out.shape == (B, COUT, H, W), out.shape
    assert bool(jnp.all(jnp.isfinite(out)))
    err_f32 = float(jnp.max(jnp.abs(out - ref)))
    assert err_f32 < 1e-3, f"f32 path max abs err {err_f32}"

    # bf16 MXU-operand default path (f32 accumulation) - bf16-appropriate tolerance.
    out_bf = jax.block_until_ready(fwd(params, x))
    assert out_bf.shape == (B, COUT, H, W), out_bf.shape
    assert bool(jnp.all(jnp.isfinite(out_bf)))
    err_bf16 = float(jnp.max(jnp.abs(out_bf - ref)))
    assert err_bf16 < 5e-2, f"bf16 path max abs err {err_bf16}"

    print("KERNEL_OK")
</pallas_src>

<mosaic_0001>
module attributes {stable_mosaic.version = 11 : i64} {
  func.func @_convblock_kernel(%arg0: i32, %arg1: memref<1x256x128xf32, #tpu.memory_space<vmem>>, %arg2: memref<1x128xf32, #tpu.memory_space<vmem>>, %arg3: memref<1x128xf32, #tpu.memory_space<vmem>>, %arg4: memref<9x128x128xf32, #tpu.memory_space<vmem>>, %arg5: memref<1x128xf32, #tpu.memory_space<vmem>>, %arg6: memref<1x128xf32, #tpu.memory_space<vmem>>, %arg7: memref<9x128x128xf32, #tpu.memory_space<vmem>>, %arg8: memref<1x128xf32, #tpu.memory_space<vmem>>, %arg9: memref<1x256x128xf32, #tpu.memory_space<vmem>>, %arg10: memref<456x128xf32, #tpu.memory_space<vmem>>, %arg11: memref<456x128xf32, #tpu.memory_space<vmem>>, %arg12: memref<384x128xf32, #tpu.memory_space<vmem>>) attributes {dimension_semantics = [#tpu.dimension_semantics<arbitrary>], iteration_bounds = array<i64: 2>, scalar_prefetch = 0 : i64, scratch_operands = 3 : i64, tpu.core_type = #tpu.core_type<tc>, window_params = [{transform_indices = @transform_0, window_bounds = array<i64: 1, 256, 128>}, {pipeline_mode = #tpu.pipeline_mode<synchronous>, transform_indices = @transform_1, window_bounds = array<i64: 1, 128>}, {pipeline_mode = #tpu.pipeline_mode<synchronous>, transform_indices = @transform_2, window_bounds = array<i64: 1, 128>}, {pipeline_mode = #tpu.pipeline_mode<synchronous>, transform_indices = @transform_3, window_bounds = array<i64: 9, 128, 128>}, {pipeline_mode = #tpu.pipeline_mode<synchronous>, transform_indices = @transform_4, window_bounds = array<i64: 1, 128>}, {pipeline_mode = #tpu.pipeline_mode<synchronous>, transform_indices = @transform_5, window_bounds = array<i64: 1, 128>}, {pipeline_mode = #tpu.pipeline_mode<synchronous>, transform_indices = @transform_6, window_bounds = array<i64: 9, 128, 128>}, {pipeline_mode = #tpu.pipeline_mode<synchronous>, transform_indices = @transform_7, window_bounds = array<i64: 1, 128>}, {transform_indices = @transform_8, window_bounds = array<i64: 1, 256, 128>}]} {
    %c0_i32 = arith.constant 0 : i32
    %0 = arith.cmpi eq, %arg0, %c0_i32 : i32
    %1 = arith.extui %0 : i1 to i32
    %c0_i32_0 = arith.constant 0 : i32
    %2 = arith.cmpi ne, %1, %c0_i32_0 : i32
    scf.if %2 {
      %cst_390 = arith.constant 0.000000e+00 : f32
      %498 = vector.broadcast %cst_390 : f32 to vector<456x128xf32>
      %c0_391 = arith.constant 0 : index
      %c0_392 = arith.constant 0 : index
      %499 = vector.load %arg10[%c0_391, %c0_392] : memref<456x128xf32, #tpu.memory_space<vmem>>, vector<456x128xf32>
      tpu.vector_store %arg10[%c0_391, %c0_392], %498 {strides = array<i32>} : memref<456x128xf32, #tpu.memory_space<vmem>>, vector<456x128xf32>,
      %cst_393 = arith.constant 0.000000e+00 : f32
      %500 = vector.broadcast %cst_393 : f32 to vector<456x128xf32>
      %c0_394 = arith.constant 0 : index
      %c0_395 = arith.constant 0 : index
      %501 = vector.load %arg11[%c0_394, %c0_395] : memref<456x128xf32, #tpu.memory_space<vmem>>, vector<456x128xf32>
      tpu.vector_store %arg11[%c0_394, %c0_395], %500 {strides = array<i32>} : memref<456x128xf32, #tpu.memory_space<vmem>>, vector<456x128xf32>,
    } else {
    }
    %c0 = arith.constant 0 : index
    %c0_1 = arith.constant 0 : index
    %3 = vector.load %arg2[%c0, %c0_1] : memref<1x128xf32, #tpu.memory_space<vmem>>, vector<1x128xf32>
    %c0_2 = arith.constant 0 : index
    %c0_3 = arith.constant 0 : index
    %4 = vector.load %arg3[%c0_2, %c0_3] : memref<1x128xf32, #tpu.memory_space<vmem>>, vector<1x128xf32>
    %c0_4 = arith.constant 0 : index
    %c0_5 = arith.constant 0 : index
    %c0_6 = arith.constant 0 : index
    %5 = vector.load %arg1[%c0_4, %c0_5, %c0_6] : memref<1x256x128xf32, #tpu.memory_space<vmem>>, vector<1x16x128xf32>
    %6 = vector.shape_cast %5 : vector<1x16x128xf32> to vector<16x128xf32>
    %7 = vector.broadcast %3 : vector<1x128xf32> to vector<16x128xf32>
    %8 = arith.mulf %6, %7 : vector<16x128xf32>
    %9 = vector.broadcast %4 : vector<1x128xf32> to vector<16x128xf32>
    %10 = arith.addf %8, %9 : vector<16x128xf32>
    %cst = arith.constant 0.000000e+00 : f32
    %11 = vector.broadcast %cst : f32 to vector<16x128xf32>
    %12 = arith.maximumf %10, %11 : vector<16x128xf32>
    %c25 = arith.constant 25 : index
    %c0_7 = arith.constant 0 : index
    %13 = vector.load %arg10[%c25, %c0_7] : memref<456x128xf32, #tpu.memory_space<vmem>>, vector<16x128xf32>
    tpu.vector_store %arg10[%c25, %c0_7], %12 {strides = array<i32>} : memref<456x128xf32, #tpu.memory_space<vmem>>, vector<16x128xf32>,
    %c0_8 = arith.constant 0 : index
    %c16 = arith.constant 16 : index
    %c0_9 = arith.constant 0 : index
    %14 = vector.load %arg1[%c0_8, %c16, %c0_9] : memref<1x256x128xf32, #tpu.memory_space<vmem>>, vector<1x16x128xf32>
    %15 = vector.shape_cast %14 : vector<1x16x128xf32> to vector<16x128xf32>
    %16 = vector.broadcast %3 : vector<1x128xf32> to vector<16x128xf32>
    %17 = arith.mulf %15, %16 : vector<16x128xf32>
    %18 = vector.broadcast %4 : vector<1x128xf32> to vector<16x128xf32>
    %19 = arith.addf %17, %18 : vector<16x128xf32>
    %cst_10 = arith.constant 0.000000e+00 : f32
    %20 = vector.broadcast %cst_10 : f32 to vector<16x128xf32>
    %21 = arith.maximumf %19, %20 : vector<16x128xf32>
    %c49 = arith.constant 49 : index
    %c0_11 = arith.constant 0 : index
    %22 = vector.load %arg10[%c49, %c0_11] : memref<456x128xf32, #tpu.memory_space<vmem>>, vector<16x128xf32>
    tpu.vector_store %arg10[%c49, %c0_11], %21 {strides = array<i32>} : memref<456x128xf32, #tpu.memory_space<vmem>>, vector<16x128xf32>,
    %c0_12 = arith.constant 0 : index
    %c32 = arith.constant 32 : index
    %c0_13 = arith.constant 0 : index
    %23 = vector.load %arg1[%c0_12, %c32, %c0_13] : memref<1x256x128xf32, #tpu.memory_space<vmem>>, vector<1x16x128xf32>
    %24 = vector.shape_cast %23 : vector<1x16x128xf32> to vector<16x128xf32>
    %25 = vector.broadcast %3 : vector<1x128xf32> to vector<16x128xf32>
    %26 = arith.mulf %24, %25 : vector<16x128xf32>
    %27 = vector.broadcast %4 : vector<1x128xf32> to vector<16x128xf32>
    %28 = arith.addf %26, %27 : vector<16x128xf32>
    %cst_14 = arith.constant 0.000000e+00 : f32
    %29 = vector.broadcast %cst_14 : f32 to vector<16x128xf32>
    %30 = arith.maximumf %28, %29 : vector<16x128xf32>
    %c73 = arith.constant 73 : index
    %c0_15 = arith.constant 0 : index
    %31 = vector.load %arg10[%c73, %c0_15] : memref<456x128xf32, #tpu.memory_space<vmem>>, vector<16x128xf32>
    tpu.vector_store %arg10[%c73, %c0_15], %30 {strides = array<i32>} : memref<456x128xf32, #tpu.memory_space<vmem>>, vector<16x128xf32>,
    %c0_16 = arith.constant 0 : index
    %c48 = arith.constant 48 : index
    %c0_17 = arith.constant 0 : index
    %32 = vector.load %arg1[%c0_16, %c48, %c0_17] : memref<1x256x128xf32, #tpu.memory_space<vmem>>, vector<1x16x128xf32>
    %33 = vector.shape_cast %32 : vector<1x16x128xf32> to vector<16x128xf32>
    %34 = vector.broadcast %3 : vector<1x128xf32> to vector<16x128xf32>
    %35 = arith.mulf %33, %34 : vector<16x128xf32>
    %36 = vector.broadcast %4 : vector<1x128xf32> to vector<16x128xf32>
    %37 = arith.addf %35, %36 : vector<16x128xf32>
    %cst_18 = arith.constant 0.000000e+00 : f32
    %38 = vector.broadcast %cst_18 : f32 to vector<16x128xf32>
    %39 = arith.maximumf %37, %38 : vector<16x128xf32>
    %c97 = arith.constant 97 : index
    %c0_19 = arith.constant 0 : index
    %40 = vector.load %arg10[%c97, %c0_19] : memref<456x128xf32, #tpu.memory_space<vmem>>, vector<16x128xf32>
    tpu.vector_store %arg10[%c97, %c0_19], %39 {strides = array<i32>} : memref<456x128xf32, #tpu.memory_space<vmem>>, vector<16x128xf32>,
    %c0_20 = arith.constant 0 : index
    %c64 = arith.constant 64 : index
    %c0_21 = arith.constant 0 : index
    %41 = vector.load %arg1[%c0_20, %c64, %c0_21] : memref<1x256x128xf32, #tpu.memory_space<vmem>>, vector<1x16x128xf32>
    %42 = vector.shape_cast %41 : vector<1x16x128xf32> to vector<16x128xf32>
    %43 = vector.broadcast %3 : vector<1x128xf32> to vector<16x128xf32>
    %44 = arith.mulf %42, %43 : vector<16x128xf32>
    %45 = vector.broadcast %4 : vector<1x128xf32> to vector<16x128xf32>
    %46 = arith.addf %44, %45 : vector<16x128xf32>
    %cst_22 = arith.constant 0.000000e+00 : f32
    %47 = vector.broadcast %cst_22 : f32 to vector<16x128xf32>
    %48 = arith.maximumf %46, %47 : vector<16x128xf32>
    %c121 = arith.constant 121 : index
    %c0_23 = arith.constant 0 : index
    %49 = vector.load %arg10[%c121, %c0_23] : memref<456x128xf32, #tpu.memory_space<vmem>>, vector<16x128xf32>
    tpu.vector_store %arg10[%c121, %c0_23], %48 {strides = array<i32>} : memref<456x128xf32, #tpu.memory_space<vmem>>, vector<16x128xf32>,
    %c0_24 = arith.constant 0 : index
    %c80 = arith.constant 80 : index
    %c0_25 = arith.constant 0 : index
    %50 = vector.load %arg1[%c0_24, %c80, %c0_25] : memref<1x256x128xf32, #tpu.memory_space<vmem>>, vector<1x16x128xf32>
    %51 = vector.shape_cast %50 : vector<1x16x128xf32> to vector<16x128xf32>
    %52 = vector.broadcast %3 : vector<1x128xf32> to vector<16x128xf32>
    %53 = arith.mulf %51, %52 : vector<16x128xf32>
    %54 = vector.broadcast %4 : vector<1x128xf32> to vector<16x128xf32>
    %55 = arith.addf %53, %54 : vector<16x128xf32>
    %cst_26 = arith.constant 0.000000e+00 : f32
    %56 = vector.broadcast %cst_26 : f32 to vector<16x128xf32>
    %57 = arith.maximumf %55, %56 : vector<16x128xf32>
    %c145 = arith.constant 145 : index
    %c0_27 = arith.constant 0 : index
    %58 = vector.load %arg10[%c145, %c0_27] : memref<456x128xf32, #tpu.memory_space<vmem>>, vector<16x128xf32>
    tpu.vector_store %arg10[%c145, %c0_27], %57 {strides = array<i32>} : memref<456x128xf32, #tpu.memory_space<vmem>>, vector<16x128xf32>,
    %c0_28 = arith.constant 0 : index
    %c96 = arith.constant 96 : index
    %c0_29 = arith.constant 0 : index
    %59 = vector.load %arg1[%c0_28, %c96, %c0_29] : memref<1x256x128xf32, #tpu.memory_space<vmem>>, vector<1x16x128xf32>
    %60 = vector.shape_cast %59 : vector<1x16x128xf32> to vector<16x128xf32>
    %61 = vector.broadcast %3 : vector<1x128xf32> to vector<16x128xf32>
    %62 = arith.mulf %60, %61 : vector<16x128xf32>
    %63 = vector.broadcast %4 : vector<1x128xf32> to vector<16x128xf32>
    %64 = arith.addf %62, %63 : vector<16x128xf32>
    %cst_30 = arith.constant 0.000000e+00 : f32
    %65 = vector.broadcast %cst_30 : f32 to vector<16x128xf32>
    %66 = arith.maximumf %64, %65 : vector<16x128xf32>
    %c169 = arith.constant 169 : index
    %c0_31 = arith.constant 0 : index
    %67 = vector.load %arg10[%c169, %c0_31] : memref<456x128xf32, #tpu.memory_space<vmem>>, vector<16x128xf32>
    tpu.vector_store %arg10[%c169, %c0_31], %66 {strides = array<i32>} : memref<456x128xf32, #tpu.memory_space<vmem>>, vector<16x128xf32>,
    %c0_32 = arith.constant 0 : index
    %c112 = arith.constant 112 : index
    %c0_33 = arith.constant 0 : index
    %68 = vector.load %arg1[%c0_32, %c112, %c0_33] : memref<1x256x128xf32, #tpu.memory_space<vmem>>, vector<1x16x128xf32>
    %69 = vector.shape_cast %68 : vector<1x16x128xf32> to vector<16x128xf32>
    %70 = vector.broadcast %3 : vector<1x128xf32> to vector<16x128xf32>
    %71 = arith.mulf %69, %70 : vector<16x128xf32>
    %72 = vector.broadcast %4 : vector<1x128xf32> to vector<16x128xf32>
    %73 = arith.addf %71, %72 : vector<16x128xf32>
    %cst_34 = arith.constant 0.000000e+00 : f32
    %74 = vector.broadcast %cst_34 : f32 to vector<16x128xf32>
    %75 = arith.maximumf %73, %74 : vector<16x128xf32>
    %c193 = arith.constant 193 : index
    %c0_35 = arith.constant 0 : index
    %76 = vector.load %arg10[%c193, %c0_35] : memref<456x128xf32, #tpu.memory_space<vmem>>, vector<16x128xf32>
    tpu.vector_store %arg10[%c193, %c0_35], %75 {strides = array<i32>} : memref<456x128xf32, #tpu.memory_space<vmem>>, vector<16x128xf32>,
    %c0_36 = arith.constant 0 : index
    %c128 = arith.constant 128 : index
    %c0_37 = arith.constant 0 : index
    %77 = vector.load %arg1[%c0_36, %c128, %c0_37] : memref<1x256x128xf32, #tpu.memory_space<vmem>>, vector<1x16x128xf32>
    %78 = vector.shape_cast %77 : vector<1x16x128xf32> to vector<16x128xf32>
    %79 = vector.broadcast %3 : vector<1x128xf32> to vector<16x128xf32>
    %80 = arith.mulf %78, %79 : vector<16x128xf32>
    %81 = vector.broadcast %4 : vector<1x128xf32> to vector<16x128xf32>
    %82 = arith.addf %80, %81 : vector<16x128xf32>
    %cst_38 = arith.constant 0.000000e+00 : f32
    %83 = vector.broadcast %cst_38 : f32 to vector<16x128xf32>
    %84 = arith.maximumf %82, %83 : vector<16x128xf32>
    %c217 = arith.constant 217 : index
    %c0_39 = arith.constant 0 : index
    %85 = vector.load %arg10[%c217, %c0_39] : memref<456x128xf32, #tpu.memory_space<vmem>>, vector<16x128xf32>
    tpu.vector_store %arg10[%c217, %c0_39], %84 {strides = array<i32>} : memref<456x128xf32, #tpu.memory_space<vmem>>, vector<16x128xf32>,
    %c0_40 = arith.constant 0 : index
    %c144 = arith.constant 144 : index
    %c0_41 = arith.constant 0 : index
    %86 = vector.load %arg1[%c0_40, %c144, %c0_41] : memref<1x256x128xf32, #tpu.memory_space<vmem>>, vector<1x16x128xf32>
    %87 = vector.shape_cast %86 : vector<1x16x128xf32> to vector<16x128xf32>
    %88 = vector.broadcast %3 : vector<1x128xf32> to vector<16x128xf32>
    %89 = arith.mulf %87, %88 : vector<16x128xf32>
    %90 = vector.broadcast %4 : vector<1x128xf32> to vector<16x128xf32>
    %91 = arith.addf %89, %90 : vector<16x128xf32>
    %cst_42 = arith.constant 0.000000e+00 : f32
    %92 = vector.broadcast %cst_42 : f32 to vector<16x128xf32>
    %93 = arith.maximumf %91, %92 : vector<16x128xf32>
    %c241 = arith.constant 241 : index
    %c0_43 = arith.constant 0 : index
    %94 = vector.load %arg10[%c241, %c0_43] : memref<456x128xf32, #tpu.memory_space<vmem>>, vector<16x128xf32>
    tpu.vector_store %arg10[%c241, %c0_43], %93 {strides = array<i32>} : memref<456x128xf32, #tpu.memory_space<vmem>>, vector<16x128xf32>,
    %c0_44 = arith.constant 0 : index
    %c160 = arith.constant 160 : index
    %c0_45 = arith.constant 0 : index
    %95 = vector.load %arg1[%c0_44, %c160, %c0_45] : memref<1x256x128xf32, #tpu.memory_space<vmem>>, vector<1x16x128xf32>
    %96 = vector.shape_cast %95 : vector<1x16x128xf32> to vector<16x128xf32>
    %97 = vector.broadcast %3 : vector<1x128xf32> to vector<16x128xf32>
    %98 = arith.mulf %96, %97 : vector<16x128xf32>
    %99 = vector.broadcast %4 : vector<1x128xf32> to vector<16x128xf32>
    %100 = arith.addf %98, %99 : vector<16x128xf32>
    %cst_46 = arith.constant 0.000000e+00 : f32
    %101 = vector.broadcast %cst_46 : f32 to vector<16x128xf32>
    %102 = arith.maximumf %100, %101 : vector<16x128xf32>
    %c265 = arith.constant 265 : index
    %c0_47 = arith.constant 0 : index
    %103 = vector.load %arg10[%c265, %c0_47] : memref<456x128xf32, #tpu.memory_space<vmem>>, vector<16x128xf32>
    tpu.vector_store %arg10[%c265, %c0_47], %102 {strides = array<i32>} : memref<456x128xf32, #tpu.memory_space<vmem>>, vector<16x128xf32>,
    %c0_48 = arith.constant 0 : index
    %c176 = arith.constant 176 : index
    %c0_49 = arith.constant 0 : index
    %104 = vector.load %arg1[%c0_48, %c176, %c0_49] : memref<1x256x128xf32, #tpu.memory_space<vmem>>, vector<1x16x128xf32>
    %105 = vector.shape_cast %104 : vector<1x16x128xf32> to vector<16x128xf32>
    %106 = vector.broadcast %3 : vector<1x128xf32> to vector<16x128xf32>
    %107 = arith.mulf %105, %106 : vector<16x128xf32>
    %108 = vector.broadcast %4 : vector<1x128xf32> to vector<16x128xf32>
    %109 = arith.addf %107, %108 : vector<16x128xf32>
    %cst_50 = arith.constant 0.000000e+00 : f32
    %110 = vector.broadcast %cst_50 : f32 to vector<16x128xf32>
    %111 = arith.maximumf %109, %110 : vector<16x128xf32>
    %c289 = arith.constant 289 : index
    %c0_51 = arith.constant 0 : index
    %112 = vector.load %arg10[%c289, %c0_51] : memref<456x128xf32, #tpu.memory_space<vmem>>, vector<16x128xf32>
    tpu.vector_store %arg10[%c289, %c0_51], %111 {strides = array<i32>} : memref<456x128xf32, #tpu.memory_space<vmem>>, vector<16x128xf32>,
    %c0_52 = arith.constant 0 : index
    %c192 = arith.constant 192 : index
    %c0_53 = arith.constant 0 : index
    %113 = vector.load %arg1[%c0_52, %c192, %c0_53] : memref<1x256x128xf32, #tpu.memory_space<vmem>>, vector<1x16x128xf32>
    %114 = vector.shape_cast %113 : vector<1x16x128xf32> to vector<16x128xf32>
    %115 = vector.broadcast %3 : vector<1x128xf32> to vector<16x128xf32>
    %116 = arith.mulf %114, %115 : vector<16x128xf32>
    %117 = vector.broadcast %4 : vector<1x128xf32> to vector<16x128xf32>
    %118 = arith.addf %116, %117 : vector<16x128xf32>
    %cst_54 = arith.constant 0.000000e+00 : f32
    %119 = vector.broadcast %cst_54 : f32 to vector<16x128xf32>
    %120 = arith.maximumf %118, %119 : vector<16x128xf32>
    %c313 = arith.constant 313 : index
    %c0_55 = arith.constant 0 : index
    %121 = vector.load %arg10[%c313, %c0_55] : memref<456x128xf32, #tpu.memory_space<vmem>>, vector<16x128xf32>
    tpu.vector_store %arg10[%c313, %c0_55], %120 {strides = array<i32>} : memref<456x128xf32, #tpu.memory_space<vmem>>, vector<16x128xf32>,
    %c0_56 = arith.constant 0 : index
    %c208 = arith.constant 208 : index
    %c0_57 = arith.constant 0 : index
    %122 = vector.load %arg1[%c0_56, %c208, %c0_57] : memref<1x256x128xf32, #tpu.memory_space<vmem>>, vector<1x16x128xf32>
    %123 = vector.shape_cast %122 : vector<1x16x128xf32> to vector<16x128xf32>
    %124 = vector.broadcast %3 : vector<1x128xf32> to vector<16x128xf32>
    %125 = arith.mulf %123, %124 : vector<16x128xf32>
    %126 = vector.broadcast %4 : vector<1x128xf32> to vector<16x128xf32>
    %127 = arith.addf %125, %126 : vector<16x128xf32>
    %cst_58 = arith.constant 0.000000e+00 : f32
    %128 = vector.broadcast %cst_58 : f32 to vector<16x128xf32>
    %129 = arith.maximumf %127, %128 : vector<16x128xf32>
    %c337 = arith.constant 337 : index
    %c0_59 = arith.constant 0 : index
    %130 = vector.load %arg10[%c337, %c0_59] : memref<456x128xf32, #tpu.memory_space<vmem>>, vector<16x128xf32>
    tpu.vector_store %arg10[%c337, %c0_59], %129 {strides = array<i32>} : memref<456x128xf32, #tpu.memory_space<vmem>>, vector<16x128xf32>,
    %c0_60 = arith.constant 0 : index
    %c224 = arith.constant 224 : index
    %c0_61 = arith.constant 0 : index
    %131 = vector.load %arg1[%c0_60, %c224, %c0_61] : memref<1x256x128xf32, #tpu.memory_space<vmem>>, vector<1x16x128xf32>
    %132 = vector.shape_cast %131 : vector<1x16x128xf32> to vector<16x128xf32>
    %133 = vector.broadcast %3 : vector<1x128xf32> to vector<16x128xf32>
    %134 = arith.mulf %132, %133 : vector<16x128xf32>
    %135 = vector.broadcast %4 : vector<1x128xf32> to vector<16x128xf32>
    %136 = arith.addf %134, %135 : vector<16x128xf32>
    %cst_62 = arith.constant 0.000000e+00 : f32
    %137 = vector.broadcast %cst_62 : f32 to vector<16x128xf32>
    %138 = arith.maximumf %136, %137 : vector<16x128xf32>
    %c361 = arith.constant 361 : index
    %c0_63 = arith.constant 0 : index
    %139 = vector.load %arg10[%c361, %c0_63] : memref<456x128xf32, #tpu.memory_space<vmem>>, vector<16x128xf32>
    tpu.vector_store %arg10[%c361, %c0_63], %138 {strides = array<i32>} : memref<456x128xf32, #tpu.memory_space<vmem>>, vector<16x128xf32>,
    %c0_64 = arith.constant 0 : index
    %c240 = arith.constant 240 : index
    %c0_65 = arith.constant 0 : index
    %140 = vector.load %arg1[%c0_64, %c240, %c0_65] : memref<1x256x128xf32, #tpu.memory_space<vmem>>, vector<1x16x128xf32>
    %141 = vector.shape_cast %140 : vector<1x16x128xf32> to vector<16x128xf32>
    %142 = vector.broadcast %3 : vector<1x128xf32> to vector<16x128xf32>
    %143 = arith.mulf %141, %142 : vector<16x128xf32>
    %144 = vector.broadcast %4 : vector<1x128xf32> to vector<16x128xf32>
    %145 = arith.addf %143, %144 : vector<16x128xf32>
    %cst_66 = arith.constant 0.000000e+00 : f32
    %146 = vector.broadcast %cst_66 : f32 to vector<16x128xf32>
    %147 = arith.maximumf %145, %146 : vector<16x128xf32>
    %c385 = arith.constant 385 : index
    %c0_67 = arith.constant 0 : index
    %148 = vector.load %arg10[%c385, %c0_67] : memref<456x128xf32, #tpu.memory_space<vmem>>, vector<16x128xf32>
    tpu.vector_store %arg10[%c385, %c0_67], %147 {strides = array<i32>} : memref<456x128xf32, #tpu.memory_space<vmem>>, vector<16x128xf32>,
    %c0_68 = arith.constant 0 : index
    %c0_69 = arith.constant 0 : index
    %149 = vector.load %arg10[%c0_68, %c0_69] : memref<456x128xf32, #tpu.memory_space<vmem>>, vector<384x128xf32>
    %c0_70 = arith.constant 0 : index
    %c0_71 = arith.constant 0 : index
    %c0_72 = arith.constant 0 : index
    %150 = vector.load %arg4[%c0_70, %c0_71, %c0_72] : memref<9x128x128xf32, #tpu.memory_space<vmem>>, vector<1x128x128xf32>
    %151 = vector.shape_cast %150 : vector<1x128x128xf32> to vector<128x128xf32>
    %cst_73 = arith.constant dense<0.000000e+00> : vector<384x128xf32>
    %152 = tpu.matmul %149, %151, %cst_73 {dimension_numbers = #tpu.dot_dimension_numbers<[1], [0], [0], [1], [0, 0, 1, 1], [], []>} : vector<384x128xf32>, vector<128x128xf32>, vector<384x128xf32> -> vector<384x128xf32>
    %c0_74 = arith.constant 0 : index
    %c0_75 = arith.constant 0 : index
    %153 = vector.load %arg12[%c0_74, %c0_75] : memref<384x128xf32, #tpu.memory_space<vmem>>, vector<384x128xf32>
    tpu.vector_store %arg12[%c0_74, %c0_75], %152 {strides = array<i32>} : memref<384x128xf32, #tpu.memory_space<vmem>>, vector<384x128xf32>,
    %c1 = arith.constant 1 : index
    %c0_76 = arith.constant 0 : index
    %154 = vector.load %arg10[%c1, %c0_76] : memref<456x128xf32, #tpu.memory_space<vmem>>, vector<384x128xf32>
    %c1_77 = arith.constant 1 : index
    %c0_78 = arith.constant 0 : index
    %c0_79 = arith.constant 0 : index
    %155 = vector.load %arg4[%c1_77, %c0_78, %c0_79] : memref<9x128x128xf32, #tpu.memory_space<vmem>>, vector<1x128x128xf32>
    %156 = vector.shape_cast %155 : vector<1x128x128xf32> to vector<128x128xf32>
    %cst_80 = arith.constant dense<0.000000e+00> : vector<384x128xf32>
    %157 = tpu.matmul %154, %156, %cst_80 {dimension_numbers = #tpu.dot_dimension_numbers<[1], [0], [0], [1], [0, 0, 1, 1], [], []>} : vector<384x128xf32>, vector<128x128xf32>, vector<384x128xf32> -> vector<384x128xf32>
    %c0_81 = arith.constant 0 : index
    %c0_82 = arith.constant 0 : index
    %158 = vector.load %arg12[%c0_81, %c0_82] : memref<384x128xf32, #tpu.memory_space<vmem>>, vector<384x128xf32>
    %159 = arith.addf %158, %157 : vector<384x128xf32>
    %c0_83 = arith.constant 0 : index
    %c0_84 = arith.constant 0 : index
    %160 = vector.load %arg12[%c0_83, %c0_84] : memref<384x128xf32, #tpu.memory_space<vmem>>, vector<384x128xf32>
    tpu.vector_store %arg12[%c0_83, %c0_84], %159 {strides = array<i32>} : memref<384x128xf32, #tpu.memory_space<vmem>>, vector<384x128xf32>,
    %c2 = arith.constant 2 : index
    %c0_85 = arith.constant 0 : index
    %161 = vector.load %arg10[%c2, %c0_85] : memref<456x128xf32, #tpu.memory_space<vmem>>, vector<384x128xf32>
    %c2_86 = arith.constant 2 : index
    %c0_87 = arith.constant 0 : index
    %c0_88 = arith.constant 0 : index
    %162 = vector.load %arg4[%c2_86, %c0_87, %c0_88] : memref<9x128x128xf32, #tpu.memory_space<vmem>>, vector<1x128x128xf32>
    %163 = vector.shape_cast %162 : vector<1x128x128xf32> to vector<128x128xf32>
    %cst_89 = arith.constant dense<0.000000e+00> : vector<384x128xf32>
    %164 = tpu.matmul %161, %163, %cst_89 {dimension_numbers = #tpu.dot_dimension_numbers<[1], [0], [0], [1], [0, 0, 1, 1], [], []>} : vector<384x128xf32>, vector<128x128xf32>, vector<384x128xf32> -> vector<384x128xf32>
    %c0_90 = arith.constant 0 : index
    %c0_91 = arith.constant 0 : index
    %165 = vector.load %arg12[%c0_90, %c0_91] : memref<384x128xf32, #tpu.memory_space<vmem>>, vector<384x128xf32>
    %166 = arith.addf %165, %164 : vector<384x128xf32>
    %c0_92 = arith.constant 0 : index
    %c0_93 = arith.constant 0 : index
    %167 = vector.load %arg12[%c0_92, %c0_93] : memref<384x128xf32, #tpu.memory_space<vmem>>, vector<384x128xf32>
    tpu.vector_store %arg12[%c0_92, %c0_93], %166 {strides = array<i32>} : memref<384x128xf32, #tpu.memory_space<vmem>>, vector<384x128xf32>,
    %c24 = arith.constant 24 : index
    %c0_94 = arith.constant 0 : index
    %168 = vector.load %arg10[%c24, %c0_94] : memref<456x128xf32, #tpu.memory_space<vmem>>, vector<384x128xf32>
    %c3 = arith.constant 3 : index
    %c0_95 = arith.constant 0 : index
    %c0_96 = arith.constant 0 : index
    %169 = vector.load %arg4[%c3, %c0_95, %c0_96] : memref<9x128x128xf32, #tpu.memory_space<vmem>>, vector<1x128x128xf32>
    %170 = vector.shape_cast %169 : vector<1x128x128xf32> to vector<128x128xf32>
    %cst_97 = arith.constant dense<0.000000e+00> : vector<384x128xf32>
    %171 = tpu.matmul %168, %170, %cst_97 {dimension_numbers = #tpu.dot_dimension_numbers<[1], [0], [0], [1], [0, 0, 1, 1], [], []>} : vector<384x128xf32>, vector<128x128xf32>, vector<384x128xf32> -> vector<384x128xf32>
    %c0_98 = arith.constant 0 : index
    %c0_99 = arith.constant 0 : index
    %172 = vector.load %arg12[%c0_98, %c0_99] : memref<384x128xf32, #tpu.memory_space<vmem>>, vector<384x128xf32>
    %173 = arith.addf %172, %171 : vector<384x128xf32>
    %c0_100 = arith.constant 0 : index
    %c0_101 = arith.constant 0 : index
    %174 = vector.load %arg12[%c0_100, %c0_101] : memref<384x128xf32, #tpu.memory_space<vmem>>, vector<384x128xf32>
    tpu.vector_store %arg12[%c0_100, %c0_101], %173 {strides = array<i32>} : memref<384x128xf32, #tpu.memory_space<vmem>>, vector<384x128xf32>,
    %c25_102 = arith.constant 25 : index
    %c0_103 = arith.constant 0 : index
    %175 = vector.load %arg10[%c25_102, %c0_103] : memref<456x128xf32, #tpu.memory_space<vmem>>, vector<384x128xf32>
    %c4 = arith.constant 4 : index
    %c0_104 = arith.constant 0 : index
    %c0_105 = arith.constant 0 : index
    %176 = vector.load %arg4[%c4, %c0_104, %c0_105] : memref<9x128x128xf32, #tpu.memory_space<vmem>>, vector<1x128x128xf32>
    %177 = vector.shape_cast %176 : vector<1x128x128xf32> to vector<128x128xf32>
    %cst_106 = arith.constant dense<0.000000e+00> : vector<384x128xf32>
    %178 = tpu.matmul %175, %177, %cst_106 {dimension_numbers = #tpu.dot_dimension_numbers<[1], [0], [0], [1], [0, 0, 1, 1], [], []>} : vector<384x128xf32>, vector<128x128xf32>, vector<384x128xf32> -> vector<384x128xf32>
    %c0_107 = arith.constant 0 : index
    %c0_108 = arith.constant 0 : index
    %179 = vector.load %arg12[%c0_107, %c0_108] : memref<384x128xf32, #tpu.memory_space<vmem>>, vector<384x128xf32>
    %180 = arith.addf %179, %178 : vector<384x128xf32>
    %c0_109 = arith.constant 0 : index
    %c0_110 = arith.constant 0 : index
    %181 = vector.load %arg12[%c0_109, %c0_110] : memref<384x128xf32, #tpu.memory_space<vmem>>, vector<384x128xf32>
    tpu.vector_store %arg12[%c0_109, %c0_110], %180 {strides = array<i32>} : memref<384x128xf32, #tpu.memory_space<vmem>>, vector<384x128xf32>,
    %c26 = arith.constant 26 : index
    %c0_111 = arith.constant 0 : index
    %182 = vector.load %arg10[%c26, %c0_111] : memref<456x128xf32, #tpu.memory_space<vmem>>, vector<384x128xf32>
    %c5 = arith.constant 5 : index
    %c0_112 = arith.constant 0 : index
    %c0_113 = arith.constant 0 : index
    %183 = vector.load %arg4[%c5, %c0_112, %c0_113] : memref<9x128x128xf32, #tpu.memory_space<vmem>>, vector<1x128x128xf32>
    %184 = vector.shape_cast %183 : vector<1x128x128xf32> to vector<128x128xf32>
    %cst_114 = arith.constant dense<0.000000e+00> : vector<384x128xf32>
    %185 = tpu.matmul %182, %184, %cst_114 {dimension_numbers = #tpu.dot_dimension_numbers<[1], [0], [0], [1], [0, 0, 1, 1], [], []>} : vector<384x128xf32>, vector<128x128xf32>, vector<384x128xf32> -> vector<384x128xf32>
    %c0_115 = arith.constant 0 : index
    %c0_116 = arith.constant 0 : index
    %186 = vector.load %arg12[%c0_115, %c0_116] : memref<384x128xf32, #tpu.memory_space<vmem>>, vector<384x128xf32>
    %187 = arith.addf %186, %185 : vector<384x128xf32>
    %c0_117 = arith.constant 0 : index
    %c0_118 = arith.constant 0 : index
    %188 = vector.load %arg12[%c0_117, %c0_118] : memref<384x128xf32, #tpu.memory_space<vmem>>, vector<384x128xf32>
    tpu.vector_store %arg12[%c0_117, %c0_118], %187 {strides = array<i32>} : memref<384x128xf32, #tpu.memory_space<vmem>>, vector<384x128xf32>,
    %c48_119 = arith.constant 48 : index
    %c0_120 = arith.constant 0 : index
    %189 = vector.load %arg10[%c48_119, %c0_120] : memref<456x128xf32, #tpu.memory_space<vmem>>, vector<384x128xf32>
    %c6 = arith.constant 6 : index
    %c0_121 = arith.constant 0 : index
    %c0_122 = arith.constant 0 : index
    %190 = vector.load %arg4[%c6, %c0_121, %c0_122] : memref<9x128x128xf32, #tpu.memory_space<vmem>>, vector<1x128x128xf32>
    %191 = vector.shape_cast %190 : vector<1x128x128xf32> to vector<128x128xf32>
    %cst_123 = arith.constant dense<0.000000e+00> : vector<384x128xf32>
    %192 = tpu.matmul %189, %191, %cst_123 {dimension_numbers = #tpu.dot_dimension_numbers<[1], [0], [0], [1], [0, 0, 1, 1], [], []>} : vector<384x128xf32>, vector<128x128xf32>, vector<384x128xf32> -> vector<384x128xf32>
    %c0_124 = arith.constant 0 : index
    %c0_125 = arith.constant 0 : index
    %193 = vector.load %arg12[%c0_124, %c0_125] : memref<384x128xf32, #tpu.memory_space<vmem>>, vector<384x128xf32>
    %194 = arith.addf %193, %192 : vector<384x128xf32>
    %c0_126 = arith.constant 0 : index
    %c0_127 = arith.constant 0 : index
    %195 = vector.load %arg12[%c0_126, %c0_127] : memref<384x128xf32, #tpu.memory_space<vmem>>, vector<384x128xf32>
    tpu.vector_store %arg12[%c0_126, %c0_127], %194 {strides = array<i32>} : memref<384x128xf32, #tpu.memory_space<vmem>>, vector<384x128xf32>,
    %c49_128 = arith.constant 49 : index
    %c0_129 = arith.constant 0 : index
    %196 = vector.load %arg10[%c49_128, %c0_129] : memref<456x128xf32, #tpu.memory_space<vmem>>, vector<384x128xf32>
    %c7 = arith.constant 7 : index
    %c0_130 = arith.constant 0 : index
    %c0_131 = arith.constant 0 : index
    %197 = vector.load %arg4[%c7, %c0_130, %c0_131] : memref<9x128x128xf32, #tpu.memory_space<vmem>>, vector<1x128x128xf32>
    %198 = vector.shape_cast %197 : vector<1x128x128xf32> to vector<128x128xf32>
    %cst_132 = arith.constant dense<0.000000e+00> : vector<384x128xf32>
    %199 = tpu.matmul %196, %198, %cst_132 {dimension_numbers = #tpu.dot_dimension_numbers<[1], [0], [0], [1], [0, 0, 1, 1], [], []>} : vector<384x128xf32>, vector<128x128xf32>, vector<384x128xf32> -> vector<384x128xf32>
    %c0_133 = arith.constant 0 : index
    %c0_134 = arith.constant 0 : index
    %200 = vector.load %arg12[%c0_133, %c0_134] : memref<384x128xf32, #tpu.memory_space<vmem>>, vector<384x128xf32>
    %201 = arith.addf %200, %199 : vector<384x128xf32>
    %c0_135 = arith.constant 0 : index
    %c0_136 = arith.constant 0 : index
    %202 = vector.load %arg12[%c0_135, %c0_136] : memref<384x128xf32, #tpu.memory_space<vmem>>, vector<384x128xf32>
    tpu.vector_store %arg12[%c0_135, %c0_136], %201 {strides = array<i32>} : memref<384x128xf32, #tpu.memory_space<vmem>>, vector<384x128xf32>,
    %c50 = arith.constant 50 : index
    %c0_137 = arith.constant 0 : index
    %203 = vector.load %arg10[%c50, %c0_137] : memref<456x128xf32, #tpu.memory_space<vmem>>, vector<384x128xf32>
    %c8 = arith.constant 8 : index
    %c0_138 = arith.constant 0 : index
    %c0_139 = arith.constant 0 : index
    %204 = vector.load %arg4[%c8, %c0_138, %c0_139] : memref<9x128x128xf32, #tpu.memory_space<vmem>>, vector<1x128x128xf32>
    %205 = vector.shape_cast %204 : vector<1x128x128xf32> to vector<128x128xf32>
    %cst_140 = arith.constant dense<0.000000e+00> : vector<384x128xf32>
    %206 = tpu.matmul %203, %205, %cst_140 {dimension_numbers = #tpu.dot_dimension_numbers<[1], [0], [0], [1], [0, 0, 1, 1], [], []>} : vector<384x128xf32>, vector<128x128xf32>, vector<384x128xf32> -> vector<384x128xf32>
    %c0_141 = arith.constant 0 : index
    %c0_142 = arith.constant 0 : index
    %207 = vector.load %arg12[%c0_141, %c0_142] : memref<384x128xf32, #tpu.memory_space<vmem>>, vector<384x128xf32>
    %208 = arith.addf %207, %206 : vector<384x128xf32>
    %c0_143 = arith.constant 0 : index
    %c0_144 = arith.constant 0 : index
    %209 = vector.load %arg12[%c0_143, %c0_144] : memref<384x128xf32, #tpu.memory_space<vmem>>, vector<384x128xf32>
    tpu.vector_store %arg12[%c0_143, %c0_144], %208 {strides = array<i32>} : memref<384x128xf32, #tpu.memory_space<vmem>>, vector<384x128xf32>,
    %c0_145 = arith.constant 0 : index
    %c0_146 = arith.constant 0 : index
    %210 = vector.load %arg5[%c0_145, %c0_146] : memref<1x128xf32, #tpu.memory_space<vmem>>, vector<1x128xf32>
    %c0_147 = arith.constant 0 : index
    %c0_148 = arith.constant 0 : index
    %211 = vector.load %arg6[%c0_147, %c0_148] : memref<1x128xf32, #tpu.memory_space<vmem>>, vector<1x128xf32>
    %c0_149 = arith.constant 0 : index
    %c0_150 = arith.constant 0 : index
    %212 = vector.load %arg12[%c0_149, %c0_150] : memref<384x128xf32, #tpu.memory_space<vmem>>, vector<16x128xf32>
    %213 = vector.broadcast %210 : vector<1x128xf32> to vector<16x128xf32>
    %214 = arith.mulf %212, %213 : vector<16x128xf32>
    %215 = vector.broadcast %211 : vector<1x128xf32> to vector<16x128xf32>
    %216 = arith.addf %214, %215 : vector<16x128xf32>
    %cst_151 = arith.constant 0.000000e+00 : f32
    %217 = vector.broadcast %cst_151 : f32 to vector<16x128xf32>
    %218 = arith.maximumf %216, %217 : vector<16x128xf32>
    %c25_152 = arith.constant 25 : index
    %c0_153 = arith.constant 0 : index
    %219 = vector.load %arg11[%c25_152, %c0_153] : memref<456x128xf32, #tpu.memory_space<vmem>>, vector<16x128xf32>
    tpu.vector_store %arg11[%c25_152, %c0_153], %218 {strides = array<i32>} : memref<456x128xf32, #tpu.memory_space<vmem>>, vector<16x128xf32>,
    %c24_154 = arith.constant 24 : index
    %c0_155 = arith.constant 0 : index
    %220 = vector.load %arg12[%c24_154, %c0_155] : memref<384x128xf32, #tpu.memory_space<vmem>>, vector<16x128xf32>
    %221 = vector.broadcast %210 : vector<1x128xf32> to vector<16x128xf32>
    %222 = arith.mulf %220, %221 : vector<16x128xf32>
    %223 = vector.broadcast %211 : vector<1x128xf32> to vector<16x128xf32>
    %224 = arith.addf %222, %223 : vector<16x128xf32>
    %cst_156 = arith.constant 0.000000e+00 : f32
    %225 = vector.broadcast %cst_156 : f32 to vector<16x128xf32>
    %226 = arith.maximumf %224, %225 : vector<16x128xf32>
    %c49_157 = arith.constant 49 : index
    %c0_158 = arith.constant 0 : index
    %227 = vector.load %arg11[%c49_157, %c0_158] : memref<456x128xf32, #tpu.memory_space<vmem>>, vector<16x128xf32>
    tpu.vector_store %arg11[%c49_157, %c0_158], %226 {strides = array<i32>} : memref<456x128xf32, #tpu.memory_space<vmem>>, vector<16x128xf32>,
    %c48_159 = arith.constant 48 : index
    %c0_160 = arith.constant 0 : index
    %228 = vector.load %arg12[%c48_159, %c0_160] : memref<384x128xf32, #tpu.memory_space<vmem>>, vector<16x128xf32>
    %229 = vector.broadcast %210 : vector<1x128xf32> to vector<16x128xf32>
    %230 = arith.mulf %228, %229 : vector<16x128xf32>
    %231 = vector.broadcast %211 : vector<1x128xf32> to vector<16x128xf32>
    %232 = arith.addf %230, %231 : vector<16x128xf32>
    %cst_161 = arith.constant 0.000000e+00 : f32
    %233 = vector.broadcast %cst_161 : f32 to vector<16x128xf32>
    %234 = arith.maximumf %232, %233 : vector<16x128xf32>
    %c73_162 = arith.constant 73 : index
    %c0_163 = arith.constant 0 : index
    %235 = vector.load %arg11[%c73_162, %c0_163] : memref<456x128xf32, #tpu.memory_space<vmem>>, vector<16x128xf32>
    tpu.vector_store %arg11[%c73_162, %c0_163], %234 {strides = array<i32>} : memref<456x128xf32, #tpu.memory_space<vmem>>, vector<16x128xf32>,
    %c72 = arith.constant 72 : index
    %c0_164 = arith.constant 0 : index
    %236 = vector.load %arg12[%c72, %c0_164] : memref<384x128xf32, #tpu.memory_space<vmem>>, vector<16x128xf32>
    %237 = vector.broadcast %210 : vector<1x128xf32> to vector<16x128xf32>
    %238 = arith.mulf %236, %237 : vector<16x128xf32>
    %239 = vector.broadcast %211 : vector<1x128xf32> to vector<16x128xf32>
    %240 = arith.addf %238, %239 : vector<16x128xf32>
    %cst_165 = arith.constant 0.000000e+00 : f32
    %241 = vector.broadcast %cst_165 : f32 to vector<16x128xf32>
    %242 = arith.maximumf %240, %241 : vector<16x128xf32>
    %c97_166 = arith.constant 97 : index
    %c0_167 = arith.constant 0 : index
    %243 = vector.load %arg11[%c97_166, %c0_167] : memref<456x128xf32, #tpu.memory_space<vmem>>, vector<16x128xf32>
    tpu.vector_store %arg11[%c97_166, %c0_167], %242 {strides = array<i32>} : memref<456x128xf32, #tpu.memory_space<vmem>>, vector<16x128xf32>,
    %c96_168 = arith.constant 96 : index
    %c0_169 = arith.constant 0 : index
    %244 = vector.load %arg12[%c96_168, %c0_169] : memref<384x128xf32, #tpu.memory_space<vmem>>, vector<16x128xf32>
    %245 = vector.broadcast %210 : vector<1x128xf32> to vector<16x128xf32>
    %246 = arith.mulf %244, %245 : vector<16x128xf32>
    %247 = vector.broadcast %211 : vector<1x128xf32> to vector<16x128xf32>
    %248 = arith.addf %246, %247 : vector<16x128xf32>
    %cst_170 = arith.constant 0.000000e+00 : f32
    %249 = vector.broadcast %cst_170 : f32 to vector<16x128xf32>
    %250 = arith.maximumf %248, %249 : vector<16x128xf32>
    %c121_171 = arith.constant 121 : index
    %c0_172 = arith.constant 0 : index
    %251 = vector.load %arg11[%c121_171, %c0_172] : memref<456x128xf32, #tpu.memory_space<vmem>>, vector<16x128xf32>
    tpu.vector_store %arg11[%c121_171, %c0_172], %250 {strides = array<i32>} : memref<456x128xf32, #tpu.memory_space<vmem>>, vector<16x128xf32>,
    %c120 = arith.constant 120 : index
    %c0_173 = arith.constant 0 : index
    %252 = vector.load %arg12[%c120, %c0_173] : memref<384x128xf32, #tpu.memory_space<vmem>>, vector<16x128xf32>
    %253 = vector.broadcast %210 : vector<1x128xf32> to vector<16x128xf32>
    %254 = arith.mulf %252, %253 : vector<16x128xf32>
    %255 = vector.broadcast %211 : vector<1x128xf32> to vector<16x128xf32>
    %256 = arith.addf %254, %255 : vector<16x128xf32>
    %cst_174 = arith.constant 0.000000e+00 : f32
    %257 = vector.broadcast %cst_174 : f32 to vector<16x128xf32>
    %258 = arith.maximumf %256, %257 : vector<16x128xf32>
    %c145_175 = arith.constant 145 : index
    %c0_176 = arith.constant 0 : index
    %259 = vector.load %arg11[%c145_175, %c0_176] : memref<456x128xf32, #tpu.memory_space<vmem>>, vector<16x128xf32>
    tpu.vector_store %arg11[%c145_175, %c0_176], %258 {strides = array<i32>} : memref<456x128xf32, #tpu.memory_space<vmem>>, vector<16x128xf32>,
    %c144_177 = arith.constant 144 : index
    %c0_178 = arith.constant 0 : index
    %260 = vector.load %arg12[%c144_177, %c0_178] : memref<384x128xf32, #tpu.memory_space<vmem>>, vector<16x128xf32>
    %261 = vector.broadcast %210 : vector<1x128xf32> to vector<16x128xf32>
    %262 = arith.mulf %260, %261 : vector<16x128xf32>
    %263 = vector.broadcast %211 : vector<1x128xf32> to vector<16x128xf32>
    %264 = arith.addf %262, %263 : vector<16x128xf32>
    %cst_179 = arith.constant 0.000000e+00 : f32
    %265 = vector.broadcast %cst_179 : f32 to vector<16x128xf32>
    %266 = arith.maximumf %264, %265 : vector<16x128xf32>
    %c169_180 = arith.constant 169 : index
    %c0_181 = arith.constant 0 : index
    %267 = vector.load %arg11[%c169_180, %c0_181] : memref<456x128xf32, #tpu.memory_space<vmem>>, vector<16x128xf32>
    tpu.vector_store %arg11[%c169_180, %c0_181], %266 {strides = array<i32>} : memref<456x128xf32, #tpu.memory_space<vmem>>, vector<16x128xf32>,
    %c168 = arith.constant 168 : index
    %c0_182 = arith.constant 0 : index
    %268 = vector.load %arg12[%c168, %c0_182] : memref<384x128xf32, #tpu.memory_space<vmem>>, vector<16x128xf32>
    %269 = vector.broadcast %210 : vector<1x128xf32> to vector<16x128xf32>
    %270 = arith.mulf %268, %269 : vector<16x128xf32>
    %271 = vector.broadcast %211 : vector<1x128xf32> to vector<16x128xf32>
    %272 = arith.addf %270, %271 : vector<16x128xf32>
    %cst_183 = arith.constant 0.000000e+00 : f32
    %273 = vector.broadcast %cst_183 : f32 to vector<16x128xf32>
    %274 = arith.maximumf %272, %273 : vector<16x128xf32>
    %c193_184 = arith.constant 193 : index
    %c0_185 = arith.constant 0 : index
    %275 = vector.load %arg11[%c193_184, %c0_185] : memref<456x128xf32, #tpu.memory_space<vmem>>, vector<16x128xf32>
    tpu.vector_store %arg11[%c193_184, %c0_185], %274 {strides = array<i32>} : memref<456x128xf32, #tpu.memory_space<vmem>>, vector<16x128xf32>,
    %c192_186 = arith.constant 192 : index
    %c0_187 = arith.constant 0 : index
    %276 = vector.load %arg12[%c192_186, %c0_187] : memref<384x128xf32, #tpu.memory_space<vmem>>, vector<16x128xf32>
    %277 = vector.broadcast %210 : vector<1x128xf32> to vector<16x128xf32>
    %278 = arith.mulf %276, %277 : vector<16x128xf32>
    %279 = vector.broadcast %211 : vector<1x128xf32> to vector<16x128xf32>
    %280 = arith.addf %278, %279 : vector<16x128xf32>
    %cst_188 = arith.constant 0.000000e+00 : f32
    %281 = vector.broadcast %cst_188 : f32 to vector<16x128xf32>
    %282 = arith.maximumf %280, %281 : vector<16x128xf32>
    %c217_189 = arith.constant 217 : index
    %c0_190 = arith.constant 0 : index
    %283 = vector.load %arg11[%c217_189, %c0_190] : memref<456x128xf32, #tpu.memory_space<vmem>>, vector<16x128xf32>
    tpu.vector_store %arg11[%c217_189, %c0_190], %282 {strides = array<i32>} : memref<456x128xf32, #tpu.memory_space<vmem>>, vector<16x128xf32>,
    %c216 = arith.constant 216 : index
    %c0_191 = arith.constant 0 : index
    %284 = vector.load %arg12[%c216, %c0_191] : memref<384x128xf32, #tpu.memory_space<vmem>>, vector<16x128xf32>
    %285 = vector.broadcast %210 : vector<1x128xf32> to vector<16x128xf32>
    %286 = arith.mulf %284, %285 : vector<16x128xf32>
    %287 = vector.broadcast %211 : vector<1x128xf32> to vector<16x128xf32>
    %288 = arith.addf %286, %287 : vector<16x128xf32>
    %cst_192 = arith.constant 0.000000e+00 : f32
    %289 = vector.broadcast %cst_192 : f32 to vector<16x128xf32>
    %290 = arith.maximumf %288, %289 : vector<16x128xf32>
    %c241_193 = arith.constant 241 : index
    %c0_194 = arith.constant 0 : index
    %291 = vector.load %arg11[%c241_193, %c0_194] : memref<456x128xf32, #tpu.memory_space<vmem>>, vector<16x128xf32>
    tpu.vector_store %arg11[%c241_193, %c0_194], %290 {strides = array<i32>} : memref<456x128xf32, #tpu.memory_space<vmem>>, vector<16x128xf32>,
    %c240_195 = arith.constant 240 : index
    %c0_196 = arith.constant 0 : index
    %292 = vector.load %arg12[%c240_195, %c0_196] : memref<384x128xf32, #tpu.memory_space<vmem>>, vector<16x128xf32>
    %293 = vector.broadcast %210 : vector<1x128xf32> to vector<16x128xf32>
    %294 = arith.mulf %292, %293 : vector<16x128xf32>
    %295 = vector.broadcast %211 : vector<1x128xf32> to vector<16x128xf32>
    %296 = arith.addf %294, %295 : vector<16x128xf32>
    %cst_197 = arith.constant 0.000000e+00 : f32
    %297 = vector.broadcast %cst_197 : f32 to vector<16x128xf32>
    %298 = arith.maximumf %296, %297 : vector<16x128xf32>
    %c265_198 = arith.constant 265 : index
    %c0_199 = arith.constant 0 : index
    %299 = vector.load %arg11[%c265_198, %c0_199] : memref<456x128xf32, #tpu.memory_space<vmem>>, vector<16x128xf32>
    tpu.vector_store %arg11[%c265_198, %c0_199], %298 {strides = array<i32>} : memref<456x128xf32, #tpu.memory_space<vmem>>, vector<16x128xf32>,
    %c264 = arith.constant 264 : index
    %c0_200 = arith.constant 0 : index
    %300 = vector.load %arg12[%c264, %c0_200] : memref<384x128xf32, #tpu.memory_space<vmem>>, vector<16x128xf32>
    %301 = vector.broadcast %210 : vector<1x128xf32> to vector<16x128xf32>
    %302 = arith.mulf %300, %301 : vector<16x128xf32>
    %303 = vector.broadcast %211 : vector<1x128xf32> to vector<16x128xf32>
    %304 = arith.addf %302, %303 : vector<16x128xf32>
    %cst_201 = arith.constant 0.000000e+00 : f32
    %305 = vector.broadcast %cst_201 : f32 to vector<16x128xf32>
    %306 = arith.maximumf %304, %305 : vector<16x128xf32>
    %c289_202 = arith.constant 289 : index
    %c0_203 = arith.constant 0 : index
    %307 = vector.load %arg11[%c289_202, %c0_203] : memref<456x128xf32, #tpu.memory_space<vmem>>, vector<16x128xf32>
    tpu.vector_store %arg11[%c289_202, %c0_203], %306 {strides = array<i32>} : memref<456x128xf32, #tpu.memory_space<vmem>>, vector<16x128xf32>,
    %c288 = arith.constant 288 : index
    %c0_204 = arith.constant 0 : index
    %308 = vector.load %arg12[%c288, %c0_204] : memref<384x128xf32, #tpu.memory_space<vmem>>, vector<16x128xf32>
    %309 = vector.broadcast %210 : vector<1x128xf32> to vector<16x128xf32>
    %310 = arith.mulf %308, %309 : vector<16x128xf32>
    %311 = vector.broadcast %211 : vector<1x128xf32> to vector<16x128xf32>
    %312 = arith.addf %310, %311 : vector<16x128xf32>
    %cst_205 = arith.constant 0.000000e+00 : f32
    %313 = vector.broadcast %cst_205 : f32 to vector<16x128xf32>
    %314 = arith.maximumf %312, %313 : vector<16x128xf32>
    %c313_206 = arith.constant 313 : index
    %c0_207 = arith.constant 0 : index
    %315 = vector.load %arg11[%c313_206, %c0_207] : memref<456x128xf32, #tpu.memory_space<vmem>>, vector<16x128xf32>
    tpu.vector_store %arg11[%c313_206, %c0_207], %314 {strides = array<i32>} : memref<456x128xf32, #tpu.memory_space<vmem>>, vector<16x128xf32>,
    %c312 = arith.constant 312 : index
    %c0_208 = arith.constant 0 : index
    %316 = vector.load %arg12[%c312, %c0_208] : memref<384x128xf32, #tpu.memory_space<vmem>>, vector<16x128xf32>
    %317 = vector.broadcast %210 : vector<1x128xf32> to vector<16x128xf32>
    %318 = arith.mulf %316, %317 : vector<16x128xf32>
    %319 = vector.broadcast %211 : vector<1x128xf32> to vector<16x128xf32>
    %320 = arith.addf %318, %319 : vector<16x128xf32>
    %cst_209 = arith.constant 0.000000e+00 : f32
    %321 = vector.broadcast %cst_209 : f32 to vector<16x128xf32>
    %322 = arith.maximumf %320, %321 : vector<16x128xf32>
    %c337_210 = arith.constant 337 : index
    %c0_211 = arith.constant 0 : index
    %323 = vector.load %arg11[%c337_210, %c0_211] : memref<456x128xf32, #tpu.memory_space<vmem>>, vector<16x128xf32>
    tpu.vector_store %arg11[%c337_210, %c0_211], %322 {strides = array<i32>} : memref<456x128xf32, #tpu.memory_space<vmem>>, vector<16x128xf32>,
    %c336 = arith.constant 336 : index
    %c0_212 = arith.constant 0 : index
    %324 = vector.load %arg12[%c336, %c0_212] : memref<384x128xf32, #tpu.memory_space<vmem>>, vector<16x128xf32>
    %325 = vector.broadcast %210 : vector<1x128xf32> to vector<16x128xf32>
    %326 = arith.mulf %324, %325 : vector<16x128xf32>
    %327 = vector.broadcast %211 : vector<1x128xf32> to vector<16x128xf32>
    %328 = arith.addf %326, %327 : vector<16x128xf32>
    %cst_213 = arith.constant 0.000000e+00 : f32
    %329 = vector.broadcast %cst_213 : f32 to vector<16x128xf32>
    %330 = arith.maximumf %328, %329 : vector<16x128xf32>
    %c361_214 = arith.constant 361 : index
    %c0_215 = arith.constant 0 : index
    %331 = vector.load %arg11[%c361_214, %c0_215] : memref<456x128xf32, #tpu.memory_space<vmem>>, vector<16x128xf32>
    tpu.vector_store %arg11[%c361_214, %c0_215], %330 {strides = array<i32>} : memref<456x128xf32, #tpu.memory_space<vmem>>, vector<16x128xf32>,
    %c360 = arith.constant 360 : index
    %c0_216 = arith.constant 0 : index
    %332 = vector.load %arg12[%c360, %c0_216] : memref<384x128xf32, #tpu.memory_space<vmem>>, vector<16x128xf32>
    %333 = vector.broadcast %210 : vector<1x128xf32> to vector<16x128xf32>
    %334 = arith.mulf %332, %333 : vector<16x128xf32>
    %335 = vector.broadcast %211 : vector<1x128xf32> to vector<16x128xf32>
    %336 = arith.addf %334, %335 : vector<16x128xf32>
    %cst_217 = arith.constant 0.000000e+00 : f32
    %337 = vector.broadcast %cst_217 : f32 to vector<16x128xf32>
    %338 = arith.maximumf %336, %337 : vector<16x128xf32>
    %c385_218 = arith.constant 385 : index
    %c0_219 = arith.constant 0 : index
    %339 = vector.load %arg11[%c385_218, %c0_219] : memref<456x128xf32, #tpu.memory_space<vmem>>, vector<16x128xf32>
    tpu.vector_store %arg11[%c385_218, %c0_219], %338 {strides = array<i32>} : memref<456x128xf32, #tpu.memory_space<vmem>>, vector<16x128xf32>,
    %c0_220 = arith.constant 0 : index
    %c0_221 = arith.constant 0 : index
    %340 = vector.load %arg11[%c0_220, %c0_221] : memref<456x128xf32, #tpu.memory_space<vmem>>, vector<384x128xf32>
    %c0_222 = arith.constant 0 : index
    %c0_223 = arith.constant 0 : index
    %c0_224 = arith.constant 0 : index
    %341 = vector.load %arg7[%c0_222, %c0_223, %c0_224] : memref<9x128x128xf32, #tpu.memory_space<vmem>>, vector<1x128x128xf32>
    %342 = vector.shape_cast %341 : vector<1x128x128xf32> to vector<128x128xf32>
    %cst_225 = arith.constant dense<0.000000e+00> : vector<384x128xf32>
    %343 = tpu.matmul %340, %342, %cst_225 {dimension_numbers = #tpu.dot_dimension_numbers<[1], [0], [0], [1], [0, 0, 1, 1], [], []>} : vector<384x128xf32>, vector<128x128xf32>, vector<384x128xf32> -> vector<384x128xf32>
    %c0_226 = arith.constant 0 : index
    %c0_227 = arith.constant 0 : index
    %344 = vector.load %arg12[%c0_226, %c0_227] : memref<384x128xf32, #tpu.memory_space<vmem>>, vector<384x128xf32>
    tpu.vector_store %arg12[%c0_226, %c0_227], %343 {strides = array<i32>} : memref<384x128xf32, #tpu.memory_space<vmem>>, vector<384x128xf32>,
    %c1_228 = arith.constant 1 : index
    %c0_229 = arith.constant 0 : index
    %345 = vector.load %arg11[%c1_228, %c0_229] : memref<456x128xf32, #tpu.memory_space<vmem>>, vector<384x128xf32>
    %c1_230 = arith.constant 1 : index
    %c0_231 = arith.constant 0 : index
    %c0_232 = arith.constant 0 : index
    %346 = vector.load %arg7[%c1_230, %c0_231, %c0_232] : memref<9x128x128xf32, #tpu.memory_space<vmem>>, vector<1x128x128xf32>
    %347 = vector.shape_cast %346 : vector<1x128x128xf32> to vector<128x128xf32>
    %cst_233 = arith.constant dense<0.000000e+00> : vector<384x128xf32>
    %348 = tpu.matmul %345, %347, %cst_233 {dimension_numbers = #tpu.dot_dimension_numbers<[1], [0], [0], [1], [0, 0, 1, 1], [], []>} : vector<384x128xf32>, vector<128x128xf32>, vector<384x128xf32> -> vector<384x128xf32>
    %c0_234 = arith.constant 0 : index
    %c0_235 = arith.constant 0 : index
    %349 = vector.load %arg12[%c0_234, %c0_235] : memref<384x128xf32, #tpu.memory_space<vmem>>, vector<384x128xf32>
    %350 = arith.addf %349, %348 : vector<384x128xf32>
    %c0_236 = arith.constant 0 : index
    %c0_237 = arith.constant 0 : index
    %351 = vector.load %arg12[%c0_236, %c0_237] : memref<384x128xf32, #tpu.memory_space<vmem>>, vector<384x128xf32>
    tpu.vector_store %arg12[%c0_236, %c0_237], %350 {strides = array<i32>} : memref<384x128xf32, #tpu.memory_space<vmem>>, vector<384x128xf32>,
    %c2_238 = arith.constant 2 : index
    %c0_239 = arith.constant 0 : index
    %352 = vector.load %arg11[%c2_238, %c0_239] : memref<456x128xf32, #tpu.memory_space<vmem>>, vector<384x128xf32>
    %c2_240 = arith.constant 2 : index
    %c0_241 = arith.constant 0 : index
    %c0_242 = arith.constant 0 : index
    %353 = vector.load %arg7[%c2_240, %c0_241, %c0_242] : memref<9x128x128xf32, #tpu.memory_space<vmem>>, vector<1x128x128xf32>
    %354 = vector.shape_cast %353 : vector<1x128x128xf32> to vector<128x128xf32>
    %cst_243 = arith.constant dense<0.000000e+00> : vector<384x128xf32>
    %355 = tpu.matmul %352, %354, %cst_243 {dimension_numbers = #tpu.dot_dimension_numbers<[1], [0], [0], [1], [0, 0, 1, 1], [], []>} : vector<384x128xf32>, vector<128x128xf32>, vector<384x128xf32> -> vector<384x128xf32>
    %c0_244 = arith.constant 0 : index
    %c0_245 = arith.constant 0 : index
    %356 = vector.load %arg12[%c0_244, %c0_245] : memref<384x128xf32, #tpu.memory_space<vmem>>, vector<384x128xf32>
    %357 = arith.addf %356, %355 : vector<384x128xf32>
    %c0_246 = arith.constant 0 : index
    %c0_247 = arith.constant 0 : index
    %358 = vector.load %arg12[%c0_246, %c0_247] : memref<384x128xf32, #tpu.memory_space<vmem>>, vector<384x128xf32>
    tpu.vector_store %arg12[%c0_246, %c0_247], %357 {strides = array<i32>} : memref<384x128xf32, #tpu.memory_space<vmem>>, vector<384x128xf32>,
    %c24_248 = arith.constant 24 : index
    %c0_249 = arith.constant 0 : index
    %359 = vector.load %arg11[%c24_248, %c0_249] : memref<456x128xf32, #tpu.memory_space<vmem>>, vector<384x128xf32>
    %c3_250 = arith.constant 3 : index
    %c0_251 = arith.constant 0 : index
    %c0_252 = arith.constant 0 : index
    %360 = vector.load %arg7[%c3_250, %c0_251, %c0_252] : memref<9x128x128xf32, #tpu.memory_space<vmem>>, vector<1x128x128xf32>
    %361 = vector.shape_cast %360 : vector<1x128x128xf32> to vector<128x128xf32>
    %cst_253 = arith.constant dense<0.000000e+00> : vector<384x128xf32>
    %362 = tpu.matmul %359, %361, %cst_253 {dimension_numbers = #tpu.dot_dimension_numbers<[1], [0], [0], [1], [0, 0, 1, 1], [], []>} : vector<384x128xf32>, vector<128x128xf32>, vector<384x128xf32> -> vector<384x128xf32>
    %c0_254 = arith.constant 0 : index
    %c0_255 = arith.constant 0 : index
    %363 = vector.load %arg12[%c0_254, %c0_255] : memref<384x128xf32, #tpu.memory_space<vmem>>, vector<384x128xf32>
    %364 = arith.addf %363, %362 : vector<384x128xf32>
    %c0_256 = arith.constant 0 : index
    %c0_257 = arith.constant 0 : index
    %365 = vector.load %arg12[%c0_256, %c0_257] : memref<384x128xf32, #tpu.memory_space<vmem>>, vector<384x128xf32>
    tpu.vector_store %arg12[%c0_256, %c0_257], %364 {strides = array<i32>} : memref<384x128xf32, #tpu.memory_space<vmem>>, vector<384x128xf32>,
    %c25_258 = arith.constant 25 : index
    %c0_259 = arith.constant 0 : index
    %366 = vector.load %arg11[%c25_258, %c0_259] : memref<456x128xf32, #tpu.memory_space<vmem>>, vector<384x128xf32>
    %c4_260 = arith.constant 4 : index
    %c0_261 = arith.constant 0 : index
    %c0_262 = arith.constant 0 : index
    %367 = vector.load %arg7[%c4_260, %c0_261, %c0_262] : memref<9x128x128xf32, #tpu.memory_space<vmem>>, vector<1x128x128xf32>
    %368 = vector.shape_cast %367 : vector<1x128x128xf32> to vector<128x128xf32>
    %cst_263 = arith.constant dense<0.000000e+00> : vector<384x128xf32>
    %369 = tpu.matmul %366, %368, %cst_263 {dimension_numbers = #tpu.dot_dimension_numbers<[1], [0], [0], [1], [0, 0, 1, 1], [], []>} : vector<384x128xf32>, vector<128x128xf32>, vector<384x128xf32> -> vector<384x128xf32>
    %c0_264 = arith.constant 0 : index
    %c0_265 = arith.constant 0 : index
    %370 = vector.load %arg12[%c0_264, %c0_265] : memref<384x128xf32, #tpu.memory_space<vmem>>, vector<384x128xf32>
    %371 = arith.addf %370, %369 : vector<384x128xf32>
    %c0_266 = arith.constant 0 : index
    %c0_267 = arith.constant 0 : index
    %372 = vector.load %arg12[%c0_266, %c0_267] : memref<384x128xf32, #tpu.memory_space<vmem>>, vector<384x128xf32>
    tpu.vector_store %arg12[%c0_266, %c0_267], %371 {strides = array<i32>} : memref<384x128xf32, #tpu.memory_space<vmem>>, vector<384x128xf32>,
    %c26_268 = arith.constant 26 : index
    %c0_269 = arith.constant 0 : index
    %373 = vector.load %arg11[%c26_268, %c0_269] : memref<456x128xf32, #tpu.memory_space<vmem>>, vector<384x128xf32>
    %c5_270 = arith.constant 5 : index
    %c0_271 = arith.constant 0 : index
    %c0_272 = arith.constant 0 : index
    %374 = vector.load %arg7[%c5_270, %c0_271, %c0_272] : memref<9x128x128xf32, #tpu.memory_space<vmem>>, vector<1x128x128xf32>
    %375 = vector.shape_cast %374 : vector<1x128x128xf32> to vector<128x128xf32>
    %cst_273 = arith.constant dense<0.000000e+00> : vector<384x128xf32>
    %376 = tpu.matmul %373, %375, %cst_273 {dimension_numbers = #tpu.dot_dimension_numbers<[1], [0], [0], [1], [0, 0, 1, 1], [], []>} : vector<384x128xf32>, vector<128x128xf32>, vector<384x128xf32> -> vector<384x128xf32>
    %c0_274 = arith.constant 0 : index
    %c0_275 = arith.constant 0 : index
    %377 = vector.load %arg12[%c0_274, %c0_275] : memref<384x128xf32, #tpu.memory_space<vmem>>, vector<384x128xf32>
    %378 = arith.addf %377, %376 : vector<384x128xf32>
    %c0_276 = arith.constant 0 : index
    %c0_277 = arith.constant 0 : index
    %379 = vector.load %arg12[%c0_276, %c0_277] : memref<384x128xf32, #tpu.memory_space<vmem>>, vector<384x128xf32>
    tpu.vector_store %arg12[%c0_276, %c0_277], %378 {strides = array<i32>} : memref<384x128xf32, #tpu.memory_space<vmem>>, vector<384x128xf32>,
    %c48_278 = arith.constant 48 : index
    %c0_279 = arith.constant 0 : index
    %380 = vector.load %arg11[%c48_278, %c0_279] : memref<456x128xf32, #tpu.memory_space<vmem>>, vector<384x128xf32>
    %c6_280 = arith.constant 6 : index
    %c0_281 = arith.constant 0 : index
    %c0_282 = arith.constant 0 : index
    %381 = vector.load %arg7[%c6_280, %c0_281, %c0_282] : memref<9x128x128xf32, #tpu.memory_space<vmem>>, vector<1x128x128xf32>
    %382 = vector.shape_cast %381 : vector<1x128x128xf32> to vector<128x128xf32>
    %cst_283 = arith.constant dense<0.000000e+00> : vector<384x128xf32>
    %383 = tpu.matmul %380, %382, %cst_283 {dimension_numbers = #tpu.dot_dimension_numbers<[1], [0], [0], [1], [0, 0, 1, 1], [], []>} : vector<384x128xf32>, vector<128x128xf32>, vector<384x128xf32> -> vector<384x128xf32>
    %c0_284 = arith.constant 0 : index
    %c0_285 = arith.constant 0 : index
    %384 = vector.load %arg12[%c0_284, %c0_285] : memref<384x128xf32, #tpu.memory_space<vmem>>, vector<384x128xf32>
    %385 = arith.addf %384, %383 : vector<384x128xf32>
    %c0_286 = arith.constant 0 : index
    %c0_287 = arith.constant 0 : index
    %386 = vector.load %arg12[%c0_286, %c0_287] : memref<384x128xf32, #tpu.memory_space<vmem>>, vector<384x128xf32>
    tpu.vector_store %arg12[%c0_286, %c0_287], %385 {strides = array<i32>} : memref<384x128xf32, #tpu.memory_space<vmem>>, vector<384x128xf32>,
    %c49_288 = arith.constant 49 : index
    %c0_289 = arith.constant 0 : index
    %387 = vector.load %arg11[%c49_288, %c0_289] : memref<456x128xf32, #tpu.memory_space<vmem>>, vector<384x128xf32>
    %c7_290 = arith.constant 7 : index
    %c0_291 = arith.constant 0 : index
    %c0_292 = arith.constant 0 : index
    %388 = vector.load %arg7[%c7_290, %c0_291, %c0_292] : memref<9x128x128xf32, #tpu.memory_space<vmem>>, vector<1x128x128xf32>
    %389 = vector.shape_cast %388 : vector<1x128x128xf32> to vector<128x128xf32>
    %cst_293 = arith.constant dense<0.000000e+00> : vector<384x128xf32>
    %390 = tpu.matmul %387, %389, %cst_293 {dimension_numbers = #tpu.dot_dimension_numbers<[1], [0], [0], [1], [0, 0, 1, 1], [], []>} : vector<384x128xf32>, vector<128x128xf32>, vector<384x128xf32> -> vector<384x128xf32>
    %c0_294 = arith.constant 0 : index
    %c0_295 = arith.constant 0 : index
    %391 = vector.load %arg12[%c0_294, %c0_295] : memref<384x128xf32, #tpu.memory_space<vmem>>, vector<384x128xf32>
    %392 = arith.addf %391, %390 : vector<384x128xf32>
    %c0_296 = arith.constant 0 : index
    %c0_297 = arith.constant 0 : index
    %393 = vector.load %arg12[%c0_296, %c0_297] : memref<384x128xf32, #tpu.memory_space<vmem>>, vector<384x128xf32>
    tpu.vector_store %arg12[%c0_296, %c0_297], %392 {strides = array<i32>} : memref<384x128xf32, #tpu.memory_space<vmem>>, vector<384x128xf32>,
    %c50_298 = arith.constant 50 : index
    %c0_299 = arith.constant 0 : index
    %394 = vector.load %arg11[%c50_298, %c0_299] : memref<456x128xf32, #tpu.memory_space<vmem>>, vector<384x128xf32>
    %c8_300 = arith.constant 8 : index
    %c0_301 = arith.constant 0 : index
    %c0_302 = arith.constant 0 : index
    %395 = vector.load %arg7[%c8_300, %c0_301, %c0_302] : memref<9x128x128xf32, #tpu.memory_space<vmem>>, vector<1x128x128xf32>
    %396 = vector.shape_cast %395 : vector<1x128x128xf32> to vector<128x128xf32>
    %cst_303 = arith.constant dense<0.000000e+00> : vector<384x128xf32>
    %397 = tpu.matmul %394, %396, %cst_303 {dimension_numbers = #tpu.dot_dimension_numbers<[1], [0], [0], [1], [0, 0, 1, 1], [], []>} : vector<384x128xf32>, vector<128x128xf32>, vector<384x128xf32> -> vector<384x128xf32>
    %c0_304 = arith.constant 0 : index
    %c0_305 = arith.constant 0 : index
    %398 = vector.load %arg12[%c0_304, %c0_305] : memref<384x128xf32, #tpu.memory_space<vmem>>, vector<384x128xf32>
    %399 = arith.addf %398, %397 : vector<384x128xf32>
    %c0_306 = arith.constant 0 : index
    %c0_307 = arith.constant 0 : index
    %400 = vector.load %arg12[%c0_306, %c0_307] : memref<384x128xf32, #tpu.memory_space<vmem>>, vector<384x128xf32>
    tpu.vector_store %arg12[%c0_306, %c0_307], %399 {strides = array<i32>} : memref<384x128xf32, #tpu.memory_space<vmem>>, vector<384x128xf32>,
    %c0_308 = arith.constant 0 : index
    %c0_309 = arith.constant 0 : index
    %401 = vector.load %arg8[%c0_308, %c0_309] : memref<1x128xf32, #tpu.memory_space<vmem>>, vector<1x128xf32>
    %c0_310 = arith.constant 0 : index
    %c0_311 = arith.constant 0 : index
    %402 = vector.load %arg12[%c0_310, %c0_311] : memref<384x128xf32, #tpu.memory_space<vmem>>, vector<16x128xf32>
    %403 = vector.broadcast %401 : vector<1x128xf32> to vector<16x128xf32>
    %404 = arith.addf %402, %403 : vector<16x128xf32>
    %c0_312 = arith.constant 0 : index
    %c0_313 = arith.constant 0 : index
    %c0_314 = arith.constant 0 : index
    %405 = vector.load %arg9[%c0_312, %c0_313, %c0_314] : memref<1x256x128xf32, #tpu.memory_space<vmem>>, vector<1x16x128xf32>
    %406 = vector.shape_cast %405 : vector<1x16x128xf32> to vector<16x128xf32>
    %407 = vector.shape_cast %404 : vector<16x128xf32> to vector<1x16x128xf32>
    tpu.vector_store %arg9[%c0_312, %c0_313, %c0_314], %407 {strides = array<i32>} : memref<1x256x128xf32, #tpu.memory_space<vmem>>, vector<1x16x128xf32>,
    %c24_315 = arith.constant 24 : index
    %c0_316 = arith.constant 0 : index
    %408 = vector.load %arg12[%c24_315, %c0_316] : memref<384x128xf32, #tpu.memory_space<vmem>>, vector<16x128xf32>
    %409 = vector.broadcast %401 : vector<1x128xf32> to vector<16x128xf32>
    %410 = arith.addf %408, %409 : vector<16x128xf32>
    %c0_317 = arith.constant 0 : index
    %c16_318 = arith.constant 16 : index
    %c0_319 = arith.constant 0 : index
    %411 = vector.load %arg9[%c0_317, %c16_318, %c0_319] : memref<1x256x128xf32, #tpu.memory_space<vmem>>, vector<1x16x128xf32>
    %412 = vector.shape_cast %411 : vector<1x16x128xf32> to vector<16x128xf32>
    %413 = vector.shape_cast %410 : vector<16x128xf32> to vector<1x16x128xf32>
    tpu.vector_store %arg9[%c0_317, %c16_318, %c0_319], %413 {strides = array<i32>} : memref<1x256x128xf32, #tpu.memory_space<vmem>>, vector<1x16x128xf32>,
    %c48_320 = arith.constant 48 : index
    %c0_321 = arith.constant 0 : index
    %414 = vector.load %arg12[%c48_320, %c0_321] : memref<384x128xf32, #tpu.memory_space<vmem>>, vector<16x128xf32>
    %415 = vector.broadcast %401 : vector<1x128xf32> to vector<16x128xf32>
    %416 = arith.addf %414, %415 : vector<16x128xf32>
    %c0_322 = arith.constant 0 : index
    %c32_323 = arith.constant 32 : index
    %c0_324 = arith.constant 0 : index
    %417 = vector.load %arg9[%c0_322, %c32_323, %c0_324] : memref<1x256x128xf32, #tpu.memory_space<vmem>>, vector<1x16x128xf32>
    %418 = vector.shape_cast %417 : vector<1x16x128xf32> to vector<16x128xf32>
    %419 = vector.shape_cast %416 : vector<16x128xf32> to vector<1x16x128xf32>
    tpu.vector_store %arg9[%c0_322, %c32_323, %c0_324], %419 {strides = array<i32>} : memref<1x256x128xf32, #tpu.memory_space<vmem>>, vector<1x16x128xf32>,
    %c72_325 = arith.constant 72 : index
    %c0_326 = arith.constant 0 : index
    %420 = vector.load %arg12[%c72_325, %c0_326] : memref<384x128xf32, #tpu.memory_space<vmem>>, vector<16x128xf32>
    %421 = vector.broadcast %401 : vector<1x128xf32> to vector<16x128xf32>
    %422 = arith.addf %420, %421 : vector<16x128xf32>
    %c0_327 = arith.constant 0 : index
    %c48_328 = arith.constant 48 : index
    %c0_329 = arith.constant 0 : index
    %423 = vector.load %arg9[%c0_327, %c48_328, %c0_329] : memref<1x256x128xf32, #tpu.memory_space<vmem>>, vector<1x16x128xf32>
    %424 = vector.shape_cast %423 : vector<1x16x128xf32> to vector<16x128xf32>
    %425 = vector.shape_cast %422 : vector<16x128xf32> to vector<1x16x128xf32>
    tpu.vector_store %arg9[%c0_327, %c48_328, %c0_329], %425 {strides = array<i32>} : memref<1x256x128xf32, #tpu.memory_space<vmem>>, vector<1x16x128xf32>,
    %c96_330 = arith.constant 96 : index
    %c0_331 = arith.constant 0 : index
    %426 = vector.load %arg12[%c96_330, %c0_331] : memref<384x128xf32, #tpu.memory_space<vmem>>, vector<16x128xf32>
    %427 = vector.broadcast %401 : vector<1x128xf32> to vector<16x128xf32>
    %428 = arith.addf %426, %427 : vector<16x128xf32>
    %c0_332 = arith.constant 0 : index
    %c64_333 = arith.constant 64 : index
    %c0_334 = arith.constant 0 : index
    %429 = vector.load %arg9[%c0_332, %c64_333, %c0_334] : memref<1x256x128xf32, #tpu.memory_space<vmem>>, vector<1x16x128xf32>
    %430 = vector.shape_cast %429 : vector<1x16x128xf32> to vector<16x128xf32>
    %431 = vector.shape_cast %428 : vector<16x128xf32> to vector<1x16x128xf32>
    tpu.vector_store %arg9[%c0_332, %c64_333, %c0_334], %431 {strides = array<i32>} : memref<1x256x128xf32, #tpu.memory_space<vmem>>, vector<1x16x128xf32>,
    %c120_335 = arith.constant 120 : index
    %c0_336 = arith.constant 0 : index
    %432 = vector.load %arg12[%c120_335, %c0_336] : memref<384x128xf32, #tpu.memory_space<vmem>>, vector<16x128xf32>
    %433 = vector.broadcast %401 : vector<1x128xf32> to vector<16x128xf32>
    %434 = arith.addf %432, %433 : vector<16x128xf32>
    %c0_337 = arith.constant 0 : index
    %c80_338 = arith.constant 80 : index
    %c0_339 = arith.constant 0 : index
    %435 = vector.load %arg9[%c0_337, %c80_338, %c0_339] : memref<1x256x128xf32, #tpu.memory_space<vmem>>, vector<1x16x128xf32>
    %436 = vector.shape_cast %435 : vector<1x16x128xf32> to vector<16x128xf32>
    %437 = vector.shape_cast %434 : vector<16x128xf32> to vector<1x16x128xf32>
    tpu.vector_store %arg9[%c0_337, %c80_338, %c0_339], %437 {strides = array<i32>} : memref<1x256x128xf32, #tpu.memory_space<vmem>>, vector<1x16x128xf32>,
    %c144_340 = arith.constant 144 : index
    %c0_341 = arith.constant 0 : index
    %438 = vector.load %arg12[%c144_340, %c0_341] : memref<384x128xf32, #tpu.memory_space<vmem>>, vector<16x128xf32>
    %439 = vector.broadcast %401 : vector<1x128xf32> to vector<16x128xf32>
    %440 = arith.addf %438, %439 : vector<16x128xf32>
    %c0_342 = arith.constant 0 : index
    %c96_343 = arith.constant 96 : index
    %c0_344 = arith.constant 0 : index
    %441 = vector.load %arg9[%c0_342, %c96_343, %c0_344] : memref<1x256x128xf32, #tpu.memory_space<vmem>>, vector<1x16x128xf32>
    %442 = vector.shape_cast %441 : vector<1x16x128xf32> to vector<16x128xf32>
    %443 = vector.shape_cast %440 : vector<16x128xf32> to vector<1x16x128xf32>
    tpu.vector_store %arg9[%c0_342, %c96_343, %c0_344], %443 {strides = array<i32>} : memref<1x256x128xf32, #tpu.memory_space<vmem>>, vector<1x16x128xf32>,
    %c168_345 = arith.constant 168 : index
    %c0_346 = arith.constant 0 : index
    %444 = vector.load %arg12[%c168_345, %c0_346] : memref<384x128xf32, #tpu.memory_space<vmem>>, vector<16x128xf32>
    %445 = vector.broadcast %401 : vector<1x128xf32> to vector<16x128xf32>
    %446 = arith.addf %444, %445 : vector<16x128xf32>
    %c0_347 = arith.constant 0 : index
    %c112_348 = arith.constant 112 : index
    %c0_349 = arith.constant 0 : index
    %447 = vector.load %arg9[%c0_347, %c112_348, %c0_349] : memref<1x256x128xf32, #tpu.memory_space<vmem>>, vector<1x16x128xf32>
    %448 = vector.shape_cast %447 : vector<1x16x128xf32> to vector<16x128xf32>
    %449 = vector.shape_cast %446 : vector<16x128xf32> to vector<1x16x128xf32>
    tpu.vector_store %arg9[%c0_347, %c112_348, %c0_349], %449 {strides = array<i32>} : memref<1x256x128xf32, #tpu.memory_space<vmem>>, vector<1x16x128xf32>,
    %c192_350 = arith.constant 192 : index
    %c0_351 = arith.constant 0 : index
    %450 = vector.load %arg12[%c192_350, %c0_351] : memref<384x128xf32, #tpu.memory_space<vmem>>, vector<16x128xf32>
    %451 = vector.broadcast %401 : vector<1x128xf32> to vector<16x128xf32>
    %452 = arith.addf %450, %451 : vector<16x128xf32>
    %c0_352 = arith.constant 0 : index
    %c128_353 = arith.constant 128 : index
    %c0_354 = arith.constant 0 : index
    %453 = vector.load %arg9[%c0_352, %c128_353, %c0_354] : memref<1x256x128xf32, #tpu.memory_space<vmem>>, vector<1x16x128xf32>
    %454 = vector.shape_cast %453 : vector<1x16x128xf32> to vector<16x128xf32>
    %455 = vector.shape_cast %452 : vector<16x128xf32> to vector<1x16x128xf32>
    tpu.vector_store %arg9[%c0_352, %c128_353, %c0_354], %455 {strides = array<i32>} : memref<1x256x128xf32, #tpu.memory_space<vmem>>, vector<1x16x128xf32>,
    %c216_355 = arith.constant 216 : index
    %c0_356 = arith.constant 0 : index
    %456 = vector.load %arg12[%c216_355, %c0_356] : memref<384x128xf32, #tpu.memory_space<vmem>>, vector<16x128xf32>
    %457 = vector.broadcast %401 : vector<1x128xf32> to vector<16x128xf32>
    %458 = arith.addf %456, %457 : vector<16x128xf32>
    %c0_357 = arith.constant 0 : index
    %c144_358 = arith.constant 144 : index
    %c0_359 = arith.constant 0 : index
    %459 = vector.load %arg9[%c0_357, %c144_358, %c0_359] : memref<1x256x128xf32, #tpu.memory_space<vmem>>, vector<1x16x128xf32>
    %460 = vector.shape_cast %459 : vector<1x16x128xf32> to vector<16x128xf32>
    %461 = vector.shape_cast %458 : vector<16x128xf32> to vector<1x16x128xf32>
    tpu.vector_store %arg9[%c0_357, %c144_358, %c0_359], %461 {strides = array<i32>} : memref<1x256x128xf32, #tpu.memory_space<vmem>>, vector<1x16x128xf32>,
    %c240_360 = arith.constant 240 : index
    %c0_361 = arith.constant 0 : index
    %462 = vector.load %arg12[%c240_360, %c0_361] : memref<384x128xf32, #tpu.memory_space<vmem>>, vector<16x128xf32>
    %463 = vector.broadcast %401 : vector<1x128xf32> to vector<16x128xf32>
    %464 = arith.addf %462, %463 : vector<16x128xf32>
    %c0_362 = arith.constant 0 : index
    %c160_363 = arith.constant 160 : index
    %c0_364 = arith.constant 0 : index
    %465 = vector.load %arg9[%c0_362, %c160_363, %c0_364] : memref<1x256x128xf32, #tpu.memory_space<vmem>>, vector<1x16x128xf32>
    %466 = vector.shape_cast %465 : vector<1x16x128xf32> to vector<16x128xf32>
    %467 = vector.shape_cast %464 : vector<16x128xf32> to vector<1x16x128xf32>
    tpu.vector_store %arg9[%c0_362, %c160_363, %c0_364], %467 {strides = array<i32>} : memref<1x256x128xf32, #tpu.memory_space<vmem>>, vector<1x16x128xf32>,
    %c264_365 = arith.constant 264 : index
    %c0_366 = arith.constant 0 : index
    %468 = vector.load %arg12[%c264_365, %c0_366] : memref<384x128xf32, #tpu.memory_space<vmem>>, vector<16x128xf32>
    %469 = vector.broadcast %401 : vector<1x128xf32> to vector<16x128xf32>
    %470 = arith.addf %468, %469 : vector<16x128xf32>
    %c0_367 = arith.constant 0 : index
    %c176_368 = arith.constant 176 : index
    %c0_369 = arith.constant 0 : index
    %471 = vector.load %arg9[%c0_367, %c176_368, %c0_369] : memref<1x256x128xf32, #tpu.memory_space<vmem>>, vector<1x16x128xf32>
    %472 = vector.shape_cast %471 : vector<1x16x128xf32> to vector<16x128xf32>
    %473 = vector.shape_cast %470 : vector<16x128xf32> to vector<1x16x128xf32>
    tpu.vector_store %arg9[%c0_367, %c176_368, %c0_369], %473 {strides = array<i32>} : memref<1x256x128xf32, #tpu.memory_space<vmem>>, vector<1x16x128xf32>,
    %c288_370 = arith.constant 288 : index
    %c0_371 = arith.constant 0 : index
    %474 = vector.load %arg12[%c288_370, %c0_371] : memref<384x128xf32, #tpu.memory_space<vmem>>, vector<16x128xf32>
    %475 = vector.broadcast %401 : vector<1x128xf32> to vector<16x128xf32>
    %476 = arith.addf %474, %475 : vector<16x128xf32>
    %c0_372 = arith.constant 0 : index
    %c192_373 = arith.constant 192 : index
    %c0_374 = arith.constant 0 : index
    %477 = vector.load %arg9[%c0_372, %c192_373, %c0_374] : memref<1x256x128xf32, #tpu.memory_space<vmem>>, vector<1x16x128xf32>
    %478 = vector.shape_cast %477 : vector<1x16x128xf32> to vector<16x128xf32>
    %479 = vector.shape_cast %476 : vector<16x128xf32> to vector<1x16x128xf32>
    tpu.vector_store %arg9[%c0_372, %c192_373, %c0_374], %479 {strides = array<i32>} : memref<1x256x128xf32, #tpu.memory_space<vmem>>, vector<1x16x128xf32>,
    %c312_375 = arith.constant 312 : index
    %c0_376 = arith.constant 0 : index
    %480 = vector.load %arg12[%c312_375, %c0_376] : memref<384x128xf32, #tpu.memory_space<vmem>>, vector<16x128xf32>
    %481 = vector.broadcast %401 : vector<1x128xf32> to vector<16x128xf32>
    %482 = arith.addf %480, %481 : vector<16x128xf32>
    %c0_377 = arith.constant 0 : index
    %c208_378 = arith.constant 208 : index
    %c0_379 = arith.constant 0 : index
    %483 = vector.load %arg9[%c0_377, %c208_378, %c0_379] : memref<1x256x128xf32, #tpu.memory_space<vmem>>, vector<1x16x128xf32>
    %484 = vector.shape_cast %483 : vector<1x16x128xf32> to vector<16x128xf32>
    %485 = vector.shape_cast %482 : vector<16x128xf32> to vector<1x16x128xf32>
    tpu.vector_store %arg9[%c0_377, %c208_378, %c0_379], %485 {strides = array<i32>} : memref<1x256x128xf32, #tpu.memory_space<vmem>>, vector<1x16x128xf32>,
    %c336_380 = arith.constant 336 : index
    %c0_381 = arith.constant 0 : index
    %486 = vector.load %arg12[%c336_380, %c0_381] : memref<384x128xf32, #tpu.memory_space<vmem>>, vector<16x128xf32>
    %487 = vector.broadcast %401 : vector<1x128xf32> to vector<16x128xf32>
    %488 = arith.addf %486, %487 : vector<16x128xf32>
    %c0_382 = arith.constant 0 : index
    %c224_383 = arith.constant 224 : index
    %c0_384 = arith.constant 0 : index
    %489 = vector.load %arg9[%c0_382, %c224_383, %c0_384] : memref<1x256x128xf32, #tpu.memory_space<vmem>>, vector<1x16x128xf32>
    %490 = vector.shape_cast %489 : vector<1x16x128xf32> to vector<16x128xf32>
    %491 = vector.shape_cast %488 : vector<16x128xf32> to vector<1x16x128xf32>
    tpu.vector_store %arg9[%c0_382, %c224_383, %c0_384], %491 {strides = array<i32>} : memref<1x256x128xf32, #tpu.memory_space<vmem>>, vector<1x16x128xf32>,
    %c360_385 = arith.constant 360 : index
    %c0_386 = arith.constant 0 : index
    %492 = vector.load %arg12[%c360_385, %c0_386] : memref<384x128xf32, #tpu.memory_space<vmem>>, vector<16x128xf32>
    %493 = vector.broadcast %401 : vector<1x128xf32> to vector<16x128xf32>
    %494 = arith.addf %492, %493 : vector<16x128xf32>
    %c0_387 = arith.constant 0 : index
    %c240_388 = arith.constant 240 : index
    %c0_389 = arith.constant 0 : index
    %495 = vector.load %arg9[%c0_387, %c240_388, %c0_389] : memref<1x256x128xf32, #tpu.memory_space<vmem>>, vector<1x16x128xf32>
    %496 = vector.shape_cast %495 : vector<1x16x128xf32> to vector<16x128xf32>
    %497 = vector.shape_cast %494 : vector<16x128xf32> to vector<1x16x128xf32>
    tpu.vector_store %arg9[%c0_387, %c240_388, %c0_389], %497 {strides = array<i32>} : memref<1x256x128xf32, #tpu.memory_space<vmem>>, vector<1x16x128xf32>,
    return
  }
  func.func @transform_0(%arg0: i32) -> (i32, i32, i32) {
    %c0_i32 = arith.constant 0 : i32
    %c0_i32_0 = arith.constant 0 : i32
    %c0_i32_1 = arith.constant 0 : i32
    return %arg0, %c0_i32, %c0_i32_0 : i32, i32, i32
  }
  func.func @transform_1(%arg0: i32) -> (i32, i32) {
    %c0_i32 = arith.constant 0 : i32
    %c0_i32_0 = arith.constant 0 : i32
    %c0_i32_1 = arith.constant 0 : i32
    return %c0_i32, %c0_i32_0 : i32, i32
  }
  func.func @transform_2(%arg0: i32) -> (i32, i32) {
    %c0_i32 = arith.constant 0 : i32
    %c0_i32_0 = arith.constant 0 : i32
    %c0_i32_1 = arith.constant 0 : i32
    return %c0_i32, %c0_i32_0 : i32, i32
  }
  func.func @transform_3(%arg0: i32) -> (i32, i32, i32) {
    %c0_i32 = arith.constant 0 : i32
    %c0_i32_0 = arith.constant 0 : i32
    %c0_i32_1 = arith.constant 0 : i32
    %c0_i32_2 = arith.constant 0 : i32
    return %c0_i32, %c0_i32_0, %c0_i32_1 : i32, i32, i32
  }
  func.func @transform_4(%arg0: i32) -> (i32, i32) {
    %c0_i32 = arith.constant 0 : i32
    %c0_i32_0 = arith.constant 0 : i32
    %c0_i32_1 = arith.constant 0 : i32
    return %c0_i32, %c0_i32_0 : i32, i32
  }
  func.func @transform_5(%arg0: i32) -> (i32, i32) {
    %c0_i32 = arith.constant 0 : i32
    %c0_i32_0 = arith.constant 0 : i32
    %c0_i32_1 = arith.constant 0 : i32
    return %c0_i32, %c0_i32_0 : i32, i32
  }
  func.func @transform_6(%arg0: i32) -> (i32, i32, i32) {
    %c0_i32 = arith.constant 0 : i32
    %c0_i32_0 = arith.constant 0 : i32
    %c0_i32_1 = arith.constant 0 : i32
    %c0_i32_2 = arith.constant 0 : i32
    return %c0_i32, %c0_i32_0, %c0_i32_1 : i32, i32, i32
  }
  func.func @transform_7(%arg0: i32) -> (i32, i32) {
    %c0_i32 = arith.constant 0 : i32
    %c0_i32_0 = arith.constant 0 : i32
    %c0_i32_1 = arith.constant 0 : i32
    return %c0_i32, %c0_i32_0 : i32, i32
  }
  func.func @transform_8(%arg0: i32) -> (i32, i32, i32) {
    %c0_i32 = arith.constant 0 : i32
    %c0_i32_0 = arith.constant 0 : i32
    %c0_i32_1 = arith.constant 0 : i32
    return %arg0, %c0_i32, %c0_i32_0 : i32, i32, i32
  }
}

</mosaic_0001>

<bundles_post_ra>
// kernel: conv_block_forward.1
= control target key start
LH: loop header
LB: loop body
LE: loop exit
PB: predicated region body
PF: predicated region fallthrough
CT: control target
= control target key end

     0   :  { %s7755_s27 = smov 0   ;;  %s10418_s0 = inlined_call_operand.vmem [shape: f32[2,256,128], index: 0, kind: input, shape index: {}]   ;;  %s10419_s1 = inlined_call_operand.vmem [shape: f32[1,128], index: 1, kind: input, shape index: {}]   ;;  %s10420_s2 = inlined_call_operand.vmem [shape: f32[1,128], index: 2, kind: input, shape index: {}]   ;;  %s10421_s3 = inlined_call_operand.vmem [shape: f32[9,128,128], index: 3, kind: input, shape index: {}]   ;;  %s10422_s4 = inlined_call_operand.vmem [shape: f32[1,128], index: 4, kind: input, shape index: {}]   ;;  %s10423_s5 = inlined_call_operand.vmem [shape: f32[1,128], index: 5, kind: input, shape index: {}]   ;;  %s10424_s6 = inlined_call_operand.vmem [shape: f32[9,128,128], index: 6, kind: input, shape index: {}]   ;;  %s10425_s7 = inlined_call_operand.vmem [shape: f32[1,128], index: 7, kind: input, shape index: {}]   ;;  %s10426_s8 = inlined_call_operand.vmem [shape: f32[2,256,128], index: 8, kind: output, shape index: {}]  }
   0x1 LB: > { %s7381_s28 = sadd.s32 4294967295, %s7707_s27   ;;  %p7385_p0 = scmp.ge.s32.totalorder %s7707_s27, 1  ;;  %s7707_s27 = sphi %s7755_s27, %s18_s27  }
   0x2   : > { %p262_p1 = scmp.lt.s32.totalorder %s7707_s27, 3 }
   0x4   : > { %p263_p2 = pnand %p7385_p0, %p262_p1 }
   0x6   : > { %266 = sbr.rel (%p263_p2) target bundleno = 2138 (0x85a), region = 52 }
   0xb   : > { %p296_p3 = scmp.lt.s32.totalorder %s7381_s28, 1  ;;  %p7390_p4 = scmp.ne.s32.totalorder %s7381_s28, 0 }
   0xd   : > { %s297_s29 = scalar_select %p296_p3, %s7381_s28, 1 }
   0xe   : > { %309 = sbr.rel (%p7390_p4) target bundleno = 130 (0x82), region = 56 }
   0xf   : > { %s7649_s30 = sshll.u32 %s297_s29, 8 }
  0x10   : > { %s7766_s11 = scalar_lea.vmem %s10418_s0, %s7649_s30  ;;  %s7771_s14 = scalar_lea.vmem %s10426_s8, %s7649_s30 }
  0x13   : > { %v7709_v0 = vmov 0.0  }
  0x14   : > { %310 = vst [vmem:[#allocation2] sm:$0xff] %v7709_v0 }
  0x15   : > { %311 = vst [vmem:[#allocation2 + $0x8] sm:$0xff] %v7709_v0 }
  0x16   : > { %312 = vst [vmem:[#allocation2 + $0x10] sm:$0xff] %v7709_v0 }
  0x17   : > { %313 = vst [vmem:[#allocation2 + $0x18] sm:$0xff] %v7709_v0 }
  0x18   : > { %314 = vst [vmem:[#allocation2 + $0x20] sm:$0xff] %v7709_v0 }
  0x19   : > { %315 = vst [vmem:[#allocation2 + $0x28] sm:$0xff] %v7709_v0 }
  0x1a   : > { %316 = vst [vmem:[#allocation2 + $0x30] sm:$0xff] %v7709_v0 }
  0x1b   : > { %317 = vst [vmem:[#allocation2 + $0x38] sm:$0xff] %v7709_v0 }
  0x1c   : > { %318 = vst [vmem:[#allocation2 + $0x40] sm:$0xff] %v7709_v0 }
  0x1d   : > { %319 = vst [vmem:[#allocation2 + $0x48] sm:$0xff] %v7709_v0 }
  0x1e   : > { %320 = vst [vmem:[#allocation2 + $0x50] sm:$0xff] %v7709_v0 }
  0x1f   : > { %321 = vst [vmem:[#allocation2 + $0x58] sm:$0xff] %v7709_v0 }
  0x20   : > { %322 = vst [vmem:[#allocation2 + $0x60] sm:$0xff] %v7709_v0 }
  0x21   : > { %323 = vst [vmem:[#allocation2 + $0x68] sm:$0xff] %v7709_v0 }
  0x22   : > { %324 = vst [vmem:[#allocation2 + $0x70] sm:$0xff] %v7709_v0 }
  0x23   : > { %325 = vst [vmem:[#allocation2 + $0x78] sm:$0xff] %v7709_v0 }
  0x24   : > { %326 = vst [vmem:[#allocation2 + $0x80] sm:$0xff] %v7709_v0 }
  0x25   : > { %327 = vst [vmem:[#allocation2 + $0x88] sm:$0xff] %v7709_v0 }
  0x26   : > { %328 = vst [vmem:[#allocation2 + $0x90] sm:$0xff] %v7709_v0 }
  0x27   : > { %329 = vst [vmem:[#allocation2 + $0x98] sm:$0xff] %v7709_v0 }
  0x28   : > { %330 = vst [vmem:[#allocation2 + $0xa0] sm:$0xff] %v7709_v0 }
  0x29   : > { %331 = vst [vmem:[#allocation2 + $0xa8] sm:$0xff] %v7709_v0 }
  0x2a   : > { %332 = vst [vmem:[#allocation2 + $0xb0] sm:$0xff] %v7709_v0 }
  0x2b   : > { %333 = vst [vmem:[#allocation2 + $0xb8] sm:$0xff] %v7709_v0 }
  0x2c   : > { %334 = vst [vmem:[#allocation2 + $0xc0] sm:$0xff] %v7709_v0 }
  0x2d   : > { %335 = vst [vmem:[#allocation2 + $0xc8] sm:$0xff] %v7709_v0 }
  0x2e   : > { %336 = vst [vmem:[#allocation2 + $0xd0] sm:$0xff] %v7709_v0 }
  0x2f   : > { %337 = vst [vmem:[#allocation2 + $0xd8] sm:$0xff] %v7709_v0 }
  0x30   : > { %338 = vst [vmem:[#allocation2 + $0xe0] sm:$0xff] %v7709_v0 }
  0x31   : > { %339 = vst [vmem:[#allocation2 + $0xe8] sm:$0xff] %v7709_v0 }
  0x32   : > { %340 = vst [vmem:[#allocation2 + $0xf0] sm:$0xff] %v7709_v0 }
  0x33   : > { %341 = vst [vmem:[#allocation2 + $0xf8] sm:$0xff] %v7709_v0 }
  0x34   : > { %342 = vst [vmem:[#allocation2 + $0x100] sm:$0xff] %v7709_v0 }
  0x35   : > { %343 = vst [vmem:[#allocation2 + $0x108] sm:$0xff] %v7709_v0 }
  0x36   : > { %344 = vst [vmem:[#allocation2 + $0x110] sm:$0xff] %v7709_v0 }
  0x37   : > { %345 = vst [vmem:[#allocation2 + $0x118] sm:$0xff] %v7709_v0 }
  0x38   : > { %346 = vst [vmem:[#allocation2 + $0x120] sm:$0xff] %v7709_v0 }
  0x39   : > { %347 = vst [vmem:[#allocation2 + $0x128] sm:$0xff] %v7709_v0 }
  0x3a   : > { %348 = vst [vmem:[#allocation2 + $0x130] sm:$0xff] %v7709_v0 }
  0x3b   : > { %349 = vst [vmem:[#allocation2 + $0x138] sm:$0xff] %v7709_v0 }
  0x3c   : > { %350 = vst [vmem:[#allocation2 + $0x140] sm:$0xff] %v7709_v0 }
  0x3d   : > { %351 = vst [vmem:[#allocation2 + $0x148] sm:$0xff] %v7709_v0 }
  0x3e   : > { %352 = vst [vmem:[#allocation2 + $0x150] sm:$0xff] %v7709_v0 }
  0x3f   : > { %353 = vst [vmem:[#allocation2 + $0x158] sm:$0xff] %v7709_v0 }
  0x40   : > { %354 = vst [vmem:[#allocation2 + $0x160] sm:$0xff] %v7709_v0 }
  0x41   : > { %355 = vst [vmem:[#allocation2 + $0x168] sm:$0xff] %v7709_v0 }
  0x42   : > { %356 = vst [vmem:[#allocation2 + $0x170] sm:$0xff] %v7709_v0 }
  0x43   : > { %357 = vst [vmem:[#allocation2 + $0x178] sm:$0xff] %v7709_v0 }
  0x44   : > { %358 = vst [vmem:[#allocation2 + $0x180] sm:$0xff] %v7709_v0 }
  0x45   : > { %359 = vst [vmem:[#allocation2 + $0x188] sm:$0xff] %v7709_v0 }
  0x46   : > { %360 = vst [vmem:[#allocation2 + $0x190] sm:$0xff] %v7709_v0 }
  0x47   : > { %361 = vst [vmem:[#allocation2 + $0x198] sm:$0xff] %v7709_v0 }
  0x48   : > { %362 = vst [vmem:[#allocation2 + $0x1a0] sm:$0xff] %v7709_v0 }
  0x49   : > { %363 = vst [vmem:[#allocation2 + $0x1a8] sm:$0xff] %v7709_v0 }
  0x4a   : > { %364 = vst [vmem:[#allocation2 + $0x1b0] sm:$0xff] %v7709_v0 }
  0x4b   : > { %367 = vst [vmem:[#allocation3] sm:$0xff] %v7709_v0 }
  0x4c   : > { %368 = vst [vmem:[#allocation3 + $0x8] sm:$0xff] %v7709_v0 }
  0x4d   : > { %369 = vst [vmem:[#allocation3 + $0x10] sm:$0xff] %v7709_v0 }
  0x4e   : > { %370 = vst [vmem:[#allocation3 + $0x18] sm:$0xff] %v7709_v0 }
  0x4f   : > { %371 = vst [vmem:[#allocation3 + $0x20] sm:$0xff] %v7709_v0 }
  0x50   : > { %372 = vst [vmem:[#allocation3 + $0x28] sm:$0xff] %v7709_v0 }
  0x51   : > { %373 = vst [vmem:[#allocation3 + $0x30] sm:$0xff] %v7709_v0 }
  0x52   : > { %374 = vst [vmem:[#allocation3 + $0x38] sm:$0xff] %v7709_v0 }
  0x53   : > { %375 = vst [vmem:[#allocation3 + $0x40] sm:$0xff] %v7709_v0 }
  0x54   : > { %376 = vst [vmem:[#allocation3 + $0x48] sm:$0xff] %v7709_v0 }
  0x55   : > { %377 = vst [vmem:[#allocation3 + $0x50] sm:$0xff] %v7709_v0 }
  0x56   : > { %378 = vst [vmem:[#allocation3 + $0x58] sm:$0xff] %v7709_v0 }
  0x57   : > { %379 = vst [vmem:[#allocation3 + $0x60] sm:$0xff] %v7709_v0 }
  0x58   : > { %380 = vst [vmem:[#allocation3 + $0x68] sm:$0xff] %v7709_v0 }
  0x59   : > { %381 = vst [vmem:[#allocation3 + $0x70] sm:$0xff] %v7709_v0 }
  0x5a   : > { %382 = vst [vmem:[#allocation3 + $0x78] sm:$0xff] %v7709_v0 }
  0x5b   : > { %383 = vst [vmem:[#allocation3 + $0x80] sm:$0xff] %v7709_v0 }
  0x5c   : > { %384 = vst [vmem:[#allocation3 + $0x88] sm:$0xff] %v7709_v0 }
  0x5d   : > { %385 = vst [vmem:[#allocation3 + $0x90] sm:$0xff] %v7709_v0 }
  0x5e   : > { %386 = vst [vmem:[#allocation3 + $0x98] sm:$0xff] %v7709_v0 }
  0x5f   : > { %387 = vst [vmem:[#allocation3 + $0xa0] sm:$0xff] %v7709_v0 }
  0x60   : > { %388 = vst [vmem:[#allocation3 + $0xa8] sm:$0xff] %v7709_v0 }
  0x61   : > { %389 = vst [vmem:[#allocation3 + $0xb0] sm:$0xff] %v7709_v0 }
  0x62   : > { %390 = vst [vmem:[#allocation3 + $0xb8] sm:$0xff] %v7709_v0 }
  0x63   : > { %391 = vst [vmem:[#allocation3 + $0xc0] sm:$0xff] %v7709_v0 }
  0x64   : > { %392 = vst [vmem:[#allocation3 + $0xc8] sm:$0xff] %v7709_v0 }
  0x65   : > { %393 = vst [vmem:[#allocation3 + $0xd0] sm:$0xff] %v7709_v0 }
  0x66   : > { %394 = vst [vmem:[#allocation3 + $0xd8] sm:$0xff] %v7709_v0 }
  0x67   : > { %395 = vst [vmem:[#allocation3 + $0xe0] sm:$0xff] %v7709_v0 }
  0x68   : > { %396 = vst [vmem:[#allocation3 + $0xe8] sm:$0xff] %v7709_v0 }
  0x69   : > { %397 = vst [vmem:[#allocation3 + $0xf0] sm:$0xff] %v7709_v0 }
  0x6a   : > { %398 = vst [vmem:[#allocation3 + $0xf8] sm:$0xff] %v7709_v0 }
  0x6b   : > { %399 = vst [vmem:[#allocation3 + $0x100] sm:$0xff] %v7709_v0 }
  0x6c   : > { %400 = vst [vmem:[#allocation3 + $0x108] sm:$0xff] %v7709_v0 }
  0x6d   : > { %401 = vst [vmem:[#allocation3 + $0x110] sm:$0xff] %v7709_v0 }
  0x6e   : > { %402 = vst [vmem:[#allocation3 + $0x118] sm:$0xff] %v7709_v0 }
  0x6f   : > { %403 = vst [vmem:[#allocation3 + $0x120] sm:$0xff] %v7709_v0 }
  0x70   : > { %404 = vst [vmem:[#allocation3 + $0x128] sm:$0xff] %v7709_v0 }
  0x71   : > { %405 = vst [vmem:[#allocation3 + $0x130] sm:$0xff] %v7709_v0 }
  0x72   : > { %406 = vst [vmem:[#allocation3 + $0x138] sm:$0xff] %v7709_v0 }
  0x73   : > { %407 = vst [vmem:[#allocation3 + $0x140] sm:$0xff] %v7709_v0 }
  0x74   : > { %408 = vst [vmem:[#allocation3 + $0x148] sm:$0xff] %v7709_v0 }
  0x75   : > { %409 = vst [vmem:[#allocation3 + $0x150] sm:$0xff] %v7709_v0 }
  0x76   : > { %410 = vst [vmem:[#allocation3 + $0x158] sm:$0xff] %v7709_v0 }
  0x77   : > { %411 = vst [vmem:[#allocation3 + $0x160] sm:$0xff] %v7709_v0 }
  0x78   : > { %412 = vst [vmem:[#allocation3 + $0x168] sm:$0xff] %v7709_v0 }
  0x79   : > { %413 = vst [vmem:[#allocation3 + $0x170] sm:$0xff] %v7709_v0 }
  0x7a   : > { %414 = vst [vmem:[#allocation3 + $0x178] sm:$0xff] %v7709_v0 }
  0x7b   : > { %415 = vst [vmem:[#allocation3 + $0x180] sm:$0xff] %v7709_v0 }
  0x7c   : > { %416 = vst [vmem:[#allocation3 + $0x188] sm:$0xff] %v7709_v0 }
  0x7d   : > { %417 = vst [vmem:[#allocation3 + $0x190] sm:$0xff] %v7709_v0 }
  0x7e   : > { %418 = vst [vmem:[#allocation3 + $0x198] sm:$0xff] %v7709_v0 }
  0x7f   : > { %419 = vst [vmem:[#allocation3 + $0x1a0] sm:$0xff] %v7709_v0 }
  0x80   : > { %420 = vst [vmem:[#allocation3 + $0x1a8] sm:$0xff] %v7709_v0 }
  0x81   : > { %421 = vst [vmem:[#allocation3 + $0x1b0] sm:$0xff] %v7709_v0 }
  0x82 PF: > { %v655_v1 = vld [vmem:[%s10421_s3 + $0x78] sm:$0xff]  ;;  %v654_v3 = vld [vmem:[%s10421_s3 + $0x70] sm:$0xff]  ;;  %v653_v5 = vld [vmem:[%s10421_s3 + $0x68] sm:$0xff] }
  0x83   : > { %v7406_v2 = vld [vmem:[%s10421_s3 + $0xf8] sm:$0xff]  ;;  %656 = vmatpush.msra.mxu0 %v655_v1  ;;  %7651 = vmatpush.msra.mxu2 %v655_v1  ;;  %v7405_v4 = vld [vmem:[%s10421_s3 + $0xf0] sm:$0xff]  ;;  %v7404_v6 = vld [vmem:[%s10421_s3 + $0xe8] sm:$0xff] }
  0x84   : > { %7667 = vmatpush.msra.mxu3 %v7406_v2  ;;  %930 = vmatpush.msra.mxu1 %v7406_v2  ;;  %v652_v7 = vld [vmem:[%s10421_s3 + $0x60] sm:$0xff]  ;;  %v651_v9 = vld [vmem:[%s10421_s3 + $0x58] sm:$0xff]  ;;  %v650_v11 = vld [vmem:[%s10421_s3 + $0x50] sm:$0xff] }
  0x85   : > { %657 = vmatpush.msra.mxu0 %v654_v3  ;;  %7652 = vmatpush.msra.mxu2 %v654_v3  ;;  %v7403_v8 = vld [vmem:[%s10421_s3 + $0xe0] sm:$0xff]  ;;  %v7402_v10 = vld [vmem:[%s10421_s3 + $0xd8] sm:$0xff]  ;;  %v7401_v12 = vld [vmem:[%s10421_s3 + $0xd0] sm:$0xff] }
  0x86   : > { %7668 = vmatpush.msra.mxu3 %v7405_v4  ;;  %931 = vmatpush.msra.mxu1 %v7405_v4  ;;  %v649_v13 = vld [vmem:[%s10421_s3 + $0x48] sm:$0xff]  ;;  %v7928_v15 = vld [vmem:[%s10419_s1] ss:$0 sm:$0xff]  ;;  %v502_v18 = vld [vmem:[%s7766_s11 + $0x70] sm:$0xff] }
  0x87   : > { %658 = vmatpush.msra.mxu0 %v653_v5  ;;  %7653 = vmatpush.msra.mxu2 %v653_v5  ;;  %v7400_v14 = vld [vmem:[%s10421_s3 + $0xc8] sm:$0xff]  ;;  %v648_v16 = vld [vmem:[%s10421_s3 + $0x40] sm:$0xff]  ;;  %v504_v20 = vmul.f32 %v7928_v15, %v502_v18  ;;  %v503_v21 = vld [vmem:[%s7766_s11 + $0x78] sm:$0xff] }
  0x88   : > { %7669 = vmatpush.msra.mxu3 %v7404_v6  ;;  %932 = vmatpush.msra.mxu1 %v7404_v6  ;;  %v7936_v17 = vld [vmem:[%s10420_s2] ss:$0 sm:$0xff]  ;;  %v647_v22 = vld [vmem:[%s10421_s3 + $0x38] sm:$0xff]  ;;  %v505_v23 = vmul.f32 %v7928_v15, %v503_v21  ;;  %v646_v27 = vld [vmem:[%s10421_s3 + $0x30] sm:$0xff] }
  0x89   : > { %659 = vmatpush.msra.mxu0 %v652_v7  ;;  %7654 = vmatpush.msra.mxu2 %v652_v7  ;;  %v7399_v19 = vld [vmem:[%s10421_s3 + $0xc0] sm:$0xff]  ;;  %v7398_v24 = vld [vmem:[%s10421_s3 + $0xb8] sm:$0xff]  ;;  %v7952_v25 = vadd.f32 %v7936_v17, %v504_v20  ;;  %v7397_v31 = vld [vmem:[%s10421_s3 + $0xb0] sm:$0xff] }
  0x8a   : > { %7670 = vmatpush.msra.mxu3 %v7403_v8  ;;  %933 = vmatpush.msra.mxu1 %v7403_v8  ;;  %v426_v26 = vld [vmem:[%s7766_s11] sm:$0xff]  ;;  %v7959_v28 = vadd.f32 %v7936_v17, %v505_v23  ;;  %v645_v32 = vld [vmem:[%s10421_s3 + $0x28] sm:$0xff]  ;;  %v643_v49 = vld [vmem:[%s10421_s3 + $0x18] sm:$0xff] }
  0x8b   : > { %660 = vmatpush.msra.mxu0 %v651_v9  ;;  %7655 = vmatpush.msra.mxu2 %v651_v9  ;;  %v431_v29 = vmul.f32 %v7928_v15, %v426_v26  ;;  %v512_v30 = vld [vmem:[%s7766_s11 + $0x80] sm:$0xff]  ;;  %v508_v33 = vmax.f32 %v7952_v25, 0.0  ;;  %v427_v37 = vld [vmem:[%s7766_s11 + $0x8] sm:$0xff]  ;;  %v7394_v50 = vld [vmem:[%s10421_s3 + $0x98] sm:$0xff] }
  0x8c   : > { %7671 = vmatpush.msra.mxu3 %v7402_v10  ;;  %934 = vmatpush.msra.mxu1 %v7402_v10  ;;  %v514_v34 = vmul.f32 %v7928_v15, %v512_v30  ;;  %v509_v35 = vmax.f32 %v7959_v28, 0.0  ;;  %v513_v38 = vld [vmem:[%s7766_s11 + $0x88] sm:$0xff]  ;;  %v432_v41 = vmul.f32 %v7928_v15, %v427_v37  ;;  %v644_v43 = vld [vmem:[%s10421_s3 + $0x20] sm:$0xff]  ;;  %v642_v53 = vld [vmem:[%s10421_s3 + $0x10] sm:$0xff] }
  0x8d   : > { %661 = vmatpush.msra.mxu0 %v650_v11  ;;  %7656 = vmatpush.msra.mxu2 %v650_v11  ;;  %v436_v36 = vadd.f32 %v7936_v17, %v431_v29  ;;  %v7396_v39 = vld [vmem:[%s10421_s3 + $0xa8] sm:$0xff]  ;;  %510 = vst [vmem:[#allocation2 + $0xc1] sm:$0xff] %v508_v33  ;;  %v515_v42 = vmul.f32 %v7928_v15, %v513_v38  ;;  %v7395_v45 = vld [vmem:[%s10421_s3 + $0xa0] sm:$0xff]  ;;  %v7393_v54 = vld [vmem:[%s10421_s3 + $0x90] sm:$0xff] }
  0x8e   : > { %7672 = vmatpush.msra.mxu3 %v7401_v12  ;;  %935 = vmatpush.msra.mxu1 %v7401_v12  ;;  %v7981_v40 = vadd.f32 %v7936_v17, %v514_v34  ;;  %511 = vst [vmem:[#allocation2 + $0xc9] sm:$0xff] %v509_v35  ;;  %v437_v47 = vadd.f32 %v7936_v17, %v432_v41  ;;  %v641_v55 = vld [vmem:[%s10421_s3 + $0x8] sm:$0xff]  ;;  %v640_v57 = vld [vmem:[%s10421_s3] sm:$0xff]  ;;  %v7422_v61 = vld [vmem:[%s10421_s3 + $0x178] sm:$0xff] }
  0x8f   : > { %662 = vmatpush.msra.mxu0 %v649_v13  ;;  %7657 = vmatpush.msra.mxu2 %v649_v13  ;;  %v7990_v44 = vmax.f32 %v436_v36, 0.0  ;;  %v7998_v48 = vadd.f32 %v7936_v17, %v515_v42  ;;  %v7392_v56 = vld [vmem:[%s10421_s3 + $0x88] sm:$0xff]  ;;  %v7391_v58 = vld [vmem:[%s10421_s3 + $0x80] sm:$0xff]  ;;  %v7438_v62 = vld [vmem:[%s10421_s3 + $0x1f8] sm:$0xff] }
  0x90   : > { %7673 = vmatpush.msra.mxu3 %v7400_v14  ;;  %936 = vmatpush.msra.mxu1 %v7400_v14  ;;  %v518_v46 = vmax.f32 %v7981_v40, 0.0  ;;  %v8009_v51 = vmax.f32 %v437_v47, 0.0  ;;  %v592_v59 = vld [vmem:[#allocation2] sm:$0xff]  ;;  %v7454_v63 = vld [vmem:[%s10421_s3 + $0x278] sm:$0xff]  ;;  %v7421_v1 = vld [vmem:[%s10421_s3 + $0x170] sm:$0xff] }
  0x91   : > { %663 = vmatpush.msra.mxu0 %v648_v16  ;;  %7658 = vmatpush.msra.mxu2 %v648_v16  ;;  %440 = vst [vmem:[#allocation2 + $0x19] sm:$0xff] %v7990_v44  ;;  %v519_v52 = vmax.f32 %v7998_v48, 0.0  ;;  %v865_v0 = vld [vmem:[#allocation2 + $0x1] sm:$0xff]  ;;  %v7437_v2 = vld [vmem:[%s10421_s3 + $0x1f0] sm:$0xff]  ;;  %v443_v23 = vld [vmem:[%s7766_s11 + $0x18] sm:$0xff] }
  0x92   : > { %7674 = vmatpush.msra.mxu3 %v7399_v19  ;;  %937 = vmatpush.msra.mxu1 %v7399_v19  ;;  %520 = vst [vmem:[#allocation2 + $0xd9] sm:$0xff] %v518_v46  ;;  %v7453_v3 = vld [vmem:[%s10421_s3 + $0x270] sm:$0xff]  ;;  %v7420_v5 = vld [vmem:[%s10421_s3 + $0x168] sm:$0xff]  ;;  %v7419_v12 = vld [vmem:[%s10421_s3 + $0x160] sm:$0xff]  ;;  %v445_v25 = vmul.f32 %v7928_v15, %v443_v23 }
  0x93   : > { %664 = vmatpush.msra.mxu0 %v647_v22  ;;  %7659 = vmatpush.msra.mxu2 %v647_v22  ;;  %441 = vst [vmem:[#allocation2 + $0x21] sm:$0xff] %v8009_v51  ;;  %v442_v4 = vld [vmem:[%s7766_s11 + $0x10] sm:$0xff]  ;;  %v7436_v8 = vld [vmem:[%s10421_s3 + $0x1e8] sm:$0xff]  ;;  %v7435_v18 = vld [vmem:[%s10421_s3 + $0x1e0] sm:$0xff] }
  0x94   : > { %7675 = vmatpush.msra.mxu3 %v7398_v24  ;;  %938 = vmatpush.msra.mxu1 %v7398_v24  ;;  %521 = vst [vmem:[#allocation2 + $0xe1] sm:$0xff] %v519_v52  ;;  %v616_v60 = vld [vmem:[#allocation2 + $0xc0] sm:$0xff]  ;;  %v444_v6 = vmul.f32 %v7928_v15, %v442_v4  ;;  %v522_v7 = vld [vmem:[%s7766_s11 + $0x90] sm:$0xff]  ;;  %v7452_v9 = vld [vmem:[%s10421_s3 + $0x268] sm:$0xff]  ;;  %v447_v28 = vadd.f32 %v7936_v17, %v445_v25 }
  0x95   : > { %665 = vmatpush.msra.mxu0 %v646_v27  ;;  %7660 = vmatpush.msra.mxu2 %v646_v27  ;;  %v524_v10 = vmul.f32 %v7928_v15, %v522_v7  ;;  %v593_v11 = vld [vmem:[#allocation2 + $0x8] sm:$0xff]  ;;  %v7451_v22 = vld [vmem:[%s10421_s3 + $0x260] sm:$0xff]  ;;  %v523_v24 = vld [vmem:[%s7766_s11 + $0x98] sm:$0xff] }
  0x96   : > { %7676 = vmatpush.msra.mxu3 %v7397_v31  ;;  %939 = vmatpush.msra.mxu1 %v7397_v31  ;;  %v446_v13 = vadd.f32 %v7936_v17, %v444_v6  ;;  %v617_v14 = vld [vmem:[#allocation2 + $0xc8] sm:$0xff]  ;;  %v525_v26 = vmul.f32 %v7928_v15, %v523_v24  ;;  %v594_v27 = vld [vmem:[#allocation2 + $0x10] sm:$0xff]  ;;  %v7434_v36 = vld [vmem:[%s10421_s3 + $0x1d8] sm:$0xff] }
  0x97   : > { %666 = vmatpush.msra.mxu0 %v645_v32  ;;  %7661 = vmatpush.msra.mxu2 %v645_v32  ;;  %v8071_v16 = vadd.f32 %v7936_v17, %v524_v10  ;;  %v866_v21 = vld [vmem:[#allocation2 + $0x9] sm:$0xff]  ;;  %v891_v31 = vld [vmem:[#allocation2 + $0xd1] sm:$0xff]  ;;  %v8095_v32 = vmax.f32 %v447_v28, 0.0  ;;  %v532_v40 = vld [vmem:[%s7766_s11 + $0xa0] sm:$0xff] }
  0x98   : > { %7677 = vmatpush.msra.mxu3 %v7396_v39  ;;  %940 = vmatpush.msra.mxu1 %v7396_v39  ;;  %v8076_v19 = vmax.f32 %v446_v13, 0.0  ;;  %v8093_v29 = vadd.f32 %v7936_v17, %v525_v26  ;;  %v618_v30 = vld [vmem:[#allocation2 + $0xd0] sm:$0xff]  ;;  %v8107_v37 = vld [vmem:[#allocation2 + $0x18] sm:$0xff]  ;;  %v7432_v4 = vld [vmem:[%s10421_s3 + $0x1c8] sm:$0xff] }
  0x99   : > { %667 = vmatpush.msra.mxu0 %v644_v43  ;;  %7662 = vmatpush.msra.mxu2 %v644_v43  ;;  %v528_v20 = vmax.f32 %v8071_v16, 0.0  ;;  %v867_v34 = vld [vmem:[#allocation2 + $0x11] sm:$0xff]  ;;  %451 = vst [vmem:[#allocation2 + $0x39] sm:$0xff] %v8095_v32  ;;  %v452_v43 = vld [vmem:[%s7766_s11 + $0x20] sm:$0xff]  ;;  %v7448_v7 = vld [vmem:[%s10421_s3 + $0x248] sm:$0xff] }
  0x9a   : > { %7678 = vmatpush.msra.mxu3 %v7395_v45  ;;  %941 = vmatpush.msra.mxu1 %v7395_v45  ;;  %450 = vst [vmem:[#allocation2 + $0x31] sm:$0xff] %v8076_v19  ;;  %v619_v38 = vld [vmem:[#allocation2 + $0xd8] sm:$0xff]  ;;  %v7417_v41 = vld [vmem:[%s10421_s3 + $0x150] sm:$0xff]  ;;  %v454_v45 = vmul.f32 %v7928_v15, %v452_v43  ;;  %v8126_v47 = vld [vmem:[#allocation2 + $0x20] sm:$0xff] }
  0x9b   : > { %668 = vmatpush.msra.mxu0 %v643_v49  ;;  %7663 = vmatpush.msra.mxu2 %v643_v49  ;;  %530 = vst [vmem:[#allocation2 + $0xf1] sm:$0xff] %v528_v20  ;;  %v7450_v39 = vld [vmem:[%s10421_s3 + $0x258] sm:$0xff]  ;;  %v7433_v42 = vld [vmem:[%s10421_s3 + $0x1d0] sm:$0xff]  ;;  %v8149_v48 = vld [vmem:[#allocation2 + $0x28] sm:$0xff] }
  0x9c   : > { %7679 = vmatpush.msra.mxu3 %v7394_v50  ;;  %942 = vmatpush.msra.mxu1 %v7394_v50  ;;  %v456_v49 = vadd.f32 %v7936_v17, %v454_v45  ;;  %v620_v50 = vld [vmem:[#allocation2 + $0xe0] sm:$0xff]  ;;  %v462_v10 = vld [vmem:[%s7766_s11 + $0x30] sm:$0xff]  ;;  %v463_v24 = vld [vmem:[%s7766_s11 + $0x38] sm:$0xff] }
  0x9d   : > { %669 = vmatpush.msra.mxu0 %v642_v53  ;;  %7664 = vmatpush.msra.mxu2 %v642_v53  ;;  %v7447_v23 = vld [vmem:[%s10421_s3 + $0x240] sm:$0xff]  ;;  %v543_v25 = vld [vmem:[%s7766_s11 + $0xb8] sm:$0xff]  ;;  %v465_v26 = vmul.f32 %v7928_v15, %v463_v24  ;;  %v7413_v45 = vld [vmem:[%s10421_s3 + $0x130] sm:$0xff] }
  0x9e   : > { %7680 = vmatpush.msra.mxu3 %v7393_v54  ;;  %943 = vmatpush.msra.mxu1 %v7393_v54  ;;  %v8132_v54 = vmax.f32 %v456_v49, 0.0  ;;  %v7446_v43 = vld [vmem:[%s10421_s3 + $0x238] sm:$0xff]  ;;  %v7444_v24 = vld [vmem:[%s10421_s3 + $0x228] sm:$0xff] }
  0x9f   : > { %670 = vmatpush.msra.mxu0 %v641_v55  ;;  %7665 = vmatpush.msra.mxu2 %v641_v55 }
  0xa0   : > { %7681 = vmatpush.msra.mxu3 %v7392_v56  ;;  %944 = vmatpush.msra.mxu1 %v7392_v56  ;;  %v7449_v56 = vld [vmem:[%s10421_s3 + $0x250] sm:$0xff]  ;;  %460 = vst [vmem:[#allocation2 + $0x49] sm:$0xff] %v8132_v54  ;;  %v8213_v28 = vld [vmem:[#allocation2 + $0x40] sm:$0xff] }
  0xa1   : > { %671 = vmatpush.msra.mxu0 %v640_v57  ;;  %7666 = vmatpush.msra.mxu2 %v640_v57  ;;  %v453_v57 = vld [vmem:[%s7766_s11 + $0x28] sm:$0xff] }
  0xa2   : > { %7682 = vmatpush.msra.mxu3 %v7391_v58  ;;  %672 = vmatmul.f32.vlgmr.msra.gmra.mxu0 %v592_v59  ;;  %v455_v59 = vmul.f32 %v7928_v15, %v453_v57  ;;  %v622_v6 = vld [vmem:[#allocation2 + $0xf0] sm:$0xff] }
  0xa3   : > { %744 = vmatmul.f32.vlgmr.msra.gmra.mxu2 %v616_v60  ;;  %1018 = vmatmul.f32.vlgmr.msra.gmra.mxu3 %v508_v33  ;;  %v529_v33 = vmax.f32 %v8093_v29, 0.0  ;;  %v467_v29 = vadd.f32 %v7936_v17, %v465_v26  ;;  %v562_v26 = vld [vmem:[%s7766_s11 + $0xd0] sm:$0xff] }
  0xa4   : > { %1300 = vmatpush.msrb.mxu2 %v7422_v61  ;;  %1670 = vmatpush.msrb.mxu3 %v7438_v62  ;;  %v621_v62 = vld [vmem:[#allocation2 + $0xe8] sm:$0xff] }
  0xa5   : > { %945 = vmatpush.msra.mxu1 %v7391_v58  ;;  %2040 = vmatpush.msrb.mxu0 %v7454_v63  ;;  %531 = vst [vmem:[#allocation2 + $0xf9] sm:$0xff] %v529_v33  ;;  %v533_v58 = vld [vmem:[%s7766_s11 + $0xa8] sm:$0xff] }
  0xa6   : > { %946 = vmatmul.f32.vlgmr.msra.gmra.mxu1 %v865_v0  ;;  %1301 = vmatpush.msrb.mxu2 %v7421_v1  ;;  %v535_v60 = vmul.f32 %v7928_v15, %v533_v58  ;;  %v894_v63 = vld [vmem:[#allocation2 + $0xe9] sm:$0xff] }
  0xa7   : > { %1671 = vmatpush.msrb.mxu3 %v7437_v2  ;;  %2041 = vmatpush.msrb.mxu0 %v7453_v3  ;;  %v8159_v2 = vld [vmem:[#allocation2 + $0x29] sm:$0xff] }
  0xa8   : > { %1302 = vmatpush.msrb.mxu2 %v7420_v5  ;;  %v8153_v61 = vadd.f32 %v7936_v17, %v535_v60  ;;  %v7416_v3 = vld [vmem:[%s10421_s3 + $0x148] sm:$0xff]  ;;  %v8171_v5 = vld [vmem:[#allocation2 + $0x30] sm:$0xff] }
  0xa9   : > { %1672 = vmatpush.msrb.mxu3 %v7436_v8  ;;  %2042 = vmatpush.msrb.mxu0 %v7452_v9  ;;  %v7415_v8 = vld [vmem:[%s10421_s3 + $0x140] sm:$0xff] }
  0xaa   : > { %675 = vmatmul.f32.gmra.mxu0 %v593_v11  ;;  %1303 = vmatpush.msrb.mxu2 %v7419_v12  ;;  %v539_v1 = vmax.f32 %v8153_v61, 0.0  ;;  %v7431_v9 = vld [vmem:[%s10421_s3 + $0x1c0] sm:$0xff]  ;;  %v464_v11 = vmul.f32 %v7928_v15, %v462_v10  ;;  %v542_v12 = vld [vmem:[%s7766_s11 + $0xb0] sm:$0xff] }
  0xab   : > { %747 = vmatmul.f32.gmra.mxu2 %v617_v14  ;;  %1021 = vmatmul.f32.gmra.mxu3 %v509_v35  ;;  %v7418_v35 = vld [vmem:[%s10421_s3 + $0x158] sm:$0xff]  ;;  %v544_v13 = vmul.f32 %v7928_v15, %v542_v12  ;;  %v7412_v12 = vld [vmem:[%s10421_s3 + $0x128] sm:$0xff] }
  0xac   : > { %1673 = vmatpush.msrb.mxu3 %v7435_v18  ;;  %2043 = vmatpush.msrb.mxu0 %v7451_v22  ;;  %541 = vst [vmem:[#allocation2 + $0x111] sm:$0xff] %v539_v1  ;;  %v8190_v14 = vld [vmem:[#allocation2 + $0x38] sm:$0xff]  ;;  %v466_v16 = vadd.f32 %v7936_v17, %v464_v11 }
  0xad   : > { %1304 = vmatpush.msrb.mxu2 %v7418_v35  ;;  %v623_v18 = vld [vmem:[#allocation2 + $0xf8] sm:$0xff] }
  0xae   : > { %949 = vmatmul.f32.gmra.mxu1 %v866_v21  ;;  %1674 = vmatpush.msrb.mxu3 %v7434_v36  ;;  %v8196_v21 = vmax.f32 %v466_v16, 0.0  ;;  %v8223_v36 = vld [vmem:[#allocation2 + $0x41] sm:$0xff]  ;;  %v8287_v11 = vld [vmem:[#allocation2 + $0x59] sm:$0xff] }
  0xaf   : > { %2044 = vmatpush.msrb.mxu0 %v7450_v39  ;;  %1305 = vmatpush.msrb.mxu2 %v7417_v41  ;;  %v7430_v39 = vld [vmem:[%s10421_s3 + $0x1b8] sm:$0xff]  ;;  %v8235_v41 = vld [vmem:[#allocation2 + $0x48] sm:$0xff] }
  0xb0   : > { %1675 = vmatpush.msrb.mxu3 %v7433_v42  ;;  %470 = vst [vmem:[#allocation2 + $0x61] sm:$0xff] %v8196_v21 }
  0xb1   : > { %2045 = vmatpush.msrb.mxu0 %v7449_v56  ;;  %1306 = vmatpush.msrb.mxu2 %v7416_v3 }
  0xb2   : > { %678 = vmatmul.f32.gmra.mxu0 %v594_v27  ;;  %1676 = vmatpush.msrb.mxu3 %v7432_v4  ;;  %v545_v27 = vmul.f32 %v7928_v15, %v543_v25  ;;  %v482_v25 = vld [vmem:[%s7766_s11 + $0x50] sm:$0xff] }
  0xb3   : > { %750 = vmatmul.f32.gmra.mxu2 %v618_v30  ;;  %1024 = vmatmul.f32.gmra.mxu3 %v891_v31  ;;  %v624_v31 = vld [vmem:[#allocation2 + $0x100] sm:$0xff] }
  0xb4   : > { %2046 = vmatpush.msrb.mxu0 %v7448_v7  ;;  %1307 = vmatpush.msrb.mxu2 %v7415_v8  ;;  %v8217_v30 = vadd.f32 %v7936_v17, %v545_v27  ;;  %v627_v7 = vld [vmem:[#allocation2 + $0x118] sm:$0xff]  ;;  %v484_v27 = vmul.f32 %v7928_v15, %v482_v25 }
  0xb5   : > { %1677 = vmatpush.msrb.mxu3 %v7431_v9  ;;  %v900_v8 = vld [vmem:[#allocation2 + $0x119] sm:$0xff] }
  0xb6   : > { %952 = vmatmul.f32.gmra.mxu1 %v867_v34  ;;  %2047 = vmatpush.msrb.mxu0 %v7447_v23  ;;  %v8219_v34 = vmax.f32 %v467_v29, 0.0  ;;  %v549_v35 = vmax.f32 %v8217_v30, 0.0  ;;  %v7470_v23 = vld [vmem:[%s10421_s3 + $0x2f8] sm:$0xff]  ;;  %v564_v29 = vmul.f32 %v7928_v15, %v562_v26  ;;  %v7469_v30 = vld [vmem:[%s10421_s3 + $0x2f0] sm:$0xff] }
  0xb7   : > { %1678 = vmatpush.msrb.mxu3 %v7430_v39  ;;  %v8299_v16 = vld [vmem:[#allocation2 + $0x60] sm:$0xff]  ;;  %2410 = vmatpush.msrb.mxu1 %v7470_v23  ;;  %v7409_v26 = vld [vmem:[%s10421_s3 + $0x110] sm:$0xff] }
  0xb8   : > { %471 = vst [vmem:[#allocation2 + $0x69] sm:$0xff] %v8219_v34  ;;  %2048 = vmatpush.msrb.mxu0 %v7446_v43  ;;  %v572_v23 = vld [vmem:[%s7766_s11 + $0xe0] sm:$0xff] }
  0xb9   : > { %551 = vst [vmem:[#allocation2 + $0x129] sm:$0xff] %v549_v35  ;;  %2411 = vmatpush.msrb.mxu1 %v7469_v30  ;;  %v574_v25 = vmul.f32 %v7928_v15, %v572_v23 }
  0xba   : > { %681 = vmatmul.f32.gmra.mxu0 %v8107_v37 }
  0xbb   : > { %753 = vmatmul.f32.gmra.mxu2 %v619_v38  ;;  %1027 = vmatmul.f32.gmra.mxu3 %v518_v46  ;;  %v534_v46 = vmul.f32 %v7928_v15, %v532_v40  ;;  %v7414_v38 = vld [vmem:[%s10421_s3 + $0x138] sm:$0xff]  ;;  %v7429_v40 = vld [vmem:[%s10421_s3 + $0x1b0] sm:$0xff] }
  0xbc   : > { %1308 = vmatpush.msrb.mxu2 %v7414_v38  ;;  %1679 = vmatpush.msrb.mxu3 %v7429_v40  ;;  %v8325_v38 = vadd.f32 %v7936_v17, %v564_v29  ;;  %v563_v40 = vld [vmem:[%s7766_s11 + $0xd8] sm:$0xff] }
  0xbd   : > { %v8130_v53 = vadd.f32 %v7936_v17, %v534_v46  ;;  %v472_v46 = vld [vmem:[%s7766_s11 + $0x40] sm:$0xff] }
  0xbe   : > { %955 = vmatmul.f32.gmra.mxu1 %v7990_v44  ;;  %1309 = vmatpush.msrb.mxu2 %v7413_v45  ;;  %v474_v49 = vmul.f32 %v7928_v15, %v472_v46  ;;  %v568_v43 = vmax.f32 %v8325_v38, 0.0  ;;  %v483_v45 = vld [vmem:[%s7766_s11 + $0x58] sm:$0xff]  ;;  %v7407_v38 = vld [vmem:[%s10421_s3 + $0x100] sm:$0xff] }
  0xbf   : > { %v538_v55 = vmax.f32 %v8130_v53, 0.0  ;;  %v485_v46 = vmul.f32 %v7928_v15, %v483_v45 }
  0xc0   : > { %v476_v56 = vadd.f32 %v7936_v17, %v474_v49  ;;  %1310 = vmatpush.msrb.mxu2 %v7412_v12  ;;  %570 = vst [vmem:[#allocation2 + $0x151] sm:$0xff] %v568_v43  ;;  %v565_v49 = vmul.f32 %v7928_v15, %v563_v40  ;;  %v7468_v12 = vld [vmem:[%s10421_s3 + $0x2e8] sm:$0xff] }
  0xc1   : > { %540 = vst [vmem:[#allocation2 + $0x109] sm:$0xff] %v538_v55  ;;  %2412 = vmatpush.msrb.mxu1 %v7468_v12  ;;  %v493_v40 = vld [vmem:[%s7766_s11 + $0x68] sm:$0xff] }
  0xc2   : > { %684 = vmatmul.f32.gmra.mxu0 %v8126_v47  ;;  %v906_v12 = vld [vmem:[#allocation2 + $0x149] sm:$0xff] }
  0xc3   : > { %756 = vmatmul.f32.gmra.mxu2 %v620_v50  ;;  %1030 = vmatmul.f32.gmra.mxu3 %v519_v52  ;;  %v457_v52 = vadd.f32 %v7936_v17, %v455_v59  ;;  %v552_v50 = vld [vmem:[%s7766_s11 + $0xc0] sm:$0xff]  ;;  %v8260_v59 = vmax.f32 %v476_v56, 0.0  ;;  %v8351_v56 = vadd.f32 %v7936_v17, %v565_v49  ;;  %v495_v49 = vmul.f32 %v7928_v15, %v493_v40 }
  0xc4   : > { %v554_v53 = vmul.f32 %v7928_v15, %v552_v50  ;;  %v8341_v50 = vld [vmem:[#allocation2 + $0x70] sm:$0xff] }
  0xc5   : > { %v8155_v0 = vmax.f32 %v457_v52, 0.0  ;;  %v7445_v52 = vld [vmem:[%s10421_s3 + $0x230] sm:$0xff]  ;;  %480 = vst [vmem:[#allocation2 + $0x79] sm:$0xff] %v8260_v59 }
  0xc6   : > { %958 = vmatmul.f32.gmra.mxu1 %v8009_v51  ;;  %v8258_v58 = vadd.f32 %v7936_v17, %v554_v53  ;;  %2049 = vmatpush.msrb.mxu0 %v7445_v52  ;;  %v487_v53 = vadd.f32 %v7936_v17, %v485_v46  ;;  %v903_v52 = vld [vmem:[#allocation2 + $0x131] sm:$0xff]  ;;  %v573_v46 = vld [vmem:[%s7766_s11 + $0xe8] sm:$0xff] }
  0xc7   : > { %461 = vst [vmem:[#allocation2 + $0x51] sm:$0xff] %v8155_v0  ;;  %v575_v30 = vmul.f32 %v7928_v15, %v573_v46  ;;  %v634_v46 = vld [vmem:[#allocation2 + $0x150] sm:$0xff] }
  0xc8   : > { %v625_v42 = vld [vmem:[#allocation2 + $0x108] sm:$0xff]  ;;  %v626_v57 = vld [vmem:[#allocation2 + $0x110] sm:$0xff]  ;;  %v558_v60 = vmax.f32 %v8258_v58, 0.0  ;;  %2050 = vmatpush.msrb.mxu0 %v7444_v24 }
  0xca   : > { %687 = vmatmul.f32.gmra.mxu0 %v8149_v48  ;;  %560 = vst [vmem:[#allocation2 + $0x139] sm:$0xff] %v558_v60 }
  0xcb   : > { %759 = vmatmul.f32.gmra.mxu2 %v621_v62  ;;  %1033 = vmatmul.f32.gmra.mxu3 %v894_v63  ;;  %v473_v62 = vld [vmem:[%s7766_s11 + $0x48] sm:$0xff] }
  0xcc   : > { %v553_v63 = vld [vmem:[%s7766_s11 + $0xc8] sm:$0xff]  ;;  %v475_v3 = vmul.f32 %v7928_v15, %v473_v62  ;;  %v8353_v62 = vmax.f32 %v487_v53, 0.0 }
  0xcd   : > { %v555_v4 = vmul.f32 %v7928_v15, %v553_v63  ;;  %v569_v63 = vmax.f32 %v8351_v56, 0.0 }
  0xce   : > { %961 = vmatmul.f32.gmra.mxu1 %v8159_v2  ;;  %v8277_v61 = vld [vmem:[#allocation2 + $0x58] sm:$0xff]  ;;  %491 = vst [vmem:[#allocation2 + $0x99] sm:$0xff] %v8353_v62 }
  0xcf   : > { %571 = vst [vmem:[#allocation2 + $0x159] sm:$0xff] %v569_v63 }
  0xd2   : > { %690 = vmatmul.f32.gmra.mxu0 %v8171_v5 }
  0xd3   : > { %762 = vmatmul.f32.gmra.mxu2 %v622_v6  ;;  %1036 = vmatmul.f32.gmra.mxu3 %v528_v20  ;;  %v8194_v20 = vadd.f32 %v7936_v17, %v544_v13  ;;  %v8281_v6 = vadd.f32 %v7936_v17, %v555_v4  ;;  %v7428_v13 = vld [vmem:[%s10421_s3 + $0x1a8] sm:$0xff]  ;;  %v7410_v4 = vld [vmem:[%s10421_s3 + $0x118] sm:$0xff] }
  0xd4   : > { %1680 = vmatpush.msrb.mxu3 %v7428_v13  ;;  %v7442_v13 = vld [vmem:[%s10421_s3 + $0x218] sm:$0xff] }
  0xd5   : > { %v548_v22 = vmax.f32 %v8194_v20, 0.0  ;;  %v559_v10 = vmax.f32 %v8281_v6, 0.0  ;;  %v8315_v20 = vld [vmem:[#allocation2 + $0x68] sm:$0xff]  ;;  %v8492_v56 = vld [vmem:[#allocation2 + $0xa0] sm:$0xff] }
  0xd6   : > { %964 = vmatmul.f32.gmra.mxu1 %v8076_v19 }
  0xd7   : > { %550 = vst [vmem:[#allocation2 + $0x121] sm:$0xff] %v548_v22 }
  0xd8   : > { %561 = vst [vmem:[#allocation2 + $0x141] sm:$0xff] %v559_v10 }
  0xda   : > { %693 = vmatmul.f32.gmra.mxu0 %v8190_v14 }
  0xdb   : > { %765 = vmatmul.f32.gmra.mxu2 %v623_v18  ;;  %1039 = vmatmul.f32.gmra.mxu3 %v529_v33  ;;  %v897_v33 = vld [vmem:[#allocation2 + $0x101] sm:$0xff] }
  0xde   : > { %967 = vmatmul.f32.gmra.mxu1 %v8095_v32  ;;  %v628_v18 = vld [vmem:[#allocation2 + $0x120] sm:$0xff]  ;;  %v629_v39 = vld [vmem:[#allocation2 + $0x128] sm:$0xff] }
  0xe2   : > { %696 = vmatmul.f32.gmra.mxu0 %v8213_v28 }
  0xe3   : > { %768 = vmatmul.f32.gmra.mxu2 %v624_v31  ;;  %1042 = vmatmul.f32.gmra.mxu3 %v897_v33  ;;  %v7427_v31 = vld [vmem:[%s10421_s3 + $0x1a0] sm:$0xff]  ;;  %v486_v33 = vadd.f32 %v7936_v17, %v484_v27  ;;  %v7425_v27 = vld [vmem:[%s10421_s3 + $0x190] sm:$0xff] }
  0xe4   : > { %1681 = vmatpush.msrb.mxu3 %v7427_v31  ;;  %v632_v31 = vld [vmem:[#allocation2 + $0x140] sm:$0xff] }
  0xe6   : > { %970 = vmatmul.f32.gmra.mxu1 %v8223_v36 }
  0xea   : > { %699 = vmatmul.f32.gmra.mxu0 %v8235_v41 }
  0xeb   : > { %771 = vmatmul.f32.gmra.mxu2 %v625_v42  ;;  %1045 = vmatmul.f32.gmra.mxu3 %v538_v55  ;;  %v8254_v55 = vld [vmem:[#allocation2 + $0x50] sm:$0xff]  ;;  %v8327_v42 = vmax.f32 %v486_v33, 0.0 }
  0xed   : > { %490 = vst [vmem:[#allocation2 + $0x91] sm:$0xff] %v8327_v42 }
  0xee   : > { %973 = vmatmul.f32.gmra.mxu1 %v8132_v54 }
  0xf2   : > { %702 = vmatmul.f32.gmra.mxu0 %v8254_v55 }
  0xf3   : > { %774 = vmatmul.f32.gmra.mxu2 %v626_v57  ;;  %1048 = vmatmul.f32.gmra.mxu3 %v539_v1  ;;  %v477_v1 = vadd.f32 %v7936_v17, %v475_v3  ;;  %v630_v57 = vld [vmem:[#allocation2 + $0x130] sm:$0xff] }
  0xf4   : > { %v8357_v3 = vld [vmem:[#allocation2 + $0x71] sm:$0xff] }
  0xf5   : > { %v8283_v9 = vmax.f32 %v477_v1, 0.0  ;;  %v7426_v1 = vld [vmem:[%s10421_s3 + $0x198] sm:$0xff]  ;;  %v8451_v40 = vld [vmem:[#allocation2 + $0x90] sm:$0xff] }
  0xf6   : > { %976 = vmatmul.f32.gmra.mxu1 %v8155_v0  ;;  %1682 = vmatpush.msrb.mxu3 %v7426_v1  ;;  %v8429_v1 = vadd.f32 %v7936_v17, %v575_v30  ;;  %v7466_v30 = vld [vmem:[%s10421_s3 + $0x2d8] sm:$0xff] }
  0xf7   : > { %481 = vst [vmem:[#allocation2 + $0x81] sm:$0xff] %v8283_v9 }
  0xf8   : > { %1683 = vmatpush.msrb.mxu3 %v7425_v27 }
  0xfa   : > { %705 = vmatmul.f32.gmra.mxu0 %v8277_v61 }
  0xfb   : > { %777 = vmatmul.f32.gmra.mxu2 %v627_v7  ;;  %1051 = vmatmul.f32.gmra.mxu3 %v900_v8  ;;  %v8369_v7 = vld [vmem:[#allocation2 + $0x78] sm:$0xff] }
  0xfc   : > { %v631_v8 = vld [vmem:[#allocation2 + $0x138] sm:$0xff] }
  0xfe   : > { %979 = vmatmul.f32.gmra.mxu1 %v8287_v11 }
 0x102   : > { %708 = vmatmul.f32.gmra.mxu0 %v8299_v16 }
 0x103   : > { %780 = vmatmul.f32.gmra.mxu2 %v628_v18  ;;  %1054 = vmatmul.f32.gmra.mxu3 %v548_v22  ;;  %v7411_v22 = vld [vmem:[%s10421_s3 + $0x120] sm:$0xff] }
 0x104   : > { %1311 = vmatpush.msrb.mxu2 %v7411_v22  ;;  %v492_v18 = vld [vmem:[%s7766_s11 + $0x60] sm:$0xff]  ;;  %v8397_v22 = vadd.f32 %v7936_v17, %v574_v25  ;;  %v7424_v25 = vld [vmem:[%s10421_s3 + $0x188] sm:$0xff] }
 0x105   : > { %v494_v24 = vmul.f32 %v7928_v15, %v492_v18  ;;  %v497_v15 = vadd.f32 %v7936_v17, %v495_v49  ;;  %v579_v18 = vmax.f32 %v8429_v1, 0.0  ;;  %1684 = vmatpush.msrb.mxu3 %v7424_v25  ;;  %v7464_v25 = vld [vmem:[%s10421_s3 + $0x2c8] sm:$0xff] }
 0x106   : > { %982 = vmatmul.f32.gmra.mxu1 %v8196_v21  ;;  %1312 = vmatpush.msrb.mxu2 %v7410_v4  ;;  %v7441_v4 = vld [vmem:[%s10421_s3 + $0x210] sm:$0xff] }
 0x107   : > { %v496_v29 = vadd.f32 %v7936_v17, %v494_v24  ;;  %v8437_v24 = vld [vmem:[#allocation2 + $0x89] sm:$0xff]  ;;  %581 = vst [vmem:[#allocation2 + $0x171] sm:$0xff] %v579_v18 }
 0x108   : > { %1313 = vmatpush.msrb.mxu2 %v7409_v26  ;;  %v7408_v17 = vld [vmem:[%s10421_s3 + $0x108] sm:$0xff] }
 0x109   : > { %v8399_v33 = vmax.f32 %v496_v29, 0.0 }
 0x10a   : > { %711 = vmatmul.f32.gmra.mxu0 %v8315_v20  ;;  %1314 = vmatpush.msrb.mxu2 %v7408_v17 }
 0x10b   : > { %783 = vmatmul.f32.gmra.mxu2 %v629_v39  ;;  %1057 = vmatmul.f32.gmra.mxu3 %v549_v35  ;;  %v7443_v35 = vld [vmem:[%s10421_s3 + $0x220] sm:$0xff]  ;;  %v578_v39 = vmax.f32 %v8397_v22, 0.0  ;;  %500 = vst [vmem:[#allocation2 + $0xa9] sm:$0xff] %v8399_v33  ;;  %v7456_v22 = vld [vmem:[%s10421_s3 + $0x288] sm:$0xff] }
 0x10c   : > { %2051 = vmatpush.msrb.mxu0 %v7443_v35  ;;  %1315 = vmatpush.msrb.mxu2 %v7407_v38 }
 0x10d   : > { %580 = vst [vmem:[#allocation2 + $0x169] sm:$0xff] %v578_v39 }
 0x10e   : > { %985 = vmatmul.f32.gmra.mxu1 %v8219_v34  ;;  %2052 = vmatpush.msrb.mxu0 %v7442_v13  ;;  %v8431_v13 = vmax.f32 %v497_v15, 0.0 }
 0x110   : > { %2053 = vmatpush.msrb.mxu0 %v7441_v4  ;;  %501 = vst [vmem:[#allocation2 + $0xb1] sm:$0xff] %v8431_v13  ;;  %v8462_v4 = vld [vmem:[#allocation2 + $0x98] sm:$0xff] }
 0x112   : > { %714 = vmatmul.f32.gmra.mxu0 %v8341_v50 }
 0x113   : > { %786 = vmatmul.f32.gmra.mxu2 %v630_v57  ;;  %1060 = vmatmul.f32.gmra.mxu3 %v903_v52  ;;  %v7467_v52 = vld [vmem:[%s10421_s3 + $0x2e0] sm:$0xff] }
 0x114   : > { %2413 = vmatpush.msrb.mxu1 %v7467_v52 }
 0x116   : > { %988 = vmatmul.f32.gmra.mxu1 %v8357_v3 }
 0x117   : > { %2414 = vmatpush.msrb.mxu1 %v7466_v30  ;;  %v7439_v30 = vld [vmem:[%s10421_s3 + $0x200] sm:$0xff] }
 0x11a   : > { %717 = vmatmul.f32.gmra.mxu0 %v8369_v7 }
 0x11b   : > { %789 = vmatmul.f32.gmra.mxu2 %v631_v8  ;;  %1063 = vmatmul.f32.gmra.mxu3 %v558_v60  ;;  %v8387_v60 = vld [vmem:[#allocation2 + $0x80] sm:$0xff]  ;;  %v633_v8 = vld [vmem:[#allocation2 + $0x148] sm:$0xff] }
 0x11e   : > { %991 = vmatmul.f32.gmra.mxu1 %v8260_v59 }
 0x11f   : > { %v8385_v58 = vpop.f32.mrf.mxu0 }
 0x122   : > { %720 = vmatmul.f32.gmra.mxu0 %v8387_v60 }
 0x123   : > { %792 = vmatmul.f32.gmra.mxu2 %v632_v31  ;;  %1066 = vmatmul.f32.gmra.mxu3 %v559_v10  ;;  %v8405_v45 = vpop.f32.mrf.mxu1  ;;  %v8419_v10 = vld [vmem:[#allocation2 + $0x88] sm:$0xff] }
 0x126   : > { %v745_v35 = vpop.f32.mrf.mxu2  ;;  %v1019_v53 = vpop.f32.mrf.mxu3  ;;  %994 = vmatmul.f32.gmra.mxu1 %v8283_v9 }
 0x127   : > { %v8415_v57 = vadd.f32 %v1019_v53, %v745_v35  ;;  %v8417_v6 = vpop.f32.mrf.mxu0  ;;  %v7440_v35 = vld [vmem:[%s10421_s3 + $0x208] sm:$0xff] }
 0x128   : > { %2054 = vmatpush.msrb.mxu0 %v7440_v35  ;;  %v636_v35 = vld [vmem:[#allocation2 + $0x160] sm:$0xff] }
 0x129   : > { %10429 = vst [vmem:[#allocation5_spill] sm:$0xff] %v8415_v57 }
 0x12a   : > { %723 = vmatmul.f32.gmra.mxu0 %v8419_v10 }
 0x12b   : > { %795 = vmatmul.f32.gmra.mxu2 %v633_v8  ;;  %1069 = vmatmul.f32.gmra.mxu3 %v906_v12  ;;  %v8435_v23 = vpop.f32.mrf.mxu1  ;;  %v7465_v8 = vld [vmem:[%s10421_s3 + $0x2d0] sm:$0xff]  ;;  %v635_v12 = vld [vmem:[#allocation2 + $0x158] sm:$0xff] }
 0x12c   : > { %2415 = vmatpush.msrb.mxu1 %v7465_v8  ;;  %2055 = vmatpush.msrb.mxu0 %v7439_v30  ;;  %v7486_v8 = vld [vmem:[%s10421_s3 + $0x378] sm:$0xff] }
 0x12d   : > { %2780 = vmatpush.msra.mxu2 %v7486_v8 }
 0x12e   : > { %v748_v26 = vpop.f32.mrf.mxu2  ;;  %v1022_v27 = vpop.f32.mrf.mxu3  ;;  %997 = vmatmul.f32.gmra.mxu1 %v8437_v24 }
 0x12f   : > { %v8449_v29 = vadd.f32 %v1022_v27, %v748_v26  ;;  %v679_v31 = vpop.f32.mrf.mxu0  ;;  %2416 = vmatpush.msrb.mxu1 %v7464_v25  ;;  %v7463_v26 = vld [vmem:[%s10421_s3 + $0x2c0] sm:$0xff]  ;;  %v7460_v25 = vld [vmem:[%s10421_s3 + $0x2a8] sm:$0xff] }
 0x131   : > { %10430 = vst [vmem:[#allocation6_spill] sm:$0xff] %v8449_v29  ;;  %2417 = vmatpush.msrb.mxu1 %v7463_v26  ;;  %v2345_v29 = vld [vmem:[#allocation2 + $0x1a] sm:$0xff] }
 0x132   : > { %726 = vmatmul.f32.gmra.mxu0 %v8451_v40 }
 0x133   : > { %798 = vmatmul.f32.gmra.mxu2 %v634_v46  ;;  %1072 = vmatmul.f32.gmra.mxu3 %v568_v43  ;;  %v953_v49 = vpop.f32.mrf.mxu1  ;;  %v7423_v43 = vld [vmem:[%s10421_s3 + $0x180] sm:$0xff] }
 0x134   : > { %1685 = vmatpush.msrb.mxu3 %v7423_v43  ;;  %v8506_v43 = vld [vmem:[#allocation2 + $0xa1] sm:$0xff] }
 0x136   : > { %v751_v53 = vpop.f32.mrf.mxu2  ;;  %v1025_v52 = vpop.f32.mrf.mxu3  ;;  %1000 = vmatmul.f32.gmra.mxu1 %v8327_v42 }
 0x137   : > { %v8465_v15 = vpop.f32.mrf.mxu0  ;;  %v909_v53 = vld [vmem:[#allocation2 + $0x161] sm:$0xff]  ;;  %v7461_v52 = vld [vmem:[%s10421_s3 + $0x2b0] sm:$0xff] }
 0x13a   : > { %729 = vmatmul.f32.gmra.mxu0 %v8462_v4 }
 0x13b   : > { %801 = vmatmul.f32.gmra.mxu2 %v635_v12  ;;  %1075 = vmatmul.f32.gmra.mxu3 %v569_v63  ;;  %v8479_v17 = vpop.f32.mrf.mxu1  ;;  %v7462_v63 = vld [vmem:[%s10421_s3 + $0x2b8] sm:$0xff] }
 0x13c   : > { %2418 = vmatpush.msrb.mxu1 %v7462_v63  ;;  %v7502_v12 = vld [vmem:[%s10421_s3 + $0x3f8] sm:$0xff] }
 0x13d   : > { %3150 = vmatpush.msra.mxu3 %v7502_v12  ;;  %v7518_v12 = vld [vmem:[%s10421_s3 + $0x478] sm:$0xff] }
 0x13e   : > { %v754_v27 = vpop.f32.mrf.mxu2  ;;  %v1028_v31 = vpop.f32.mrf.mxu3  ;;  %1003 = vmatmul.f32.gmra.mxu1 %v8353_v62  ;;  %3520 = vmatpush.msra.mxu0 %v7518_v12 }
 0x13f   : > { %v8488_v46 = vadd.f32 %v1028_v31, %v754_v27  ;;  %v8490_v49 = vpop.f32.mrf.mxu0  ;;  %2419 = vmatpush.msrb.mxu1 %v7461_v52  ;;  %v7459_v31 = vld [vmem:[%s10421_s3 + $0x2a0] sm:$0xff]  ;;  %v7458_v52 = vld [vmem:[%s10421_s3 + $0x298] sm:$0xff] }
 0x141   : > { %10431 = vst [vmem:[#allocation7_spill] sm:$0xff] %v8488_v46  ;;  %2420 = vmatpush.msrb.mxu1 %v7460_v25  ;;  %v7457_v25 = vld [vmem:[%s10421_s3 + $0x290] sm:$0xff] }
 0x142   : > { %732 = vmatmul.f32.gmra.mxu0 %v8492_v56 }
 0x143   : > { %804 = vmatmul.f32.gmra.mxu2 %v636_v35  ;;  %1078 = vmatmul.f32.gmra.mxu3 %v909_v53  ;;  %v8504_v38 = vpop.f32.mrf.mxu1  ;;  %v8523_v35 = vld [vmem:[#allocation2 + $0xa8] sm:$0xff] }
 0x144   : > { %v637_v53 = vld [vmem:[#allocation2 + $0x168] sm:$0xff]  ;;  %2421 = vmatpush.msrb.mxu1 %v7459_v31  ;;  %v8543_v31 = vld [vmem:[#allocation2 + $0xb0] sm:$0xff] }
 0x146   : > { %v757_v26 = vpop.f32.mrf.mxu2  ;;  %v1031_v27 = vpop.f32.mrf.mxu3  ;;  %1006 = vmatmul.f32.gmra.mxu1 %v8506_v43 }
 0x147   : > { %v8521_v63 = vadd.f32 %v1031_v27, %v757_v26  ;;  %v688_v30 = vpop.f32.mrf.mxu0  ;;  %2422 = vmatpush.msrb.mxu1 %v7458_v52 }
 0x148   : > { %v638_v30 = vld [vmem:[#allocation2 + $0x170] sm:$0xff] }
 0x149   : > { %10432 = vst [vmem:[#allocation8_spill] sm:$0xff] %v8521_v63  ;;  %2423 = vmatpush.msrb.mxu1 %v7457_v25  ;;  %v912_v63 = vld [vmem:[#allocation2 + $0x179] sm:$0xff] }
 0x14a   : > { %735 = vmatmul.f32.gmra.mxu0 %v8523_v35 }
 0x14b   : > { %807 = vmatmul.f32.gmra.mxu2 %v637_v53  ;;  %1081 = vmatmul.f32.gmra.mxu3 %v578_v39  ;;  %v962_v8 = vpop.f32.mrf.mxu1  ;;  %v7455_v53 = vld [vmem:[%s10421_s3 + $0x280] sm:$0xff] }
 0x14c   : > { %2424 = vmatpush.msrb.mxu1 %v7456_v22  ;;  %v639_v22 = vld [vmem:[#allocation2 + $0x178] sm:$0xff] }
 0x14e   : > { %v760_v26 = vpop.f32.mrf.mxu2  ;;  %v1034_v27 = vpop.f32.mrf.mxu3  ;;  %1009 = vmatmul.f32.gmra.mxu1 %v8399_v33 }
 0x14f   : > { %v8541_v39 = vpop.f32.mrf.mxu0  ;;  %2425 = vmatpush.msrb.mxu1 %v7455_v53  ;;  %v8558_v27 = vld [vmem:[#allocation2 + $0xb8] sm:$0xff]  ;;  %v7501_v53 = vld [vmem:[%s10421_s3 + $0x3f0] sm:$0xff] }
 0x150   : > { %3151 = vmatpush.msra.mxu3 %v7501_v53 }
 0x152   : > { %738 = vmatmul.f32.gmra.mxu0 %v8543_v31 }
 0x153   : > { %810 = vmatmul.f32.gmra.mxu2 %v638_v30  ;;  %1084 = vmatmul.f32.gmra.mxu3 %v579_v18  ;;  %v8551_v52 = vpop.f32.mrf.mxu1  ;;  %v8563_v18 = vld [vmem:[#allocation2 + $0xb9] sm:$0xff]  ;;  %v7485_v30 = vld [vmem:[%s10421_s3 + $0x370] sm:$0xff] }
 0x154   : > { %2781 = vmatpush.msra.mxu2 %v7485_v30  ;;  %v7517_v30 = vld [vmem:[%s10421_s3 + $0x470] sm:$0xff] }
 0x155   : > { %3521 = vmatpush.msra.mxu0 %v7517_v30  ;;  %v2347_v30 = vld [vmem:[#allocation2 + $0x2a] sm:$0xff] }
 0x156   : > { %v763_v8 = vpop.f32.mrf.mxu2  ;;  %v1037_v12 = vpop.f32.mrf.mxu3  ;;  %1012 = vmatmul.f32.gmra.mxu1 %v8431_v13 }
 0x157   : > { %v8554_v25 = vadd.f32 %v1037_v12, %v763_v8  ;;  %v8556_v26 = vpop.f32.mrf.mxu0 }
 0x159   : > { %10433 = vst [vmem:[#allocation9_spill] sm:$0xff] %v8554_v25  ;;  %v1235_v25 = vld [vmem:[#allocation2 + $0x2] sm:$0xff] }
 0x15a   : > { %741 = vmatmul.f32.gmra.mxu0 %v8558_v27 }
 0x15b   : > { %813 = vmatmul.f32.gmra.mxu2 %v639_v22  ;;  %1087 = vmatmul.f32.gmra.mxu3 %v912_v63  ;;  %v8561_v1 = vpop.f32.mrf.mxu1 }
 0x15c   : > { %10434 = vst [vmem:[#allocation10_spill] sm:$0xff] %v8561_v1 }
 0x15e   : > { %v766_v8 = vpop.f32.mrf.mxu2  ;;  %v1040_v12 = vpop.f32.mrf.mxu3  ;;  %1015 = vmatmul.f32.gmra.mxu1 %v8563_v18 }
 0x15f   : > { %v8572_v22 = vadd.f32 %v1040_v12, %v766_v8  ;;  %v697_v63 = vpop.f32.mrf.mxu0  ;;  %v1236_v8 = vld [vmem:[#allocation2 + $0xa] sm:$0xff] }
 0x161   : > { %10435 = vst [vmem:[#allocation11_spill] sm:$0xff] %v8572_v22 }
 0x162   : > { %2056 = vmatmul.f32.vlgmr.msrb.gmra.mxu0 %v7990_v44 }
 0x163   : > { %1316 = vmatmul.f32.vlgmr.msrb.gmra.mxu2 %v1235_v25  ;;  %1686 = vmatmul.f32.vlgmr.msrb.gmra.mxu3 %v8107_v37  ;;  %v971_v46 = vpop.f32.mrf.mxu1  ;;  %v2346_v37 = vld [vmem:[#allocation2 + $0x22] sm:$0xff] }
 0x166   : > { %v769_v53 = vpop.f32.mrf.mxu2  ;;  %v1043_v57 = vpop.f32.mrf.mxu3  ;;  %2426 = vmatmul.f32.vlgmr.msrb.gmra.mxu1 %v2345_v29 }
 0x167   : > { %v8579_v1 = vpop.f32.mrf.mxu0  ;;  %v1237_v57 = vld [vmem:[#allocation2 + $0x12] sm:$0xff]  ;;  %v7500_v53 = vld [vmem:[%s10421_s3 + $0x3e8] sm:$0xff] }
 0x168   : > { %3152 = vmatpush.msra.mxu3 %v7500_v53 }
 0x16a   : > { %2059 = vmatmul.f32.gmra.mxu0 %v8009_v51 }
 0x16b   : > { %1319 = vmatmul.f32.gmra.mxu2 %v1236_v8  ;;  %1689 = vmatmul.f32.gmra.mxu3 %v8126_v47  ;;  %v8583_v44 = vpop.f32.mrf.mxu1  ;;  %v7484_v47 = vld [vmem:[%s10421_s3 + $0x368] sm:$0xff] }
 0x16c   : > { %2782 = vmatpush.msra.mxu2 %v7484_v47 }
 0x16e   : > { %v772_v46 = vpop.f32.mrf.mxu2  ;;  %v1046_v25 = vpop.f32.mrf.mxu3  ;;  %2429 = vmatmul.f32.gmra.mxu1 %v2346_v37 }
 0x16f   : > { %v8585_v12 = vadd.f32 %v1046_v25, %v772_v46  ;;  %v8587_v63 = vpop.f32.mrf.mxu0 }
 0x171   : > { %10436 = vst [vmem:[#allocation12_spill] sm:$0xff] %v8585_v12  ;;  %v7516_v12 = vld [vmem:[%s10421_s3 + $0x468] sm:$0xff] }
 0x172   : > { %2062 = vmatmul.f32.gmra.mxu0 %v8159_v2 }
 0x173   : > { %1322 = vmatmul.f32.gmra.mxu2 %v1237_v57  ;;  %1692 = vmatmul.f32.gmra.mxu3 %v8149_v48  ;;  %v8591_v51 = vpop.f32.mrf.mxu1  ;;  %v2348_v57 = vld [vmem:[#allocation2 + $0x32] sm:$0xff] }
 0x174   : > { %3522 = vmatpush.msra.mxu0 %v7516_v12 }
 0x176   : > { %v775_v8 = vpop.f32.mrf.mxu2  ;;  %v1049_v46 = vpop.f32.mrf.mxu3  ;;  %2432 = vmatmul.f32.gmra.mxu1 %v2347_v30 }
 0x177   : > { %v8599_v2 = vadd.f32 %v1049_v46, %v775_v8  ;;  %v706_v25 = vpop.f32.mrf.mxu0 }
 0x17a   : > { %2065 = vmatmul.f32.gmra.mxu0 %v8076_v19 }
 0x17b   : > { %1325 = vmatmul.f32.gmra.mxu2 %v2345_v29  ;;  %1695 = vmatmul.f32.gmra.mxu3 %v8171_v5  ;;  %v980_v48 = vpop.f32.mrf.mxu1  ;;  %v2349_v5 = vld [vmem:[#allocation2 + $0x3a] sm:$0xff] }
 0x17e   : > { %v778_v47 = vpop.f32.mrf.mxu2  ;;  %v1052_v53 = vpop.f32.mrf.mxu3  ;;  %2435 = vmatmul.f32.gmra.mxu1 %v2348_v57 }
 0x17f   : > { %v8606_v22 = vpop.f32.mrf.mxu0  ;;  %v2351_v53 = vld [vmem:[#allocation2 + $0x4a] sm:$0xff] }
 0x182   : > { %2068 = vmatmul.f32.gmra.mxu0 %v8095_v32  ;;  %v2350_v32 = vld [vmem:[#allocation2 + $0x42] sm:$0xff] }
 0x183   : > { %1328 = vmatmul.f32.gmra.mxu2 %v2346_v37  ;;  %1698 = vmatmul.f32.gmra.mxu3 %v8190_v14  ;;  %v8610_v19 = vpop.f32.mrf.mxu1  ;;  %v7483_v14 = vld [vmem:[%s10421_s3 + $0x360] sm:$0xff] }
 0x184   : > { %v7499_v37 = vld [vmem:[%s10421_s3 + $0x3e0] sm:$0xff]  ;;  %2783 = vmatpush.msra.mxu2 %v7483_v14 }
 0x185   : > { %3153 = vmatpush.msra.mxu3 %v7499_v37 }
 0x186   : > { %v781_v29 = vpop.f32.mrf.mxu2  ;;  %v1055_v8 = vpop.f32.mrf.mxu3  ;;  %2438 = vmatmul.f32.gmra.mxu1 %v2349_v5 }
 0x187   : > { %v8612_v46 = vadd.f32 %v1055_v8, %v781_v29  ;;  %v8614_v25 = vpop.f32.mrf.mxu0  ;;  %v7515_v29 = vld [vmem:[%s10421_s3 + $0x460] sm:$0xff] }
 0x188   : > { %3523 = vmatpush.msra.mxu0 %v7515_v29 }
 0x18a   : > { %2071 = vmatmul.f32.gmra.mxu0 %v8223_v36 }
 0x18b   : > { %1331 = vmatmul.f32.gmra.mxu2 %v2347_v30  ;;  %1701 = vmatmul.f32.gmra.mxu3 %v8213_v28  ;;  %v8618_v12 = vpop.f32.mrf.mxu1 }
 0x18e   : > { %v784_v48 = vpop.f32.mrf.mxu2  ;;  %v1058_v47 = vpop.f32.mrf.mxu3  ;;  %2441 = vmatmul.f32.gmra.mxu1 %v2350_v32 }
 0x18f   : > { %v8626_v36 = vadd.f32 %v1058_v47, %v784_v48  ;;  %v715_v30 = vpop.f32.mrf.mxu0 }
 0x192   : > { %2074 = vmatmul.f32.gmra.mxu0 %v8132_v54 }
 0x193   : > { %1334 = vmatmul.f32.gmra.mxu2 %v2348_v57  ;;  %1704 = vmatmul.f32.gmra.mxu3 %v8235_v41  ;;  %v989_v28 = vpop.f32.mrf.mxu1  ;;  %v2352_v41 = vld [vmem:[#allocation2 + $0x52] sm:$0xff] }
 0x196   : > { %v787_v8 = vpop.f32.mrf.mxu2  ;;  %v1061_v14 = vpop.f32.mrf.mxu3  ;;  %2444 = vmatmul.f32.gmra.mxu1 %v2351_v53 }
 0x197   : > { %v8633_v37 = vpop.f32.mrf.mxu0  ;;  %v2354_v14 = vld [vmem:[#allocation2 + $0x62] sm:$0xff] }
 0x19a   : > { %2077 = vmatmul.f32.gmra.mxu0 %v8155_v0  ;;  %v2353_v0 = vld [vmem:[#allocation2 + $0x5a] sm:$0xff] }
 0x19b   : > { %1337 = vmatmul.f32.gmra.mxu2 %v2349_v5  ;;  %1707 = vmatmul.f32.gmra.mxu3 %v8254_v55  ;;  %v8637_v54 = vpop.f32.mrf.mxu1  ;;  %v7482_v55 = vld [vmem:[%s10421_s3 + $0x358] sm:$0xff] }
 0x19c   : > { %v7498_v5 = vld [vmem:[%s10421_s3 + $0x3d8] sm:$0xff]  ;;  %2784 = vmatpush.msra.mxu2 %v7482_v55 }
 0x19d   : > { %3154 = vmatpush.msra.mxu3 %v7498_v5 }
 0x19e   : > { %v790_v57 = vpop.f32.mrf.mxu2  ;;  %v1064_v48 = vpop.f32.mrf.mxu3  ;;  %2447 = vmatmul.f32.gmra.mxu1 %v2352_v41 }
 0x19f   : > { %v8639_v47 = vadd.f32 %v1064_v48, %v790_v57  ;;  %v8641_v30 = vpop.f32.mrf.mxu0  ;;  %v7514_v57 = vld [vmem:[%s10421_s3 + $0x458] sm:$0xff] }
 0x1a0   : > { %3524 = vmatpush.msra.mxu0 %v7514_v57 }
 0x1a2   : > { %2080 = vmatmul.f32.gmra.mxu0 %v8287_v11 }
 0x1a3   : > { %1340 = vmatmul.f32.gmra.mxu2 %v2350_v32  ;;  %1710 = vmatmul.f32.gmra.mxu3 %v8277_v61  ;;  %v8645_v28 = vpop.f32.mrf.mxu1 }
 0x1a6   : > { %v793_v29 = vpop.f32.mrf.mxu2  ;;  %v1067_v8 = vpop.f32.mrf.mxu3  ;;  %2450 = vmatmul.f32.gmra.mxu1 %v2353_v0 }
 0x1a7   : > { %v8653_v11 = vadd.f32 %v1067_v8, %v793_v29  ;;  %v724_v32 = vpop.f32.mrf.mxu0 }
 0x1aa   : > { %2083 = vmatmul.f32.gmra.mxu0 %v8196_v21 }
 0x1ab   : > { %1343 = vmatmul.f32.gmra.mxu2 %v2351_v53  ;;  %1713 = vmatmul.f32.gmra.mxu3 %v8299_v16  ;;  %v998_v61 = vpop.f32.mrf.mxu1  ;;  %v2355_v16 = vld [vmem:[#allocation2 + $0x6a] sm:$0xff] }
 0x1ae   : > { %v796_v48 = vpop.f32.mrf.mxu2  ;;  %v1070_v55 = vpop.f32.mrf.mxu3  ;;  %2453 = vmatmul.f32.gmra.mxu1 %v2354_v14 }
 0x1af   : > { %v8660_v5 = vpop.f32.mrf.mxu0  ;;  %v2357_v55 = vld [vmem:[#allocation2 + $0x7a] sm:$0xff] }
 0x1b2   : > { %2086 = vmatmul.f32.gmra.mxu0 %v8219_v34  ;;  %v2356_v34 = vld [vmem:[#allocation2 + $0x72] sm:$0xff] }
 0x1b3   : > { %1346 = vmatmul.f32.gmra.mxu2 %v2352_v41  ;;  %1716 = vmatmul.f32.gmra.mxu3 %v8315_v20  ;;  %v8664_v21 = vpop.f32.mrf.mxu1  ;;  %v7481_v20 = vld [vmem:[%s10421_s3 + $0x350] sm:$0xff] }
 0x1b4   : > { %v7497_v41 = vld [vmem:[%s10421_s3 + $0x3d0] sm:$0xff]  ;;  %2785 = vmatpush.msra.mxu2 %v7481_v20 }
 0x1b5   : > { %3155 = vmatpush.msra.mxu3 %v7497_v41 }
 0x1b6   : > { %v799_v53 = vpop.f32.mrf.mxu2  ;;  %v1073_v29 = vpop.f32.mrf.mxu3  ;;  %2456 = vmatmul.f32.gmra.mxu1 %v2355_v16 }
 0x1b7   : > { %v8666_v8 = vadd.f32 %v1073_v29, %v799_v53  ;;  %v8668_v32 = vpop.f32.mrf.mxu0  ;;  %v4056_v53 = vld [vmem:[%s10424_s6 + $0x78] sm:$0xff]  ;;  %v7513_v29 = vld [vmem:[%s10421_s3 + $0x450] sm:$0xff] }
 0x1b8   : > { %4057 = vmatpush.msra.mxu1 %v4056_v53  ;;  %3525 = vmatpush.msra.mxu0 %v7513_v29 }
 0x1ba   : > { %2089 = vmatmul.f32.gmra.mxu0 %v8357_v3 }
 0x1bb   : > { %1349 = vmatmul.f32.gmra.mxu2 %v2353_v0  ;;  %1719 = vmatmul.f32.gmra.mxu3 %v8341_v50  ;;  %v8672_v61 = vpop.f32.mrf.mxu1 }
 0x1be   : > { %v802_v57 = vpop.f32.mrf.mxu2  ;;  %v1076_v48 = vpop.f32.mrf.mxu3  ;;  %2459 = vmatmul.f32.gmra.mxu1 %v2356_v34 }
 0x1bf   : > { %v8680_v3 = vadd.f32 %v1076_v48, %v802_v57  ;;  %v733_v0 = vpop.f32.mrf.mxu0 }
 0x1c2   : > { %2092 = vmatmul.f32.gmra.mxu0 %v8260_v59 }
 0x1c3   : > { %1352 = vmatmul.f32.gmra.mxu2 %v2354_v14  ;;  %1722 = vmatmul.f32.gmra.mxu3 %v8369_v7  ;;  %v1007_v50 = vpop.f32.mrf.mxu1  ;;  %v2358_v7 = vld [vmem:[#allocation2 + $0x82] sm:$0xff] }
 0x1c6   : > { %v805_v20 = vpop.f32.mrf.mxu2  ;;  %v1079_v41 = vpop.f32.mrf.mxu3  ;;  %2462 = vmatmul.f32.gmra.mxu1 %v2357_v55 }
 0x1c7   : > { %v8690_v57 = vpop.f32.mrf.mxu0  ;;  %v2360_v41 = vld [vmem:[#allocation2 + $0x92] sm:$0xff] }
 0x1ca   : > { %2095 = vmatmul.f32.gmra.mxu0 %v8283_v9  ;;  %v2359_v9 = vld [vmem:[#allocation2 + $0x8a] sm:$0xff] }
 0x1cb   : > { %1355 = vmatmul.f32.gmra.mxu2 %v2355_v16  ;;  %1725 = vmatmul.f32.gmra.mxu3 %v8387_v60  ;;  %v8694_v59 = vpop.f32.mrf.mxu1  ;;  %v7480_v60 = vld [vmem:[%s10421_s3 + $0x348] sm:$0xff] }
 0x1cc   : > { %2786 = vmatpush.msra.mxu2 %v7480_v60  ;;  %v7496_v16 = vld [vmem:[%s10421_s3 + $0x3c8] sm:$0xff] }
 0x1cd   : > { %3156 = vmatpush.msra.mxu3 %v7496_v16 }
 0x1ce   : > { %v808_v14 = vpop.f32.mrf.mxu2  ;;  %v1082_v48 = vpop.f32.mrf.mxu3  ;;  %2465 = vmatmul.f32.gmra.mxu1 %v2358_v7 }
 0x1cf   : > { %v8696_v0 = vadd.f32 %v1082_v48, %v808_v14  ;;  %v8698_v50 = vpop.f32.mrf.mxu0  ;;  %v4055_v14 = vld [vmem:[%s10424_s6 + $0x70] sm:$0xff]  ;;  %v7512_v48 = vld [vmem:[%s10421_s3 + $0x448] sm:$0xff] }
 0x1d0   : > { %4058 = vmatpush.msra.mxu1 %v4055_v14  ;;  %3526 = vmatpush.msra.mxu0 %v7512_v48 }
 0x1d2   : > { %2098 = vmatmul.f32.gmra.mxu0 %v8437_v24 }
 0x1d3   : > { %1358 = vmatmul.f32.gmra.mxu2 %v2356_v34  ;;  %1728 = vmatmul.f32.gmra.mxu3 %v8419_v10  ;;  %v8702_v53 = vpop.f32.mrf.mxu1 }
 0x1d6   : > { %v811_v29 = vpop.f32.mrf.mxu2  ;;  %v1085_v20 = vpop.f32.mrf.mxu3  ;;  %2468 = vmatmul.f32.gmra.mxu1 %v2359_v9 }
 0x1d7   : > { %v8710_v24 = vadd.f32 %v1085_v20, %v811_v29  ;;  %v742_v34 = vpop.f32.mrf.mxu0 }
 0x1da   : > { %2101 = vmatmul.f32.gmra.mxu0 %v8327_v42 }
 0x1db   : > { %1361 = vmatmul.f32.gmra.mxu2 %v2357_v55  ;;  %1731 = vmatmul.f32.gmra.mxu3 %v8451_v40  ;;  %v1016_v10 = vpop.f32.mrf.mxu1  ;;  %v2361_v40 = vld [vmem:[#allocation2 + $0x9a] sm:$0xff]  ;;  %v1139_v55 = vadd.f32 %v8405_v45, %v8385_v58  ;;  %v1140_v58 = vadd.f32 %v8435_v23, %v8417_v6  ;;  %v2363_v23 = vld [vmem:[#allocation2 + $0xaa] sm:$0xff] }
 0x1de   : > { %v814_v60 = vpop.f32.mrf.mxu2  ;;  %v1088_v16 = vpop.f32.mrf.mxu3  ;;  %2471 = vmatmul.f32.gmra.mxu1 %v2360_v41 }
 0x1df   : > { %v2057_v29 = vpop.f32.mrf.mxu0  ;;  %v2362_v60 = vld [vmem:[#allocation2 + $0xa2] sm:$0xff] }
 0x1e2   : > { %2104 = vmatmul.f32.gmra.mxu0 %v8353_v62 }
 0x1e3   : > { %1364 = vmatmul.f32.gmra.mxu2 %v2358_v7  ;;  %1734 = vmatmul.f32.gmra.mxu3 %v8462_v4  ;;  %v2427_v42 = vpop.f32.mrf.mxu1  ;;  %v7479_v4 = vld [vmem:[%s10421_s3 + $0x340] sm:$0xff] }
 0x1e4   : > { %2787 = vmatpush.msra.mxu2 %v7479_v4 }
 0x1e6   : > { %v1317_v20 = vpop.f32.mrf.mxu2  ;;  %v1687_v34 = vpop.f32.mrf.mxu3  ;;  %2474 = vmatmul.f32.gmra.mxu1 %v2361_v40 }
 0x1e7   : > { %v1509_v10 = vadd.f32 %v1317_v20, %v1139_v55  ;;  %v2060_v14 = vpop.f32.mrf.mxu0 }
 0x1e9   : > { %v1879_v48 = vadd.f32 %v1687_v34, %v1509_v10  ;;  %v7511_v34 = vld [vmem:[%s10421_s3 + $0x440] sm:$0xff] }
 0x1ea   : > { %2107 = vmatmul.f32.gmra.mxu0 %v8506_v43  ;;  %v7495_v43 = vld [vmem:[%s10421_s3 + $0x3c0] sm:$0xff] }
 0x1eb   : > { %1367 = vmatmul.f32.gmra.mxu2 %v2359_v9  ;;  %1737 = vmatmul.f32.gmra.mxu3 %v8492_v56  ;;  %v2249_v62 = vadd.f32 %v2057_v29, %v1879_v48  ;;  %v2430_v7 = vpop.f32.mrf.mxu1 }
 0x1ec   : > { %3157 = vmatpush.msra.mxu3 %v7495_v43  ;;  %3527 = vmatpush.msra.mxu0 %v7511_v34  ;;  %v4053_v34 = vld [vmem:[%s10424_s6 + $0x60] sm:$0xff] }
 0x1ed   : > { %v8731_v45 = vadd.f32 %v2427_v42, %v2249_v62  ;;  %v4054_v42 = vld [vmem:[%s10424_s6 + $0x68] sm:$0xff]  ;;  %v1142_v62 = vadd.f32 %v8479_v17, %v8465_v15  ;;  %v1143_v15 = vadd.f32 %v8504_v38, %v8490_v49 }
 0x1ee   : > { %v1320_v9 = vpop.f32.mrf.mxu2  ;;  %v1690_v16 = vpop.f32.mrf.mxu3  ;;  %2477 = vmatmul.f32.gmra.mxu1 %v2362_v60  ;;  %v2366_v38 = vld [vmem:[#allocation2 + $0xc2] sm:$0xff] }
 0x1ef   : > { %v1510_v56 = vadd.f32 %v1320_v9, %v1140_v58  ;;  %v2063_v29 = vpop.f32.mrf.mxu0  ;;  %4059 = vmatpush.msra.mxu1 %v4054_v42 }
 0x1f1   : > { %v1880_v55 = vadd.f32 %v1690_v16, %v1510_v56  ;;  %v2365_v16 = vld [vmem:[#allocation2 + $0xba] sm:$0xff]  ;;  %4060 = vmatpush.msra.mxu1 %v4053_v34 }
 0x1f2   : > { %2110 = vmatmul.f32.gmra.mxu0 %v8399_v33  ;;  %v1999_v34 = vld [vmem:[#allocation2 + $0xd9] sm:$0xff] }
 0x1f3   : > { %1370 = vmatmul.f32.gmra.mxu2 %v2360_v41  ;;  %1740 = vmatmul.f32.gmra.mxu3 %v8523_v35  ;;  %v2250_v20 = vadd.f32 %v2060_v14, %v1880_v55  ;;  %v2433_v6 = vpop.f32.mrf.mxu1  ;;  %v2364_v14 = vld [vmem:[#allocation2 + $0xb2] sm:$0xff]  ;;  %v1996_v55 = vld [vmem:[#allocation2 + $0xc1] sm:$0xff] }
 0x1f5   : > { %v8744_v10 = vadd.f32 %v2430_v7, %v2250_v20  ;;  %v1626_v20 = vld [vmem:[#allocation2 + $0xc0] sm:$0xff] }
 0x1f6   : > { %v1323_v48 = vpop.f32.mrf.mxu2  ;;  %v1693_v33 = vpop.f32.mrf.mxu3  ;;  %2480 = vmatmul.f32.gmra.mxu1 %v2363_v23 }
 0x1f7   : > { %v2066_v41 = vpop.f32.mrf.mxu0  ;;  %v7510_v48 = vld [vmem:[%s10421_s3 + $0x438] sm:$0xff] }
 0x1f8   : > { %3528 = vmatpush.msra.mxu0 %v7510_v48  ;;  %v1629_v48 = vld [vmem:[#allocation2 + $0xd8] sm:$0xff] }
 0x1fa   : > { %2113 = vmatmul.f32.gmra.mxu0 %v8431_v13 }
 0x1fb   : > { %1373 = vmatmul.f32.gmra.mxu2 %v2361_v40  ;;  %1743 = vmatmul.f32.gmra.mxu3 %v8543_v31  ;;  %v2436_v35 = vpop.f32.mrf.mxu1  ;;  %v7478_v31 = vld [vmem:[%s10421_s3 + $0x338] sm:$0xff] }
 0x1fc   : > { %2788 = vmatpush.msra.mxu2 %v7478_v31 }
 0x1fe   : > { %v1326_v4 = vpop.f32.mrf.mxu2  ;;  %v1696_v58 = vpop.f32.mrf.mxu3  ;;  %2483 = vmatmul.f32.gmra.mxu1 %v2364_v14 }
 0x1ff   : > { %v1512_v43 = vadd.f32 %v1326_v4, %v1142_v62  ;;  %v2069_v7 = vpop.f32.mrf.mxu0  ;;  %v1997_v62 = vld [vmem:[#allocation2 + $0xc9] sm:$0xff] }
 0x200   : > { %v1627_v4 = vld [vmem:[#allocation2 + $0xc8] sm:$0xff] }
 0x201   : > { %v1882_v9 = vadd.f32 %v1696_v58, %v1512_v43  ;;  %v2367_v43 = vld [vmem:[#allocation2 + $0xca] sm:$0xff] }
 0x202   : > { %2116 = vmatmul.f32.gmra.mxu0 %v8563_v18  ;;  %v7494_v18 = vld [vmem:[%s10421_s3 + $0x3b8] sm:$0xff] }
 0x203   : > { %1376 = vmatmul.f32.gmra.mxu2 %v2362_v60  ;;  %1746 = vmatmul.f32.gmra.mxu3 %v8558_v27  ;;  %v2252_v13 = vadd.f32 %v2066_v41, %v1882_v9  ;;  %v2439_v40 = vpop.f32.mrf.mxu1 }
 0x204   : > { %3158 = vmatpush.msra.mxu3 %v7494_v18  ;;  %v1628_v18 = vld [vmem:[#allocation2 + $0xd0] sm:$0xff] }
 0x205   : > { %v8757_v17 = vadd.f32 %v2436_v35, %v2252_v13 }
 0x206   : > { %v1329_v60 = vpop.f32.mrf.mxu2  ;;  %v1699_v56 = vpop.f32.mrf.mxu3  ;;  %2486 = vmatmul.f32.gmra.mxu1 %v2365_v16 }
 0x207   : > { %v1513_v27 = vadd.f32 %v1329_v60, %v1143_v15  ;;  %v2072_v29 = vpop.f32.mrf.mxu0  ;;  %v1998_v15 = vld [vmem:[#allocation2 + $0xd1] sm:$0xff] }
 0x208   : > { %v7477_v29 = vld [vmem:[%s10421_s3 + $0x330] sm:$0xff] }
 0x209   : > { %v1883_v6 = vadd.f32 %v1699_v56, %v1513_v27  ;;  %2789 = vmatpush.msra.mxu2 %v7477_v29 }
 0x20a   : > { %2119 = vmatmul.f32.gmra.mxu0 %v1996_v55 }
 0x20b   : > { %1379 = vmatmul.f32.gmra.mxu2 %v2363_v23  ;;  %1749 = vmatmul.f32.gmra.mxu3 %v1626_v20  ;;  %v2253_v42 = vadd.f32 %v2069_v7, %v1883_v6  ;;  %v2442_v49 = vpop.f32.mrf.mxu1  ;;  %v1145_v7 = vadd.f32 %v8551_v52, %v8541_v39  ;;  %v10437_v39 = vld [vmem:[#allocation10_spill] sm:$0xff]  ;;  %v7493_v20 = vld [vmem:[%s10421_s3 + $0x3b0] sm:$0xff] }
 0x20c   : > { %v1146_v52 = vadd.f32 %v10437_v39, %v8556_v26  ;;  %3159 = vmatpush.msra.mxu3 %v7493_v20  ;;  %v2001_v39 = vld [vmem:[#allocation2 + $0xe9] sm:$0xff] }
 0x20d   : > { %v8768_v33 = vadd.f32 %v2439_v40, %v2253_v42 }
 0x20e   : > { %v1332_v41 = vpop.f32.mrf.mxu2  ;;  %v1702_v35 = vpop.f32.mrf.mxu3  ;;  %2489 = vmatmul.f32.gmra.mxu1 %v2366_v38 }
 0x20f   : > { %v2075_v23 = vpop.f32.mrf.mxu0 }
 0x212   : > { %2122 = vmatmul.f32.gmra.mxu0 %v1997_v62  ;;  %v4052_v62 = vld [vmem:[%s10424_s6 + $0x58] sm:$0xff] }
 0x213   : > { %1382 = vmatmul.f32.gmra.mxu2 %v2364_v14  ;;  %1752 = vmatmul.f32.gmra.mxu3 %v1627_v4  ;;  %v2445_v58 = vpop.f32.mrf.mxu1  ;;  %v2368_v14 = vld [vmem:[#allocation2 + $0xd2] sm:$0xff] }
 0x214   : > { %v7509_v4 = vld [vmem:[%s10421_s3 + $0x430] sm:$0xff]  ;;  %4061 = vmatpush.msra.mxu1 %v4052_v62 }
 0x215   : > { %3529 = vmatpush.msra.mxu0 %v7509_v4 }
 0x216   : > { %v1335_v9 = vpop.f32.mrf.mxu2  ;;  %v1705_v13 = vpop.f32.mrf.mxu3  ;;  %2492 = vmatmul.f32.gmra.mxu1 %v2367_v43 }
 0x217   : > { %v1515_v31 = vadd.f32 %v1335_v9, %v1145_v7  ;;  %v2078_v40 = vpop.f32.mrf.mxu0 }
 0x219   : > { %v1885_v60 = vadd.f32 %v1705_v13, %v1515_v31  ;;  %v2000_v13 = vld [vmem:[#allocation2 + $0xe1] sm:$0xff] }
 0x21a   : > { %2125 = vmatmul.f32.gmra.mxu0 %v1998_v15  ;;  %v1630_v31 = vld [vmem:[#allocation2 + $0xe0] sm:$0xff] }
 0x21b   : > { %1385 = vmatmul.f32.gmra.mxu2 %v2365_v16  ;;  %1755 = vmatmul.f32.gmra.mxu3 %v1628_v18  ;;  %v2255_v56 = vadd.f32 %v2075_v23, %v1885_v60  ;;  %v2448_v27 = vpop.f32.mrf.mxu1  ;;  %v2369_v23 = vld [vmem:[#allocation2 + $0xda] sm:$0xff]  ;;  %v2370_v15 = vld [vmem:[#allocation2 + $0xe2] sm:$0xff]  ;;  %v1148_v18 = vadd.f32 %v8583_v44, %v8579_v1  ;;  %v1149_v1 = vadd.f32 %v8591_v51, %v8587_v63  ;;  %v2372_v51 = vld [vmem:[#allocation2 + $0xf2] sm:$0xff] }
 0x21d   : > { %v8777_v55 = vadd.f32 %v2445_v58, %v2255_v56 }
 0x21e   : > { %v1338_v6 = vpop.f32.mrf.mxu2  ;;  %v1708_v16 = vpop.f32.mrf.mxu3  ;;  %2495 = vmatmul.f32.gmra.mxu1 %v2368_v14 }
 0x21f   : > { %v1516_v42 = vadd.f32 %v1338_v6, %v1146_v52  ;;  %v2081_v49 = vpop.f32.mrf.mxu0  ;;  %v1631_v52 = vld [vmem:[#allocation2 + $0xe8] sm:$0xff] }
 0x220   : > { %v7492_v49 = vld [vmem:[%s10421_s3 + $0x3a8] sm:$0xff] }
 0x221   : > { %v1886_v41 = vadd.f32 %v1708_v16, %v1516_v42  ;;  %v7476_v42 = vld [vmem:[%s10421_s3 + $0x328] sm:$0xff]  ;;  %3160 = vmatpush.msra.mxu3 %v7492_v49 }
 0x222   : > { %2128 = vmatmul.f32.gmra.mxu0 %v1999_v34  ;;  %2790 = vmatpush.msra.mxu2 %v7476_v42 }
 0x223   : > { %1388 = vmatmul.f32.gmra.mxu2 %v2366_v38  ;;  %1758 = vmatmul.f32.gmra.mxu3 %v1629_v48  ;;  %v2256_v35 = vadd.f32 %v2078_v40, %v1886_v41  ;;  %v2451_v26 = vpop.f32.mrf.mxu1 }
 0x224   : > { %v1632_v26 = vld [vmem:[#allocation2 + $0xf0] sm:$0xff] }
 0x225   : > { %v8788_v58 = vadd.f32 %v2448_v27, %v2256_v35  ;;  %v2002_v35 = vld [vmem:[#allocation2 + $0xf1] sm:$0xff] }
 0x226   : > { %v1341_v7 = vpop.f32.mrf.mxu2  ;;  %v1711_v9 = vpop.f32.mrf.mxu3  ;;  %2498 = vmatmul.f32.gmra.mxu1 %v2369_v23 }
 0x227   : > { %v2084_v38 = vpop.f32.mrf.mxu0  ;;  %v4051_v7 = vld [vmem:[%s10424_s6 + $0x50] sm:$0xff]  ;;  %v7508_v9 = vld [vmem:[%s10421_s3 + $0x428] sm:$0xff] }
 0x228   : > { %4062 = vmatpush.msra.mxu1 %v4051_v7  ;;  %3530 = vmatpush.msra.mxu0 %v7508_v9  ;;  %v4050_v7 = vld [vmem:[%s10424_s6 + $0x48] sm:$0xff]  ;;  %v7507_v9 = vld [vmem:[%s10421_s3 + $0x420] sm:$0xff] }
 0x22a   : > { %2131 = vmatmul.f32.gmra.mxu0 %v2000_v13  ;;  %4063 = vmatpush.msra.mxu1 %v4050_v7 }
 0x22b   : > { %1391 = vmatmul.f32.gmra.mxu2 %v2367_v43  ;;  %1761 = vmatmul.f32.gmra.mxu3 %v1630_v31  ;;  %v2454_v40 = vpop.f32.mrf.mxu1  ;;  %v2371_v43 = vld [vmem:[#allocation2 + $0xea] sm:$0xff] }
 0x22c   : > { %3531 = vmatpush.msra.mxu0 %v7507_v9 }
 0x22e   : > { %v1344_v60 = vpop.f32.mrf.mxu2  ;;  %v1714_v56 = vpop.f32.mrf.mxu3  ;;  %2501 = vmatmul.f32.gmra.mxu1 %v2370_v15 }
 0x22f   : > { %v1518_v29 = vadd.f32 %v1344_v60, %v1148_v18  ;;  %v2087_v27 = vpop.f32.mrf.mxu0  ;;  %v1633_v18 = vld [vmem:[#allocation2 + $0xf8] sm:$0xff] }
 0x231   : > { %v1888_v20 = vadd.f32 %v1714_v56, %v1518_v29  ;;  %v2373_v56 = vld [vmem:[#allocation2 + $0xfa] sm:$0xff]  ;;  %v1151_v29 = vadd.f32 %v8610_v19, %v8606_v22  ;;  %v1152_v22 = vadd.f32 %v8618_v12, %v8614_v25  ;;  %v2375_v12 = vld [vmem:[#allocation2 + $0x10a] sm:$0xff] }
 0x232   : > { %2134 = vmatmul.f32.gmra.mxu0 %v2001_v39 }
 0x233   : > { %1394 = vmatmul.f32.gmra.mxu2 %v2368_v14  ;;  %1764 = vmatmul.f32.gmra.mxu3 %v1631_v52  ;;  %v2258_v6 = vadd.f32 %v2084_v38, %v1888_v20  ;;  %v2457_v16 = vpop.f32.mrf.mxu1 }
 0x235   : > { %v8797_v44 = vadd.f32 %v2454_v40, %v2258_v6  ;;  %v2003_v40 = vld [vmem:[#allocation2 + $0xf9] sm:$0xff]  ;;  %v2004_v6 = vld [vmem:[#allocation2 + $0x101] sm:$0xff] }
 0x236   : > { %v1347_v34 = vpop.f32.mrf.mxu2  ;;  %v1717_v14 = vpop.f32.mrf.mxu3  ;;  %2504 = vmatmul.f32.gmra.mxu1 %v2371_v43 }
 0x237   : > { %v1519_v48 = vadd.f32 %v1347_v34, %v1149_v1  ;;  %v2090_v41 = vpop.f32.mrf.mxu0  ;;  %v7475_v34 = vld [vmem:[%s10421_s3 + $0x320] sm:$0xff] }
 0x238   : > { %2791 = vmatpush.msra.mxu2 %v7475_v34 }
 0x239   : > { %v1889_v62 = vadd.f32 %v1717_v14, %v1519_v48  ;;  %v7491_v14 = vld [vmem:[%s10421_s3 + $0x3a0] sm:$0xff] }
 0x23a   : > { %2137 = vmatmul.f32.gmra.mxu0 %v2002_v35  ;;  %3161 = vmatpush.msra.mxu3 %v7491_v14  ;;  %v7490_v14 = vld [vmem:[%s10421_s3 + $0x398] sm:$0xff] }
 0x23b   : > { %1397 = vmatmul.f32.gmra.mxu2 %v2369_v23  ;;  %1767 = vmatmul.f32.gmra.mxu3 %v1632_v26  ;;  %v2259_v4 = vadd.f32 %v2087_v27, %v1889_v62  ;;  %v2460_v63 = vpop.f32.mrf.mxu1  ;;  %v2005_v26 = vld [vmem:[#allocation2 + $0x109] sm:$0xff] }
 0x23c   : > { %v1635_v62 = vld [vmem:[#allocation2 + $0x108] sm:$0xff]  ;;  %3162 = vmatpush.msra.mxu3 %v7490_v14 }
 0x23d   : > { %v8808_v38 = vadd.f32 %v2457_v16, %v2259_v4  ;;  %v1634_v16 = vld [vmem:[#allocation2 + $0x100] sm:$0xff] }
 0x23e   : > { %v1350_v13 = vpop.f32.mrf.mxu2  ;;  %v1720_v31 = vpop.f32.mrf.mxu3  ;;  %2507 = vmatmul.f32.gmra.mxu1 %v2372_v51 }
 0x23f   : > { %v2093_v23 = vpop.f32.mrf.mxu0 }
 0x242   : > { %2140 = vmatmul.f32.gmra.mxu0 %v2003_v40  ;;  %v2006_v40 = vld [vmem:[#allocation2 + $0x111] sm:$0xff] }
 0x243   : > { %1400 = vmatmul.f32.gmra.mxu2 %v2370_v15  ;;  %1770 = vmatmul.f32.gmra.mxu3 %v1633_v18  ;;  %v2463_v60 = vpop.f32.mrf.mxu1  ;;  %v2374_v15 = vld [vmem:[#allocation2 + $0x102] sm:$0xff]  ;;  %v1636_v18 = vld [vmem:[#allocation2 + $0x110] sm:$0xff] }
 0x246   : > { %v1353_v27 = vpop.f32.mrf.mxu2  ;;  %v1723_v39 = vpop.f32.mrf.mxu3  ;;  %2510 = vmatmul.f32.gmra.mxu1 %v2373_v56 }
 0x247   : > { %v1521_v52 = vadd.f32 %v1353_v27, %v1151_v29  ;;  %v2096_v20 = vpop.f32.mrf.mxu0  ;;  %v2376_v29 = vld [vmem:[#allocation2 + $0x112] sm:$0xff]  ;;  %v1154_v27 = vadd.f32 %v8637_v54, %v8633_v37  ;;  %v1155_v37 = vadd.f32 %v8645_v28, %v8641_v30  ;;  %v2378_v28 = vld [vmem:[#allocation2 + $0x122] sm:$0xff] }
 0x249   : > { %v1891_v42 = vadd.f32 %v1723_v39, %v1521_v52 }
 0x24a   : > { %2143 = vmatmul.f32.gmra.mxu0 %v2004_v6 }
 0x24b   : > { %1403 = vmatmul.f32.gmra.mxu2 %v2371_v43  ;;  %1773 = vmatmul.f32.gmra.mxu3 %v1634_v16  ;;  %v2261_v1 = vadd.f32 %v2093_v23, %v1891_v42  ;;  %v2466_v49 = vpop.f32.mrf.mxu1  ;;  %v2007_v16 = vld [vmem:[#allocation2 + $0x119] sm:$0xff] }
 0x24c   : > { %v1637_v42 = vld [vmem:[#allocation2 + $0x118] sm:$0xff] }
 0x24d   : > { %v8817_v19 = vadd.f32 %v2463_v60, %v2261_v1 }
 0x24e   : > { %v1356_v48 = vpop.f32.mrf.mxu2  ;;  %v1726_v43 = vpop.f32.mrf.mxu3  ;;  %2513 = vmatmul.f32.gmra.mxu1 %v2374_v15 }
 0x24f   : > { %v1522_v41 = vadd.f32 %v1356_v48, %v1152_v22  ;;  %v2099_v35 = vpop.f32.mrf.mxu0  ;;  %v7474_v22 = vld [vmem:[%s10421_s3 + $0x318] sm:$0xff] }
 0x250   : > { %2792 = vmatpush.msra.mxu2 %v7474_v22  ;;  %v2008_v35 = vld [vmem:[#allocation2 + $0x121] sm:$0xff]  ;;  %v7489_v22 = vld [vmem:[%s10421_s3 + $0x390] sm:$0xff] }
 0x251   : > { %v1892_v4 = vadd.f32 %v1726_v43, %v1522_v41  ;;  %3163 = vmatpush.msra.mxu3 %v7489_v22  ;;  %v2014_v22 = vld [vmem:[#allocation2 + $0x151] sm:$0xff] }
 0x252   : > { %2146 = vmatmul.f32.gmra.mxu0 %v2005_v26  ;;  %v1638_v26 = vld [vmem:[#allocation2 + $0x120] sm:$0xff] }
 0x253   : > { %1406 = vmatmul.f32.gmra.mxu2 %v2372_v51  ;;  %1776 = vmatmul.f32.gmra.mxu3 %v1635_v62  ;;  %v2262_v63 = vadd.f32 %v2096_v20, %v1892_v4  ;;  %v2469_v25 = vpop.f32.mrf.mxu1 }
 0x254   : > { %v7506_v25 = vld [vmem:[%s10421_s3 + $0x418] sm:$0xff] }
 0x255   : > { %v8828_v13 = vadd.f32 %v2466_v49, %v2262_v63  ;;  %v4049_v63 = vld [vmem:[%s10424_s6 + $0x40] sm:$0xff]  ;;  %3532 = vmatpush.msra.mxu0 %v7506_v25 }
 0x256   : > { %v1359_v31 = vpop.f32.mrf.mxu2  ;;  %v1729_v23 = vpop.f32.mrf.mxu3  ;;  %2516 = vmatmul.f32.gmra.mxu1 %v2375_v12  ;;  %v2012_v25 = vld [vmem:[#allocation2 + $0x141] sm:$0xff] }
 0x257   : > { %v2102_v51 = vpop.f32.mrf.mxu0  ;;  %4064 = vmatpush.msra.mxu1 %v4049_v63  ;;  %v2009_v23 = vld [vmem:[#allocation2 + $0x129] sm:$0xff] }
 0x25a   : > { %2149 = vmatmul.f32.gmra.mxu0 %v2006_v40 }
 0x25b   : > { %1409 = vmatmul.f32.gmra.mxu2 %v2373_v56  ;;  %1779 = vmatmul.f32.gmra.mxu3 %v1636_v18  ;;  %v2472_v60 = vpop.f32.mrf.mxu1  ;;  %v2377_v56 = vld [vmem:[#allocation2 + $0x11a] sm:$0xff]  ;;  %v2379_v18 = vld [vmem:[#allocation2 + $0x12a] sm:$0xff] }
 0x25e   : > { %v1362_v39 = vpop.f32.mrf.mxu2  ;;  %v1732_v52 = vpop.f32.mrf.mxu3  ;;  %2519 = vmatmul.f32.gmra.mxu1 %v2376_v29 }
 0x25f   : > { %v1524_v20 = vadd.f32 %v1362_v39, %v1154_v27  ;;  %v2105_v6 = vpop.f32.mrf.mxu0 }
 0x261   : > { %v1894_v1 = vadd.f32 %v1732_v52, %v1524_v20 }
 0x262   : > { %2152 = vmatmul.f32.gmra.mxu0 %v2007_v16  ;;  %v1640_v16 = vld [vmem:[#allocation2 + $0x130] sm:$0xff] }
 0x263   : > { %1412 = vmatmul.f32.gmra.mxu2 %v2374_v15  ;;  %1782 = vmatmul.f32.gmra.mxu3 %v1637_v42  ;;  %v2264_v49 = vadd.f32 %v2102_v51, %v1894_v1  ;;  %v2475_v34 = vpop.f32.mrf.mxu1  ;;  %v1639_v51 = vld [vmem:[#allocation2 + $0x128] sm:$0xff] }
 0x265   : > { %v8837_v54 = vadd.f32 %v2472_v60, %v2264_v49  ;;  %v1157_v60 = vadd.f32 %v8664_v21, %v8660_v5  ;;  %v1158_v5 = vadd.f32 %v8672_v61, %v8668_v32  ;;  %v2381_v61 = vld [vmem:[#allocation2 + $0x13a] sm:$0xff] }
 0x266   : > { %v1365_v48 = vpop.f32.mrf.mxu2  ;;  %v1735_v15 = vpop.f32.mrf.mxu3  ;;  %2522 = vmatmul.f32.gmra.mxu1 %v2377_v56 }
 0x267   : > { %v1525_v43 = vadd.f32 %v1365_v48, %v1155_v37  ;;  %v2108_v41 = vpop.f32.mrf.mxu0 }
 0x269   : > { %v1895_v62 = vadd.f32 %v1735_v15, %v1525_v43  ;;  %v2011_v15 = vld [vmem:[#allocation2 + $0x139] sm:$0xff] }
 0x26a   : > { %2155 = vmatmul.f32.gmra.mxu0 %v2008_v35  ;;  %v1641_v43 = vld [vmem:[#allocation2 + $0x138] sm:$0xff] }
 0x26b   : > { %1415 = vmatmul.f32.gmra.mxu2 %v2375_v12  ;;  %1785 = vmatmul.f32.gmra.mxu3 %v1638_v26  ;;  %v2265_v4 = vadd.f32 %v2105_v6, %v1895_v62  ;;  %v2478_v30 = vpop.f32.mrf.mxu1  ;;  %v2010_v6 = vld [vmem:[#allocation2 + $0x131] sm:$0xff] }
 0x26c   : > { %v4048_v26 = vld [vmem:[%s10424_s6 + $0x38] sm:$0xff]  ;;  %v7505_v62 = vld [vmem:[%s10421_s3 + $0x410] sm:$0xff] }
 0x26d   : > { %v8848_v7 = vadd.f32 %v2475_v34, %v2265_v4  ;;  %v7473_v34 = vld [vmem:[%s10421_s3 + $0x310] sm:$0xff]  ;;  %4065 = vmatpush.msra.mxu1 %v4048_v26  ;;  %3533 = vmatpush.msra.mxu0 %v7505_v62 }
 0x26e   : > { %v1368_v9 = vpop.f32.mrf.mxu2  ;;  %v1738_v31 = vpop.f32.mrf.mxu3  ;;  %2525 = vmatmul.f32.gmra.mxu1 %v2378_v28  ;;  %2793 = vmatpush.msra.mxu2 %v7473_v34 }
 0x26f   : > { %v2111_v12 = vpop.f32.mrf.mxu0  ;;  %v1642_v9 = vld [vmem:[#allocation2 + $0x140] sm:$0xff] }
 0x272   : > { %2158 = vmatmul.f32.gmra.mxu0 %v2009_v23  ;;  %v1160_v23 = vadd.f32 %v8694_v59, %v8690_v57  ;;  %v1161_v57 = vadd.f32 %v8702_v53, %v8698_v50 }
 0x273   : > { %1418 = vmatmul.f32.gmra.mxu2 %v2376_v29  ;;  %1788 = vmatmul.f32.gmra.mxu3 %v1639_v51  ;;  %v2481_v40 = vpop.f32.mrf.mxu1  ;;  %v2380_v29 = vld [vmem:[#allocation2 + $0x132] sm:$0xff] }
 0x276   : > { %v1371_v27 = vpop.f32.mrf.mxu2  ;;  %v1741_v39 = vpop.f32.mrf.mxu3  ;;  %2528 = vmatmul.f32.gmra.mxu1 %v2379_v18 }
 0x277   : > { %v1527_v52 = vadd.f32 %v1371_v27, %v1157_v60  ;;  %v2114_v20 = vpop.f32.mrf.mxu0 }
 0x279   : > { %v1897_v42 = vadd.f32 %v1741_v39, %v1527_v52  ;;  %v2013_v39 = vld [vmem:[#allocation2 + $0x149] sm:$0xff] }
 0x27a   : > { %2161 = vmatmul.f32.gmra.mxu0 %v2010_v6  ;;  %v1643_v52 = vld [vmem:[#allocation2 + $0x148] sm:$0xff] }
 0x27b   : > { %1421 = vmatmul.f32.gmra.mxu2 %v2377_v56  ;;  %1791 = vmatmul.f32.gmra.mxu3 %v1640_v16  ;;  %v2267_v1 = vadd.f32 %v2111_v12, %v1897_v42  ;;  %v2484_v49 = vpop.f32.mrf.mxu1  ;;  %v2382_v12 = vld [vmem:[#allocation2 + $0x142] sm:$0xff] }
 0x27c   : > { %v7472_v42 = vld [vmem:[%s10421_s3 + $0x308] sm:$0xff] }
 0x27d   : > { %v8857_v21 = vadd.f32 %v2481_v40, %v2267_v1  ;;  %2794 = vmatpush.msra.mxu2 %v7472_v42  ;;  %v7488_v1 = vld [vmem:[%s10421_s3 + $0x388] sm:$0xff]  ;;  %v1646_v42 = vld [vmem:[#allocation2 + $0x160] sm:$0xff] }
 0x27e   : > { %v1374_v37 = vpop.f32.mrf.mxu2  ;;  %v1744_v56 = vpop.f32.mrf.mxu3  ;;  %2531 = vmatmul.f32.gmra.mxu1 %v2380_v29  ;;  %3164 = vmatpush.msra.mxu3 %v7488_v1 }
 0x27f   : > { %v1528_v14 = vadd.f32 %v1374_v37, %v1158_v5  ;;  %v2117_v48 = vpop.f32.mrf.mxu0  ;;  %v1644_v37 = vld [vmem:[#allocation2 + $0x150] sm:$0xff] }
 0x280   : > { %v4047_v48 = vld [vmem:[%s10424_s6 + $0x30] sm:$0xff] }
 0x281   : > { %v1898_v41 = vadd.f32 %v1744_v56, %v1528_v14  ;;  %v2384_v14 = vld [vmem:[#allocation2 + $0x152] sm:$0xff]  ;;  %4066 = vmatpush.msra.mxu1 %v4047_v48  ;;  %v1647_v48 = vld [vmem:[#allocation2 + $0x168] sm:$0xff] }
 0x282   : > { %2164 = vmatmul.f32.gmra.mxu0 %v2011_v15  ;;  %v7504_v15 = vld [vmem:[%s10421_s3 + $0x408] sm:$0xff] }
 0x283   : > { %1424 = vmatmul.f32.gmra.mxu2 %v2378_v28  ;;  %1794 = vmatmul.f32.gmra.mxu3 %v1641_v43  ;;  %v2268_v35 = vadd.f32 %v2114_v20, %v1898_v41  ;;  %v2487_v32 = vpop.f32.mrf.mxu1  ;;  %v582_v43 = vld [vmem:[%s7766_s11 + $0xf0] sm:$0xff] }
 0x284   : > { %3534 = vmatpush.msra.mxu0 %v7504_v15 }
 0x285   : > { %v8868_v4 = vadd.f32 %v2484_v49, %v2268_v35  ;;  %v7697_v35 = vld [vmem:[%s10419_s1] ss:$0 sm:$0xff] }
 0x286   : > { %v1377_v30 = vpop.f32.mrf.mxu2  ;;  %v1747_v63 = vpop.f32.mrf.mxu3  ;;  %2534 = vmatmul.f32.gmra.mxu1 %v2381_v61  ;;  %v584_v32 = vmul.f32 %v7697_v35, %v582_v43 }
 0x287   : > { %v2120_v28 = vpop.f32.mrf.mxu0  ;;  %v2015_v30 = vld [vmem:[#allocation2 + $0x159] sm:$0xff] }
 0x288   : > { %v7698_v63 = vld [vmem:[%s10420_s2] ss:$0 sm:$0xff] }
 0x28a   : > { %2167 = vmatmul.f32.gmra.mxu0 %v2012_v25  ;;  %v1645_v25 = vld [vmem:[#allocation2 + $0x158] sm:$0xff] }
 0x28b   : > { %1427 = vmatmul.f32.gmra.mxu2 %v2379_v18  ;;  %1797 = vmatmul.f32.gmra.mxu3 %v1642_v9  ;;  %v2490_v31 = vpop.f32.mrf.mxu1  ;;  %v2383_v18 = vld [vmem:[#allocation2 + $0x14a] sm:$0xff] }
 0x28e   : > { %v1380_v51 = vpop.f32.mrf.mxu2  ;;  %v1750_v40 = vpop.f32.mrf.mxu3  ;;  %2537 = vmatmul.f32.gmra.mxu1 %v2382_v12 }
 0x28f   : > { %v1530_v60 = vadd.f32 %v1380_v51, %v1160_v23  ;;  %v2123_v27 = vpop.f32.mrf.mxu0  ;;  %v2385_v23 = vld [vmem:[#allocation2 + $0x15a] sm:$0xff] }
 0x290   : > { %v583_v51 = vld [vmem:[%s7766_s11 + $0xf8] sm:$0xff] }
 0x291   : > { %v1900_v20 = vadd.f32 %v1750_v40, %v1530_v60  ;;  %v585_v40 = vmul.f32 %v7697_v35, %v583_v51 }
 0x292   : > { %2170 = vmatmul.f32.gmra.mxu0 %v2013_v39  ;;  %v10438_v39 = vld [vmem:[#allocation5_spill] sm:$0xff] }
 0x293   : > { %1430 = vmatmul.f32.gmra.mxu2 %v2380_v29  ;;  %1800 = vmatmul.f32.gmra.mxu3 %v1643_v52  ;;  %v2270_v6 = vadd.f32 %v2120_v28, %v1900_v20  ;;  %v2493_v16 = vpop.f32.mrf.mxu1  ;;  %v8897_v28 = vadd.f32 %v7698_v63, %v584_v32  ;;  %v2387_v32 = vld [vmem:[#allocation2 + $0x16a] sm:$0xff] }
 0x295   : > { %v8877_v59 = vadd.f32 %v2490_v31, %v2270_v6  ;;  %v588_v9 = vmax.f32 %v8897_v28, 0.0  ;;  %v2016_v6 = vld [vmem:[#allocation2 + $0x161] sm:$0xff] }
 0x296   : > { %v1383_v49 = vpop.f32.mrf.mxu2  ;;  %v1753_v29 = vpop.f32.mrf.mxu3  ;;  %2540 = vmatmul.f32.gmra.mxu1 %v2383_v18 }
 0x297   : > { %v1531_v34 = vadd.f32 %v1383_v49, %v1161_v57  ;;  %v2126_v5 = vpop.f32.mrf.mxu0  ;;  %590 = vst [vmem:[#allocation2 + $0x181] sm:$0xff] %v588_v9 }
 0x298   : > { %v7487_v5 = vld [vmem:[%s10421_s3 + $0x380] sm:$0xff] }
 0x299   : > { %v1901_v56 = vadd.f32 %v1753_v29, %v1531_v34  ;;  %v2386_v29 = vld [vmem:[#allocation2 + $0x162] sm:$0xff]  ;;  %3165 = vmatpush.msra.mxu3 %v7487_v5 }
 0x29a   : > { %2173 = vmatmul.f32.gmra.mxu0 %v2014_v22  ;;  %v7471_v34 = vld [vmem:[%s10421_s3 + $0x300] sm:$0xff] }
 0x29b   : > { %1433 = vmatmul.f32.gmra.mxu2 %v2381_v61  ;;  %1803 = vmatmul.f32.gmra.mxu3 %v1644_v37  ;;  %v2271_v50 = vadd.f32 %v2123_v27, %v1901_v56  ;;  %v2496_v53 = vpop.f32.mrf.mxu1  ;;  %v10439_v37 = vld [vmem:[#allocation6_spill] sm:$0xff] }
 0x29c   : > { %2795 = vmatpush.msra.mxu2 %v7471_v34  ;;  %v2017_v53 = vld [vmem:[#allocation2 + $0x169] sm:$0xff] }
 0x29d   : > { %v8889_v41 = vadd.f32 %v2493_v16, %v2271_v50  ;;  %v8906_v16 = vadd.f32 %v7698_v63, %v585_v40  ;;  %v2388_v40 = vld [vmem:[#allocation2 + $0x172] sm:$0xff] }
 0x29e   : > { %v1386_v61 = vpop.f32.mrf.mxu2  ;;  %v1756_v26 = vpop.f32.mrf.mxu3  ;;  %2543 = vmatmul.f32.gmra.mxu1 %v2384_v14 }
 0x29f   : > { %v2129_v62 = vpop.f32.mrf.mxu0  ;;  %v589_v57 = vmax.f32 %v8906_v16, 0.0  ;;  %v4046_v61 = vld [vmem:[%s10424_s6 + $0x28] sm:$0xff]  ;;  %v7503_v26 = vld [vmem:[%s10421_s3 + $0x400] sm:$0xff] }
 0x2a0   : > { %4067 = vmatpush.msra.mxu1 %v4046_v61  ;;  %3535 = vmatpush.msra.mxu0 %v7503_v26  ;;  %v4045_v61 = vld [vmem:[%s10424_s6 + $0x20] sm:$0xff] }
 0x2a1   : > { %591 = vst [vmem:[#allocation2 + $0x189] sm:$0xff] %v589_v57 }
 0x2a2   : > { %2176 = vmatmul.f32.gmra.mxu0 %v2015_v30  ;;  %4068 = vmatpush.msra.mxu1 %v4045_v61 }
 0x2a3   : > { %1436 = vmatmul.f32.gmra.mxu2 %v2382_v12  ;;  %1806 = vmatmul.f32.gmra.mxu3 %v1645_v25  ;;  %v8900_v31 = vpop.f32.mrf.mxu1  ;;  %v1648_v25 = vld [vmem:[#allocation2 + $0x170] sm:$0xff] }
 0x2a6   : > { %v1389_v60 = vpop.f32.mrf.mxu2  ;;  %v1759_v27 = vpop.f32.mrf.mxu3  ;;  %2546 = vmatmul.f32.gmra.mxu1 %v2385_v23 }
 0x2a7   : > { %v1533_v52 = vadd.f32 %v1389_v60, %v10438_v39  ;;  %v2132_v20 = vpop.f32.mrf.mxu0  ;;  %v10440_v39 = vld [vmem:[#allocation7_spill] sm:$0xff] }
 0x2a9   : > { %v1903_v12 = vadd.f32 %v1759_v27, %v1533_v52 }
 0x2aa   : > { %2179 = vmatmul.f32.gmra.mxu0 %v2016_v6  ;;  %v2019_v6 = vld [vmem:[#allocation2 + $0x179] sm:$0xff] }
 0x2ab   : > { %1439 = vmatmul.f32.gmra.mxu2 %v2383_v18  ;;  %1809 = vmatmul.f32.gmra.mxu3 %v1646_v42  ;;  %v8909_v1 = vadd.f32 %v2129_v62, %v1903_v12  ;;  %v8911_v49 = vpop.f32.mrf.mxu1  ;;  %v1649_v42 = vld [vmem:[#allocation2 + $0x178] sm:$0xff] }
 0x2ae   : > { %v1392_v22 = vpop.f32.mrf.mxu2  ;;  %v1762_v18 = vpop.f32.mrf.mxu3  ;;  %2549 = vmatmul.f32.gmra.mxu1 %v2386_v29 }
 0x2af   : > { %v1534_v56 = vadd.f32 %v1392_v22, %v10439_v37  ;;  %v2135_v50 = vpop.f32.mrf.mxu0  ;;  %v10441_v37 = vld [vmem:[#allocation8_spill] sm:$0xff] }
 0x2b1   : > { %v1904_v15 = vadd.f32 %v1762_v18, %v1534_v56 }
 0x2b2   : > { %2182 = vmatmul.f32.gmra.mxu0 %v2017_v53  ;;  %v1650_v53 = vld [vmem:[#allocation2 + $0x180] sm:$0xff] }
 0x2b3   : > { %1442 = vmatmul.f32.gmra.mxu2 %v2384_v14  ;;  %1812 = vmatmul.f32.gmra.mxu3 %v1647_v48  ;;  %v8922_v43 = vadd.f32 %v2132_v20, %v1904_v15  ;;  %v2505_v35 = vpop.f32.mrf.mxu1  ;;  %v2018_v14 = vld [vmem:[#allocation2 + $0x171] sm:$0xff] }
 0x2b4   : > { %v2390_v35 = vld [vmem:[#allocation2 + $0x182] sm:$0xff] }
 0x2b6   : > { %v1395_v62 = vpop.f32.mrf.mxu2  ;;  %v1765_v30 = vpop.f32.mrf.mxu3  ;;  %2552 = vmatmul.f32.gmra.mxu1 %v2387_v32 }
 0x2b7   : > { %v2138_v63 = vpop.f32.mrf.mxu0 }
 0x2ba   : > { %2185 = vmatmul.f32.gmra.mxu0 %v2018_v14 }
 0x2bb   : > { %1445 = vmatmul.f32.gmra.mxu2 %v2385_v23  ;;  %1815 = vmatmul.f32.gmra.mxu3 %v1648_v25  ;;  %v8930_v51 = vpop.f32.mrf.mxu1  ;;  %v2389_v23 = vld [vmem:[#allocation2 + $0x17a] sm:$0xff]  ;;  %v10442_v25 = vld [vmem:[#allocation9_spill] sm:$0xff] }
 0x2be   : > { %v1398_v60 = vpop.f32.mrf.mxu2  ;;  %v1768_v27 = vpop.f32.mrf.mxu3  ;;  %2555 = vmatmul.f32.gmra.mxu1 %v2388_v40 }
 0x2bf   : > { %v1536_v52 = vadd.f32 %v1398_v60, %v10440_v39  ;;  %v2141_v20 = vpop.f32.mrf.mxu0  ;;  %v2022_v39 = vld [vmem:[#allocation2 + $0x191] sm:$0xff] }
 0x2c1   : > { %v1906_v12 = vadd.f32 %v1768_v27, %v1536_v52  ;;  %v1652_v52 = vld [vmem:[#allocation2 + $0x190] sm:$0xff] }
 0x2c2   : > { %2188 = vmatmul.f32.gmra.mxu0 %v2019_v6 }
 0x2c3   : > { %1448 = vmatmul.f32.gmra.mxu2 %v2386_v29  ;;  %1818 = vmatmul.f32.gmra.mxu3 %v1649_v42  ;;  %v8933_v34 = vadd.f32 %v2138_v63, %v1906_v12  ;;  %v8935_v5 = vpop.f32.mrf.mxu1  ;;  %v1651_v63 = vld [vmem:[#allocation2 + $0x188] sm:$0xff]  ;;  %v10443_v42 = vld [vmem:[#allocation11_spill] sm:$0xff] }
 0x2c6   : > { %v1401_v22 = vpop.f32.mrf.mxu2  ;;  %v1771_v18 = vpop.f32.mrf.mxu3  ;;  %2558 = vmatmul.f32.gmra.mxu1 %v2389_v23 }
 0x2c7   : > { %v1537_v56 = vadd.f32 %v1401_v22, %v10441_v37  ;;  %v2144_v50 = vpop.f32.mrf.mxu0  ;;  %v2715_v37 = vld [vmem:[#allocation2 + $0x30] sm:$0xff] }
 0x2c9   : > { %v1907_v48 = vadd.f32 %v1771_v18, %v1537_v56  ;;  %v3455_v18 = vld [vmem:[#allocation2 + $0x32] sm:$0xff] }
 0x2ca   : > { %2191 = vmatmul.f32.gmra.mxu0 %v588_v9  ;;  %v2391_v9 = vld [vmem:[#allocation2 + $0x18a] sm:$0xff] }
 0x2cb   : > { %1451 = vmatmul.f32.gmra.mxu2 %v2387_v32  ;;  %1821 = vmatmul.f32.gmra.mxu3 %v1650_v53  ;;  %v8940_v29 = vadd.f32 %v2141_v20, %v1907_v48  ;;  %v2514_v15 = vpop.f32.mrf.mxu1  ;;  %v3085_v56 = vld [vmem:[#allocation2 + $0x31] sm:$0xff] }
 0x2cc   : > { %v4044_v48 = vld [vmem:[%s10424_s6 + $0x18] sm:$0xff] }
 0x2cd   : > { %4069 = vmatpush.msra.mxu1 %v4044_v48 }
 0x2ce   : > { %v1404_v26 = vpop.f32.mrf.mxu2  ;;  %v1774_v62 = vpop.f32.mrf.mxu3  ;;  %2561 = vmatmul.f32.gmra.mxu1 %v2390_v35 }
 0x2cf   : > { %v2147_v30 = vpop.f32.mrf.mxu0  ;;  %v3456_v26 = vld [vmem:[#allocation2 + $0x3a] sm:$0xff] }
 0x2d0   : > { %v2716_v62 = vld [vmem:[#allocation2 + $0x38] sm:$0xff] }
 0x2d2   : > { %2194 = vmatmul.f32.gmra.mxu0 %v589_v57 }
 0x2d3   : > { %1454 = vmatmul.f32.gmra.mxu2 %v2388_v40  ;;  %1824 = vmatmul.f32.gmra.mxu3 %v1651_v63  ;;  %v8947_v28 = vpop.f32.mrf.mxu1 }
 0x2d6   : > { %v1407_v32 = vpop.f32.mrf.mxu2  ;;  %v1777_v14 = vpop.f32.mrf.mxu3  ;;  %2564 = vmatmul.f32.gmra.mxu1 %v2391_v9 }
 0x2d7   : > { %v1539_v60 = vadd.f32 %v1407_v32, %v10442_v25  ;;  %v2150_v27 = vpop.f32.mrf.mxu0 }
 0x2d9   : > { %v1909_v20 = vadd.f32 %v1777_v14, %v1539_v60  ;;  %v10444_v14 = vld [vmem:[#allocation12_spill] sm:$0xff] }
 0x2da   : > { %2197 = vmatmul.f32.gmra.mxu0 %v2022_v39  ;;  %v2717_v39 = vld [vmem:[#allocation2 + $0x40] sm:$0xff] }
 0x2db   : > { %1457 = vmatmul.f32.gmra.mxu2 %v2389_v23  ;;  %1827 = vmatmul.f32.gmra.mxu3 %v1652_v52  ;;  %v8950_v6 = vadd.f32 %v2147_v30, %v1909_v20  ;;  %v8952_v16 = vpop.f32.mrf.mxu1  ;;  %v3086_v30 = vld [vmem:[#allocation2 + $0x39] sm:$0xff]  ;;  %v3087_v52 = vld [vmem:[#allocation2 + $0x41] sm:$0xff] }
 0x2de   : > { %v1410_v57 = vpop.f32.mrf.mxu2  ;;  %v1780_v40 = vpop.f32.mrf.mxu3 }
 0x2df   : > { %v1540_v12 = vadd.f32 %v1410_v57, %v10443_v42  ;;  %v2153_v22 = vpop.f32.mrf.mxu0 }
 0x2e1   : > { %v1910_v50 = vadd.f32 %v1780_v40, %v1540_v12 }
 0x2e2   : > { %3536 = vmatmul.f32.vlgmr.msra.gmra.mxu0 %v3455_v18 }
 0x2e3   : > { %2796 = vmatmul.f32.vlgmr.msra.gmra.mxu2 %v2715_v37  ;;  %3166 = vmatmul.f32.vlgmr.msra.gmra.mxu3 %v3085_v56  ;;  %v8955_v53 = vadd.f32 %v2150_v27, %v1910_v50  ;;  %v2523_v23 = vpop.f32.mrf.mxu1  ;;  %v3457_v27 = vld [vmem:[#allocation2 + $0x42] sm:$0xff]  ;;  %v3458_v37 = vld [vmem:[#allocation2 + $0x4a] sm:$0xff] }
 0x2e4   : > { %v2718_v56 = vld [vmem:[#allocation2 + $0x48] sm:$0xff] }
 0x2e5   : > { %v3088_v50 = vld [vmem:[#allocation2 + $0x49] sm:$0xff] }
 0x2e6   : > { %v1413_v15 = vpop.f32.mrf.mxu2  ;;  %v1783_v35 = vpop.f32.mrf.mxu3 }
 0x2e7   : > { %v2156_v61 = vpop.f32.mrf.mxu0  ;;  %v4043_v35 = vld [vmem:[%s10424_s6 + $0x10] sm:$0xff] }
 0x2e8   : > { %4070 = vmatpush.msra.mxu1 %v4043_v35 }
 0x2ea   : > { %3539 = vmatmul.f32.gmra.mxu0 %v3456_v26 }
 0x2eb   : > { %2799 = vmatmul.f32.gmra.mxu2 %v2716_v62  ;;  %3169 = vmatmul.f32.gmra.mxu3 %v3086_v30  ;;  %v8960_v63 = vpop.f32.mrf.mxu1  ;;  %v2719_v30 = vld [vmem:[#allocation2 + $0x50] sm:$0xff] }
 0x2ee   : > { %v1416_v9 = vpop.f32.mrf.mxu2  ;;  %v1786_v32 = vpop.f32.mrf.mxu3 }
 0x2ef   : > { %v1542_v25 = vadd.f32 %v1416_v9, %v10444_v14  ;;  %v2159_v60 = vpop.f32.mrf.mxu0  ;;  %v3089_v9 = vld [vmem:[#allocation2 + $0x51] sm:$0xff] }
 0x2f1   : > { %v1912_v20 = vadd.f32 %v1786_v32, %v1542_v25 }
 0x2f2   : > { %3542 = vmatmul.f32.gmra.mxu0 %v3457_v27 }
 0x2f3   : > { %2802 = vmatmul.f32.gmra.mxu2 %v2717_v39  ;;  %3172 = vmatmul.f32.gmra.mxu3 %v3087_v52  ;;  %v8963_v57 = vadd.f32 %v2156_v61, %v1912_v20  ;;  %v8965_v40 = vpop.f32.mrf.mxu1  ;;  %v3460_v39 = vld [vmem:[#allocation2 + $0x5a] sm:$0xff] }
 0x2f4   : > { %v2720_v52 = vld [vmem:[#allocation2 + $0x58] sm:$0xff] }
 0x2f5   : > { %v3090_v20 = vld [vmem:[#allocation2 + $0x59] sm:$0xff] }
 0x2f6   : > { %v1419_v42 = vpop.f32.mrf.mxu2  ;;  %v1789_v12 = vpop.f32.mrf.mxu3 }
 0x2f7   : > { %v1543_v22 = vadd.f32 %v1419_v42, %v8599_v2  ;;  %v2162_v18 = vpop.f32.mrf.mxu0  ;;  %v3459_v2 = vld [vmem:[#allocation2 + $0x52] sm:$0xff] }
 0x2f9   : > { %v1913_v23 = vadd.f32 %v1789_v12, %v1543_v22 }
 0x2fa   : > { %3545 = vmatmul.f32.gmra.mxu0 %v3458_v37 }
 0x2fb   : > { %2805 = vmatmul.f32.gmra.mxu2 %v2718_v56  ;;  %3175 = vmatmul.f32.gmra.mxu3 %v3088_v50  ;;  %v8968_v48 = vadd.f32 %v2159_v60, %v1913_v23  ;;  %v2532_v15 = vpop.f32.mrf.mxu1  ;;  %v3461_v23 = vld [vmem:[#allocation2 + $0x62] sm:$0xff] }
 0x2fc   : > { %v2721_v15 = vld [vmem:[#allocation2 + $0x60] sm:$0xff] }
 0x2fe   : > { %v1422_v61 = vpop.f32.mrf.mxu2  ;;  %v1792_v26 = vpop.f32.mrf.mxu3 }
 0x2ff   : > { %v2165_v62 = vpop.f32.mrf.mxu0 }
 0x302   : > { %3548 = vmatmul.f32.gmra.mxu0 %v3459_v2 }
 0x303   : > { %2808 = vmatmul.f32.gmra.mxu2 %v2719_v30  ;;  %3178 = vmatmul.f32.gmra.mxu3 %v3089_v9  ;;  %v8973_v32 = vpop.f32.mrf.mxu1 }
 0x306   : > { %v1425_v14 = vpop.f32.mrf.mxu2  ;;  %v1795_v25 = vpop.f32.mrf.mxu3 }
 0x307   : > { %v1545_v60 = vadd.f32 %v1425_v14, %v8612_v46  ;;  %v2168_v27 = vpop.f32.mrf.mxu0  ;;  %v3091_v46 = vld [vmem:[#allocation2 + $0x61] sm:$0xff] }
 0x308   : > { %v2722_v14 = vld [vmem:[#allocation2 + $0x68] sm:$0xff] }
 0x309   : > { %v1915_v42 = vadd.f32 %v1795_v25, %v1545_v60  ;;  %v3092_v25 = vld [vmem:[#allocation2 + $0x69] sm:$0xff] }
 0x30a   : > { %3551 = vmatmul.f32.gmra.mxu0 %v3460_v39 }
 0x30b   : > { %2811 = vmatmul.f32.gmra.mxu2 %v2720_v52  ;;  %3181 = vmatmul.f32.gmra.mxu3 %v3090_v20  ;;  %v8976_v12 = vadd.f32 %v2165_v62, %v1915_v42  ;;  %v8978_v22 = vpop.f32.mrf.mxu1  ;;  %v4042_v62 = vld [vmem:[%s10424_s6 + $0x8] sm:$0xff]  ;;  %v3463_v42 = vld [vmem:[#allocation2 + $0x72] sm:$0xff] }
 0x30c   : > { %4071 = vmatpush.msra.mxu1 %v4042_v62  ;;  %v3464_v62 = vld [vmem:[#allocation2 + $0x7a] sm:$0xff] }
 0x30e   : > { %v1428_v18 = vpop.f32.mrf.mxu2  ;;  %v1798_v37 = vpop.f32.mrf.mxu3 }
 0x30f   : > { %v1546_v56 = vadd.f32 %v1428_v18, %v8626_v36  ;;  %v2171_v50 = vpop.f32.mrf.mxu0  ;;  %v3462_v36 = vld [vmem:[#allocation2 + $0x6a] sm:$0xff] }
 0x310   : > { %v2723_v18 = vld [vmem:[#allocation2 + $0x70] sm:$0xff] }
 0x311   : > { %v1916_v35 = vadd.f32 %v1798_v37, %v1546_v56  ;;  %v3093_v37 = vld [vmem:[#allocation2 + $0x71] sm:$0xff] }
 0x312   : > { %3554 = vmatmul.f32.gmra.mxu0 %v3461_v23 }
 0x313   : > { %2814 = vmatmul.f32.gmra.mxu2 %v2721_v15  ;;  %3184 = vmatmul.f32.gmra.mxu3 %v3091_v46  ;;  %v8981_v61 = vadd.f32 %v2168_v27, %v1916_v35  ;;  %v2541_v26 = vpop.f32.mrf.mxu1 }
 0x316   : > { %v1431_v2 = vpop.f32.mrf.mxu2  ;;  %v1801_v30 = vpop.f32.mrf.mxu3 }
 0x317   : > { %v2174_v9 = vpop.f32.mrf.mxu0  ;;  %v2724_v2 = vld [vmem:[#allocation2 + $0x78] sm:$0xff] }
 0x31a   : > { %3557 = vmatmul.f32.gmra.mxu0 %v3462_v36 }
 0x31b   : > { %2817 = vmatmul.f32.gmra.mxu2 %v2722_v14  ;;  %3187 = vmatmul.f32.gmra.mxu3 %v3092_v25  ;;  %v8986_v60 = vpop.f32.mrf.mxu1 }
 0x31e   : > { %v1434_v39 = vpop.f32.mrf.mxu2  ;;  %v1804_v27 = vpop.f32.mrf.mxu3 }
 0x31f   : > { %v1548_v52 = vadd.f32 %v1434_v39, %v8639_v47  ;;  %v2177_v20 = vpop.f32.mrf.mxu0  ;;  %v3094_v47 = vld [vmem:[#allocation2 + $0x79] sm:$0xff] }
 0x321   : > { %v1918_v56 = vadd.f32 %v1804_v27, %v1548_v52  ;;  %v2725_v52 = vld [vmem:[#allocation2 + $0x80] sm:$0xff] }
 0x322   : > { %3560 = vmatmul.f32.gmra.mxu0 %v3463_v42  ;;  %v3095_v42 = vld [vmem:[#allocation2 + $0x81] sm:$0xff] }
 0x323   : > { %2820 = vmatmul.f32.gmra.mxu2 %v2723_v18  ;;  %3190 = vmatmul.f32.gmra.mxu3 %v3093_v37  ;;  %v8989_v50 = vadd.f32 %v2174_v9, %v1918_v56  ;;  %v8991_v23 = vpop.f32.mrf.mxu1  ;;  %v4041_v9 = vld [vmem:[%s10424_s6] sm:$0xff] }
 0x324   : > { %4072 = vmatpush.msra.mxu1 %v4041_v9 }
 0x326   : > { %v1437_v15 = vpop.f32.mrf.mxu2  ;;  %v1807_v46 = vpop.f32.mrf.mxu3 }
 0x327   : > { %v1549_v35 = vadd.f32 %v1437_v15, %v8653_v11  ;;  %v2180_v26 = vpop.f32.mrf.mxu0  ;;  %v3465_v11 = vld [vmem:[#allocation2 + $0x82] sm:$0xff] }
 0x328   : > { %v3096_v26 = vld [vmem:[#allocation2 + $0x89] sm:$0xff] }
 0x329   : > { %v1919_v30 = vadd.f32 %v1807_v46, %v1549_v35  ;;  %v3466_v46 = vld [vmem:[#allocation2 + $0x8a] sm:$0xff] }
 0x32a   : > { %3563 = vmatmul.f32.gmra.mxu0 %v3464_v62  ;;  %v2726_v35 = vld [vmem:[#allocation2 + $0x88] sm:$0xff] }
 0x32b   : > { %2823 = vmatmul.f32.gmra.mxu2 %v2724_v2  ;;  %3193 = vmatmul.f32.gmra.mxu3 %v3094_v47  ;;  %v8994_v36 = vadd.f32 %v2177_v20, %v1919_v30  ;;  %v2550_v14 = vpop.f32.mrf.mxu1  ;;  %v7534_v2 = vld [vmem:[%s10424_s6 + $0xf8] sm:$0xff] }
 0x32c   : > { %v2392_v47 = vld [vmem:[#allocation2 + $0x192] sm:$0xff]  ;;  %4331 = vmatpush.msrb.mxu2 %v7534_v2 }
 0x32d   : > { %2567 = vmatmul.f32.gmra.mxu1 %v2392_v47  ;;  %v3468_v47 = vld [vmem:[#allocation2 + $0x9a] sm:$0xff] }
 0x32e   : > { %v1440_v25 = vpop.f32.mrf.mxu2  ;;  %v1810_v39 = vpop.f32.mrf.mxu3 }
 0x32f   : > { %v2183_v27 = vpop.f32.mrf.mxu0 }
 0x332   : > { %3566 = vmatmul.f32.gmra.mxu0 %v3465_v11 }
 0x333   : > { %2826 = vmatmul.f32.gmra.mxu2 %v2725_v52  ;;  %3196 = vmatmul.f32.gmra.mxu3 %v3095_v42  ;;  %v8999_v18 = vpop.f32.mrf.mxu1  ;;  %v3467_v52 = vld [vmem:[#allocation2 + $0x92] sm:$0xff] }
 0x334   : > { %v2727_v42 = vld [vmem:[#allocation2 + $0x90] sm:$0xff] }
 0x336   : > { %v1443_v37 = vpop.f32.mrf.mxu2  ;;  %v1813_v20 = vpop.f32.mrf.mxu3 }
 0x337   : > { %v1551_v56 = vadd.f32 %v1443_v37, %v8666_v8  ;;  %v2186_v15 = vpop.f32.mrf.mxu0  ;;  %v7550_v8 = vld [vmem:[%s10424_s6 + $0x178] sm:$0xff] }
 0x338   : > { %4701 = vmatpush.msrb.mxu3 %v7550_v8  ;;  %v3097_v37 = vld [vmem:[#allocation2 + $0x91] sm:$0xff] }
 0x339   : > { %v1921_v62 = vadd.f32 %v1813_v20, %v1551_v56  ;;  %v2728_v8 = vld [vmem:[#allocation2 + $0x98] sm:$0xff] }
 0x33a   : > { %3569 = vmatmul.f32.gmra.mxu0 %v3466_v46 }
 0x33b   : > { %2829 = vmatmul.f32.gmra.mxu2 %v2726_v35  ;;  %3199 = vmatmul.f32.gmra.mxu3 %v3096_v26  ;;  %v9005_v30 = vadd.f32 %v2183_v27, %v1921_v62  ;;  %v9007_v14 = vpop.f32.mrf.mxu1  ;;  %v3993_v27 = vld [vmem:[#allocation3] sm:$0xff]  ;;  %v7566_v35 = vld [vmem:[%s10424_s6 + $0x1f8] sm:$0xff] }
 0x33c   : > { %4073 = vmatmul.f32.vlgmr.msra.gmra.mxu1 %v3993_v27  ;;  %5071 = vmatpush.msrb.mxu0 %v7566_v35  ;;  %v3995_v35 = vld [vmem:[#allocation3 + $0x10] sm:$0xff] }
 0x33e   : > { %v1446_v9 = vpop.f32.mrf.mxu2  ;;  %v1816_v25 = vpop.f32.mrf.mxu3 }
 0x33f   : > { %v1552_v39 = vadd.f32 %v1446_v9, %v8680_v3  ;;  %v2189_v11 = vpop.f32.mrf.mxu0  ;;  %v7582_v3 = vld [vmem:[%s10424_s6 + $0x278] sm:$0xff] }
 0x340   : > { %5441 = vmatpush.msrb.mxu1 %v7582_v3  ;;  %v3098_v9 = vld [vmem:[#allocation2 + $0x99] sm:$0xff] }
 0x341   : > { %v1922_v20 = vadd.f32 %v1816_v25, %v1552_v39 }
 0x342   : > { %3572 = vmatmul.f32.gmra.mxu0 %v3467_v52 }
 0x343   : > { %2832 = vmatmul.f32.gmra.mxu2 %v2727_v42  ;;  %3202 = vmatmul.f32.gmra.mxu3 %v3097_v37  ;;  %v9013_v56 = vadd.f32 %v2186_v15, %v1922_v20  ;;  %v2559_v46 = vpop.f32.mrf.mxu1  ;;  %v3994_v15 = vld [vmem:[#allocation3 + $0x8] sm:$0xff]  ;;  %v3469_v42 = vld [vmem:[#allocation2 + $0xa2] sm:$0xff] }
 0x344   : > { %4076 = vmatmul.f32.gmra.mxu1 %v3994_v15  ;;  %v2729_v37 = vld [vmem:[#allocation2 + $0xa0] sm:$0xff] }
 0x345   : > { %v3099_v20 = vld [vmem:[#allocation2 + $0xa1] sm:$0xff] }
 0x346   : > { %v1449_v26 = vpop.f32.mrf.mxu2  ;;  %v1819_v62 = vpop.f32.mrf.mxu3 }
 0x347   : > { %v2192_v2 = vpop.f32.mrf.mxu0 }
 0x34a   : > { %3575 = vmatmul.f32.gmra.mxu0 %v3468_v47 }
 0x34b   : > { %2835 = vmatmul.f32.gmra.mxu2 %v2728_v8  ;;  %3205 = vmatmul.f32.gmra.mxu3 %v3098_v9  ;;  %v3470_v8 = vld [vmem:[#allocation2 + $0xaa] sm:$0xff] }
 0x34c   : > { %4079 = vmatmul.f32.gmra.mxu1 %v3995_v35  ;;  %v2730_v9 = vld [vmem:[#allocation2 + $0xa8] sm:$0xff]  ;;  %v3101_v35 = vld [vmem:[#allocation2 + $0xb1] sm:$0xff] }
 0x34e   : > { %v1452_v25 = vpop.f32.mrf.mxu2  ;;  %v1822_v39 = vpop.f32.mrf.mxu3 }
 0x34f   : > { %v1554_v11 = vadd.f32 %v1452_v25, %v8696_v0  ;;  %v2195_v52 = vpop.f32.mrf.mxu0  ;;  %v3100_v0 = vld [vmem:[#allocation2 + $0xa9] sm:$0xff] }
 0x351   : > { %v1924_v27 = vadd.f32 %v1822_v39, %v1554_v11  ;;  %v7549_v39 = vld [vmem:[%s10424_s6 + $0x170] sm:$0xff] }
 0x352   : > { %3578 = vmatmul.f32.gmra.mxu0 %v3469_v42  ;;  %4702 = vmatpush.msrb.mxu3 %v7549_v39  ;;  %v7581_v11 = vld [vmem:[%s10424_s6 + $0x270] sm:$0xff] }
 0x353   : > { %2838 = vmatmul.f32.gmra.mxu2 %v2729_v37  ;;  %3208 = vmatmul.f32.gmra.mxu3 %v3099_v20  ;;  %v9022_v46 = vadd.f32 %v2192_v2, %v1924_v27  ;;  %v7533_v2 = vld [vmem:[%s10424_s6 + $0xf0] sm:$0xff] }
 0x354   : > { %4332 = vmatpush.msrb.mxu2 %v7533_v2  ;;  %5442 = vmatpush.msrb.mxu1 %v7581_v11  ;;  %v3471_v20 = vld [vmem:[#allocation2 + $0xb2] sm:$0xff]  ;;  %v9043_v2 = vld [vmem:[%s10422_s4] ss:$0 sm:$0xff] }
 0x355   : > { %v2731_v27 = vld [vmem:[#allocation2 + $0xb0] sm:$0xff] }
 0x356   : > { %v1455_v3 = vpop.f32.mrf.mxu2  ;;  %v1825_v26 = vpop.f32.mrf.mxu3 }
 0x357   : > { %v1555_v62 = vadd.f32 %v1455_v3, %v8710_v24  ;;  %v2198_v47 = vpop.f32.mrf.mxu0  ;;  %v7565_v24 = vld [vmem:[%s10424_s6 + $0x1f0] sm:$0xff] }
 0x358   : > { %5072 = vmatpush.msrb.mxu0 %v7565_v24  ;;  %v9048_v24 = vld [vmem:[%s10423_s5] ss:$0 sm:$0xff] }
 0x359   : > { %v1925_v15 = vadd.f32 %v1825_v26, %v1555_v62 }
 0x35a   : > { %3581 = vmatmul.f32.gmra.mxu0 %v3470_v8  ;;  %v3472_v8 = vld [vmem:[#allocation2 + $0xba] sm:$0xff] }
 0x35b   : > { %2841 = vmatmul.f32.gmra.mxu2 %v2730_v9  ;;  %3211 = vmatmul.f32.gmra.mxu3 %v3100_v0  ;;  %v9025_v25 = vadd.f32 %v2195_v52, %v1925_v15  ;;  %v2732_v9 = vld [vmem:[#allocation2 + $0xb8] sm:$0xff] }
 0x35c   : > { %v3102_v0 = vld [vmem:[#allocation2 + $0xb9] sm:$0xff] }
 0x35d   : > { %10445 = vst [vmem:[#allocation10_spill] sm:$0xff] %v9025_v25 }
 0x35e   : > { %v1458_v52 = vpop.f32.mrf.mxu2  ;;  %v1828_v42 = vpop.f32.mrf.mxu3 }
 0x35f   : > { %v3537_v37 = vpop.f32.mrf.mxu0 }
 0x362   : > { %3584 = vmatmul.f32.gmra.mxu0 %v3471_v20 }
 0x363   : > { %2844 = vmatmul.f32.gmra.mxu2 %v2731_v27  ;;  %3214 = vmatmul.f32.gmra.mxu3 %v3101_v35  ;;  %v3473_v35 = vld [vmem:[#allocation2 + $0xc2] sm:$0xff] }
 0x366   : > { %v2797_v3 = vpop.f32.mrf.mxu2  ;;  %v3167_v26 = vpop.f32.mrf.mxu3 }
 0x367   : > { %v2989_v62 = vadd.f32 %v2797_v3, %v8731_v45  ;;  %v3540_v47 = vpop.f32.mrf.mxu0  ;;  %v2733_v3 = vld [vmem:[#allocation2 + $0xc0] sm:$0xff] }
 0x369   : > { %v3359_v15 = vadd.f32 %v3167_v26, %v2989_v62  ;;  %v3103_v26 = vld [vmem:[#allocation2 + $0xc1] sm:$0xff] }
 0x36a   : > { %3587 = vmatmul.f32.gmra.mxu0 %v3472_v8 }
 0x36b   : > { %v3729_v39 = vadd.f32 %v3537_v37, %v3359_v15  ;;  %2847 = vmatmul.f32.gmra.mxu2 %v2732_v9  ;;  %3217 = vmatmul.f32.gmra.mxu3 %v3102_v0  ;;  %v7532_v9 = vld [vmem:[%s10424_s6 + $0xe8] sm:$0xff] }
 0x36c   : > { %v7548_v0 = vld [vmem:[%s10424_s6 + $0x168] sm:$0xff]  ;;  %4333 = vmatpush.msrb.mxu2 %v7532_v9  ;;  %v3475_v9 = vld [vmem:[#allocation2 + $0xd2] sm:$0xff] }
 0x36d   : > { %v3832_v45 = vmul.f32 %v9043_v2, %v3729_v39  ;;  %4703 = vmatpush.msrb.mxu3 %v7548_v0  ;;  %v2735_v0 = vld [vmem:[#allocation2 + $0xd0] sm:$0xff] }
 0x36e   : > { %v2800_v11 = vpop.f32.mrf.mxu2  ;;  %v3170_v52 = vpop.f32.mrf.mxu3 }
 0x36f   : > { %v3837_v42 = vadd.f32 %v9048_v24, %v3832_v45  ;;  %v2990_v20 = vadd.f32 %v2800_v11, %v8744_v10  ;;  %v3543_v27 = vpop.f32.mrf.mxu0  ;;  %v7564_v10 = vld [vmem:[%s10424_s6 + $0x1e8] sm:$0xff] }
 0x370   : > { %5073 = vmatpush.msrb.mxu0 %v7564_v10  ;;  %v3104_v27 = vld [vmem:[#allocation2 + $0xc9] sm:$0xff]  ;;  %v3105_v10 = vld [vmem:[#allocation2 + $0xd1] sm:$0xff] }
 0x371   : > { %v3839_v37 = vmax.f32 %v3837_v42, 0.0  ;;  %v3360_v62 = vadd.f32 %v3170_v52, %v2990_v20  ;;  %v3474_v42 = vld [vmem:[#allocation2 + $0xca] sm:$0xff] }
 0x372   : > { %3590 = vmatmul.f32.gmra.mxu0 %v3473_v35  ;;  %v2734_v20 = vld [vmem:[#allocation2 + $0xc8] sm:$0xff] }
 0x373   : > { %3841 = vst [vmem:[#allocation3 + $0x19] sm:$0xff] %v3839_v37  ;;  %v3730_v8 = vadd.f32 %v3540_v47, %v3360_v62  ;;  %2850 = vmatmul.f32.gmra.mxu2 %v2733_v3  ;;  %3220 = vmatmul.f32.gmra.mxu3 %v3103_v26  ;;  %v7580_v47 = vld [vmem:[%s10424_s6 + $0x268] sm:$0xff] }
 0x374   : > { %5443 = vmatpush.msrb.mxu1 %v7580_v47 }
 0x375   : > { %v3833_v15 = vmul.f32 %v9043_v2, %v3730_v8 }
 0x376   : > { %v2803_v39 = vpop.f32.mrf.mxu2  ;;  %v3173_v45 = vpop.f32.mrf.mxu3 }
 0x377   : > { %v3838_v11 = vadd.f32 %v9048_v24, %v3833_v15  ;;  %v3546_v52 = vpop.f32.mrf.mxu0 }
 0x379   : > { %v3840_v35 = vmax.f32 %v3838_v11, 0.0 }
 0x37a   : > { %3593 = vmatmul.f32.gmra.mxu0 %v3474_v42  ;;  %v3996_v3 = vld [vmem:[#allocation3 + $0x18] sm:$0xff] }
 0x37b   : > { %3842 = vst [vmem:[#allocation3 + $0x21] sm:$0xff] %v3840_v35  ;;  %2853 = vmatmul.f32.gmra.mxu2 %v2734_v20  ;;  %3223 = vmatmul.f32.gmra.mxu3 %v3104_v27  ;;  %v3476_v35 = vld [vmem:[#allocation2 + $0xda] sm:$0xff] }
 0x37c   : > { %4082 = vmatmul.f32.gmra.mxu1 %v3996_v3  ;;  %v2736_v3 = vld [vmem:[#allocation2 + $0xd8] sm:$0xff] }
 0x37e   : > { %v2806_v26 = vpop.f32.mrf.mxu2  ;;  %v3176_v37 = vpop.f32.mrf.mxu3 }
 0x37f   : > { %v2992_v62 = vadd.f32 %v2806_v26, %v8757_v17  ;;  %v3549_v8 = vpop.f32.mrf.mxu0  ;;  %v3106_v26 = vld [vmem:[#allocation2 + $0xd9] sm:$0xff] }
 0x381   : > { %v3362_v15 = vadd.f32 %v3176_v37, %v2992_v62 }
 0x382   : > { %3596 = vmatmul.f32.gmra.mxu0 %v3475_v9  ;;  %v3997_v47 = vld [vmem:[#allocation3 + $0x20] sm:$0xff]  ;;  %v3998_v62 = vld [vmem:[#allocation3 + $0x28] sm:$0xff]  ;;  %v7531_v9 = vld [vmem:[%s10424_s6 + $0xe0] sm:$0xff] }
 0x383   : > { %v3732_v39 = vadd.f32 %v3546_v52, %v3362_v15  ;;  %2856 = vmatmul.f32.gmra.mxu2 %v2735_v0  ;;  %3226 = vmatmul.f32.gmra.mxu3 %v3105_v10  ;;  %v7563_v0 = vld [vmem:[%s10424_s6 + $0x1e0] sm:$0xff] }
 0x384   : > { %4085 = vmatmul.f32.gmra.mxu1 %v3997_v47  ;;  %4334 = vmatpush.msrb.mxu2 %v7531_v9 }
 0x385   : > { %v3845_v45 = vmul.f32 %v9043_v2, %v3732_v39  ;;  %5074 = vmatpush.msrb.mxu0 %v7563_v0 }
 0x386   : > { %v2809_v11 = vpop.f32.mrf.mxu2  ;;  %v3179_v42 = vpop.f32.mrf.mxu3 }
 0x387   : > { %v3847_v20 = vadd.f32 %v9048_v24, %v3845_v45  ;;  %v2993_v27 = vadd.f32 %v2809_v11, %v8768_v33  ;;  %v3552_v17 = vpop.f32.mrf.mxu0  ;;  %v7547_v33 = vld [vmem:[%s10424_s6 + $0x160] sm:$0xff] }
 0x388   : > { %4704 = vmatpush.msrb.mxu3 %v7547_v33  ;;  %v3477_v45 = vld [vmem:[#allocation2 + $0xe2] sm:$0xff] }
 0x389   : > { %v3849_v25 = vmax.f32 %v3847_v20, 0.0  ;;  %v3363_v37 = vadd.f32 %v3179_v42, %v2993_v27  ;;  %v2737_v11 = vld [vmem:[#allocation2 + $0xe0] sm:$0xff] }
 0x38a   : > { %3599 = vmatmul.f32.gmra.mxu0 %v3476_v35  ;;  %v3107_v42 = vld [vmem:[#allocation2 + $0xe1] sm:$0xff] }
 0x38b   : > { %3851 = vst [vmem:[#allocation3 + $0x31] sm:$0xff] %v3849_v25  ;;  %v3733_v52 = vadd.f32 %v3549_v8, %v3363_v37  ;;  %2859 = vmatmul.f32.gmra.mxu2 %v2736_v3  ;;  %3229 = vmatmul.f32.gmra.mxu3 %v3106_v26  ;;  %v7579_v8 = vld [vmem:[%s10424_s6 + $0x260] sm:$0xff]  ;;  %v3478_v37 = vld [vmem:[#allocation2 + $0xea] sm:$0xff] }
 0x38c   : > { %4088 = vmatmul.f32.gmra.mxu1 %v3998_v62  ;;  %v3108_v62 = vld [vmem:[#allocation2 + $0xe9] sm:$0xff] }
 0x38d   : > { %v3846_v25 = vmul.f32 %v9043_v2, %v3733_v52  ;;  %5444 = vmatpush.msrb.mxu1 %v7579_v8  ;;  %v2738_v52 = vld [vmem:[#allocation2 + $0xe8] sm:$0xff] }
 0x38e   : > { %v2812_v10 = vpop.f32.mrf.mxu2  ;;  %v3182_v15 = vpop.f32.mrf.mxu3 }
 0x38f   : > { %v3848_v47 = vadd.f32 %v9048_v24, %v3846_v25  ;;  %v3555_v39 = vpop.f32.mrf.mxu0 }
 0x391   : > { %v3850_v20 = vmax.f32 %v3848_v47, 0.0 }
 0x392   : > { %3602 = vmatmul.f32.gmra.mxu0 %v3477_v45  ;;  %v3999_v27 = vld [vmem:[#allocation3 + $0x30] sm:$0xff] }
 0x393   : > { %3852 = vst [vmem:[#allocation3 + $0x39] sm:$0xff] %v3850_v20  ;;  %2862 = vmatmul.f32.gmra.mxu2 %v2737_v11  ;;  %3232 = vmatmul.f32.gmra.mxu3 %v3107_v42  ;;  %v3479_v45 = vld [vmem:[#allocation2 + $0xf2] sm:$0xff] }
 0x394   : > { %4091 = vmatmul.f32.gmra.mxu1 %v3999_v27  ;;  %v2739_v11 = vld [vmem:[#allocation2 + $0xf0] sm:$0xff] }
 0x395   : > { %v3109_v42 = vld [vmem:[#allocation2 + $0xf1] sm:$0xff] }
 0x396   : > { %v2815_v17 = vpop.f32.mrf.mxu2  ;;  %v3185_v35 = vpop.f32.mrf.mxu3 }
 0x397   : > { %v2995_v3 = vadd.f32 %v2815_v17, %v8777_v55  ;;  %v3558_v26 = vpop.f32.mrf.mxu0 }
 0x399   : > { %v3365_v9 = vadd.f32 %v3185_v35, %v2995_v3  ;;  %v7530_v35 = vld [vmem:[%s10424_s6 + $0xd8] sm:$0xff] }
 0x39a   : > { %3605 = vmatmul.f32.gmra.mxu0 %v3478_v37  ;;  %v4000_v33 = vld [vmem:[#allocation3 + $0x38] sm:$0xff]  ;;  %v4001_v17 = vld [vmem:[#allocation3 + $0x40] sm:$0xff]  ;;  %4335 = vmatpush.msrb.mxu2 %v7530_v35  ;;  %v7562_v3 = vld [vmem:[%s10424_s6 + $0x1d8] sm:$0xff] }
 0x39b   : > { %v3735_v0 = vadd.f32 %v3555_v39, %v3365_v9  ;;  %2865 = vmatmul.f32.gmra.mxu2 %v2738_v52  ;;  %3235 = vmatmul.f32.gmra.mxu3 %v3108_v62  ;;  %v9102_v9 = vpop.f32.mrf.mxu1 }
 0x39c   : > { %4094 = vmatmul.f32.gmra.mxu1 %v4000_v33  ;;  %5075 = vmatpush.msrb.mxu0 %v7562_v3 }
 0x39d   : > { %v3855_v25 = vmul.f32 %v9043_v2, %v3735_v0 }
 0x39e   : > { %v2818_v8 = vpop.f32.mrf.mxu2  ;;  %v3188_v10 = vpop.f32.mrf.mxu3 }
 0x39f   : > { %v3857_v15 = vadd.f32 %v9048_v24, %v3855_v25  ;;  %v2996_v47 = vadd.f32 %v2818_v8, %v8788_v58  ;;  %v3561_v55 = vpop.f32.mrf.mxu0  ;;  %v7546_v58 = vld [vmem:[%s10424_s6 + $0x158] sm:$0xff] }
 0x3a0   : > { %4705 = vmatpush.msrb.mxu3 %v7546_v58  ;;  %v3480_v25 = vld [vmem:[#allocation2 + $0xfa] sm:$0xff] }
 0x3a1   : > { %v3859_v20 = vmax.f32 %v3857_v15, 0.0  ;;  %v3366_v27 = vadd.f32 %v3188_v10, %v2996_v47  ;;  %v2740_v8 = vld [vmem:[#allocation2 + $0xf8] sm:$0xff] }
 0x3a2   : > { %3608 = vmatmul.f32.gmra.mxu0 %v3479_v45  ;;  %v3110_v10 = vld [vmem:[#allocation2 + $0xf9] sm:$0xff] }
 0x3a3   : > { %3861 = vst [vmem:[#allocation3 + $0x49] sm:$0xff] %v3859_v20  ;;  %v3736_v39 = vadd.f32 %v3558_v26, %v3366_v27  ;;  %2868 = vmatmul.f32.gmra.mxu2 %v2739_v11  ;;  %3238 = vmatmul.f32.gmra.mxu3 %v3109_v42  ;;  %v7578_v26 = vld [vmem:[%s10424_s6 + $0x258] sm:$0xff]  ;;  %v3481_v20 = vld [vmem:[#allocation2 + $0x102] sm:$0xff] }
 0x3a4   : > { %4097 = vmatmul.f32.gmra.mxu1 %v4001_v17  ;;  %v2741_v27 = vld [vmem:[#allocation2 + $0x100] sm:$0xff]  ;;  %v9106_v17 = vpop.f32.mrf.mxu1 }
 0x3a5   : > { %v3856_v37 = vmul.f32 %v9043_v2, %v3736_v39  ;;  %5445 = vmatpush.msrb.mxu1 %v7578_v26  ;;  %v3111_v39 = vld [vmem:[#allocation2 + $0x101] sm:$0xff] }
 0x3a6   : > { %v2821_v52 = vpop.f32.mrf.mxu2  ;;  %v3191_v62 = vpop.f32.mrf.mxu3 }
 0x3a7   : > { %v3858_v33 = vadd.f32 %v9048_v24, %v3856_v37  ;;  %v3564_v0 = vpop.f32.mrf.mxu0 }
 0x3a9   : > { %v3860_v15 = vmax.f32 %v3858_v33, 0.0 }
 0x3aa   : > { %3611 = vmatmul.f32.gmra.mxu0 %v3480_v25  ;;  %v4002_v47 = vld [vmem:[#allocation3 + $0x48] sm:$0xff] }
 0x3ab   : > { %3862 = vst [vmem:[#allocation3 + $0x51] sm:$0xff] %v3860_v15  ;;  %2871 = vmatmul.f32.gmra.mxu2 %v2740_v8  ;;  %3241 = vmatmul.f32.gmra.mxu3 %v3110_v10  ;;  %v3482_v25 = vld [vmem:[#allocation2 + $0x10a] sm:$0xff] }
 0x3ac   : > { %4100 = vmatmul.f32.gmra.mxu1 %v4002_v47  ;;  %v2742_v8 = vld [vmem:[#allocation2 + $0x108] sm:$0xff] }
 0x3ad   : > { %v3112_v10 = vld [vmem:[#allocation2 + $0x109] sm:$0xff] }
 0x3ae   : > { %v2824_v55 = vpop.f32.mrf.mxu2  ;;  %v3194_v45 = vpop.f32.mrf.mxu3 }
 0x3af   : > { %v2998_v11 = vadd.f32 %v2824_v55, %v8797_v44  ;;  %v3567_v42 = vpop.f32.mrf.mxu0  ;;  %v2568_v55 = vpop.f32.mrf.mxu1 }
 0x3b0   : > { %v2744_v55 = vld [vmem:[#allocation2 + $0x118] sm:$0xff] }
 0x3b1   : > { %v3368_v35 = vadd.f32 %v3194_v45, %v2998_v11  ;;  %v7529_v11 = vld [vmem:[%s10424_s6 + $0xd0] sm:$0xff] }
 0x3b2   : > { %3614 = vmatmul.f32.gmra.mxu0 %v3481_v20  ;;  %v4003_v58 = vld [vmem:[#allocation3 + $0x50] sm:$0xff]  ;;  %v4004_v45 = vld [vmem:[#allocation3 + $0x58] sm:$0xff]  ;;  %4336 = vmatpush.msrb.mxu2 %v7529_v11  ;;  %v7561_v20 = vld [vmem:[%s10424_s6 + $0x1d0] sm:$0xff] }
 0x3b3   : > { %v3738_v3 = vadd.f32 %v3564_v0, %v3368_v35  ;;  %2874 = vmatmul.f32.gmra.mxu2 %v2741_v27  ;;  %3244 = vmatmul.f32.gmra.mxu3 %v3111_v39 }
 0x3b4   : > { %4103 = vmatmul.f32.gmra.mxu1 %v4003_v58  ;;  %5076 = vmatpush.msrb.mxu0 %v7561_v20 }
 0x3b5   : > { %v3865_v37 = vmul.f32 %v9043_v2, %v3738_v3 }
 0x3b6   : > { %v2827_v26 = vpop.f32.mrf.mxu2  ;;  %v3197_v52 = vpop.f32.mrf.mxu3 }
 0x3b7   : > { %v3867_v62 = vadd.f32 %v9048_v24, %v3865_v37  ;;  %v2999_v44 = vadd.f32 %v2827_v26, %v8808_v38  ;;  %v3570_v33 = vpop.f32.mrf.mxu0  ;;  %v7545_v38 = vld [vmem:[%s10424_s6 + $0x150] sm:$0xff] }
 0x3b8   : > { %4706 = vmatpush.msrb.mxu3 %v7545_v38  ;;  %v3483_v37 = vld [vmem:[#allocation2 + $0x112] sm:$0xff] }
 0x3b9   : > { %v3869_v15 = vmax.f32 %v3867_v62, 0.0  ;;  %v3369_v47 = vadd.f32 %v3197_v52, %v2999_v44  ;;  %v2743_v26 = vld [vmem:[#allocation2 + $0x110] sm:$0xff]  ;;  %v9125_v44 = vpop.f32.mrf.mxu1 }
 0x3ba   : > { %3617 = vmatmul.f32.gmra.mxu0 %v3482_v25  ;;  %v3113_v52 = vld [vmem:[#allocation2 + $0x111] sm:$0xff] }
 0x3bb   : > { %3871 = vst [vmem:[#allocation3 + $0x61] sm:$0xff] %v3869_v15  ;;  %v3739_v0 = vadd.f32 %v3567_v42, %v3369_v47  ;;  %2877 = vmatmul.f32.gmra.mxu2 %v2742_v8  ;;  %3247 = vmatmul.f32.gmra.mxu3 %v3112_v10  ;;  %v7577_v42 = vld [vmem:[%s10424_s6 + $0x250] sm:$0xff]  ;;  %v3484_v47 = vld [vmem:[#allocation2 + $0x11a] sm:$0xff] }
 0x3bc   : > { %4106 = vmatmul.f32.gmra.mxu1 %v4004_v45 }
 0x3bd   : > { %v3866_v27 = vmul.f32 %v9043_v2, %v3739_v0  ;;  %5446 = vmatpush.msrb.mxu1 %v7577_v42  ;;  %v3114_v0 = vld [vmem:[#allocation2 + $0x119] sm:$0xff] }
 0x3be   : > { %v2830_v39 = vpop.f32.mrf.mxu2  ;;  %v3200_v35 = vpop.f32.mrf.mxu3 }
 0x3bf   : > { %v3868_v58 = vadd.f32 %v9048_v24, %v3866_v27  ;;  %v3573_v3 = vpop.f32.mrf.mxu0 }
 0x3c1   : > { %v3870_v62 = vmax.f32 %v3868_v58, 0.0  ;;  %v9128_v11 = vpop.f32.mrf.mxu1 }
 0x3c2   : > { %3620 = vmatmul.f32.gmra.mxu0 %v3483_v37  ;;  %v4005_v33 = vld [vmem:[#allocation3 + $0x60] sm:$0xff] }
 0x3c3   : > { %3872 = vst [vmem:[#allocation3 + $0x69] sm:$0xff] %v3870_v62  ;;  %2880 = vmatmul.f32.gmra.mxu2 %v2743_v26  ;;  %3250 = vmatmul.f32.gmra.mxu3 %v3113_v52  ;;  %v3485_v37 = vld [vmem:[#allocation2 + $0x122] sm:$0xff] }
 0x3c4   : > { %4109 = vmatmul.f32.gmra.mxu1 %v4005_v33  ;;  %v2745_v26 = vld [vmem:[#allocation2 + $0x120] sm:$0xff] }
 0x3c5   : > { %v3115_v52 = vld [vmem:[#allocation2 + $0x121] sm:$0xff] }
 0x3c6   : > { %v2833_v25 = vpop.f32.mrf.mxu2  ;;  %v3203_v8 = vpop.f32.mrf.mxu3 }
 0x3c7   : > { %v3001_v10 = vadd.f32 %v2833_v25, %v8817_v19  ;;  %v3576_v15 = vpop.f32.mrf.mxu0 }
 0x3c9   : > { %v3371_v45 = vadd.f32 %v3203_v8, %v3001_v10  ;;  %v4080_v25 = vpop.f32.mrf.mxu1  ;;  %v7528_v10 = vld [vmem:[%s10424_s6 + $0xc8] sm:$0xff] }
 0x3ca   : > { %3623 = vmatmul.f32.gmra.mxu0 %v3484_v47  ;;  %v4006_v38 = vld [vmem:[#allocation3 + $0x68] sm:$0xff]  ;;  %v4007_v8 = vld [vmem:[#allocation3 + $0x70] sm:$0xff]  ;;  %4337 = vmatpush.msrb.mxu2 %v7528_v10  ;;  %v7560_v47 = vld [vmem:[%s10424_s6 + $0x1c8] sm:$0xff] }
 0x3cb   : > { %v3741_v20 = vadd.f32 %v3573_v3, %v3371_v45  ;;  %2883 = vmatmul.f32.gmra.mxu2 %v2744_v55  ;;  %3253 = vmatmul.f32.gmra.mxu3 %v3114_v0  ;;  %v3117_v25 = vld [vmem:[#allocation2 + $0x131] sm:$0xff] }
 0x3cc   : > { %4112 = vmatmul.f32.gmra.mxu1 %v4006_v38  ;;  %5077 = vmatpush.msrb.mxu0 %v7560_v47 }
 0x3cd   : > { %v3875_v27 = vmul.f32 %v9043_v2, %v3741_v20 }
 0x3ce   : > { %v2836_v42 = vpop.f32.mrf.mxu2  ;;  %v3206_v39 = vpop.f32.mrf.mxu3 }
 0x3cf   : > { %v3877_v35 = vadd.f32 %v9048_v24, %v3875_v27  ;;  %v3002_v19 = vadd.f32 %v2836_v42, %v8828_v13  ;;  %v3579_v58 = vpop.f32.mrf.mxu0  ;;  %v7544_v13 = vld [vmem:[%s10424_s6 + $0x148] sm:$0xff] }
 0x3d0   : > { %4707 = vmatpush.msrb.mxu3 %v7544_v13  ;;  %v3486_v27 = vld [vmem:[#allocation2 + $0x12a] sm:$0xff] }
 0x3d1   : > { %v3879_v62 = vmax.f32 %v3877_v35, 0.0  ;;  %v3372_v33 = vadd.f32 %v3206_v39, %v3002_v19  ;;  %v2746_v42 = vld [vmem:[#allocation2 + $0x128] sm:$0xff] }
 0x3d2   : > { %3626 = vmatmul.f32.gmra.mxu0 %v3485_v37  ;;  %v3116_v39 = vld [vmem:[#allocation2 + $0x129] sm:$0xff] }
 0x3d3   : > { %3881 = vst [vmem:[#allocation3 + $0x79] sm:$0xff] %v3879_v62  ;;  %v3742_v3 = vadd.f32 %v3576_v15, %v3372_v33  ;;  %2886 = vmatmul.f32.gmra.mxu2 %v2745_v26  ;;  %3256 = vmatmul.f32.gmra.mxu3 %v3115_v52  ;;  %v7576_v15 = vld [vmem:[%s10424_s6 + $0x248] sm:$0xff]  ;;  %v3487_v62 = vld [vmem:[#allocation2 + $0x132] sm:$0xff] }
 0x3d4   : > { %4115 = vmatmul.f32.gmra.mxu1 %v4007_v8  ;;  %v2747_v33 = vld [vmem:[#allocation2 + $0x130] sm:$0xff] }
 0x3d5   : > { %v3876_v55 = vmul.f32 %v9043_v2, %v3742_v3  ;;  %5447 = vmatpush.msrb.mxu1 %v7576_v15 }
 0x3d6   : > { %v2839_v0 = vpop.f32.mrf.mxu2  ;;  %v3209_v45 = vpop.f32.mrf.mxu3 }
 0x3d7   : > { %v3878_v38 = vadd.f32 %v9048_v24, %v3876_v55  ;;  %v3582_v20 = vpop.f32.mrf.mxu0  ;;  %v3488_v45 = vld [vmem:[#allocation2 + $0x13a] sm:$0xff] }
 0x3d9   : > { %v3880_v35 = vmax.f32 %v3878_v38, 0.0  ;;  %v2748_v38 = vld [vmem:[#allocation2 + $0x138] sm:$0xff] }
 0x3da   : > { %3629 = vmatmul.f32.gmra.mxu0 %v3486_v27  ;;  %v4008_v19 = vld [vmem:[#allocation3 + $0x78] sm:$0xff] }
 0x3db   : > { %3882 = vst [vmem:[#allocation3 + $0x81] sm:$0xff] %v3880_v35  ;;  %2889 = vmatmul.f32.gmra.mxu2 %v2746_v42  ;;  %3259 = vmatmul.f32.gmra.mxu3 %v3116_v39  ;;  %v3118_v27 = vld [vmem:[#allocation2 + $0x139] sm:$0xff] }
 0x3dc   : > { %4118 = vmatmul.f32.gmra.mxu1 %v4008_v19  ;;  %v7527_v19 = vld [vmem:[%s10424_s6 + $0xc0] sm:$0xff] }
 0x3dd   : > { %4338 = vmatpush.msrb.mxu2 %v7527_v19 }
 0x3de   : > { %v2842_v58 = vpop.f32.mrf.mxu2  ;;  %v3212_v37 = vpop.f32.mrf.mxu3 }
 0x3df   : > { %v3004_v26 = vadd.f32 %v2842_v58, %v8837_v54  ;;  %v3585_v52 = vpop.f32.mrf.mxu0  ;;  %v7559_v58 = vld [vmem:[%s10424_s6 + $0x1c0] sm:$0xff] }
 0x3e0   : > { %5078 = vmatpush.msrb.mxu0 %v7559_v58 }
 0x3e1   : > { %v3374_v3 = vadd.f32 %v3212_v37, %v3004_v26  ;;  %v7575_v26 = vld [vmem:[%s10424_s6 + $0x240] sm:$0xff] }
 0x3e2   : > { %3632 = vmatmul.f32.gmra.mxu0 %v3487_v62  ;;  %v4009_v8 = vld [vmem:[#allocation3 + $0x80] sm:$0xff]  ;;  %v4010_v35 = vld [vmem:[#allocation3 + $0x88] sm:$0xff]  ;;  %5448 = vmatpush.msrb.mxu1 %v7575_v26 }
 0x3e3   : > { %v3744_v10 = vadd.f32 %v3582_v20, %v3374_v3  ;;  %2892 = vmatmul.f32.gmra.mxu2 %v2747_v33  ;;  %3262 = vmatmul.f32.gmra.mxu3 %v3117_v25  ;;  %v3489_v3 = vld [vmem:[#allocation2 + $0x142] sm:$0xff] }
 0x3e4   : > { %4121 = vmatmul.f32.gmra.mxu1 %v4009_v8  ;;  %v2749_v8 = vld [vmem:[#allocation2 + $0x140] sm:$0xff] }
 0x3e5   : > { %v3885_v13 = vmul.f32 %v9043_v2, %v3744_v10  ;;  %v3119_v10 = vld [vmem:[#allocation2 + $0x141] sm:$0xff] }
 0x3e6   : > { %v2845_v47 = vpop.f32.mrf.mxu2  ;;  %v3215_v55 = vpop.f32.mrf.mxu3 }
 0x3e7   : > { %v3887_v15 = vadd.f32 %v9048_v24, %v3885_v13  ;;  %v3005_v0 = vadd.f32 %v2845_v47, %v8848_v7  ;;  %v3588_v54 = vpop.f32.mrf.mxu0  ;;  %v7543_v7 = vld [vmem:[%s10424_s6 + $0x140] sm:$0xff] }
 0x3e8   : > { %4708 = vmatpush.msrb.mxu3 %v7543_v7 }
 0x3e9   : > { %v3889_v42 = vmax.f32 %v3887_v15, 0.0  ;;  %v3375_v39 = vadd.f32 %v3215_v55, %v3005_v0 }
 0x3ea   : > { %3635 = vmatmul.f32.gmra.mxu0 %v3488_v45  ;;  %v3490_v45 = vld [vmem:[#allocation2 + $0x14a] sm:$0xff] }
 0x3eb   : > { %3891 = vst [vmem:[#allocation3 + $0x91] sm:$0xff] %v3889_v42  ;;  %v3745_v20 = vadd.f32 %v3585_v52, %v3375_v39  ;;  %2895 = vmatmul.f32.gmra.mxu2 %v2748_v38  ;;  %3265 = vmatmul.f32.gmra.mxu3 %v3118_v27  ;;  %v2750_v38 = vld [vmem:[#allocation2 + $0x148] sm:$0xff] }
 0x3ec   : > { %4124 = vmatmul.f32.gmra.mxu1 %v4010_v35  ;;  %v3120_v27 = vld [vmem:[#allocation2 + $0x149] sm:$0xff] }
 0x3ed   : > { %v3886_v37 = vmul.f32 %v9043_v2, %v3745_v20 }
 0x3ee   : > { %v2848_v52 = vpop.f32.mrf.mxu2  ;;  %v3218_v62 = vpop.f32.mrf.mxu3 }
 0x3ef   : > { %v3888_v33 = vadd.f32 %v9048_v24, %v3886_v37  ;;  %v3591_v25 = vpop.f32.mrf.mxu0  ;;  %v3491_v52 = vld [vmem:[#allocation2 + $0x152] sm:$0xff] }
 0x3f0   : > { %v2751_v62 = vld [vmem:[#allocation2 + $0x150] sm:$0xff] }
 0x3f1   : > { %v3890_v13 = vmax.f32 %v3888_v33, 0.0  ;;  %v3121_v33 = vld [vmem:[#allocation2 + $0x151] sm:$0xff] }
 0x3f2   : > { %3638 = vmatmul.f32.gmra.mxu0 %v3489_v3  ;;  %v4011_v47 = vld [vmem:[#allocation3 + $0x90] sm:$0xff] }
 0x3f3   : > { %3892 = vst [vmem:[#allocation3 + $0x99] sm:$0xff] %v3890_v13  ;;  %2898 = vmatmul.f32.gmra.mxu2 %v2749_v8  ;;  %3268 = vmatmul.f32.gmra.mxu3 %v3119_v10 }
 0x3f4   : > { %4127 = vmatmul.f32.gmra.mxu1 %v4011_v47  ;;  %v7526_v47 = vld [vmem:[%s10424_s6 + $0xb8] sm:$0xff] }
 0x3f5   : > { %4339 = vmatpush.msrb.mxu2 %v7526_v47 }
 0x3f6   : > { %v2851_v55 = vpop.f32.mrf.mxu2  ;;  %v3221_v15 = vpop.f32.mrf.mxu3 }
 0x3f7   : > { %v3007_v0 = vadd.f32 %v2851_v55, %v8857_v21  ;;  %v3594_v54 = vpop.f32.mrf.mxu0  ;;  %v7558_v55 = vld [vmem:[%s10424_s6 + $0x1b8] sm:$0xff] }
 0x3f8   : > { %5079 = vmatpush.msrb.mxu0 %v7558_v55 }
 0x3f9   : > { %v3377_v42 = vadd.f32 %v3221_v15, %v3007_v0  ;;  %v9166_v39 = vpop.f32.mrf.mxu1  ;;  %v7574_v0 = vld [vmem:[%s10424_s6 + $0x238] sm:$0xff] }
 0x3fa   : > { %3641 = vmatmul.f32.gmra.mxu0 %v3490_v45  ;;  %v4012_v20 = vld [vmem:[#allocation3 + $0x98] sm:$0xff]  ;;  %v4013_v13 = vld [vmem:[#allocation3 + $0xa0] sm:$0xff]  ;;  %5449 = vmatpush.msrb.mxu1 %v7574_v0 }
 0x3fb   : > { %v3747_v35 = vadd.f32 %v3591_v25, %v3377_v42  ;;  %2901 = vmatmul.f32.gmra.mxu2 %v2750_v38  ;;  %3271 = vmatmul.f32.gmra.mxu3 %v3120_v27  ;;  %v3492_v42 = vld [vmem:[#allocation2 + $0x15a] sm:$0xff] }
 0x3fc   : > { %4130 = vmatmul.f32.gmra.mxu1 %v4012_v20  ;;  %v2752_v20 = vld [vmem:[#allocation2 + $0x158] sm:$0xff] }
 0x3fd   : > { %v3895_v19 = vmul.f32 %v9043_v2, %v3747_v35  ;;  %v3122_v35 = vld [vmem:[#allocation2 + $0x159] sm:$0xff] }
 0x3fe   : > { %v2854_v7 = vpop.f32.mrf.mxu2  ;;  %v3224_v58 = vpop.f32.mrf.mxu3 }
 0x3ff   : > { %v3897_v37 = vadd.f32 %v9048_v24, %v3895_v19  ;;  %v3008_v21 = vadd.f32 %v2854_v7, %v8868_v4  ;;  %v3597_v26 = vpop.f32.mrf.mxu0  ;;  %v7542_v4 = vld [vmem:[%s10424_s6 + $0x138] sm:$0xff] }
 0x400   : > { %4709 = vmatpush.msrb.mxu3 %v7542_v4 }
 0x401   : > { %v3899_v3 = vmax.f32 %v3897_v37, 0.0  ;;  %v3378_v8 = vadd.f32 %v3224_v58, %v3008_v21  ;;  %v9171_v10 = vpop.f32.mrf.mxu1 }
 0x402   : > { %3644 = vmatmul.f32.gmra.mxu0 %v3491_v52 }
 0x403   : > { %3901 = vst [vmem:[#allocation3 + $0xa9] sm:$0xff] %v3899_v3  ;;  %v3748_v25 = vadd.f32 %v3594_v54, %v3378_v8  ;;  %2904 = vmatmul.f32.gmra.mxu2 %v2751_v62  ;;  %3274 = vmatmul.f32.gmra.mxu3 %v3121_v33  ;;  %v3493_v62 = vld [vmem:[#allocation2 + $0x162] sm:$0xff] }
 0x404   : > { %4133 = vmatmul.f32.gmra.mxu1 %v4013_v13  ;;  %v2753_v33 = vld [vmem:[#allocation2 + $0x160] sm:$0xff] }
 0x405   : > { %v3896_v15 = vmul.f32 %v9043_v2, %v3748_v25  ;;  %v3123_v3 = vld [vmem:[#allocation2 + $0x161] sm:$0xff] }
 0x406   : > { %v2857_v54 = vpop.f32.mrf.mxu2  ;;  %v3227_v45 = vpop.f32.mrf.mxu3 }
 0x407   : > { %v3898_v38 = vadd.f32 %v9048_v24, %v3896_v15  ;;  %v3600_v27 = vpop.f32.mrf.mxu0  ;;  %v3494_v45 = vld [vmem:[#allocation2 + $0x16a] sm:$0xff] }
 0x409   : > { %v3900_v19 = vmax.f32 %v3898_v38, 0.0  ;;  %v4089_v7 = vpop.f32.mrf.mxu1  ;;  %v2754_v38 = vld [vmem:[#allocation2 + $0x168] sm:$0xff] }
 0x40a   : > { %3647 = vmatmul.f32.gmra.mxu0 %v3492_v42  ;;  %v4014_v58 = vld [vmem:[#allocation3 + $0xa8] sm:$0xff] }
 0x40b   : > { %3902 = vst [vmem:[#allocation3 + $0xb1] sm:$0xff] %v3900_v19  ;;  %2907 = vmatmul.f32.gmra.mxu2 %v2752_v20  ;;  %3277 = vmatmul.f32.gmra.mxu3 %v3122_v35  ;;  %v3124_v42 = vld [vmem:[#allocation2 + $0x169] sm:$0xff] }
 0x40c   : > { %4136 = vmatmul.f32.gmra.mxu1 %v4014_v58  ;;  %v7525_v58 = vld [vmem:[%s10424_s6 + $0xb0] sm:$0xff] }
 0x40d   : > { %4340 = vmatpush.msrb.mxu2 %v7525_v58 }
 0x40e   : > { %v2860_v37 = vpop.f32.mrf.mxu2  ;;  %v3230_v21 = vpop.f32.mrf.mxu3 }
 0x40f   : > { %v3010_v26 = vadd.f32 %v2860_v37, %v8877_v59  ;;  %v3603_v52 = vpop.f32.mrf.mxu0  ;;  %v7557_v37 = vld [vmem:[%s10424_s6 + $0x1b0] sm:$0xff] }
 0x410   : > { %5080 = vmatpush.msrb.mxu0 %v7557_v37  ;;  %v2644_v37 = vadd.f32 %v8911_v49, %v8922_v43  ;;  %v7524_v43 = vld [vmem:[%s10424_s6 + $0xa8] sm:$0xff] }
 0x411   : > { %v3380_v8 = vadd.f32 %v3230_v21, %v3010_v26  ;;  %v9188_v25 = vpop.f32.mrf.mxu1  ;;  %v7573_v26 = vld [vmem:[%s10424_s6 + $0x230] sm:$0xff]  ;;  %4341 = vmatpush.msrb.mxu2 %v7524_v43 }
 0x412   : > { %3650 = vmatmul.f32.gmra.mxu0 %v3493_v62  ;;  %v4015_v13 = vld [vmem:[#allocation3 + $0xb0] sm:$0xff]  ;;  %v4016_v7 = vld [vmem:[#allocation3 + $0xb8] sm:$0xff]  ;;  %5450 = vmatpush.msrb.mxu1 %v7573_v26 }
 0x413   : > { %v3750_v47 = vadd.f32 %v3600_v27, %v3380_v8  ;;  %2910 = vmatmul.f32.gmra.mxu2 %v2753_v33  ;;  %3280 = vmatmul.f32.gmra.mxu3 %v3123_v3  ;;  %v3495_v8 = vld [vmem:[#allocation2 + $0x172] sm:$0xff] }
 0x414   : > { %4139 = vmatmul.f32.gmra.mxu1 %v4015_v13  ;;  %v2755_v13 = vld [vmem:[#allocation2 + $0x170] sm:$0xff] }
 0x415   : > { %v3905_v4 = vmul.f32 %v9043_v2, %v3750_v47  ;;  %v3125_v47 = vld [vmem:[#allocation2 + $0x171] sm:$0xff] }
 0x416   : > { %v2863_v55 = vpop.f32.mrf.mxu2  ;;  %v3233_v15 = vpop.f32.mrf.mxu3  ;;  %v3129_v43 = vld [vmem:[#allocation2 + $0x191] sm:$0xff] }
 0x417   : > { %v3907_v0 = vadd.f32 %v9048_v24, %v3905_v4  ;;  %v3011_v59 = vadd.f32 %v2863_v55, %v8889_v41  ;;  %v3606_v54 = vpop.f32.mrf.mxu0  ;;  %v7541_v41 = vld [vmem:[%s10424_s6 + $0x130] sm:$0xff] }
 0x418   : > { %4710 = vmatpush.msrb.mxu3 %v7541_v41 }
 0x419   : > { %v3909_v20 = vmax.f32 %v3907_v0, 0.0  ;;  %v3381_v35 = vadd.f32 %v3233_v15, %v3011_v59  ;;  %v9193_v19 = vpop.f32.mrf.mxu1  ;;  %v2643_v0 = vadd.f32 %v8900_v31, %v8909_v1 }
 0x41a   : > { %3653 = vmatmul.f32.gmra.mxu0 %v3494_v45 }
 0x41b   : > { %3911 = vst [vmem:[#allocation3 + $0xc1] sm:$0xff] %v3909_v20  ;;  %v3751_v27 = vadd.f32 %v3603_v52, %v3381_v35  ;;  %2913 = vmatmul.f32.gmra.mxu2 %v2754_v38  ;;  %3283 = vmatmul.f32.gmra.mxu3 %v3124_v42  ;;  %v3496_v42 = vld [vmem:[#allocation2 + $0x17a] sm:$0xff] }
 0x41c   : > { %4142 = vmatmul.f32.gmra.mxu1 %v4016_v7  ;;  %v2756_v20 = vld [vmem:[#allocation2 + $0x178] sm:$0xff] }
 0x41d   : > { %v3906_v21 = vmul.f32 %v9043_v2, %v3751_v27  ;;  %v3126_v35 = vld [vmem:[#allocation2 + $0x179] sm:$0xff] }
 0x41e   : > { %v2866_v52 = vpop.f32.mrf.mxu2  ;;  %v3236_v62 = vpop.f32.mrf.mxu3 }
 0x41f   : > { %v3908_v33 = vadd.f32 %v9048_v24, %v3906_v21  ;;  %v3609_v3 = vpop.f32.mrf.mxu0 }
 0x421   : > { %v3910_v4 = vmax.f32 %v3908_v33, 0.0  ;;  %v4098_v55 = vpop.f32.mrf.mxu1  ;;  %v3497_v33 = vld [vmem:[#allocation2 + $0x182] sm:$0xff] }
 0x422   : > { %3656 = vmatmul.f32.gmra.mxu0 %v3495_v8  ;;  %v4017_v15 = vld [vmem:[#allocation3 + $0xc0] sm:$0xff]  ;;  %v2757_v8 = vld [vmem:[#allocation2 + $0x180] sm:$0xff] }
 0x423   : > { %3912 = vst [vmem:[#allocation3 + $0xc9] sm:$0xff] %v3910_v4  ;;  %2916 = vmatmul.f32.gmra.mxu2 %v2755_v13  ;;  %3286 = vmatmul.f32.gmra.mxu3 %v3125_v47  ;;  %v3127_v13 = vld [vmem:[#allocation2 + $0x181] sm:$0xff] }
 0x424   : > { %4145 = vmatmul.f32.gmra.mxu1 %v4017_v15  ;;  %v7540_v15 = vld [vmem:[%s10424_s6 + $0x128] sm:$0xff] }
 0x425   : > { %4711 = vmatpush.msrb.mxu3 %v7540_v15  ;;  %v7520_v15 = vld [vmem:[%s10424_s6 + $0x88] sm:$0xff] }
 0x426   : > { %v2869_v59 = vpop.f32.mrf.mxu2  ;;  %v3239_v54 = vpop.f32.mrf.mxu3 }
 0x427   : > { %v3013_v45 = vadd.f32 %v2869_v59, %v2643_v0  ;;  %v3612_v38 = vpop.f32.mrf.mxu0  ;;  %v7556_v0 = vld [vmem:[%s10424_s6 + $0x1a8] sm:$0xff] }
 0x428   : > { %5081 = vmatpush.msrb.mxu0 %v7556_v0 }
 0x429   : > { %v3383_v27 = vadd.f32 %v3239_v54, %v3013_v45  ;;  %v9211_v7 = vpop.f32.mrf.mxu1  ;;  %v7572_v54 = vld [vmem:[%s10424_s6 + $0x228] sm:$0xff] }
 0x42a   : > { %3659 = vmatmul.f32.gmra.mxu0 %v3496_v42  ;;  %v4018_v58 = vld [vmem:[#allocation3 + $0xc8] sm:$0xff]  ;;  %v4019_v49 = vld [vmem:[#allocation3 + $0xd0] sm:$0xff]  ;;  %5451 = vmatpush.msrb.mxu1 %v7572_v54  ;;  %v7536_v54 = vld [vmem:[%s10424_s6 + $0x108] sm:$0xff] }
 0x42b   : > { %v3753_v41 = vadd.f32 %v3609_v3, %v3383_v27  ;;  %2919 = vmatmul.f32.gmra.mxu2 %v2756_v20  ;;  %3289 = vmatmul.f32.gmra.mxu3 %v3126_v35  ;;  %v3498_v35 = vld [vmem:[#allocation2 + $0x18a] sm:$0xff] }
 0x42c   : > { %4148 = vmatmul.f32.gmra.mxu1 %v4018_v58  ;;  %v2758_v27 = vld [vmem:[#allocation2 + $0x188] sm:$0xff] }
 0x42d   : > { %v3915_v31 = vmul.f32 %v9043_v2, %v3753_v41  ;;  %v3128_v58 = vld [vmem:[#allocation2 + $0x189] sm:$0xff] }
 0x42e   : > { %v2872_v1 = vpop.f32.mrf.mxu2  ;;  %v3242_v21 = vpop.f32.mrf.mxu3 }
 0x42f   : > { %v3917_v26 = vadd.f32 %v9048_v24, %v3915_v31  ;;  %v3014_v52 = vadd.f32 %v2872_v1, %v2644_v37  ;;  %v3615_v62 = vpop.f32.mrf.mxu0  ;;  %v7539_v1 = vld [vmem:[%s10424_s6 + $0x120] sm:$0xff] }
 0x430   : > { %4712 = vmatpush.msrb.mxu3 %v7539_v1  ;;  %v7554_v62 = vld [vmem:[%s10424_s6 + $0x198] sm:$0xff]  ;;  %v9293_v1 = vld [vmem:[%s10423_s5] ss:$0 sm:$0xff] }
 0x431   : > { %v3919_v47 = vmax.f32 %v3917_v26, 0.0  ;;  %v3384_v4 = vadd.f32 %v3242_v21, %v3014_v52  ;;  %v9217_v3 = vpop.f32.mrf.mxu1  ;;  %v7522_v21 = vld [vmem:[%s10424_s6 + $0x98] sm:$0xff]  ;;  %v2646_v52 = vadd.f32 %v8930_v51, %v8933_v34  ;;  %v7553_v51 = vld [vmem:[%s10424_s6 + $0x190] sm:$0xff] }
 0x432   : > { %3662 = vmatmul.f32.gmra.mxu0 %v3497_v33  ;;  %v7538_v26 = vld [vmem:[%s10424_s6 + $0x118] sm:$0xff] }
 0x433   : > { %3921 = vst [vmem:[#allocation3 + $0xd9] sm:$0xff] %v3919_v47  ;;  %v3754_v55 = vadd.f32 %v3612_v38, %v3384_v4  ;;  %2922 = vmatmul.f32.gmra.mxu2 %v2757_v8  ;;  %3292 = vmatmul.f32.gmra.mxu3 %v3127_v13  ;;  %v7521_v13 = vld [vmem:[%s10424_s6 + $0x90] sm:$0xff] }
 0x434   : > { %4151 = vmatmul.f32.gmra.mxu1 %v4019_v49  ;;  %v7537_v47 = vld [vmem:[%s10424_s6 + $0x110] sm:$0xff]  ;;  %4713 = vmatpush.msrb.mxu3 %v7538_v26  ;;  %v2760_v26 = vld [vmem:[#allocation2 + $0x198] sm:$0xff] }
 0x435   : > { %v3916_v59 = vmul.f32 %v9043_v2, %v3754_v55  ;;  %v7523_v2 = vld [vmem:[%s10424_s6 + $0xa0] sm:$0xff]  ;;  %v3499_v55 = vld [vmem:[#allocation2 + $0x192] sm:$0xff] }
 0x436   : > { %v2875_v45 = vpop.f32.mrf.mxu2  ;;  %v3245_v38 = vpop.f32.mrf.mxu3  ;;  %4342 = vmatpush.msrb.mxu2 %v7523_v2  ;;  %v2759_v49 = vld [vmem:[#allocation2 + $0x190] sm:$0xff]  ;;  %4714 = vmatpush.msrb.mxu3 %v7537_v47 }
 0x437   : > { %v3918_v42 = vadd.f32 %v9048_v24, %v3916_v59  ;;  %v3618_v20 = vpop.f32.mrf.mxu0  ;;  %v7555_v24 = vld [vmem:[%s10424_s6 + $0x1a0] sm:$0xff]  ;;  %v7552_v38 = vld [vmem:[%s10424_s6 + $0x188] sm:$0xff] }
 0x438   : > { %5082 = vmatpush.msrb.mxu0 %v7555_v24  ;;  %4343 = vmatpush.msrb.mxu2 %v7522_v21  ;;  %v3500_v21 = vld [vmem:[#allocation2 + $0x19a] sm:$0xff] }
 0x439   : > { %v3920_v41 = vmax.f32 %v3918_v42, 0.0  ;;  %v4107_v37 = vpop.f32.mrf.mxu1  ;;  %v7519_v42 = vld [vmem:[%s10424_s6 + $0x80] sm:$0xff]  ;;  %4715 = vmatpush.msrb.mxu3 %v7536_v54 }
 0x43a   : > { %3665 = vmatmul.f32.gmra.mxu0 %v3498_v35  ;;  %v4020_v31 = vld [vmem:[#allocation3 + $0xd8] sm:$0xff]  ;;  %4344 = vmatpush.msrb.mxu2 %v7521_v13 }
 0x43b   : > { %3922 = vst [vmem:[#allocation3 + $0xe1] sm:$0xff] %v3920_v41  ;;  %2925 = vmatmul.f32.gmra.mxu2 %v2758_v27  ;;  %3295 = vmatmul.f32.gmra.mxu3 %v3128_v58  ;;  %v7535_v27 = vld [vmem:[%s10424_s6 + $0x100] sm:$0xff]  ;;  %v2647_v41 = vadd.f32 %v8935_v5, %v8940_v29 }
 0x43c   : > { %4154 = vmatmul.f32.gmra.mxu1 %v4020_v31  ;;  %5083 = vmatpush.msrb.mxu0 %v7554_v62  ;;  %v7551_v58 = vld [vmem:[%s10424_s6 + $0x180] sm:$0xff] }
 0x43d   : > { %4345 = vmatpush.msrb.mxu2 %v7520_v15  ;;  %v9287_v37 = vld [vmem:[%s10422_s4] ss:$0 sm:$0xff]  ;;  %4716 = vmatpush.msrb.mxu3 %v7535_v27 }
 0x43e   : > { %v2878_v33 = vpop.f32.mrf.mxu2  ;;  %v3248_v8 = vpop.f32.mrf.mxu3  ;;  %5084 = vmatpush.msrb.mxu0 %v7553_v51  ;;  %v7571_v51 = vld [vmem:[%s10424_s6 + $0x220] sm:$0xff] }
 0x43f   : > { %v3016_v34 = vadd.f32 %v2878_v33, %v2646_v52  ;;  %v3621_v4 = vpop.f32.mrf.mxu0  ;;  %4346 = vmatpush.msrb.mxu2 %v7519_v42  ;;  %v3130_v52 = vld [vmem:[#allocation2 + $0x199] sm:$0xff]  ;;  %5452 = vmatpush.msrb.mxu1 %v7571_v51  ;;  %v4266_v51 = vld [vmem:[#allocation3 + $0x1] sm:$0xff] }
 0x440   : > { %5085 = vmatpush.msrb.mxu0 %v7552_v38  ;;  %v2761_v54 = vld [vmem:[#allocation2 + $0x1a0] sm:$0xff] }
 0x441   : > { %v3386_v0 = vadd.f32 %v3248_v8, %v3016_v34  ;;  %v9265_v59 = vpop.f32.mrf.mxu1 }
 0x442   : > { %3668 = vmatmul.f32.gmra.mxu0 %v3499_v55  ;;  %v4021_v45 = vld [vmem:[#allocation3 + $0xe0] sm:$0xff]  ;;  %v4022_v47 = vld [vmem:[#allocation3 + $0xe8] sm:$0xff] }
 0x443   : > { %v3756_v35 = vadd.f32 %v3618_v20, %v3386_v0  ;;  %2928 = vmatmul.f32.gmra.mxu2 %v2759_v49  ;;  %3298 = vmatmul.f32.gmra.mxu3 %v3129_v43  ;;  %v3501_v0 = vld [vmem:[#allocation2 + $0x1a2] sm:$0xff] }
 0x444   : > { %4157 = vmatmul.f32.gmra.mxu1 %v4021_v45  ;;  %5086 = vmatpush.msrb.mxu0 %v7551_v58  ;;  %v3131_v45 = vld [vmem:[#allocation2 + $0x1a1] sm:$0xff] }
 0x445   : > { %v3925_v20 = vmul.f32 %v9287_v37, %v3756_v35  ;;  %v2649_v35 = vadd.f32 %v8947_v28, %v8950_v6  ;;  %v2650_v28 = vadd.f32 %v8952_v16, %v8955_v53  ;;  %v7570_v16 = vld [vmem:[%s10424_s6 + $0x218] sm:$0xff] }
 0x446   : > { %v2881_v31 = vpop.f32.mrf.mxu2  ;;  %v3251_v2 = vpop.f32.mrf.mxu3  ;;  %5453 = vmatpush.msrb.mxu1 %v7570_v16 }
 0x447   : > { %v3927_v24 = vadd.f32 %v9293_v1, %v3925_v20  ;;  %v3017_v5 = vadd.f32 %v2881_v31, %v2647_v41  ;;  %v3624_v29 = vpop.f32.mrf.mxu0  ;;  %v3502_v31 = vld [vmem:[#allocation2 + $0x1aa] sm:$0xff] }
 0x449   : > { %v3929_v62 = vmax.f32 %v3927_v24, 0.0  ;;  %v3387_v33 = vadd.f32 %v3251_v2, %v3017_v5  ;;  %v9296_v8 = vpop.f32.mrf.mxu1  ;;  %v2762_v2 = vld [vmem:[#allocation2 + $0x1a8] sm:$0xff] }
 0x44a   : > { %3671 = vmatmul.f32.gmra.mxu0 %v3500_v21  ;;  %v3132_v24 = vld [vmem:[#allocation2 + $0x1a9] sm:$0xff] }
 0x44b   : > { %3931 = vst [vmem:[#allocation3 + $0xf1] sm:$0xff] %v3929_v62  ;;  %v3757_v13 = vadd.f32 %v3621_v4, %v3387_v33  ;;  %2931 = vmatmul.f32.gmra.mxu2 %v2760_v26  ;;  %3301 = vmatmul.f32.gmra.mxu3 %v3130_v52 }
 0x44c   : > { %4160 = vmatmul.f32.gmra.mxu1 %v4022_v47 }
 0x44d   : > { %v3926_v34 = vmul.f32 %v9287_v37, %v3757_v13 }
 0x44e   : > { %v2884_v55 = vpop.f32.mrf.mxu2  ;;  %v3254_v49 = vpop.f32.mrf.mxu3 }
 0x44f   : > { %v3928_v43 = vadd.f32 %v9293_v1, %v3926_v34  ;;  %v3627_v15 = vpop.f32.mrf.mxu0  ;;  %v4636_v34 = vld [vmem:[#allocation3 + $0x2] sm:$0xff] }
 0x451   : > { %v3930_v4 = vmax.f32 %v3928_v43, 0.0  ;;  %v4116_v38 = vpop.f32.mrf.mxu1 }
 0x452   : > { %3674 = vmatmul.f32.gmra.mxu0 %v3501_v0  ;;  %v4023_v42 = vld [vmem:[#allocation3 + $0xf0] sm:$0xff] }
 0x453   : > { %3932 = vst [vmem:[#allocation3 + $0xf9] sm:$0xff] %v3930_v4  ;;  %2934 = vmatmul.f32.gmra.mxu2 %v2761_v54  ;;  %3304 = vmatmul.f32.gmra.mxu3 %v3131_v45 }
 0x454   : > { %4163 = vmatmul.f32.gmra.mxu1 %v4023_v42 }
 0x456   : > { %v2887_v27 = vpop.f32.mrf.mxu2  ;;  %v3257_v58 = vpop.f32.mrf.mxu3 }
 0x457   : > { %v3019_v41 = vadd.f32 %v2887_v27, %v2649_v35  ;;  %v3630_v20 = vpop.f32.mrf.mxu0  ;;  %v4267_v35 = vld [vmem:[#allocation3 + $0x9] sm:$0xff] }
 0x458   : > { %v4637_v27 = vld [vmem:[#allocation3 + $0xa] sm:$0xff] }
 0x459   : > { %v3389_v5 = vadd.f32 %v3257_v58, %v3019_v41  ;;  %v9305_v29 = vpop.f32.mrf.mxu1 }
 0x45a   : > { %3677 = vmatmul.f32.gmra.mxu0 %v3502_v31  ;;  %v9307_v21 = vld [vmem:[#allocation3 + $0xf8] sm:$0xff]  ;;  %v9316_v54 = vld [vmem:[#allocation3 + $0x100] sm:$0xff] }
 0x45b   : > { %v3759_v26 = vadd.f32 %v3627_v15, %v3389_v5  ;;  %2937 = vmatmul.f32.gmra.mxu2 %v2762_v2  ;;  %3307 = vmatmul.f32.gmra.mxu3 %v3132_v24  ;;  %v5006_v15 = vld [vmem:[#allocation3 + $0x18] sm:$0xff]  ;;  %v2652_v2 = vadd.f32 %v8960_v63, %v8963_v57  ;;  %v2653_v63 = vadd.f32 %v8965_v40, %v8968_v48  ;;  %v7569_v48 = vld [vmem:[%s10424_s6 + $0x210] sm:$0xff] }
 0x45c   : > { %4166 = vmatmul.f32.gmra.mxu1 %v9307_v21 }
 0x45d   : > { %v3935_v6 = vmul.f32 %v9287_v37, %v3759_v26  ;;  %5454 = vmatpush.msrb.mxu1 %v7569_v48 }
 0x45e   : > { %v2890_v52 = vpop.f32.mrf.mxu2  ;;  %v3260_v62 = vpop.f32.mrf.mxu3 }
 0x45f   : > { %v3937_v33 = vadd.f32 %v9293_v1, %v3935_v6  ;;  %v3020_v13 = vadd.f32 %v2890_v52, %v2650_v28  ;;  %v3633_v47 = vpop.f32.mrf.mxu0  ;;  %v4268_v6 = vld [vmem:[#allocation3 + $0x11] sm:$0xff] }
 0x460   : > { %v4638_v47 = vld [vmem:[#allocation3 + $0x12] sm:$0xff] }
 0x461   : > { %v3939_v55 = vmax.f32 %v3937_v33, 0.0  ;;  %v3390_v49 = vadd.f32 %v3260_v62, %v3020_v13  ;;  %v9314_v43 = vpop.f32.mrf.mxu1  ;;  %v5008_v33 = vld [vmem:[#allocation3 + $0x28] sm:$0xff] }
 0x462   : > { %5087 = vmatmul.f32.vlgmr.msrb.gmra.mxu0 %v5006_v15 }
 0x463   : > { %3941 = vst [vmem:[#allocation3 + $0x109] sm:$0xff] %v3939_v55  ;;  %v3760_v0 = vadd.f32 %v3630_v20, %v3390_v49  ;;  %4347 = vmatmul.f32.vlgmr.msrb.gmra.mxu2 %v4266_v51  ;;  %4717 = vmatmul.f32.vlgmr.msrb.gmra.mxu3 %v4636_v34  ;;  %v5007_v20 = vld [vmem:[#allocation3 + $0x20] sm:$0xff] }
 0x464   : > { %4169 = vmatmul.f32.gmra.mxu1 %v9316_v54 }
 0x465   : > { %v3936_v53 = vmul.f32 %v9287_v37, %v3760_v0 }
 0x466   : > { %v2893_v45 = vpop.f32.mrf.mxu2  ;;  %v3263_v4 = vpop.f32.mrf.mxu3 }
 0x467   : > { %v3938_v38 = vadd.f32 %v9293_v1, %v3936_v53  ;;  %v3636_v42 = vpop.f32.mrf.mxu0  ;;  %v5009_v4 = vld [vmem:[#allocation3 + $0x30] sm:$0xff] }
 0x469   : > { %v3940_v58 = vmax.f32 %v3938_v38, 0.0  ;;  %v4125_v41 = vpop.f32.mrf.mxu1  ;;  %v9340_v38 = vld [vmem:[#allocation3 + $0x19] sm:$0xff] }
 0x46a   : > { %v9324_v31 = vld [vmem:[#allocation3 + $0x108] sm:$0xff]  ;;  %5090 = vmatmul.f32.gmra.mxu0 %v5007_v20 }
 0x46b   : > { %3942 = vst [vmem:[#allocation3 + $0x111] sm:$0xff] %v3940_v58  ;;  %4350 = vmatmul.f32.gmra.mxu2 %v4267_v35  ;;  %4720 = vmatmul.f32.gmra.mxu3 %v4637_v27 }
 0x46c   : > { %4172 = vmatmul.f32.gmra.mxu1 %v9324_v31 }
 0x46e   : > { %v2896_v24 = vpop.f32.mrf.mxu2  ;;  %v3266_v5 = vpop.f32.mrf.mxu3 }
 0x46f   : > { %v3022_v26 = vadd.f32 %v2896_v24, %v2652_v2  ;;  %v3639_v28 = vpop.f32.mrf.mxu0 }
 0x471   : > { %v3392_v52 = vadd.f32 %v3266_v5, %v3022_v26  ;;  %v9329_v62 = vpop.f32.mrf.mxu1  ;;  %v5010_v26 = vld [vmem:[#allocation3 + $0x38] sm:$0xff] }
 0x472   : > { %v9331_v13 = vld [vmem:[#allocation3 + $0x110] sm:$0xff]  ;;  %5093 = vmatmul.f32.gmra.mxu0 %v5008_v33  ;;  %v9342_v40 = vld [vmem:[#allocation3 + $0x118] sm:$0xff]  ;;  %v2655_v33 = vadd.f32 %v8973_v32, %v8976_v12  ;;  %v2656_v32 = vadd.f32 %v8978_v22, %v8981_v61  ;;  %v7568_v61 = vld [vmem:[%s10424_s6 + $0x208] sm:$0xff] }
 0x473   : > { %v3762_v51 = vadd.f32 %v3636_v42, %v3392_v52  ;;  %4353 = vmatmul.f32.gmra.mxu2 %v4268_v6  ;;  %4723 = vmatmul.f32.gmra.mxu3 %v4638_v47  ;;  %v4639_v42 = vld [vmem:[#allocation3 + $0x1a] sm:$0xff]  ;;  %v4640_v52 = vld [vmem:[#allocation3 + $0x22] sm:$0xff] }
 0x474   : > { %4175 = vmatmul.f32.gmra.mxu1 %v9331_v13  ;;  %v9353_v6 = vld [vmem:[#allocation3 + $0x21] sm:$0xff] }
 0x475   : > { %v3945_v57 = vmul.f32 %v9287_v37, %v3762_v51  ;;  %5455 = vmatpush.msrb.mxu1 %v7568_v61 }
 0x476   : > { %v2899_v34 = vpop.f32.mrf.mxu2  ;;  %v3269_v55 = vpop.f32.mrf.mxu3 }
 0x477   : > { %v3947_v49 = vadd.f32 %v9293_v1, %v3945_v57  ;;  %v3023_v15 = vadd.f32 %v2899_v34, %v2653_v63  ;;  %v3642_v0 = vpop.f32.mrf.mxu0  ;;  %v9359_v34 = vld [vmem:[#allocation3 + $0x29] sm:$0xff] }
 0x479   : > { %v3949_v16 = vmax.f32 %v3947_v49, 0.0  ;;  %v3393_v53 = vadd.f32 %v3269_v55, %v3023_v15  ;;  %v9338_v45 = vpop.f32.mrf.mxu1  ;;  %v5011_v15 = vld [vmem:[#allocation3 + $0x40] sm:$0xff] }
 0x47a   : > { %5096 = vmatmul.f32.gmra.mxu0 %v5009_v4 }
 0x47b   : > { %3951 = vst [vmem:[#allocation3 + $0x121] sm:$0xff] %v3949_v16  ;;  %v3763_v35 = vadd.f32 %v3639_v28, %v3393_v53  ;;  %4356 = vmatmul.f32.gmra.mxu2 %v9340_v38  ;;  %4726 = vmatmul.f32.gmra.mxu3 %v4639_v42  ;;  %v4641_v16 = vld [vmem:[#allocation3 + $0x2a] sm:$0xff] }
 0x47c   : > { %4178 = vmatmul.f32.gmra.mxu1 %v9342_v40 }
 0x47d   : > { %v3946_v27 = vmul.f32 %v9287_v37, %v3763_v35 }
 0x47e   : > { %v2902_v58 = vpop.f32.mrf.mxu2  ;;  %v3272_v41 = vpop.f32.mrf.mxu3 }
 0x47f   : > { %v3948_v20 = vadd.f32 %v9293_v1, %v3946_v27  ;;  %v3645_v2 = vpop.f32.mrf.mxu0 }
 0x481   : > { %v3950_v24 = vmax.f32 %v3948_v20, 0.0  ;;  %v4134_v5 = vpop.f32.mrf.mxu1 }
 0x482   : > { %v9351_v28 = vld [vmem:[#allocation3 + $0x120] sm:$0xff]  ;;  %5099 = vmatmul.f32.gmra.mxu0 %v5010_v26  ;;  %v4642_v5 = vld [vmem:[#allocation3 + $0x32] sm:$0xff] }
 0x483   : > { %3952 = vst [vmem:[#allocation3 + $0x129] sm:$0xff] %v3950_v24  ;;  %4359 = vmatmul.f32.gmra.mxu2 %v9353_v6  ;;  %4729 = vmatmul.f32.gmra.mxu3 %v4640_v52  ;;  %v9373_v24 = vld [vmem:[#allocation3 + $0x31] sm:$0xff] }
 0x484   : > { %4181 = vmatmul.f32.gmra.mxu1 %v9351_v28 }
 0x486   : > { %v2905_v47 = vpop.f32.mrf.mxu2  ;;  %v3275_v51 = vpop.f32.mrf.mxu3 }
 0x487   : > { %v3025_v63 = vadd.f32 %v2905_v47, %v2655_v33  ;;  %v3648_v57 = vpop.f32.mrf.mxu0 }
 0x489   : > { %v3395_v55 = vadd.f32 %v3275_v51, %v3025_v63  ;;  %v9361_v49 = vpop.f32.mrf.mxu1 }
 0x48a   : > { %v9363_v0 = vld [vmem:[#allocation3 + $0x128] sm:$0xff]  ;;  %5102 = vmatmul.f32.gmra.mxu0 %v5011_v15  ;;  %v9375_v22 = vld [vmem:[#allocation3 + $0x130] sm:$0xff] }
 0x48b   : > { %v3765_v53 = vadd.f32 %v3645_v2, %v3395_v55  ;;  %4362 = vmatmul.f32.gmra.mxu2 %v9359_v34  ;;  %4732 = vmatmul.f32.gmra.mxu3 %v4641_v16  ;;  %v5012_v2 = vld [vmem:[#allocation3 + $0x48] sm:$0xff]  ;;  %v5013_v15 = vld [vmem:[#allocation3 + $0x50] sm:$0xff] }
 0x48c   : > { %4184 = vmatmul.f32.gmra.mxu1 %v9363_v0 }
 0x48d   : > { %v3955_v12 = vmul.f32 %v9287_v37, %v3765_v53  ;;  %v9386_v53 = vld [vmem:[#allocation3 + $0x39] sm:$0xff] }
 0x48e   : > { %v2908_v4 = vpop.f32.mrf.mxu2  ;;  %v3278_v42 = vpop.f32.mrf.mxu3 }
 0x48f   : > { %v3957_v35 = vadd.f32 %v9293_v1, %v3955_v12  ;;  %v3026_v48 = vadd.f32 %v2908_v4, %v2656_v32  ;;  %v3651_v27 = vpop.f32.mrf.mxu0  ;;  %v4643_v32 = vld [vmem:[#allocation3 + $0x3a] sm:$0xff]  ;;  %v2658_v12 = vadd.f32 %v8986_v60, %v8989_v50  ;;  %v2659_v60 = vadd.f32 %v8991_v23, %v8994_v36 }
 0x490   : > { %v9392_v27 = vld [vmem:[#allocation3 + $0x41] sm:$0xff]  ;;  %v7567_v36 = vld [vmem:[%s10424_s6 + $0x200] sm:$0xff] }
 0x491   : > { %v3959_v58 = vmax.f32 %v3957_v35, 0.0  ;;  %v3396_v41 = vadd.f32 %v3278_v42, %v3026_v48  ;;  %v9371_v20 = vpop.f32.mrf.mxu1  ;;  %5456 = vmatpush.msrb.mxu1 %v7567_v36 }
 0x492   : > { %5105 = vmatmul.f32.gmra.mxu0 %v5012_v2  ;;  %v5014_v2 = vld [vmem:[#allocation3 + $0x58] sm:$0xff] }
 0x493   : > { %3961 = vst [vmem:[#allocation3 + $0x139] sm:$0xff] %v3959_v58  ;;  %v3766_v26 = vadd.f32 %v3648_v57, %v3396_v41  ;;  %4365 = vmatmul.f32.gmra.mxu2 %v9373_v24  ;;  %4735 = vmatmul.f32.gmra.mxu3 %v4642_v5 }
 0x494   : > { %4187 = vmatmul.f32.gmra.mxu1 %v9375_v22 }
 0x495   : > { %v3956_v52 = vmul.f32 %v9287_v37, %v3766_v26  ;;  %v4644_v26 = vld [vmem:[#allocation3 + $0x42] sm:$0xff] }
 0x496   : > { %v2911_v33 = vpop.f32.mrf.mxu2  ;;  %v3281_v47 = vpop.f32.mrf.mxu3 }
 0x497   : > { %v3958_v51 = vadd.f32 %v9293_v1, %v3956_v52  ;;  %v3654_v63 = vpop.f32.mrf.mxu0 }
 0x499   : > { %v3960_v57 = vmax.f32 %v3958_v51, 0.0  ;;  %v4143_v55 = vpop.f32.mrf.mxu1 }
 0x49a   : > { %v9384_v16 = vld [vmem:[#allocation3 + $0x138] sm:$0xff]  ;;  %5108 = vmatmul.f32.gmra.mxu0 %v5013_v15 }
 0x49b   : > { %3962 = vst [vmem:[#allocation3 + $0x141] sm:$0xff] %v3960_v57  ;;  %4368 = vmatmul.f32.gmra.mxu2 %v9386_v53  ;;  %4738 = vmatmul.f32.gmra.mxu3 %v4643_v32 }
 0x49c   : > { %4190 = vmatmul.f32.gmra.mxu1 %v9384_v16 }
 0x49e   : > { %v2914_v4 = vpop.f32.mrf.mxu2  ;;  %v3284_v42 = vpop.f32.mrf.mxu3 }
 0x49f   : > { %v3028_v35 = vadd.f32 %v2914_v4, %v2658_v12  ;;  %v3657_v48 = vpop.f32.mrf.mxu0  ;;  %v9406_v12 = vld [vmem:[#allocation3 + $0x49] sm:$0xff] }
 0x4a0   : > { %v4645_v4 = vld [vmem:[#allocation3 + $0x4a] sm:$0xff] }
 0x4a1   : > { %v3398_v58 = vadd.f32 %v3284_v42, %v3028_v35  ;;  %v9394_v41 = vpop.f32.mrf.mxu1 }
 0x4a2   : > { %v9396_v5 = vld [vmem:[#allocation3 + $0x140] sm:$0xff]  ;;  %5111 = vmatmul.f32.gmra.mxu0 %v5014_v2  ;;  %v9408_v23 = vld [vmem:[#allocation3 + $0x148] sm:$0xff] }
 0x4a3   : > { %v3768_v61 = vadd.f32 %v3654_v63, %v3398_v58  ;;  %4371 = vmatmul.f32.gmra.mxu2 %v9392_v27  ;;  %4741 = vmatmul.f32.gmra.mxu3 %v4644_v26  ;;  %v5015_v63 = vld [vmem:[#allocation3 + $0x60] sm:$0xff] }
 0x4a4   : > { %4193 = vmatmul.f32.gmra.mxu1 %v9396_v5 }
 0x4a5   : > { %v3965_v50 = vmul.f32 %v9287_v37, %v3768_v61 }
 0x4a6   : > { %v2917_v52 = vpop.f32.mrf.mxu2  ;;  %v3287_v33 = vpop.f32.mrf.mxu3 }
 0x4a7   : > { %v3967_v47 = vadd.f32 %v9293_v1, %v3965_v50  ;;  %v3029_v51 = vadd.f32 %v2917_v52, %v2659_v60  ;;  %v3660_v57 = vpop.f32.mrf.mxu0  ;;  %v5016_v50 = vld [vmem:[#allocation3 + $0x68] sm:$0xff] }
 0x4a9   : > { %v3969_v55 = vmax.f32 %v3967_v47, 0.0  ;;  %v3399_v15 = vadd.f32 %v3287_v33, %v3029_v51  ;;  %v9404_v32 = vpop.f32.mrf.mxu1  ;;  %v9419_v33 = vld [vmem:[#allocation3 + $0x51] sm:$0xff]  ;;  %v2661_v51 = vadd.f32 %v8999_v18, %v9005_v30  ;;  %v2662_v18 = vadd.f32 %v9007_v14, %v9013_v56 }
 0x4aa   : > { %5114 = vmatmul.f32.gmra.mxu0 %v5015_v63  ;;  %v4646_v47 = vld [vmem:[#allocation3 + $0x52] sm:$0xff] }
 0x4ab   : > { %3971 = vst [vmem:[#allocation3 + $0x151] sm:$0xff] %v3969_v55  ;;  %v3769_v42 = vadd.f32 %v3657_v48, %v3399_v15  ;;  %4374 = vmatmul.f32.gmra.mxu2 %v9406_v12  ;;  %4744 = vmatmul.f32.gmra.mxu3 %v4645_v4  ;;  %v9425_v4 = vld [vmem:[#allocation3 + $0x59] sm:$0xff]  ;;  %v7598_v56 = vld [vmem:[%s10424_s6 + $0x2f8] sm:$0xff] }
 0x4ac   : > { %4196 = vmatmul.f32.gmra.mxu1 %v9408_v23  ;;  %5811 = vmatpush.msra.mxu2 %v7598_v56  ;;  %v4649_v56 = vld [vmem:[#allocation3 + $0x6a] sm:$0xff] }
 0x4ad   : > { %v3966_v35 = vmul.f32 %v9287_v37, %v3769_v42 }
 0x4ae   : > { %v2920_v58 = vpop.f32.mrf.mxu2  ;;  %v3290_v2 = vpop.f32.mrf.mxu3 }
 0x4af   : > { %v3968_v26 = vadd.f32 %v9293_v1, %v3966_v35  ;;  %v3663_v61 = vpop.f32.mrf.mxu0  ;;  %v5017_v35 = vld [vmem:[#allocation3 + $0x70] sm:$0xff]  ;;  %v4647_v2 = vld [vmem:[#allocation3 + $0x5a] sm:$0xff] }
 0x4b1   : > { %v3970_v48 = vmax.f32 %v3968_v26, 0.0  ;;  %v4152_v60 = vpop.f32.mrf.mxu1 }
 0x4b2   : > { %v9417_v52 = vld [vmem:[#allocation3 + $0x150] sm:$0xff]  ;;  %5117 = vmatmul.f32.gmra.mxu0 %v5016_v50 }
 0x4b3   : > { %3972 = vst [vmem:[#allocation3 + $0x159] sm:$0xff] %v3970_v48  ;;  %4377 = vmatmul.f32.gmra.mxu2 %v9419_v33  ;;  %4747 = vmatmul.f32.gmra.mxu3 %v4646_v47 }
 0x4b4   : > { %4199 = vmatmul.f32.gmra.mxu1 %v9417_v52 }
 0x4b6   : > { %v2923_v57 = vpop.f32.mrf.mxu2  ;;  %v3293_v55 = vpop.f32.mrf.mxu3 }
 0x4b7   : > { %v3031_v15 = vadd.f32 %v2923_v57, %v2661_v51  ;;  %v3666_v63 = vpop.f32.mrf.mxu0 }
 0x4b9   : > { %v3401_v42 = vadd.f32 %v3293_v55, %v3031_v15  ;;  %v9427_v36 = vpop.f32.mrf.mxu1 }
 0x4ba   : > { %10446 = vst [vmem:[#allocation5_spill] sm:$0xff] %v9427_v36  ;;  %v9429_v58 = vld [vmem:[#allocation3 + $0x158] sm:$0xff]  ;;  %5120 = vmatmul.f32.gmra.mxu0 %v5017_v35  ;;  %v4648_v35 = vld [vmem:[#allocation3 + $0x62] sm:$0xff]  ;;  %v5021_v36 = vld [vmem:[#allocation3 + $0x90] sm:$0xff] }
 0x4bb   : > { %v3771_v26 = vadd.f32 %v3663_v61, %v3401_v42  ;;  %4380 = vmatmul.f32.gmra.mxu2 %v9425_v4  ;;  %4750 = vmatmul.f32.gmra.mxu3 %v4647_v2  ;;  %v5018_v61 = vld [vmem:[#allocation3 + $0x78] sm:$0xff]  ;;  %v9439_v42 = vld [vmem:[#allocation3 + $0x61] sm:$0xff] }
 0x4bc   : > { %4202 = vmatmul.f32.gmra.mxu1 %v9429_v58  ;;  %v9441_v14 = vld [vmem:[#allocation3 + $0x160] sm:$0xff] }
 0x4bd   : > { %v3975_v30 = vmul.f32 %v9287_v37, %v3771_v26  ;;  %v7614_v26 = vld [vmem:[%s10424_s6 + $0x378] sm:$0xff] }
 0x4be   : > { %v2926_v48 = vpop.f32.mrf.mxu2  ;;  %v3296_v60 = vpop.f32.mrf.mxu3  ;;  %6181 = vmatpush.msra.mxu3 %v7614_v26 }
 0x4bf   : > { %v3977_v50 = vadd.f32 %v9293_v1, %v3975_v30  ;;  %v3032_v47 = vadd.f32 %v2926_v48, %v2662_v18  ;;  %v3669_v51 = vpop.f32.mrf.mxu0  ;;  %v7646_v18 = vld [vmem:[%s10424_s6 + $0x478] sm:$0xff] }
 0x4c0   : > { %6921 = vmatpush.msra.mxu1 %v7646_v18 }
 0x4c1   : > { %v3979_v57 = vmax.f32 %v3977_v50, 0.0  ;;  %v3402_v55 = vadd.f32 %v3296_v60, %v3032_v47  ;;  %v9437_v15 = vpop.f32.mrf.mxu1 }
 0x4c2   : > { %10447 = vst [vmem:[#allocation6_spill] sm:$0xff] %v9437_v15  ;;  %5123 = vmatmul.f32.gmra.mxu0 %v5018_v61 }
 0x4c3   : > { %3981 = vst [vmem:[#allocation3 + $0x169] sm:$0xff] %v3979_v57  ;;  %v3772_v2 = vadd.f32 %v3666_v63, %v3402_v55  ;;  %4383 = vmatmul.f32.gmra.mxu2 %v9439_v42  ;;  %4753 = vmatmul.f32.gmra.mxu3 %v4648_v35  ;;  %v7630_v63 = vld [vmem:[%s10424_s6 + $0x3f8] sm:$0xff]  ;;  %v5019_v55 = vld [vmem:[#allocation3 + $0x80] sm:$0xff] }
 0x4c4   : > { %4205 = vmatmul.f32.gmra.mxu1 %v9441_v14  ;;  %6551 = vmatpush.msra.mxu0 %v7630_v63  ;;  %v9461_v35 = vld [vmem:[#allocation3 + $0x69] sm:$0xff] }
 0x4c5   : > { %v3976_v30 = vmul.f32 %v9287_v37, %v3772_v2  ;;  %v2664_v2 = vadd.f32 %v9102_v9, %v9022_v46  ;;  %v7613_v9 = vld [vmem:[%s10424_s6 + $0x370] sm:$0xff] }
 0x4c6   : > { %v2929_v48 = vpop.f32.mrf.mxu2  ;;  %v3299_v60 = vpop.f32.mrf.mxu3  ;;  %6182 = vmatpush.msra.mxu3 %v7613_v9 }
 0x4c7   : > { %v3978_v50 = vadd.f32 %v9293_v1, %v3976_v30  ;;  %v3672_v47 = vpop.f32.mrf.mxu0  ;;  %v9467_v48 = vld [vmem:[#allocation3 + $0x71] sm:$0xff] }
 0x4c9   : > { %v3980_v51 = vmax.f32 %v3978_v50, 0.0  ;;  %v4161_v57 = vpop.f32.mrf.mxu1 }
 0x4ca   : > { %v9459_v61 = vld [vmem:[#allocation3 + $0x168] sm:$0xff]  ;;  %5126 = vmatmul.f32.gmra.mxu0 %v5019_v55 }
 0x4cb   : > { %10448 = vst [vmem:[#allocation7_spill] sm:$0xff] %v9459_v61  ;;  %4386 = vmatmul.f32.gmra.mxu2 %v9461_v35  ;;  %4756 = vmatmul.f32.gmra.mxu3 %v4649_v56  ;;  %v5020_v57 = vld [vmem:[#allocation3 + $0x88] sm:$0xff]  ;;  %v4650_v56 = vld [vmem:[#allocation3 + $0x72] sm:$0xff] }
 0x4cc   : > { %3982 = vst [vmem:[#allocation3 + $0x171] sm:$0xff] %v3980_v51  ;;  %4208 = vmatmul.f32.gmra.mxu1 %v9459_v61  ;;  %v7597_v51 = vld [vmem:[%s10424_s6 + $0x2f0] sm:$0xff]  ;;  %v4651_v61 = vld [vmem:[#allocation3 + $0x7a] sm:$0xff] }
 0x4cd   : > { %5812 = vmatpush.msra.mxu2 %v7597_v51 }
 0x4ce   : > { %v2932_v26 = vpop.f32.mrf.mxu2  ;;  %v3302_v63 = vpop.f32.mrf.mxu3 }
 0x4cf   : > { %v3034_v18 = vadd.f32 %v2932_v26, %v2664_v2  ;;  %v3675_v30 = vpop.f32.mrf.mxu0  ;;  %v10451_v2 = vld [vmem:[#allocation10_spill] sm:$0xff] }
 0x4d0   : > { %v2665_v26 = vadd.f32 %v9106_v17, %v10451_v2 }
 0x4d1   : > { %v3404_v60 = vadd.f32 %v3302_v63, %v3034_v18  ;;  %v9469_v50 = vpop.f32.mrf.mxu1 }
 0x4d2   : > { %10449 = vst [vmem:[#allocation8_spill] sm:$0xff] %v9469_v50  ;;  %5129 = vmatmul.f32.gmra.mxu0 %v5020_v57 }
 0x4d3   : > { %v9474_v55 = vld [vmem:[#allocation3 + $0x170] sm:$0xff]  ;;  %v3774_v46 = vadd.f32 %v3672_v47, %v3404_v60  ;;  %4389 = vmatmul.f32.gmra.mxu2 %v9467_v48  ;;  %4759 = vmatmul.f32.gmra.mxu3 %v4650_v56  ;;  %v9489_v2 = vld [vmem:[#allocation3 + $0x178] sm:$0xff] }
 0x4d4   : > { %10450 = vst [vmem:[#allocation9_spill] sm:$0xff] %v9474_v55  ;;  %4211 = vmatmul.f32.gmra.mxu1 %v9474_v55  ;;  %v9487_v55 = vld [vmem:[#allocation3 + $0x79] sm:$0xff] }
 0x4d5   : > { %v3985_v63 = vmul.f32 %v9287_v37, %v3774_v46  ;;  %v7645_v46 = vld [vmem:[%s10424_s6 + $0x470] sm:$0xff] }
 0x4d6   : > { %v2935_v18 = vpop.f32.mrf.mxu2  ;;  %v3305_v50 = vpop.f32.mrf.mxu3  ;;  %6922 = vmatpush.msra.mxu1 %v7645_v46 }
 0x4d7   : > { %v3987_v57 = vadd.f32 %v9293_v1, %v3985_v63  ;;  %v3035_v47 = vadd.f32 %v2935_v18, %v2665_v26  ;;  %v3678_v60 = vpop.f32.mrf.mxu0 }
 0x4d8   : > { %v4652_v60 = vld [vmem:[#allocation3 + $0x82] sm:$0xff] }
 0x4d9   : > { %v3989_v51 = vmax.f32 %v3987_v57, 0.0  ;;  %v3405_v56 = vadd.f32 %v3305_v50, %v3035_v47  ;;  %v9485_v15 = vpop.f32.mrf.mxu1  ;;  %v7629_v50 = vld [vmem:[%s10424_s6 + $0x3f0] sm:$0xff]  ;;  %v5022_v57 = vld [vmem:[#allocation3 + $0x98] sm:$0xff] }
 0x4da   : > { %5132 = vmatmul.f32.gmra.mxu0 %v5021_v36  ;;  %v9501_v47 = vld [vmem:[#allocation3 + $0x81] sm:$0xff] }
 0x4db   : > { %3991 = vst [vmem:[#allocation3 + $0x181] sm:$0xff] %v3989_v51  ;;  %v3775_v17 = vadd.f32 %v3675_v30, %v3405_v56  ;;  %4392 = vmatmul.f32.gmra.mxu2 %v9487_v55  ;;  %4762 = vmatmul.f32.gmra.mxu3 %v4651_v61 }
 0x4dc   : > { %4214 = vmatmul.f32.gmra.mxu1 %v9489_v2  ;;  %6552 = vmatpush.msra.mxu0 %v7629_v50 }
 0x4dd   : > { %v3986_v9 = vmul.f32 %v9287_v37, %v3775_v17 }
 0x4de   : > { %v2938_v36 = vpop.f32.mrf.mxu2  ;;  %v3308_v30 = vpop.f32.mrf.mxu3 }
 0x4df   : > { %v3988_v26 = vadd.f32 %v9293_v1, %v3986_v9  ;;  %v5088_v63 = vpop.f32.mrf.mxu0  ;;  %v9506_v1 = vld [vmem:[#allocation3 + $0x89] sm:$0xff]  ;;  %v5023_v9 = vld [vmem:[#allocation3 + $0xa0] sm:$0xff] }
 0x4e0   : > { %v7596_v36 = vld [vmem:[%s10424_s6 + $0x2e8] sm:$0xff]  ;;  %v4653_v30 = vld [vmem:[#allocation3 + $0x8a] sm:$0xff] }
 0x4e1   : > { %v3990_v61 = vmax.f32 %v3988_v26, 0.0  ;;  %v4170_v18 = vpop.f32.mrf.mxu1  ;;  %5813 = vmatpush.msra.mxu2 %v7596_v36 }
 0x4e2   : > { %5135 = vmatmul.f32.gmra.mxu0 %v5022_v57 }
 0x4e3   : > { %3992 = vst [vmem:[#allocation3 + $0x189] sm:$0xff] %v3990_v61  ;;  %4395 = vmatmul.f32.gmra.mxu2 %v9501_v47  ;;  %4765 = vmatmul.f32.gmra.mxu3 %v4652_v60 }
 0x4e4   : > { %5457 = vmatmul.f32.vlgmr.msrb.gmra.mxu1 %v9340_v38 }
 0x4e6   : > { %v4348_v37 = vpop.f32.mrf.mxu2  ;;  %v4718_v51 = vpop.f32.mrf.mxu3 }
 0x4e7   : > { %v4540_v56 = vadd.f32 %v4348_v37, %v9125_v44  ;;  %v5091_v17 = vpop.f32.mrf.mxu0  ;;  %v7612_v44 = vld [vmem:[%s10424_s6 + $0x368] sm:$0xff] }
 0x4e8   : > { %6183 = vmatpush.msra.mxu3 %v7612_v44 }
 0x4e9   : > { %v4910_v50 = vadd.f32 %v4718_v51, %v4540_v56  ;;  %v9508_v46 = vpop.f32.mrf.mxu1  ;;  %v5024_v51 = vld [vmem:[#allocation3 + $0xa8] sm:$0xff]  ;;  %v9523_v56 = vld [vmem:[#allocation3 + $0x91] sm:$0xff] }
 0x4ea   : > { %5138 = vmatmul.f32.gmra.mxu0 %v5023_v9 }
 0x4eb   : > { %4398 = vmatmul.f32.gmra.mxu2 %v9506_v1  ;;  %4768 = vmatmul.f32.gmra.mxu3 %v4653_v30  ;;  %v9514_v38 = vadd.f32 %v5088_v63, %v4910_v50  ;;  %v4654_v63 = vld [vmem:[#allocation3 + $0x92] sm:$0xff]  ;;  %v7644_v50 = vld [vmem:[%s10424_s6 + $0x468] sm:$0xff] }
 0x4ec   : > { %5460 = vmatmul.f32.gmra.mxu1 %v9353_v6 }
 0x4ed   : > { %6923 = vmatpush.msra.mxu1 %v7644_v50  ;;  %v5026_v50 = vld [vmem:[#allocation3 + $0xb8] sm:$0xff] }
 0x4ee   : > { %v4351_v26 = vpop.f32.mrf.mxu2  ;;  %v4721_v61 = vpop.f32.mrf.mxu3 }
 0x4ef   : > { %v4541_v18 = vadd.f32 %v4351_v26, %v9128_v11  ;;  %v5094_v57 = vpop.f32.mrf.mxu0  ;;  %v7628_v11 = vld [vmem:[%s10424_s6 + $0x3e8] sm:$0xff]  ;;  %v5025_v26 = vld [vmem:[#allocation3 + $0xb0] sm:$0xff] }
 0x4f0   : > { %6553 = vmatpush.msra.mxu0 %v7628_v11 }
 0x4f1   : > { %v4911_v60 = vadd.f32 %v4721_v61, %v4541_v18  ;;  %v9521_v37 = vpop.f32.mrf.mxu1  ;;  %v9535_v61 = vld [vmem:[#allocation3 + $0x99] sm:$0xff] }
 0x4f2   : > { %5141 = vmatmul.f32.gmra.mxu0 %v5024_v51  ;;  %v9540_v51 = vld [vmem:[#allocation3 + $0xa1] sm:$0xff] }
 0x4f3   : > { %4401 = vmatmul.f32.gmra.mxu2 %v9523_v56  ;;  %4771 = vmatmul.f32.gmra.mxu3 %v4654_v63  ;;  %v9526_v6 = vadd.f32 %v5091_v17, %v4911_v60  ;;  %v4655_v17 = vld [vmem:[#allocation3 + $0x9a] sm:$0xff] }
 0x4f4   : > { %5463 = vmatmul.f32.gmra.mxu1 %v9359_v34 }
 0x4f6   : > { %v4354_v9 = vpop.f32.mrf.mxu2  ;;  %v4724_v36 = vpop.f32.mrf.mxu3 }
 0x4f7   : > { %v5097_v30 = vpop.f32.mrf.mxu0  ;;  %v7595_v9 = vld [vmem:[%s10424_s6 + $0x2e0] sm:$0xff]  ;;  %v4656_v36 = vld [vmem:[#allocation3 + $0xa2] sm:$0xff] }
 0x4f8   : > { %5814 = vmatpush.msra.mxu2 %v7595_v9  ;;  %v9557_v9 = vld [vmem:[#allocation3 + $0xa9] sm:$0xff] }
 0x4f9   : > { %v4179_v44 = vpop.f32.mrf.mxu1 }
 0x4fa   : > { %5144 = vmatmul.f32.gmra.mxu0 %v5025_v26 }
 0x4fb   : > { %4404 = vmatmul.f32.gmra.mxu2 %v9535_v61  ;;  %4774 = vmatmul.f32.gmra.mxu3 %v4655_v17 }
 0x4fc   : > { %5466 = vmatmul.f32.gmra.mxu1 %v9373_v24 }
 0x4fe   : > { %v4357_v34 = vpop.f32.mrf.mxu2  ;;  %v4727_v18 = vpop.f32.mrf.mxu3 }
 0x4ff   : > { %v4543_v57 = vadd.f32 %v4357_v34, %v9166_v39  ;;  %v5100_v60 = vpop.f32.mrf.mxu0  ;;  %v7611_v39 = vld [vmem:[%s10424_s6 + $0x360] sm:$0xff] }
 0x500   : > { %6184 = vmatpush.msra.mxu3 %v7611_v39 }
 0x501   : > { %v4913_v63 = vadd.f32 %v4727_v18, %v4543_v57  ;;  %v9542_v11 = vpop.f32.mrf.mxu1 }
 0x502   : > { %5147 = vmatmul.f32.gmra.mxu0 %v5026_v50  ;;  %v5027_v50 = vld [vmem:[#allocation3 + $0xc0] sm:$0xff] }
 0x503   : > { %4407 = vmatmul.f32.gmra.mxu2 %v9540_v51  ;;  %4777 = vmatmul.f32.gmra.mxu3 %v4656_v36  ;;  %v9548_v24 = vadd.f32 %v5097_v30, %v4913_v63  ;;  %v4657_v30 = vld [vmem:[#allocation3 + $0xaa] sm:$0xff]  ;;  %v7643_v63 = vld [vmem:[%s10424_s6 + $0x460] sm:$0xff] }
 0x504   : > { %5469 = vmatmul.f32.gmra.mxu1 %v9386_v53 }
 0x505   : > { %10452 = vst [vmem:[#allocation11_spill] sm:$0xff] %v9548_v24  ;;  %6924 = vmatpush.msra.mxu1 %v7643_v63  ;;  %v9591_v24 = vld [vmem:[#allocation3 + $0xc1] sm:$0xff] }
 0x506   : > { %v4360_v44 = vpop.f32.mrf.mxu2  ;;  %v4730_v26 = vpop.f32.mrf.mxu3 }
 0x507   : > { %v4544_v17 = vadd.f32 %v4360_v44, %v9171_v10  ;;  %v5103_v34 = vpop.f32.mrf.mxu0  ;;  %v7627_v10 = vld [vmem:[%s10424_s6 + $0x3e0] sm:$0xff] }
 0x508   : > { %6554 = vmatpush.msra.mxu0 %v7627_v10  ;;  %v9569_v34 = vld [vmem:[#allocation3 + $0xb1] sm:$0xff]  ;;  %v9574_v10 = vld [vmem:[#allocation3 + $0xb9] sm:$0xff] }
 0x509   : > { %v4914_v18 = vadd.f32 %v4730_v26, %v4544_v17  ;;  %v9555_v57 = vpop.f32.mrf.mxu1  ;;  %v5028_v17 = vld [vmem:[#allocation3 + $0xc8] sm:$0xff] }
 0x50a   : > { %5150 = vmatmul.f32.gmra.mxu0 %v5027_v50 }
 0x50b   : > { %4410 = vmatmul.f32.gmra.mxu2 %v9557_v9  ;;  %4780 = vmatmul.f32.gmra.mxu3 %v4657_v30  ;;  %v9560_v53 = vadd.f32 %v5100_v60, %v4914_v18  ;;  %v4658_v60 = vld [vmem:[#allocation3 + $0xb2] sm:$0xff] }
 0x50c   : > { %5472 = vmatmul.f32.gmra.mxu1 %v9392_v27 }
 0x50d   : > { %10453 = vst [vmem:[#allocation12_spill] sm:$0xff] %v9560_v53 }
 0x50e   : > { %v4363_v36 = vpop.f32.mrf.mxu2  ;;  %v4733_v39 = vpop.f32.mrf.mxu3 }
 0x50f   : > { %v5106_v44 = vpop.f32.mrf.mxu0  ;;  %v5029_v39 = vld [vmem:[#allocation3 + $0xd0] sm:$0xff] }
 0x511   : > { %v4188_v26 = vpop.f32.mrf.mxu1 }
 0x512   : > { %5153 = vmatmul.f32.gmra.mxu0 %v5028_v17  ;;  %v7594_v26 = vld [vmem:[%s10424_s6 + $0x2d8] sm:$0xff]  ;;  %v4659_v17 = vld [vmem:[#allocation3 + $0xba] sm:$0xff] }
 0x513   : > { %4413 = vmatmul.f32.gmra.mxu2 %v9569_v34  ;;  %4783 = vmatmul.f32.gmra.mxu3 %v4658_v60 }
 0x514   : > { %5475 = vmatmul.f32.gmra.mxu1 %v9406_v12  ;;  %5815 = vmatpush.msra.mxu2 %v7594_v26  ;;  %v5030_v26 = vld [vmem:[#allocation3 + $0xd8] sm:$0xff] }
 0x516   : > { %v4366_v27 = vpop.f32.mrf.mxu2  ;;  %v4736_v18 = vpop.f32.mrf.mxu3 }
 0x517   : > { %v4546_v50 = vadd.f32 %v4366_v27, %v9188_v25  ;;  %v5109_v30 = vpop.f32.mrf.mxu0  ;;  %v7610_v25 = vld [vmem:[%s10424_s6 + $0x358] sm:$0xff] }
 0x518   : > { %6185 = vmatpush.msra.mxu3 %v7610_v25 }
 0x519   : > { %v4916_v63 = vadd.f32 %v4736_v18, %v4546_v50  ;;  %v9576_v36 = vpop.f32.mrf.mxu1 }
 0x51a   : > { %5156 = vmatmul.f32.gmra.mxu0 %v5029_v39 }
 0x51b   : > { %4416 = vmatmul.f32.gmra.mxu2 %v9574_v10  ;;  %4786 = vmatmul.f32.gmra.mxu3 %v4659_v17  ;;  %v9582_v12 = vadd.f32 %v5106_v44, %v4916_v63  ;;  %v4660_v44 = vld [vmem:[#allocation3 + $0xc2] sm:$0xff]  ;;  %v7642_v63 = vld [vmem:[%s10424_s6 + $0x458] sm:$0xff] }
 0x51c   : > { %5478 = vmatmul.f32.gmra.mxu1 %v9419_v33 }
 0x51d   : > { %10454 = vst [vmem:[#allocation10_spill] sm:$0xff] %v9582_v12  ;;  %6925 = vmatpush.msra.mxu1 %v7642_v63  ;;  %v9625_v12 = vld [vmem:[#allocation3 + $0xd9] sm:$0xff] }
 0x51e   : > { %v4369_v60 = vpop.f32.mrf.mxu2  ;;  %v4739_v27 = vpop.f32.mrf.mxu3 }
 0x51f   : > { %v4547_v18 = vadd.f32 %v4369_v60, %v9193_v19  ;;  %v5112_v50 = vpop.f32.mrf.mxu0  ;;  %v7626_v19 = vld [vmem:[%s10424_s6 + $0x3d8] sm:$0xff] }
 0x520   : > { %6555 = vmatpush.msra.mxu0 %v7626_v19  ;;  %v9603_v50 = vld [vmem:[#allocation3 + $0xc9] sm:$0xff]  ;;  %v9608_v19 = vld [vmem:[#allocation3 + $0xd1] sm:$0xff] }
 0x521   : > { %v4917_v53 = vadd.f32 %v4739_v27, %v4547_v18  ;;  %v9589_v39 = vpop.f32.mrf.mxu1  ;;  %v5031_v18 = vld [vmem:[#allocation3 + $0xe0] sm:$0xff] }
 0x522   : > { %5159 = vmatmul.f32.gmra.mxu0 %v5030_v26 }
 0x523   : > { %4419 = vmatmul.f32.gmra.mxu2 %v9591_v24  ;;  %4789 = vmatmul.f32.gmra.mxu3 %v4660_v44  ;;  %v9594_v33 = vadd.f32 %v5109_v30, %v4917_v53  ;;  %v4661_v53 = vld [vmem:[#allocation3 + $0xca] sm:$0xff] }
 0x524   : > { %5481 = vmatmul.f32.gmra.mxu1 %v9425_v4 }
 0x525   : > { %10455 = vst [vmem:[#allocation13_spill] sm:$0xff] %v9594_v33 }
 0x526   : > { %v4372_v17 = vpop.f32.mrf.mxu2  ;;  %v4742_v25 = vpop.f32.mrf.mxu3 }
 0x527   : > { %v5115_v60 = vpop.f32.mrf.mxu0  ;;  %v5032_v25 = vld [vmem:[#allocation3 + $0xe8] sm:$0xff] }
 0x529   : > { %v4197_v27 = vpop.f32.mrf.mxu1 }
 0x52a   : > { %5162 = vmatmul.f32.gmra.mxu0 %v5031_v18  ;;  %v7593_v27 = vld [vmem:[%s10424_s6 + $0x2d0] sm:$0xff]  ;;  %v4662_v18 = vld [vmem:[#allocation3 + $0xd2] sm:$0xff] }
 0x52b   : > { %4422 = vmatmul.f32.gmra.mxu2 %v9603_v50  ;;  %4792 = vmatmul.f32.gmra.mxu3 %v4661_v53 }
 0x52c   : > { %5484 = vmatmul.f32.gmra.mxu1 %v9439_v42  ;;  %5816 = vmatpush.msra.mxu2 %v7593_v27  ;;  %v5033_v27 = vld [vmem:[#allocation3 + $0xf0] sm:$0xff] }
 0x52e   : > { %v4375_v4 = vpop.f32.mrf.mxu2  ;;  %v4745_v30 = vpop.f32.mrf.mxu3 }
 0x52f   : > { %v4549_v26 = vadd.f32 %v4375_v4, %v9211_v7  ;;  %v5118_v44 = vpop.f32.mrf.mxu0  ;;  %v7609_v7 = vld [vmem:[%s10424_s6 + $0x350] sm:$0xff] }
 0x530   : > { %6186 = vmatpush.msra.mxu3 %v7609_v7 }
 0x531   : > { %v4919_v63 = vadd.f32 %v4745_v30, %v4549_v26  ;;  %v9610_v17 = vpop.f32.mrf.mxu1 }
 0x532   : > { %5165 = vmatmul.f32.gmra.mxu0 %v5032_v25 }
 0x533   : > { %4425 = vmatmul.f32.gmra.mxu2 %v9608_v19  ;;  %4795 = vmatmul.f32.gmra.mxu3 %v4662_v18  ;;  %v9616_v42 = vadd.f32 %v5115_v60, %v4919_v63  ;;  %v4663_v60 = vld [vmem:[#allocation3 + $0xda] sm:$0xff]  ;;  %v7641_v63 = vld [vmem:[%s10424_s6 + $0x450] sm:$0xff] }
 0x534   : > { %5487 = vmatmul.f32.gmra.mxu1 %v9461_v35 }
 0x535   : > { %6926 = vmatpush.msra.mxu1 %v7641_v63 }
 0x536   : > { %v4378_v53 = vpop.f32.mrf.mxu2  ;;  %v4748_v4 = vpop.f32.mrf.mxu3 }
 0x537   : > { %v4550_v30 = vadd.f32 %v4378_v53, %v9217_v3  ;;  %v5121_v26 = vpop.f32.mrf.mxu0  ;;  %v7625_v3 = vld [vmem:[%s10424_s6 + $0x3d0] sm:$0xff] }
 0x538   : > { %6556 = vmatpush.msra.mxu0 %v7625_v3 }
 0x539   : > { %v4920_v33 = vadd.f32 %v4748_v4, %v4550_v30  ;;  %v9623_v25 = vpop.f32.mrf.mxu1  ;;  %v9637_v30 = vld [vmem:[#allocation3 + $0xe1] sm:$0xff] }
 0x53a   : > { %5168 = vmatmul.f32.gmra.mxu0 %v5033_v27 }
 0x53b   : > { %4428 = vmatmul.f32.gmra.mxu2 %v9625_v12  ;;  %4798 = vmatmul.f32.gmra.mxu3 %v4663_v60  ;;  %v9628_v35 = vadd.f32 %v5118_v44, %v4920_v33  ;;  %v4664_v33 = vld [vmem:[#allocation3 + $0xe2] sm:$0xff] }
 0x53c   : > { %5490 = vmatmul.f32.gmra.mxu1 %v9467_v48  ;;  %v9643_v60 = vld [vmem:[#allocation3 + $0xe9] sm:$0xff] }
 0x53e   : > { %v4381_v18 = vpop.f32.mrf.mxu2  ;;  %v4751_v7 = vpop.f32.mrf.mxu3 }
 0x53f   : > { %v5124_v53 = vpop.f32.mrf.mxu0  ;;  %v4665_v18 = vld [vmem:[#allocation3 + $0xea] sm:$0xff] }
 0x541   : > { %v4206_v4 = vpop.f32.mrf.mxu1 }
 0x542   : > { %5171 = vmatmul.f32.gmra.mxu0 %v9307_v21  ;;  %v7592_v21 = vld [vmem:[%s10424_s6 + $0x2c8] sm:$0xff] }
 0x543   : > { %4431 = vmatmul.f32.gmra.mxu2 %v9637_v30  ;;  %4801 = vmatmul.f32.gmra.mxu3 %v4664_v33 }
 0x544   : > { %5493 = vmatmul.f32.gmra.mxu1 %v9487_v55  ;;  %5817 = vmatpush.msra.mxu2 %v7592_v21 }
 0x546   : > { %v4384_v48 = vpop.f32.mrf.mxu2  ;;  %v4754_v44 = vpop.f32.mrf.mxu3 }
 0x547   : > { %v4552_v26 = vadd.f32 %v4384_v48, %v9265_v59  ;;  %v5127_v27 = vpop.f32.mrf.mxu0  ;;  %v7608_v59 = vld [vmem:[%s10424_s6 + $0x348] sm:$0xff] }
 0x548   : > { %6187 = vmatpush.msra.mxu3 %v7608_v59 }
 0x549   : > { %v4922_v3 = vadd.f32 %v4754_v44, %v4552_v26  ;;  %v9645_v63 = vpop.f32.mrf.mxu1  ;;  %v9661_v26 = vld [vmem:[#allocation3 + $0xf1] sm:$0xff] }
 0x54a   : > { %5174 = vmatmul.f32.gmra.mxu0 %v9316_v54 }
 0x54b   : > { %4434 = vmatmul.f32.gmra.mxu2 %v9643_v60  ;;  %4804 = vmatmul.f32.gmra.mxu3 %v4665_v18  ;;  %v9652_v55 = vadd.f32 %v5124_v53, %v4922_v3  ;;  %v4666_v53 = vld [vmem:[#allocation3 + $0xf2] sm:$0xff]  ;;  %v7640_v3 = vld [vmem:[%s10424_s6 + $0x448] sm:$0xff] }
 0x54c   : > { %5496 = vmatmul.f32.gmra.mxu1 %v9501_v47 }
 0x54d   : > { %6927 = vmatpush.msra.mxu1 %v7640_v3  ;;  %v4668_v3 = vld [vmem:[#allocation3 + $0x102] sm:$0xff] }
 0x54e   : > { %v4387_v7 = vpop.f32.mrf.mxu2  ;;  %v4757_v4 = vpop.f32.mrf.mxu3 }
 0x54f   : > { %v4553_v54 = vadd.f32 %v4387_v7, %v9296_v8  ;;  %v5130_v33 = vpop.f32.mrf.mxu0  ;;  %v7624_v8 = vld [vmem:[%s10424_s6 + $0x3c8] sm:$0xff] }
 0x550   : > { %6557 = vmatpush.msra.mxu0 %v7624_v8  ;;  %v9674_v7 = vld [vmem:[#allocation3 + $0xf9] sm:$0xff] }
 0x551   : > { %v4923_v48 = vadd.f32 %v4757_v4, %v4553_v54  ;;  %v9659_v44 = vpop.f32.mrf.mxu1 }
 0x552   : > { %5177 = vmatmul.f32.gmra.mxu0 %v9324_v31 }
 0x553   : > { %4437 = vmatmul.f32.gmra.mxu2 %v9661_v26  ;;  %4807 = vmatmul.f32.gmra.mxu3 %v4666_v53  ;;  %v9665_v47 = vadd.f32 %v5127_v27, %v4923_v48  ;;  %v4667_v27 = vld [vmem:[#allocation3 + $0xfa] sm:$0xff] }
 0x554   : > { %5499 = vmatmul.f32.gmra.mxu1 %v9506_v1  ;;  %v9680_v48 = vld [vmem:[#allocation3 + $0x101] sm:$0xff] }
 0x556   : > { %v4390_v18 = vpop.f32.mrf.mxu2  ;;  %v4760_v21 = vpop.f32.mrf.mxu3 }
 0x557   : > { %v5133_v31 = vpop.f32.mrf.mxu0 }
 0x559   : > { %v4215_v59 = vpop.f32.mrf.mxu1 }
 0x55a   : > { %5180 = vmatmul.f32.gmra.mxu0 %v9331_v13  ;;  %v7591_v13 = vld [vmem:[%s10424_s6 + $0x2c0] sm:$0xff] }
 0x55b   : > { %4440 = vmatmul.f32.gmra.mxu2 %v9674_v7  ;;  %4810 = vmatmul.f32.gmra.mxu3 %v4667_v27 }
 0x55c   : > { %5502 = vmatmul.f32.gmra.mxu1 %v9523_v56  ;;  %5818 = vmatpush.msra.mxu2 %v7591_v13 }
 0x55e   : > { %v4393_v1 = vpop.f32.mrf.mxu2  ;;  %v4763_v4 = vpop.f32.mrf.mxu3 }
 0x55f   : > { %v4555_v54 = vadd.f32 %v4393_v1, %v9305_v29  ;;  %v5136_v33 = vpop.f32.mrf.mxu0  ;;  %v7607_v29 = vld [vmem:[%s10424_s6 + $0x340] sm:$0xff] }
 0x560   : > { %6188 = vmatpush.msra.mxu3 %v7607_v29  ;;  %v9711_v29 = vld [vmem:[#allocation3 + $0x111] sm:$0xff] }
 0x561   : > { %v4925_v53 = vadd.f32 %v4763_v4, %v4555_v54  ;;  %v9682_v8 = vpop.f32.mrf.mxu1  ;;  %v9698_v4 = vld [vmem:[#allocation3 + $0x109] sm:$0xff]  ;;  %v7639_v54 = vld [vmem:[%s10424_s6 + $0x440] sm:$0xff] }
 0x562   : > { %5183 = vmatmul.f32.gmra.mxu0 %v9342_v40  ;;  %6928 = vmatpush.msra.mxu1 %v7639_v54 }
 0x563   : > { %4443 = vmatmul.f32.gmra.mxu2 %v9680_v48  ;;  %4813 = vmatmul.f32.gmra.mxu3 %v4668_v3  ;;  %v9689_v56 = vadd.f32 %v5133_v31, %v4925_v53  ;;  %v4669_v31 = vld [vmem:[#allocation3 + $0x10a] sm:$0xff] }
 0x564   : > { %5505 = vmatmul.f32.gmra.mxu1 %v9535_v61 }
 0x566   : > { %v4396_v18 = vpop.f32.mrf.mxu2  ;;  %v4766_v21 = vpop.f32.mrf.mxu3 }
 0x567   : > { %v4556_v40 = vadd.f32 %v4396_v18, %v9314_v43  ;;  %v5139_v59 = vpop.f32.mrf.mxu0  ;;  %v7623_v43 = vld [vmem:[%s10424_s6 + $0x3c0] sm:$0xff] }
 0x568   : > { %6558 = vmatpush.msra.mxu0 %v7623_v43  ;;  %v9717_v59 = vld [vmem:[#allocation3 + $0x119] sm:$0xff] }
 0x569   : > { %v4926_v27 = vadd.f32 %v4766_v21, %v4556_v40  ;;  %v9696_v1 = vpop.f32.mrf.mxu1  ;;  %v4671_v43 = vld [vmem:[#allocation3 + $0x11a] sm:$0xff] }
 0x56a   : > { %5186 = vmatmul.f32.gmra.mxu0 %v9351_v28 }
 0x56b   : > { %4446 = vmatmul.f32.gmra.mxu2 %v9698_v4  ;;  %4816 = vmatmul.f32.gmra.mxu3 %v4669_v31  ;;  %v9702_v61 = vadd.f32 %v5136_v33, %v4926_v27  ;;  %v4670_v33 = vld [vmem:[#allocation3 + $0x112] sm:$0xff] }
 0x56c   : > { %5508 = vmatmul.f32.gmra.mxu1 %v9540_v51 }
 0x56e   : > { %v4399_v53 = vpop.f32.mrf.mxu2  ;;  %v4769_v3 = vpop.f32.mrf.mxu3 }
 0x56f   : > { %v5142_v28 = vpop.f32.mrf.mxu0 }
 0x571   : > { %v5464_v13 = vpop.f32.mrf.mxu1 }
 0x572   : > { %5189 = vmatmul.f32.gmra.mxu0 %v9363_v0  ;;  %v7590_v0 = vld [vmem:[%s10424_s6 + $0x2b8] sm:$0xff] }
 0x573   : > { %4449 = vmatmul.f32.gmra.mxu2 %v9711_v29  ;;  %4819 = vmatmul.f32.gmra.mxu3 %v4670_v33 }
 0x574   : > { %5511 = vmatmul.f32.gmra.mxu1 %v9557_v9  ;;  %5819 = vmatpush.msra.mxu2 %v7590_v0  ;;  %v9748_v0 = vld [vmem:[#allocation3 + $0x129] sm:$0xff] }
 0x576   : > { %v4402_v51 = vpop.f32.mrf.mxu2  ;;  %v4772_v18 = vpop.f32.mrf.mxu3 }
 0x577   : > { %v4558_v21 = vadd.f32 %v4402_v51, %v9329_v62  ;;  %v5145_v40 = vpop.f32.mrf.mxu0  ;;  %v7606_v62 = vld [vmem:[%s10424_s6 + $0x338] sm:$0xff]  ;;  %v9735_v51 = vld [vmem:[#allocation3 + $0x121] sm:$0xff] }
 0x578   : > { %6189 = vmatpush.msra.mxu3 %v7606_v62 }
 0x579   : > { %v4928_v27 = vadd.f32 %v4772_v18, %v4558_v21  ;;  %v9719_v31 = vpop.f32.mrf.mxu1  ;;  %v7638_v18 = vld [vmem:[%s10424_s6 + $0x438] sm:$0xff] }
 0x57a   : > { %5192 = vmatmul.f32.gmra.mxu0 %v9375_v22  ;;  %6929 = vmatpush.msra.mxu1 %v7638_v18 }
 0x57b   : > { %4452 = vmatmul.f32.gmra.mxu2 %v9717_v59  ;;  %4822 = vmatmul.f32.gmra.mxu3 %v4671_v43  ;;  %v9726_v9 = vadd.f32 %v5142_v28, %v4928_v27  ;;  %v4672_v28 = vld [vmem:[#allocation3 + $0x122] sm:$0xff] }
 0x57c   : > { %5514 = vmatmul.f32.gmra.mxu1 %v9569_v34 }
 0x57e   : > { %v4405_v54 = vpop.f32.mrf.mxu2  ;;  %v4775_v53 = vpop.f32.mrf.mxu3 }
 0x57f   : > { %v4559_v22 = vadd.f32 %v4405_v54, %v9338_v45  ;;  %v5148_v3 = vpop.f32.mrf.mxu0  ;;  %v7622_v45 = vld [vmem:[%s10424_s6 + $0x3b8] sm:$0xff] }
 0x580   : > { %6559 = vmatpush.msra.mxu0 %v7622_v45 }
 0x581   : > { %v4929_v13 = vadd.f32 %v4775_v53, %v4559_v22  ;;  %v9733_v33 = vpop.f32.mrf.mxu1  ;;  %v9754_v22 = vld [vmem:[#allocation3 + $0x131] sm:$0xff] }
 0x582   : > { %5195 = vmatmul.f32.gmra.mxu0 %v9384_v16 }
 0x583   : > { %4455 = vmatmul.f32.gmra.mxu2 %v9735_v51  ;;  %4825 = vmatmul.f32.gmra.mxu3 %v4672_v28  ;;  %v9739_v34 = vadd.f32 %v5145_v40, %v4929_v13  ;;  %v4673_v40 = vld [vmem:[#allocation3 + $0x12a] sm:$0xff]  ;;  %v4674_v28 = vld [vmem:[#allocation3 + $0x132] sm:$0xff] }
 0x584   : > { %5517 = vmatmul.f32.gmra.mxu1 %v9574_v10 }
 0x586   : > { %v4408_v21 = vpop.f32.mrf.mxu2  ;;  %v4778_v27 = vpop.f32.mrf.mxu3 }
 0x587   : > { %v5151_v16 = vpop.f32.mrf.mxu0 }
 0x589   : > { %v5473_v43 = vpop.f32.mrf.mxu1 }
 0x58a   : > { %5198 = vmatmul.f32.gmra.mxu0 %v9396_v5  ;;  %v7589_v5 = vld [vmem:[%s10424_s6 + $0x2b0] sm:$0xff] }
 0x58b   : > { %4458 = vmatmul.f32.gmra.mxu2 %v9748_v0  ;;  %4828 = vmatmul.f32.gmra.mxu3 %v4673_v40  ;;  %v9772_v40 = vld [vmem:[#allocation3 + $0x139] sm:$0xff] }
 0x58c   : > { %5520 = vmatmul.f32.gmra.mxu1 %v9591_v24  ;;  %5820 = vmatpush.msra.mxu2 %v7589_v5 }
 0x58e   : > { %v4411_v10 = vpop.f32.mrf.mxu2  ;;  %v4781_v62 = vpop.f32.mrf.mxu3 }
 0x58f   : > { %v4561_v54 = vadd.f32 %v4411_v10, %v9361_v49  ;;  %v5154_v53 = vpop.f32.mrf.mxu0  ;;  %v7605_v49 = vld [vmem:[%s10424_s6 + $0x330] sm:$0xff] }
 0x590   : > { %6190 = vmatpush.msra.mxu3 %v7605_v49  ;;  %v7637_v10 = vld [vmem:[%s10424_s6 + $0x430] sm:$0xff] }
 0x591   : > { %v4931_v3 = vadd.f32 %v4781_v62, %v4561_v54  ;;  %v9756_v13 = vpop.f32.mrf.mxu1  ;;  %6930 = vmatpush.msra.mxu1 %v7637_v10 }
 0x592   : > { %5201 = vmatmul.f32.gmra.mxu0 %v9408_v23 }
 0x593   : > { %4461 = vmatmul.f32.gmra.mxu2 %v9754_v22  ;;  %4831 = vmatmul.f32.gmra.mxu3 %v4674_v28  ;;  %v9763_v24 = vadd.f32 %v5151_v16, %v4931_v3  ;;  %v4675_v16 = vld [vmem:[#allocation3 + $0x13a] sm:$0xff] }
 0x594   : > { %5523 = vmatmul.f32.gmra.mxu1 %v9603_v50  ;;  %v9785_v28 = vld [vmem:[#allocation3 + $0x141] sm:$0xff] }
 0x596   : > { %v4414_v45 = vpop.f32.mrf.mxu2  ;;  %v4784_v18 = vpop.f32.mrf.mxu3 }
 0x597   : > { %v4562_v23 = vadd.f32 %v4414_v45, %v9371_v20  ;;  %v5157_v21 = vpop.f32.mrf.mxu0  ;;  %v7621_v20 = vld [vmem:[%s10424_s6 + $0x3b0] sm:$0xff] }
 0x598   : > { %6560 = vmatpush.msra.mxu0 %v7621_v20 }
 0x599   : > { %v4932_v27 = vadd.f32 %v4784_v18, %v4562_v23  ;;  %v9770_v43 = vpop.f32.mrf.mxu1  ;;  %v9791_v18 = vld [vmem:[#allocation3 + $0x149] sm:$0xff] }
 0x59a   : > { %5204 = vmatmul.f32.gmra.mxu0 %v9417_v52 }
 0x59b   : > { %4464 = vmatmul.f32.gmra.mxu2 %v9772_v40  ;;  %4834 = vmatmul.f32.gmra.mxu3 %v4675_v16  ;;  %v9776_v50 = vadd.f32 %v5154_v53, %v4932_v27  ;;  %v4676_v53 = vld [vmem:[#allocation3 + $0x142] sm:$0xff]  ;;  %v4677_v27 = vld [vmem:[#allocation3 + $0x14a] sm:$0xff] }
 0x59c   : > { %5526 = vmatmul.f32.gmra.mxu1 %v9608_v19 }
 0x59e   : > { %v4417_v62 = vpop.f32.mrf.mxu2  ;;  %v4787_v54 = vpop.f32.mrf.mxu3 }
 0x59f   : > { %v5160_v52 = vpop.f32.mrf.mxu0 }
 0x5a1   : > { %v5482_v3 = vpop.f32.mrf.mxu1 }
 0x5a2   : > { %5207 = vmatmul.f32.gmra.mxu0 %v9429_v58  ;;  %v7588_v58 = vld [vmem:[%s10424_s6 + $0x2a8] sm:$0xff]  ;;  %v9809_v3 = vld [vmem:[#allocation3 + $0x151] sm:$0xff] }
 0x5a3   : > { %4467 = vmatmul.f32.gmra.mxu2 %v9785_v28  ;;  %4837 = vmatmul.f32.gmra.mxu3 %v4676_v53  ;;  %v10456_v53 = vld [vmem:[#allocation7_spill] sm:$0xff] }
 0x5a4   : > { %5529 = vmatmul.f32.gmra.mxu1 %v9625_v12  ;;  %5821 = vmatpush.msra.mxu2 %v7588_v58  ;;  %v9822_v58 = vld [vmem:[#allocation3 + $0x159] sm:$0xff] }
 0x5a6   : > { %v4420_v19 = vpop.f32.mrf.mxu2  ;;  %v4790_v5 = vpop.f32.mrf.mxu3 }
 0x5a7   : > { %v4564_v49 = vadd.f32 %v4420_v19, %v9394_v41  ;;  %v5163_v45 = vpop.f32.mrf.mxu0  ;;  %v7604_v41 = vld [vmem:[%s10424_s6 + $0x328] sm:$0xff] }
 0x5a8   : > { %6191 = vmatpush.msra.mxu3 %v7604_v41  ;;  %v7636_v19 = vld [vmem:[%s10424_s6 + $0x428] sm:$0xff]  ;;  %v10458_v41 = vld [vmem:[#allocation9_spill] sm:$0xff] }
 0x5a9   : > { %v4934_v23 = vadd.f32 %v4790_v5, %v4564_v49  ;;  %v9793_v21 = vpop.f32.mrf.mxu1  ;;  %6931 = vmatpush.msra.mxu1 %v7636_v19 }
 0x5aa   : > { %5210 = vmatmul.f32.gmra.mxu0 %v9441_v14 }
 0x5ab   : > { %4470 = vmatmul.f32.gmra.mxu2 %v9791_v18  ;;  %4840 = vmatmul.f32.gmra.mxu3 %v4677_v27  ;;  %v9800_v12 = vadd.f32 %v5160_v52, %v4934_v23  ;;  %v4678_v52 = vld [vmem:[#allocation3 + $0x152] sm:$0xff] }
 0x5ac   : > { %5532 = vmatmul.f32.gmra.mxu1 %v9637_v30 }
 0x5ae   : > { %v4423_v16 = vpop.f32.mrf.mxu2  ;;  %v4793_v20 = vpop.f32.mrf.mxu3 }
 0x5af   : > { %v4565_v14 = vadd.f32 %v4423_v16, %v9404_v32  ;;  %v5166_v10 = vpop.f32.mrf.mxu0  ;;  %v7620_v32 = vld [vmem:[%s10424_s6 + $0x3a8] sm:$0xff]  ;;  %v7603_v16 = vld [vmem:[%s10424_s6 + $0x320] sm:$0xff] }
 0x5b0   : > { %6561 = vmatpush.msra.mxu0 %v7620_v32  ;;  %v7602_v10 = vld [vmem:[%s10424_s6 + $0x318] sm:$0xff]  ;;  %6192 = vmatpush.msra.mxu3 %v7603_v16  ;;  %v10459_v32 = vld [vmem:[#allocation5_spill] sm:$0xff] }
 0x5b1   : > { %v4935_v62 = vadd.f32 %v4793_v20, %v4565_v14  ;;  %v9807_v54 = vpop.f32.mrf.mxu1  ;;  %v7619_v20 = vld [vmem:[%s10424_s6 + $0x3a0] sm:$0xff]  ;;  %v7586_v14 = vld [vmem:[%s10424_s6 + $0x298] sm:$0xff]  ;;  %v7617_v16 = vld [vmem:[%s10424_s6 + $0x390] sm:$0xff] }
 0x5b2   : > { %5213 = vmatmul.f32.gmra.mxu0 %v10456_v53  ;;  %6193 = vmatpush.msra.mxu3 %v7602_v10 }
 0x5b3   : > { %4473 = vmatmul.f32.gmra.mxu2 %v9809_v3  ;;  %4843 = vmatmul.f32.gmra.mxu3 %v4678_v52  ;;  %v9813_v30 = vadd.f32 %v5163_v45, %v4935_v62  ;;  %v4679_v45 = vld [vmem:[#allocation3 + $0x15a] sm:$0xff]  ;;  %v7618_v62 = vld [vmem:[%s10424_s6 + $0x398] sm:$0xff] }
 0x5b4   : > { %5535 = vmatmul.f32.gmra.mxu1 %v9643_v60  ;;  %v7587_v60 = vld [vmem:[%s10424_s6 + $0x2a0] sm:$0xff]  ;;  %6562 = vmatpush.msra.mxu0 %v7619_v20  ;;  %v7584_v20 = vld [vmem:[%s10424_s6 + $0x288] sm:$0xff] }
 0x5b5   : > { %10457 = vst [vmem:[#allocation7_spill] sm:$0xff] %v9813_v30  ;;  %5822 = vmatpush.msra.mxu2 %v7587_v60  ;;  %v4680_v60 = vld [vmem:[#allocation3 + $0x162] sm:$0xff]  ;;  %v6116_v30 = vld [vmem:[#allocation3 + $0x30] sm:$0xff] }
 0x5b6   : > { %v4426_v5 = vpop.f32.mrf.mxu2  ;;  %v4796_v49 = vpop.f32.mrf.mxu3  ;;  %6563 = vmatpush.msra.mxu0 %v7618_v62  ;;  %v7583_v62 = vld [vmem:[%s10424_s6 + $0x280] sm:$0xff] }
 0x5b7   : > { %v5169_v23 = vpop.f32.mrf.mxu0  ;;  %5823 = vmatpush.msra.mxu2 %v7586_v14  ;;  %v9846_v5 = vld [vmem:[#allocation3 + $0x161] sm:$0xff] }
 0x5b8   : > { %v7600_v14 = vld [vmem:[%s10424_s6 + $0x308] sm:$0xff]  ;;  %6564 = vmatpush.msra.mxu0 %v7617_v16  ;;  %v9885_v16 = vld [vmem:[#allocation3 + $0x169] sm:$0xff] }
 0x5b9   : > { %v5491_v27 = vpop.f32.mrf.mxu1 }
 0x5ba   : > { %5216 = vmatmul.f32.gmra.mxu0 %v10458_v41  ;;  %v7601_v41 = vld [vmem:[%s10424_s6 + $0x310] sm:$0xff] }
 0x5bb   : > { %4476 = vmatmul.f32.gmra.mxu2 %v9822_v58  ;;  %4846 = vmatmul.f32.gmra.mxu3 %v4679_v45  ;;  %v7585_v45 = vld [vmem:[%s10424_s6 + $0x290] sm:$0xff] }
 0x5bc   : > { %5538 = vmatmul.f32.gmra.mxu1 %v9661_v26  ;;  %5824 = vmatpush.msra.mxu2 %v7585_v45 }
 0x5bd   : > { %6194 = vmatpush.msra.mxu3 %v7601_v41 }
 0x5be   : > { %v4429_v52 = vpop.f32.mrf.mxu2  ;;  %v4799_v53 = vpop.f32.mrf.mxu3  ;;  %5825 = vmatpush.msra.mxu2 %v7584_v20  ;;  %v4681_v20 = vld [vmem:[#allocation3 + $0x16a] sm:$0xff] }
 0x5bf   : > { %v4567_v26 = vadd.f32 %v4429_v52, %v10459_v32  ;;  %v5172_v19 = vpop.f32.mrf.mxu0  ;;  %v7599_v52 = vld [vmem:[%s10424_s6 + $0x300] sm:$0xff]  ;;  %6195 = vmatpush.msra.mxu3 %v7600_v14  ;;  %v10461_v32 = vld [vmem:[#allocation6_spill] sm:$0xff] }
 0x5c0   : > { %5826 = vmatpush.msra.mxu2 %v7583_v62 }
 0x5c1   : > { %v4937_v49 = vadd.f32 %v4799_v53, %v4567_v26  ;;  %v9848_v27 = vpop.f32.mrf.mxu1  ;;  %6196 = vmatpush.msra.mxu3 %v7599_v52 }
 0x5c2   : > { %5219 = vmatmul.f32.gmra.mxu0 %v9489_v2  ;;  %v7616_v2 = vld [vmem:[%s10424_s6 + $0x388] sm:$0xff] }
 0x5c3   : > { %4479 = vmatmul.f32.gmra.mxu2 %v9846_v5  ;;  %4849 = vmatmul.f32.gmra.mxu3 %v4680_v60  ;;  %v9867_v10 = vadd.f32 %v5169_v23, %v4937_v49  ;;  %v5051_v60 = vld [vmem:[#allocation3 + $0x180] sm:$0xff] }
 0x5c4   : > { %5541 = vmatmul.f32.gmra.mxu1 %v9674_v7  ;;  %v7615_v7 = vld [vmem:[%s10424_s6 + $0x380] sm:$0xff]  ;;  %6565 = vmatpush.msra.mxu0 %v7616_v2 }
 0x5c5   : > { %10460 = vst [vmem:[#allocation9_spill] sm:$0xff] %v9867_v10  ;;  %v7635_v2 = vld [vmem:[%s10424_s6 + $0x420] sm:$0xff] }
 0x5c6   : > { %v4432_v53 = vpop.f32.mrf.mxu2  ;;  %v4802_v23 = vpop.f32.mrf.mxu3  ;;  %6566 = vmatpush.msra.mxu0 %v7615_v7  ;;  %6932 = vmatpush.msra.mxu1 %v7635_v2  ;;  %v5052_v7 = vld [vmem:[#allocation3 + $0x188] sm:$0xff] }
 0x5c7   : > { %v4568_v26 = vadd.f32 %v4432_v53, %v10461_v32  ;;  %v5175_v49 = vpop.f32.mrf.mxu0  ;;  %v9894_v32 = vld [vmem:[#allocation3 + $0x171] sm:$0xff] }
 0x5c8   : > { %v10463_v49 = vld [vmem:[#allocation8_spill] sm:$0xff] }
 0x5c9   : > { %v4938_v45 = vadd.f32 %v4802_v23, %v4568_v26  ;;  %v9883_v41 = vpop.f32.mrf.mxu1  ;;  %v4682_v26 = vld [vmem:[#allocation3 + $0x172] sm:$0xff] }
 0x5ca   : > { %5222 = vmatmul.f32.gmra.mxu0 %v5051_v60 }
 0x5cb   : > { %4482 = vmatmul.f32.gmra.mxu2 %v9885_v16  ;;  %4852 = vmatmul.f32.gmra.mxu3 %v4681_v20  ;;  %v9888_v14 = vadd.f32 %v5172_v19, %v4938_v45  ;;  %v9899_v20 = vld [vmem:[#allocation3 + $0x179] sm:$0xff] }
 0x5cc   : > { %5544 = vmatmul.f32.gmra.mxu1 %v9680_v48 }
 0x5cd   : > { %10462 = vst [vmem:[#allocation5_spill] sm:$0xff] %v9888_v14 }
 0x5ce   : > { %v4435_v62 = vpop.f32.mrf.mxu2  ;;  %v4805_v52 = vpop.f32.mrf.mxu3 }
 0x5cf   : > { %v5178_v53 = vpop.f32.mrf.mxu0  ;;  %v5053_v52 = vld [vmem:[#allocation3 + $0x190] sm:$0xff] }
 0x5d1   : > { %v5500_v23 = vpop.f32.mrf.mxu1 }
 0x5d2   : > { %5225 = vmatmul.f32.gmra.mxu0 %v5052_v7  ;;  %v4683_v23 = vld [vmem:[#allocation3 + $0x17a] sm:$0xff] }
 0x5d3   : > { %4485 = vmatmul.f32.gmra.mxu2 %v9894_v32  ;;  %4855 = vmatmul.f32.gmra.mxu3 %v4682_v26 }
 0x5d4   : > { %5547 = vmatmul.f32.gmra.mxu1 %v9698_v4 }
 0x5d6   : > { %v4438_v48 = vpop.f32.mrf.mxu2  ;;  %v4808_v19 = vpop.f32.mrf.mxu3 }
 0x5d7   : > { %v4570_v45 = vadd.f32 %v4438_v48, %v10463_v49  ;;  %v5181_v60 = vpop.f32.mrf.mxu0 }
 0x5d9   : > { %v4940_v2 = vadd.f32 %v4808_v19, %v4570_v45  ;;  %v9901_v62 = vpop.f32.mrf.mxu1  ;;  %v6486_v19 = vld [vmem:[#allocation3 + $0x31] sm:$0xff]  ;;  %v5746_v45 = vld [vmem:[#allocation3 + $0x1a] sm:$0xff] }
 0x5da   : > { %5228 = vmatmul.f32.gmra.mxu0 %v5053_v52 }
 0x5db   : > { %4488 = vmatmul.f32.gmra.mxu2 %v9899_v20  ;;  %4858 = vmatmul.f32.gmra.mxu3 %v4683_v23  ;;  %v9904_v7 = vadd.f32 %v5178_v53, %v4940_v2 }
 0x5dc   : > { %5550 = vmatmul.f32.gmra.mxu1 %v9711_v29  ;;  %v7634_v29 = vld [vmem:[%s10424_s6 + $0x418] sm:$0xff] }
 0x5dd   : > { %6933 = vmatpush.msra.mxu1 %v7634_v29  ;;  %v5748_v29 = vld [vmem:[#allocation3 + $0x2a] sm:$0xff] }
 0x5de   : > { %v4441_v4 = vpop.f32.mrf.mxu2  ;;  %v4811_v26 = vpop.f32.mrf.mxu3 }
 0x5df   : > { %v4571_v48 = vadd.f32 %v4441_v4, %v9485_v15  ;;  %v5184_v49 = vpop.f32.mrf.mxu0  ;;  %v6487_v4 = vld [vmem:[#allocation3 + $0x39] sm:$0xff] }
 0x5e0   : > { %v6488_v49 = vld [vmem:[#allocation3 + $0x41] sm:$0xff] }
 0x5e1   : > { %v4941_v14 = vadd.f32 %v4811_v26, %v4571_v48  ;;  %v9908_v10 = vpop.f32.mrf.mxu1  ;;  %v5747_v26 = vld [vmem:[#allocation3 + $0x22] sm:$0xff]  ;;  %v6117_v48 = vld [vmem:[#allocation3 + $0x38] sm:$0xff] }
 0x5e2   : > { %6567 = vmatmul.f32.vlgmr.msra.gmra.mxu0 %v6486_v19 }
 0x5e3   : > { %5827 = vmatmul.f32.vlgmr.msra.gmra.mxu2 %v5746_v45  ;;  %6197 = vmatmul.f32.vlgmr.msra.gmra.mxu3 %v6116_v30  ;;  %v9910_v52 = vadd.f32 %v5181_v60, %v4941_v14 }
 0x5e4   : > { %5553 = vmatmul.f32.gmra.mxu1 %v9717_v59 }
 0x5e5   : > { %10464 = vst [vmem:[#allocation6_spill] sm:$0xff] %v9910_v52  ;;  %v10029_v52 = vld [vmem:[#allocation3 + $0x92] sm:$0xff] }
 0x5e6   : > { %v4444_v15 = vpop.f32.mrf.mxu2  ;;  %v4814_v53 = vpop.f32.mrf.mxu3 }
 0x5e7   : > { %v5187_v2 = vpop.f32.mrf.mxu0  ;;  %v6118_v15 = vld [vmem:[#allocation3 + $0x40] sm:$0xff] }
 0x5e9   : > { %v5509_v23 = vpop.f32.mrf.mxu1 }
 0x5ea   : > { %6570 = vmatmul.f32.gmra.mxu0 %v6487_v4 }
 0x5eb   : > { %5830 = vmatmul.f32.gmra.mxu2 %v5747_v26  ;;  %6200 = vmatmul.f32.gmra.mxu3 %v6117_v48 }
 0x5ec   : > { %5556 = vmatmul.f32.gmra.mxu1 %v9735_v51 }
 0x5ee   : > { %v4447_v30 = vpop.f32.mrf.mxu2  ;;  %v4817_v14 = vpop.f32.mrf.mxu3 }
 0x5ef   : > { %v4573_v59 = vadd.f32 %v4447_v30, %v9508_v46  ;;  %v5190_v60 = vpop.f32.mrf.mxu0  ;;  %v6489_v30 = vld [vmem:[#allocation3 + $0x49] sm:$0xff] }
 0x5f1   : > { %v4943_v19 = vadd.f32 %v4817_v14, %v4573_v59  ;;  %v9918_v45 = vpop.f32.mrf.mxu1  ;;  %v9926_v14 = vld [vmem:[#allocation3 + $0x32] sm:$0xff]  ;;  %v6119_v59 = vld [vmem:[#allocation3 + $0x48] sm:$0xff] }
 0x5f2   : > { %6573 = vmatmul.f32.gmra.mxu0 %v6488_v49 }
 0x5f3   : > { %5833 = vmatmul.f32.gmra.mxu2 %v5748_v29  ;;  %6203 = vmatmul.f32.gmra.mxu3 %v6118_v15  ;;  %v9920_v53 = vadd.f32 %v5187_v2, %v4943_v19  ;;  %v6490_v15 = vld [vmem:[#allocation3 + $0x51] sm:$0xff] }
 0x5f4   : > { %5559 = vmatmul.f32.gmra.mxu1 %v9748_v0 }
 0x5f5   : > { %10465 = vst [vmem:[#allocation8_spill] sm:$0xff] %v9920_v53  ;;  %v10027_v53 = vld [vmem:[#allocation3 + $0x191] sm:$0xff] }
 0x5f6   : > { %v4450_v23 = vpop.f32.mrf.mxu2  ;;  %v4820_v51 = vpop.f32.mrf.mxu3 }
 0x5f7   : > { %v4574_v4 = vadd.f32 %v4450_v23, %v9521_v37  ;;  %v5193_v26 = vpop.f32.mrf.mxu0  ;;  %v7633_v37 = vld [vmem:[%s10424_s6 + $0x410] sm:$0xff]  ;;  %v9935_v23 = vld [vmem:[#allocation3 + $0x3a] sm:$0xff] }
 0x5f8   : > { %6934 = vmatpush.msra.mxu1 %v7633_v37  ;;  %v9942_v37 = vld [vmem:[#allocation3 + $0x42] sm:$0xff] }
 0x5f9   : > { %v4944_v46 = vadd.f32 %v4820_v51, %v4574_v4  ;;  %v9924_v48 = vpop.f32.mrf.mxu1  ;;  %v6120_v51 = vld [vmem:[#allocation3 + $0x50] sm:$0xff] }
 0x5fa   : > { %6576 = vmatmul.f32.gmra.mxu0 %v6489_v30 }
 0x5fb   : > { %5836 = vmatmul.f32.gmra.mxu2 %v9926_v14  ;;  %6206 = vmatmul.f32.gmra.mxu3 %v6119_v59  ;;  %v9929_v2 = vadd.f32 %v5190_v60, %v4944_v46  ;;  %v6491_v46 = vld [vmem:[#allocation3 + $0x59] sm:$0xff] }
 0x5fc   : > { %5562 = vmatmul.f32.gmra.mxu1 %v9754_v22 }
 0x5fd   : > { %10466 = vst [vmem:[#allocation14_spill] sm:$0xff] %v9929_v2  ;;  %v6122_v2 = vld [vmem:[#allocation3 + $0x60] sm:$0xff] }
 0x5fe   : > { %v4453_v0 = vpop.f32.mrf.mxu2  ;;  %v4823_v49 = vpop.f32.mrf.mxu3 }
 0x5ff   : > { %v5196_v19 = vpop.f32.mrf.mxu0  ;;  %v6121_v0 = vld [vmem:[#allocation3 + $0x58] sm:$0xff] }
 0x601   : > { %v5518_v29 = vpop.f32.mrf.mxu1 }
 0x602   : > { %6579 = vmatmul.f32.gmra.mxu0 %v6490_v15 }
 0x603   : > { %5839 = vmatmul.f32.gmra.mxu2 %v9935_v23  ;;  %6209 = vmatmul.f32.gmra.mxu3 %v6120_v51 }
 0x604   : > { %5565 = vmatmul.f32.gmra.mxu1 %v9772_v40 }
 0x606   : > { %v4456_v22 = vpop.f32.mrf.mxu2  ;;  %v4826_v60 = vpop.f32.mrf.mxu3 }
 0x607   : > { %v4576_v4 = vadd.f32 %v4456_v22, %v9542_v11  ;;  %v5199_v26 = vpop.f32.mrf.mxu0 }
 0x609   : > { %v4946_v30 = vadd.f32 %v4826_v60, %v4576_v4  ;;  %v9940_v59 = vpop.f32.mrf.mxu1  ;;  %v6492_v60 = vld [vmem:[#allocation3 + $0x61] sm:$0xff]  ;;  %v9951_v4 = vld [vmem:[#allocation3 + $0x4a] sm:$0xff] }
 0x60a   : > { %6582 = vmatmul.f32.gmra.mxu0 %v6491_v46 }
 0x60b   : > { %5842 = vmatmul.f32.gmra.mxu2 %v9942_v37  ;;  %6212 = vmatmul.f32.gmra.mxu3 %v6121_v0  ;;  %v9945_v49 = vadd.f32 %v5196_v19, %v4946_v30 }
 0x60c   : > { %5568 = vmatmul.f32.gmra.mxu1 %v9785_v28 }
 0x60d   : > { %10467 = vst [vmem:[#allocation15_spill] sm:$0xff] %v9945_v49  ;;  %v6125_v49 = vld [vmem:[#allocation3 + $0x78] sm:$0xff] }
 0x60e   : > { %v4459_v40 = vpop.f32.mrf.mxu2  ;;  %v4829_v29 = vpop.f32.mrf.mxu3 }
 0x60f   : > { %v4577_v11 = vadd.f32 %v4459_v40, %v9555_v57  ;;  %v5202_v15 = vpop.f32.mrf.mxu0  ;;  %v7632_v57 = vld [vmem:[%s10424_s6 + $0x408] sm:$0xff]  ;;  %v6493_v40 = vld [vmem:[#allocation3 + $0x69] sm:$0xff] }
 0x610   : > { %6935 = vmatpush.msra.mxu1 %v7632_v57 }
 0x611   : > { %v4947_v51 = vadd.f32 %v4829_v29, %v4577_v11  ;;  %v9949_v22 = vpop.f32.mrf.mxu1  ;;  %v9960_v29 = vld [vmem:[#allocation3 + $0x52] sm:$0xff]  ;;  %v6123_v11 = vld [vmem:[#allocation3 + $0x68] sm:$0xff] }
 0x612   : > { %6585 = vmatmul.f32.gmra.mxu0 %v6492_v60 }
 0x613   : > { %5845 = vmatmul.f32.gmra.mxu2 %v9951_v4  ;;  %6215 = vmatmul.f32.gmra.mxu3 %v6122_v2  ;;  %v9954_v19 = vadd.f32 %v5199_v26, %v4947_v51  ;;  %v6494_v51 = vld [vmem:[#allocation3 + $0x71] sm:$0xff] }
 0x614   : > { %5571 = vmatmul.f32.gmra.mxu1 %v9791_v18 }
 0x615   : > { %10468 = vst [vmem:[#allocation16_spill] sm:$0xff] %v9954_v19  ;;  %v9976_v19 = vld [vmem:[#allocation3 + $0x62] sm:$0xff] }
 0x616   : > { %v4462_v28 = vpop.f32.mrf.mxu2  ;;  %v4832_v46 = vpop.f32.mrf.mxu3 }
 0x617   : > { %v5205_v30 = vpop.f32.mrf.mxu0  ;;  %v9967_v28 = vld [vmem:[#allocation3 + $0x5a] sm:$0xff]  ;;  %v6124_v46 = vld [vmem:[#allocation3 + $0x70] sm:$0xff] }
 0x619   : > { %v5527_v0 = vpop.f32.mrf.mxu1 }
 0x61a   : > { %6588 = vmatmul.f32.gmra.mxu0 %v6493_v40 }
 0x61b   : > { %5848 = vmatmul.f32.gmra.mxu2 %v9960_v29  ;;  %6218 = vmatmul.f32.gmra.mxu3 %v6123_v11 }
 0x61c   : > { %5574 = vmatmul.f32.gmra.mxu1 %v9809_v3 }
 0x61e   : > { %v4465_v18 = vpop.f32.mrf.mxu2  ;;  %v4835_v2 = vpop.f32.mrf.mxu3 }
 0x61f   : > { %v4579_v26 = vadd.f32 %v4465_v18, %v9576_v36  ;;  %v5208_v15 = vpop.f32.mrf.mxu0 }
 0x621   : > { %v4949_v60 = vadd.f32 %v4835_v2, %v4579_v26  ;;  %v9965_v57 = vpop.f32.mrf.mxu1  ;;  %v6495_v26 = vld [vmem:[#allocation3 + $0x79] sm:$0xff] }
 0x622   : > { %6591 = vmatmul.f32.gmra.mxu0 %v6494_v51 }
 0x623   : > { %5851 = vmatmul.f32.gmra.mxu2 %v9967_v28  ;;  %6221 = vmatmul.f32.gmra.mxu3 %v6124_v46  ;;  %v9970_v0 = vadd.f32 %v5205_v30, %v4949_v60 }
 0x624   : > { %5577 = vmatmul.f32.gmra.mxu1 %v9822_v58 }
 0x625   : > { %10469 = vst [vmem:[#allocation17_spill] sm:$0xff] %v9970_v0  ;;  %v6128_v0 = vld [vmem:[#allocation3 + $0x90] sm:$0xff] }
 0x626   : > { %v4468_v3 = vpop.f32.mrf.mxu2  ;;  %v4838_v40 = vpop.f32.mrf.mxu3 }
 0x627   : > { %v4580_v36 = vadd.f32 %v4468_v3, %v9589_v39  ;;  %v5211_v11 = vpop.f32.mrf.mxu0  ;;  %v7631_v39 = vld [vmem:[%s10424_s6 + $0x400] sm:$0xff]  ;;  %v6496_v3 = vld [vmem:[#allocation3 + $0x81] sm:$0xff] }
 0x628   : > { %6936 = vmatpush.msra.mxu1 %v7631_v39 }
 0x629   : > { %v4950_v18 = vadd.f32 %v4838_v40, %v4580_v36  ;;  %v9974_v2 = vpop.f32.mrf.mxu1  ;;  %v9985_v40 = vld [vmem:[#allocation3 + $0x6a] sm:$0xff]  ;;  %v6126_v36 = vld [vmem:[#allocation3 + $0x80] sm:$0xff] }
 0x62a   : > { %6594 = vmatmul.f32.gmra.mxu0 %v6495_v26 }
 0x62b   : > { %5854 = vmatmul.f32.gmra.mxu2 %v9976_v19  ;;  %6224 = vmatmul.f32.gmra.mxu3 %v6125_v49  ;;  %v9979_v30 = vadd.f32 %v5208_v15, %v4950_v18  ;;  %v6497_v18 = vld [vmem:[#allocation3 + $0x89] sm:$0xff] }
 0x62c   : > { %5580 = vmatmul.f32.gmra.mxu1 %v9846_v5 }
 0x62d   : > { %10470 = vst [vmem:[#allocation18_spill] sm:$0xff] %v9979_v30  ;;  %v10001_v30 = vld [vmem:[#allocation3 + $0x7a] sm:$0xff] }
 0x62e   : > { %v4471_v58 = vpop.f32.mrf.mxu2  ;;  %v4841_v51 = vpop.f32.mrf.mxu3 }
 0x62f   : > { %v5214_v60 = vpop.f32.mrf.mxu0  ;;  %v9992_v58 = vld [vmem:[#allocation3 + $0x72] sm:$0xff]  ;;  %v6127_v51 = vld [vmem:[#allocation3 + $0x88] sm:$0xff] }
 0x631   : > { %v5536_v46 = vpop.f32.mrf.mxu1 }
 0x632   : > { %6597 = vmatmul.f32.gmra.mxu0 %v6496_v3 }
 0x633   : > { %5857 = vmatmul.f32.gmra.mxu2 %v9985_v40  ;;  %6227 = vmatmul.f32.gmra.mxu3 %v6126_v36 }
 0x634   : > { %5583 = vmatmul.f32.gmra.mxu1 %v9885_v16 }
 0x636   : > { %v4474_v5 = vpop.f32.mrf.mxu2  ;;  %v4844_v49 = vpop.f32.mrf.mxu3 }
 0x637   : > { %v4582_v15 = vadd.f32 %v4474_v5, %v9610_v17  ;;  %v5217_v11 = vpop.f32.mrf.mxu0 }
 0x639   : > { %v4952_v26 = vadd.f32 %v4844_v49, %v4582_v15  ;;  %v9990_v39 = vpop.f32.mrf.mxu1  ;;  %v6498_v15 = vld [vmem:[#allocation3 + $0x91] sm:$0xff] }
 0x63a   : > { %6600 = vmatmul.f32.gmra.mxu0 %v6497_v18 }
 0x63b   : > { %5860 = vmatmul.f32.gmra.mxu2 %v9992_v58  ;;  %6230 = vmatmul.f32.gmra.mxu3 %v6127_v51  ;;  %v9995_v46 = vadd.f32 %v5214_v60, %v4952_v26  ;;  %v6499_v51 = vld [vmem:[#allocation3 + $0x99] sm:$0xff] }
 0x63c   : > { %5586 = vmatmul.f32.gmra.mxu1 %v9894_v32 }
 0x63d   : > { %10471 = vst [vmem:[#allocation19_spill] sm:$0xff] %v9995_v46 }
 0x63e   : > { %v4477_v16 = vpop.f32.mrf.mxu2  ;;  %v4847_v3 = vpop.f32.mrf.mxu3 }
 0x63f   : > { %v4583_v17 = vadd.f32 %v4477_v16, %v9623_v25  ;;  %v5220_v36 = vpop.f32.mrf.mxu0  ;;  %v10007_v16 = vld [vmem:[#allocation3 + $0x82] sm:$0xff] }
 0x641   : > { %v4953_v5 = vadd.f32 %v4847_v3, %v4583_v17  ;;  %v9999_v49 = vpop.f32.mrf.mxu1  ;;  %v6129_v3 = vld [vmem:[#allocation3 + $0x98] sm:$0xff]  ;;  %v10009_v17 = vld [vmem:[#allocation3 + $0x181] sm:$0xff] }
 0x642   : > { %6603 = vmatmul.f32.gmra.mxu0 %v6498_v15 }
 0x643   : > { %5863 = vmatmul.f32.gmra.mxu2 %v10001_v30  ;;  %6233 = vmatmul.f32.gmra.mxu3 %v6128_v0  ;;  %v10004_v60 = vadd.f32 %v5217_v11, %v4953_v5  ;;  %v6500_v5 = vld [vmem:[#allocation3 + $0xa1] sm:$0xff] }
 0x644   : > { %5589 = vmatmul.f32.gmra.mxu1 %v9899_v20 }
 0x645   : > { %10472 = vst [vmem:[#allocation20_spill] sm:$0xff] %v10004_v60 }
 0x646   : > { %v4480_v32 = vpop.f32.mrf.mxu2  ;;  %v4850_v18 = vpop.f32.mrf.mxu3 }
 0x647   : > { %v5223_v26 = vpop.f32.mrf.mxu0  ;;  %v10016_v18 = vld [vmem:[#allocation3 + $0x8a] sm:$0xff] }
 0x649   : > { %v5545_v25 = vpop.f32.mrf.mxu1 }
 0x64a   : > { %6606 = vmatmul.f32.gmra.mxu0 %v6499_v51  ;;  %v6130_v25 = vld [vmem:[#allocation3 + $0xa0] sm:$0xff]  ;;  %v10018_v51 = vld [vmem:[#allocation3 + $0x189] sm:$0xff] }
 0x64b   : > { %5866 = vmatmul.f32.gmra.mxu2 %v10007_v16  ;;  %6236 = vmatmul.f32.gmra.mxu3 %v6129_v3 }
 0x64c   : > { %5592 = vmatmul.f32.gmra.mxu1 %v10009_v17 }
 0x64e   : > { %v4483_v0 = vpop.f32.mrf.mxu2  ;;  %v4853_v11 = vpop.f32.mrf.mxu3 }
 0x64f   : > { %v4585_v20 = vadd.f32 %v4483_v0, %v9645_v63  ;;  %v5226_v36 = vpop.f32.mrf.mxu0 }
 0x651   : > { %v4955_v15 = vadd.f32 %v4853_v11, %v4585_v20  ;;  %v10014_v32 = vpop.f32.mrf.mxu1 }
 0x652   : > { %10473 = vst [vmem:[#allocation21_spill] sm:$0xff] %v10014_v32  ;;  %6609 = vmatmul.f32.gmra.mxu0 %v6500_v5  ;;  %v6501_v5 = vld [vmem:[#allocation3 + $0xa9] sm:$0xff] }
 0x653   : > { %5869 = vmatmul.f32.gmra.mxu2 %v10016_v18  ;;  %6239 = vmatmul.f32.gmra.mxu3 %v6130_v25  ;;  %v10021_v3 = vadd.f32 %v5223_v26, %v4955_v15  ;;  %v6131_v32 = vld [vmem:[#allocation3 + $0xa8] sm:$0xff] }
 0x654   : > { %5595 = vmatmul.f32.gmra.mxu1 %v10018_v51 }
 0x655   : > { %10474 = vst [vmem:[#allocation22_spill] sm:$0xff] %v10021_v3  ;;  %v10043_v3 = vld [vmem:[#allocation3 + $0xa2] sm:$0xff] }
 0x656   : > { %v4486_v60 = vpop.f32.mrf.mxu2  ;;  %v4856_v63 = vpop.f32.mrf.mxu3 }
 0x657   : > { %v4586_v0 = vadd.f32 %v4486_v60, %v9659_v44  ;;  %v5229_v11 = vpop.f32.mrf.mxu0 }
 0x658   : > { %v6132_v11 = vld [vmem:[#allocation3 + $0xb0] sm:$0xff] }
 0x659   : > { %v4956_v20 = vadd.f32 %v4856_v63, %v4586_v0  ;;  %v10025_v46 = vpop.f32.mrf.mxu1  ;;  %v6502_v63 = vld [vmem:[#allocation3 + $0xb1] sm:$0xff]  ;;  %v10035_v0 = vld [vmem:[#allocation3 + $0x9a] sm:$0xff] }
 0x65a   : > { %10475 = vst [vmem:[#allocation23_spill] sm:$0xff] %v10025_v46  ;;  %6612 = vmatmul.f32.gmra.mxu0 %v6501_v5  ;;  %v6133_v46 = vld [vmem:[#allocation3 + $0xb8] sm:$0xff] }
 0x65b   : > { %5872 = vmatmul.f32.gmra.mxu2 %v10029_v52  ;;  %6242 = vmatmul.f32.gmra.mxu3 %v6131_v32  ;;  %v10032_v26 = vadd.f32 %v5226_v36, %v4956_v20  ;;  %v5650_v36 = vadd.f32 %v9682_v8, %v9514_v38  ;;  %v5651_v38 = vadd.f32 %v9696_v1, %v9526_v6 }
 0x65c   : > { %5598 = vmatmul.f32.gmra.mxu1 %v10027_v53 }
 0x65d   : > { %10476 = vst [vmem:[#allocation24_spill] sm:$0xff] %v10032_v26 }
 0x65e   : > { %v4489_v15 = vpop.f32.mrf.mxu2  ;;  %v4859_v44 = vpop.f32.mrf.mxu3 }
 0x65f   : > { %v6568_v60 = vpop.f32.mrf.mxu0  ;;  %v6503_v44 = vld [vmem:[#allocation3 + $0xb9] sm:$0xff] }
 0x661   : > { %v5554_v25 = vpop.f32.mrf.mxu1 }
 0x662   : > { %6615 = vmatmul.f32.gmra.mxu0 %v6502_v63 }
 0x663   : > { %5875 = vmatmul.f32.gmra.mxu2 %v10035_v0  ;;  %6245 = vmatmul.f32.gmra.mxu3 %v6132_v11 }
 0x664   : > { %6937 = vmatmul.f32.vlgmr.msra.gmra.mxu1 %v9926_v14 }
 0x666   : > { %v5828_v32 = vpop.f32.mrf.mxu2  ;;  %v6198_v20 = vpop.f32.mrf.mxu3 }
 0x667   : > { %v6020_v5 = vadd.f32 %v5828_v32, %v5650_v36  ;;  %v6571_v15 = vpop.f32.mrf.mxu0 }
 0x669   : > { %v6390_v26 = vadd.f32 %v6198_v20, %v6020_v5  ;;  %v10041_v25 = vpop.f32.mrf.mxu1  ;;  %v6504_v5 = vld [vmem:[#allocation3 + $0xc1] sm:$0xff] }
 0x66a   : > { %10477 = vst [vmem:[#allocation25_spill] sm:$0xff] %v10041_v25  ;;  %6618 = vmatmul.f32.gmra.mxu0 %v6503_v44  ;;  %v10053_v25 = vld [vmem:[#allocation3 + $0xaa] sm:$0xff]  ;;  %v6134_v44 = vld [vmem:[#allocation3 + $0xc0] sm:$0xff] }
 0x66b   : > { %5878 = vmatmul.f32.gmra.mxu2 %v10043_v3  ;;  %6248 = vmatmul.f32.gmra.mxu3 %v6133_v46  ;;  %v10046_v63 = vadd.f32 %v6568_v60, %v6390_v26  ;;  %v6505_v60 = vld [vmem:[#allocation3 + $0xc9] sm:$0xff] }
 0x66c   : > { %6940 = vmatmul.f32.gmra.mxu1 %v9935_v23 }
 0x66e   : > { %v5831_v8 = vpop.f32.mrf.mxu2  ;;  %v6201_v14 = vpop.f32.mrf.mxu3 }
 0x66f   : > { %v6021_v11 = vadd.f32 %v5831_v8, %v5651_v38  ;;  %v6574_v36 = vpop.f32.mrf.mxu0  ;;  %v10059_v38 = vld [vmem:[#allocation3 + $0xb2] sm:$0xff]  ;;  %v6135_v8 = vld [vmem:[#allocation3 + $0xc8] sm:$0xff] }
 0x671   : > { %v6391_v32 = vadd.f32 %v6201_v14, %v6021_v11  ;;  %v10051_v20 = vpop.f32.mrf.mxu1  ;;  %v10479_v14 = vld [vmem:[#allocation11_spill] sm:$0xff] }
 0x672   : > { %10478 = vst [vmem:[#allocation26_spill] sm:$0xff] %v10051_v20  ;;  %6621 = vmatmul.f32.gmra.mxu0 %v6504_v5  ;;  %v6506_v5 = vld [vmem:[#allocation3 + $0xd1] sm:$0xff]  ;;  %v10077_v20 = vld [vmem:[#allocation3 + $0xc2] sm:$0xff] }
 0x673   : > { %5881 = vmatmul.f32.gmra.mxu2 %v10053_v25  ;;  %6251 = vmatmul.f32.gmra.mxu3 %v6134_v44  ;;  %v10056_v46 = vadd.f32 %v6571_v15, %v6391_v32  ;;  %v5653_v15 = vadd.f32 %v9719_v31, %v10479_v14  ;;  %v10481_v31 = vld [vmem:[#allocation12_spill] sm:$0xff] }
 0x674   : > { %6943 = vmatmul.f32.gmra.mxu1 %v9942_v37 }
 0x676   : > { %v5834_v6 = vpop.f32.mrf.mxu2  ;;  %v6204_v1 = vpop.f32.mrf.mxu3 }
 0x677   : > { %v6577_v23 = vpop.f32.mrf.mxu0  ;;  %v10067_v1 = vld [vmem:[#allocation3 + $0xba] sm:$0xff] }
 0x679   : > { %v5563_v26 = vpop.f32.mrf.mxu1 }
 0x67a   : > { %6624 = vmatmul.f32.gmra.mxu0 %v6505_v60  ;;  %v6136_v26 = vld [vmem:[#allocation3 + $0xd0] sm:$0xff] }
 0x67b   : > { %5884 = vmatmul.f32.gmra.mxu2 %v10059_v38  ;;  %6254 = vmatmul.f32.gmra.mxu3 %v6135_v8 }
 0x67c   : > { %6946 = vmatmul.f32.gmra.mxu1 %v9951_v4  ;;  %v5654_v4 = vadd.f32 %v9733_v33, %v10481_v31  ;;  %v6508_v31 = vld [vmem:[#allocation3 + $0xe1] sm:$0xff] }
 0x67e   : > { %v5837_v11 = vpop.f32.mrf.mxu2  ;;  %v6207_v36 = vpop.f32.mrf.mxu3 }
 0x67f   : > { %v6023_v37 = vadd.f32 %v5837_v11, %v5653_v15  ;;  %v6580_v32 = vpop.f32.mrf.mxu0 }
 0x681   : > { %v6393_v44 = vadd.f32 %v6207_v36, %v6023_v37  ;;  %v10065_v6 = vpop.f32.mrf.mxu1 }
 0x682   : > { %10480 = vst [vmem:[#allocation11_spill] sm:$0xff] %v10065_v6  ;;  %6627 = vmatmul.f32.gmra.mxu0 %v6506_v5  ;;  %v6507_v6 = vld [vmem:[#allocation3 + $0xd9] sm:$0xff] }
 0x683   : > { %5887 = vmatmul.f32.gmra.mxu2 %v10067_v1  ;;  %6257 = vmatmul.f32.gmra.mxu3 %v6136_v26  ;;  %v10070_v60 = vadd.f32 %v6577_v23, %v6393_v44  ;;  %v6137_v5 = vld [vmem:[#allocation3 + $0xd8] sm:$0xff] }
 0x684   : > { %6949 = vmatmul.f32.gmra.mxu1 %v9960_v29 }
 0x686   : > { %v5840_v8 = vpop.f32.mrf.mxu2  ;;  %v6210_v14 = vpop.f32.mrf.mxu3 }
 0x687   : > { %v6024_v15 = vadd.f32 %v5840_v8, %v5654_v4  ;;  %v6583_v11 = vpop.f32.mrf.mxu0  ;;  %v10083_v4 = vld [vmem:[#allocation3 + $0xca] sm:$0xff]  ;;  %v6138_v8 = vld [vmem:[#allocation3 + $0xe0] sm:$0xff] }
 0x689   : > { %v6394_v36 = vadd.f32 %v6210_v14, %v6024_v15  ;;  %v10075_v37 = vpop.f32.mrf.mxu1 }
 0x68a   : > { %10482 = vst [vmem:[#allocation12_spill] sm:$0xff] %v10075_v37  ;;  %6630 = vmatmul.f32.gmra.mxu0 %v6507_v6  ;;  %v10483_v6 = vld [vmem:[#allocation10_spill] sm:$0xff]  ;;  %v10101_v37 = vld [vmem:[#allocation3 + $0xda] sm:$0xff] }
 0x68b   : > { %5890 = vmatmul.f32.gmra.mxu2 %v10077_v20  ;;  %6260 = vmatmul.f32.gmra.mxu3 %v6137_v5  ;;  %v10080_v23 = vadd.f32 %v6580_v32, %v6394_v36  ;;  %v5656_v32 = vadd.f32 %v9756_v13, %v10483_v6  ;;  %v6509_v36 = vld [vmem:[#allocation3 + $0xe9] sm:$0xff] }
 0x68c   : > { %6952 = vmatmul.f32.gmra.mxu1 %v9967_v28  ;;  %v10485_v13 = vld [vmem:[#allocation13_spill] sm:$0xff] }
 0x68e   : > { %v5843_v33 = vpop.f32.mrf.mxu2  ;;  %v6213_v29 = vpop.f32.mrf.mxu3 }
 0x68f   : > { %v6586_v44 = vpop.f32.mrf.mxu0  ;;  %v10091_v29 = vld [vmem:[#allocation3 + $0xd2] sm:$0xff] }
 0x691   : > { %v5572_v26 = vpop.f32.mrf.mxu1 }
 0x692   : > { %6633 = vmatmul.f32.gmra.mxu0 %v6508_v31  ;;  %v6139_v26 = vld [vmem:[#allocation3 + $0xe8] sm:$0xff] }
 0x693   : > { %5893 = vmatmul.f32.gmra.mxu2 %v10083_v4  ;;  %6263 = vmatmul.f32.gmra.mxu3 %v6138_v8 }
 0x694   : > { %6955 = vmatmul.f32.gmra.mxu1 %v9976_v19  ;;  %v5657_v19 = vadd.f32 %v9770_v43, %v10485_v13  ;;  %v6511_v13 = vld [vmem:[#allocation3 + $0xf9] sm:$0xff] }
 0x696   : > { %v5846_v14 = vpop.f32.mrf.mxu2  ;;  %v6216_v15 = vpop.f32.mrf.mxu3 }
 0x697   : > { %v6026_v28 = vadd.f32 %v5846_v14, %v5656_v32  ;;  %v6589_v11 = vpop.f32.mrf.mxu0 }
 0x699   : > { %v6396_v5 = vadd.f32 %v6216_v15, %v6026_v28  ;;  %v10089_v33 = vpop.f32.mrf.mxu1 }
 0x69a   : > { %10484 = vst [vmem:[#allocation10_spill] sm:$0xff] %v10089_v33  ;;  %6636 = vmatmul.f32.gmra.mxu0 %v6509_v36  ;;  %v6510_v33 = vld [vmem:[#allocation3 + $0xf1] sm:$0xff] }
 0x69b   : > { %5896 = vmatmul.f32.gmra.mxu2 %v10091_v29  ;;  %6266 = vmatmul.f32.gmra.mxu3 %v6139_v26  ;;  %v10094_v31 = vadd.f32 %v6586_v44, %v6396_v5  ;;  %v6140_v36 = vld [vmem:[#allocation3 + $0xf0] sm:$0xff] }
 0x69c   : > { %6958 = vmatmul.f32.gmra.mxu1 %v9985_v40 }
 0x69e   : > { %v5849_v8 = vpop.f32.mrf.mxu2  ;;  %v6219_v6 = vpop.f32.mrf.mxu3 }
 0x69f   : > { %v6027_v32 = vadd.f32 %v5849_v8, %v5657_v19  ;;  %v6592_v14 = vpop.f32.mrf.mxu0  ;;  %v10107_v19 = vld [vmem:[#allocation3 + $0xe2] sm:$0xff]  ;;  %v6141_v8 = vld [vmem:[#allocation3 + $0xf8] sm:$0xff] }
 0x6a0   : > { %v6512_v14 = vld [vmem:[#allocation3 + $0x101] sm:$0xff] }
 0x6a1   : > { %v6397_v15 = vadd.f32 %v6219_v6, %v6027_v32  ;;  %v10099_v28 = vpop.f32.mrf.mxu1 }
 0x6a2   : > { %6639 = vmatmul.f32.gmra.mxu0 %v6510_v33 }
 0x6a3   : > { %5899 = vmatmul.f32.gmra.mxu2 %v10101_v37  ;;  %6269 = vmatmul.f32.gmra.mxu3 %v6140_v36  ;;  %v10104_v44 = vadd.f32 %v6589_v11, %v6397_v15  ;;  %v5659_v11 = vadd.f32 %v9793_v21, %v9616_v42  ;;  %v5660_v42 = vadd.f32 %v9807_v54, %v9628_v35 }
 0x6a4   : > { %6961 = vmatmul.f32.gmra.mxu1 %v9992_v58 }
 0x6a6   : > { %v5852_v43 = vpop.f32.mrf.mxu2  ;;  %v6222_v40 = vpop.f32.mrf.mxu3 }
 0x6a7   : > { %v6595_v5 = vpop.f32.mrf.mxu0  ;;  %v10115_v43 = vld [vmem:[#allocation3 + $0xea] sm:$0xff]  ;;  %v6142_v40 = vld [vmem:[#allocation3 + $0x100] sm:$0xff] }
 0x6a9   : > { %v5581_v26 = vpop.f32.mrf.mxu1 }
 0x6aa   : > { %6642 = vmatmul.f32.gmra.mxu0 %v6511_v13 }
 0x6ab   : > { %5902 = vmatmul.f32.gmra.mxu2 %v10107_v19  ;;  %6272 = vmatmul.f32.gmra.mxu3 %v6141_v8 }
 0x6ac   : > { %6964 = vmatmul.f32.gmra.mxu1 %v10001_v30 }
 0x6ae   : > { %v5855_v33 = vpop.f32.mrf.mxu2  ;;  %v6225_v6 = vpop.f32.mrf.mxu3 }
 0x6af   : > { %v6029_v58 = vadd.f32 %v5855_v33, %v5659_v11  ;;  %v6598_v32 = vpop.f32.mrf.mxu0 }
 0x6b1   : > { %v6399_v15 = vadd.f32 %v6225_v6, %v6029_v58  ;;  %v10113_v36 = vpop.f32.mrf.mxu1  ;;  %v6513_v6 = vld [vmem:[#allocation3 + $0x109] sm:$0xff]  ;;  %v10125_v58 = vld [vmem:[#allocation3 + $0xf2] sm:$0xff] }
 0x6b2   : > { %6645 = vmatmul.f32.gmra.mxu0 %v6512_v14  ;;  %v6143_v14 = vld [vmem:[#allocation3 + $0x108] sm:$0xff] }
 0x6b3   : > { %5905 = vmatmul.f32.gmra.mxu2 %v10115_v43  ;;  %6275 = vmatmul.f32.gmra.mxu3 %v6142_v40  ;;  %v10118_v26 = vadd.f32 %v6595_v5, %v6399_v15  ;;  %v6514_v40 = vld [vmem:[#allocation3 + $0x111] sm:$0xff] }
 0x6b4   : > { %6967 = vmatmul.f32.gmra.mxu1 %v10007_v16 }
 0x6b6   : > { %v5858_v21 = vpop.f32.mrf.mxu2  ;;  %v6228_v30 = vpop.f32.mrf.mxu3 }
 0x6b7   : > { %v6030_v13 = vadd.f32 %v5858_v21, %v5660_v42  ;;  %v6601_v8 = vpop.f32.mrf.mxu0  ;;  %v10131_v42 = vld [vmem:[#allocation3 + $0xfa] sm:$0xff]  ;;  %v6144_v21 = vld [vmem:[#allocation3 + $0x110] sm:$0xff] }
 0x6b9   : > { %v6400_v11 = vadd.f32 %v6228_v30, %v6030_v13  ;;  %v10123_v33 = vpop.f32.mrf.mxu1 }
 0x6ba   : > { %6648 = vmatmul.f32.gmra.mxu0 %v6513_v6 }
 0x6bb   : > { %5908 = vmatmul.f32.gmra.mxu2 %v10125_v58  ;;  %6278 = vmatmul.f32.gmra.mxu3 %v6143_v14  ;;  %v10128_v5 = vadd.f32 %v6598_v32, %v6400_v11  ;;  %v5662_v32 = vadd.f32 %v9848_v27, %v9652_v55  ;;  %v6515_v11 = vld [vmem:[#allocation3 + $0x119] sm:$0xff]  ;;  %v5663_v55 = vadd.f32 %v9883_v41, %v9665_v47 }
 0x6bc   : > { %6970 = vmatmul.f32.gmra.mxu1 %v10016_v18 }
 0x6be   : > { %v5861_v35 = vpop.f32.mrf.mxu2  ;;  %v6231_v54 = vpop.f32.mrf.mxu3 }
 0x6bf   : > { %v6604_v16 = vpop.f32.mrf.mxu0  ;;  %v10139_v35 = vld [vmem:[#allocation3 + $0x102] sm:$0xff]  ;;  %v6145_v54 = vld [vmem:[#allocation3 + $0x118] sm:$0xff] }
 0x6c1   : > { %v5590_v15 = vpop.f32.mrf.mxu1 }
 0x6c2   : > { %6651 = vmatmul.f32.gmra.mxu0 %v6514_v40 }
 0x6c3   : > { %5911 = vmatmul.f32.gmra.mxu2 %v10131_v42  ;;  %6281 = vmatmul.f32.gmra.mxu3 %v6144_v21 }
 0x6c4   : > { %6973 = vmatmul.f32.gmra.mxu1 %v10029_v52 }
 0x6c6   : > { %v5864_v30 = vpop.f32.mrf.mxu2  ;;  %v6234_v13 = vpop.f32.mrf.mxu3 }
 0x6c7   : > { %v6032_v18 = vadd.f32 %v5864_v30, %v5662_v32  ;;  %v6607_v8 = vpop.f32.mrf.mxu0 }
 0x6c9   : > { %v6402_v6 = vadd.f32 %v6234_v13, %v6032_v18  ;;  %v10137_v14 = vpop.f32.mrf.mxu1  ;;  %v6516_v13 = vld [vmem:[#allocation3 + $0x121] sm:$0xff]  ;;  %v10149_v18 = vld [vmem:[#allocation3 + $0x10a] sm:$0xff] }
 0x6ca   : > { %6654 = vmatmul.f32.gmra.mxu0 %v6515_v11  ;;  %v6146_v11 = vld [vmem:[#allocation3 + $0x120] sm:$0xff] }
 0x6cb   : > { %5914 = vmatmul.f32.gmra.mxu2 %v10139_v35  ;;  %6284 = vmatmul.f32.gmra.mxu3 %v6145_v54  ;;  %v10142_v15 = vadd.f32 %v6604_v16, %v6402_v6  ;;  %v6517_v54 = vld [vmem:[#allocation3 + $0x129] sm:$0xff] }
 0x6cc   : > { %6976 = vmatmul.f32.gmra.mxu1 %v10035_v0 }
 0x6ce   : > { %v5867_v27 = vpop.f32.mrf.mxu2  ;;  %v6237_v52 = vpop.f32.mrf.mxu3 }
 0x6cf   : > { %v6033_v40 = vadd.f32 %v5867_v27, %v5663_v55  ;;  %v6610_v21 = vpop.f32.mrf.mxu0  ;;  %v10155_v55 = vld [vmem:[#allocation3 + $0x112] sm:$0xff]  ;;  %v6147_v27 = vld [vmem:[#allocation3 + $0x128] sm:$0xff] }
 0x6d1   : > { %v6403_v32 = vadd.f32 %v6237_v52, %v6033_v40  ;;  %v10147_v30 = vpop.f32.mrf.mxu1 }
 0x6d2   : > { %6657 = vmatmul.f32.gmra.mxu0 %v6516_v13  ;;  %v10164_v13 = vld [vmem:[%s10425_s7] ss:$0 sm:$0xff] }
 0x6d3   : > { %5917 = vmatmul.f32.gmra.mxu2 %v10149_v18  ;;  %6287 = vmatmul.f32.gmra.mxu3 %v6146_v11  ;;  %v10152_v16 = vadd.f32 %v6607_v8, %v6403_v32  ;;  %v5665_v8 = vadd.f32 %v9901_v62, %v9689_v56  ;;  %v6518_v32 = vld [vmem:[#allocation3 + $0x131] sm:$0xff] }
 0x6d4   : > { %6979 = vmatmul.f32.gmra.mxu1 %v10043_v3 }
 0x6d6   : > { %v5870_v47 = vpop.f32.mrf.mxu2  ;;  %v6240_v41 = vpop.f32.mrf.mxu3 }
 0x6d7   : > { %v6613_v0 = vpop.f32.mrf.mxu0 }
 0x6d9   : > { %v5599_v6 = vpop.f32.mrf.mxu1 }
 0x6da   : > { %6660 = vmatmul.f32.gmra.mxu0 %v6517_v54  ;;  %v10167_v6 = vld [vmem:[#allocation3 + $0x11a] sm:$0xff]  ;;  %v5666_v54 = vadd.f32 %v9908_v10, %v9702_v61 }
 0x6db   : > { %5920 = vmatmul.f32.gmra.mxu2 %v10155_v55  ;;  %6290 = vmatmul.f32.gmra.mxu3 %v6147_v27 }
 0x6dc   : > { %6982 = vmatmul.f32.gmra.mxu1 %v10053_v25  ;;  %v6148_v25 = vld [vmem:[#allocation3 + $0x130] sm:$0xff] }
 0x6de   : > { %v5873_v52 = vpop.f32.mrf.mxu2  ;;  %v6243_v40 = vpop.f32.mrf.mxu3 }
 0x6df   : > { %v6035_v3 = vadd.f32 %v5873_v52, %v5665_v8  ;;  %v6616_v21 = vpop.f32.mrf.mxu0 }
 0x6e1   : > { %v6405_v11 = vadd.f32 %v6243_v40, %v6035_v3  ;;  %v6938_v47 = vpop.f32.mrf.mxu1 }
 0x6e2   : > { %v7130_v41 = vadd.f32 %v6938_v47, %v10046_v63  ;;  %6663 = vmatmul.f32.gmra.mxu0 %v6518_v32  ;;  %v6519_v32 = vld [vmem:[#allocation3 + $0x139] sm:$0xff] }
 0x6e3   : > { %5923 = vmatmul.f32.gmra.mxu2 %v10167_v6  ;;  %6293 = vmatmul.f32.gmra.mxu3 %v6148_v25  ;;  %v10170_v56 = vadd.f32 %v6613_v0, %v6405_v11  ;;  %v10178_v0 = vld [vmem:[#allocation3 + $0x122] sm:$0xff]  ;;  %v6149_v11 = vld [vmem:[#allocation3 + $0x138] sm:$0xff] }
 0x6e4   : > { %v7232_v62 = vadd.f32 %v10164_v13, %v7130_v41  ;;  %6985 = vmatmul.f32.gmra.mxu1 %v10059_v38 }
 0x6e6   : > { %7234 = vst [vmem:[%s7771_s14] sm:$0xff] %v7232_v62  ;;  %v5876_v27 = vpop.f32.mrf.mxu2  ;;  %v6246_v63 = vpop.f32.mrf.mxu3 }
 0x6e7   : > { %v6036_v8 = vadd.f32 %v5876_v27, %v5666_v54  ;;  %v6619_v52 = vpop.f32.mrf.mxu0  ;;  %v6520_v54 = vld [vmem:[#allocation3 + $0x141] sm:$0xff] }
 0x6e8   : > { %v6150_v27 = vld [vmem:[#allocation3 + $0x140] sm:$0xff] }
 0x6e9   : > { %v6406_v40 = vadd.f32 %v6246_v63, %v6036_v8  ;;  %v6941_v3 = vpop.f32.mrf.mxu1 }
 0x6ea   : > { %v7131_v47 = vadd.f32 %v6941_v3, %v10056_v46  ;;  %6666 = vmatmul.f32.gmra.mxu0 %v6519_v32  ;;  %v10186_v46 = vld [vmem:[#allocation3 + $0x12a] sm:$0xff] }
 0x6eb   : > { %5926 = vmatmul.f32.gmra.mxu2 %v10178_v0  ;;  %6296 = vmatmul.f32.gmra.mxu3 %v6149_v11  ;;  %v10181_v38 = vadd.f32 %v6616_v21, %v6406_v40  ;;  %v5668_v21 = vadd.f32 %v9918_v45, %v9726_v9  ;;  %v6521_v40 = vld [vmem:[#allocation3 + $0x149] sm:$0xff]  ;;  %v10193_v11 = vld [vmem:[#allocation3 + $0x132] sm:$0xff]  ;;  %v5669_v45 = vadd.f32 %v9924_v48, %v9739_v34 }
 0x6ec   : > { %v7233_v61 = vadd.f32 %v10164_v13, %v7131_v47  ;;  %6988 = vmatmul.f32.gmra.mxu1 %v10067_v1 }
 0x6ee   : > { %7235 = vst [vmem:[%s7771_s14 + $0x8] sm:$0xff] %v7233_v61  ;;  %v5879_v10 = vpop.f32.mrf.mxu2  ;;  %v6249_v41 = vpop.f32.mrf.mxu3  ;;  %v6151_v61 = vld [vmem:[#allocation3 + $0x148] sm:$0xff] }
 0x6ef   : > { %v6622_v25 = vpop.f32.mrf.mxu0 }
 0x6f1   : > { %v6944_v62 = vpop.f32.mrf.mxu1 }
 0x6f2   : > { %6669 = vmatmul.f32.gmra.mxu0 %v6520_v54 }
 0x6f3   : > { %5929 = vmatmul.f32.gmra.mxu2 %v10186_v46  ;;  %6299 = vmatmul.f32.gmra.mxu3 %v6150_v27 }
 0x6f4   : > { %6991 = vmatmul.f32.gmra.mxu1 %v10077_v20 }
 0x6f6   : > { %v5882_v63 = vpop.f32.mrf.mxu2  ;;  %v6252_v1 = vpop.f32.mrf.mxu3 }
 0x6f7   : > { %v6038_v8 = vadd.f32 %v5882_v63, %v5668_v21  ;;  %v6625_v52 = vpop.f32.mrf.mxu0  ;;  %v6522_v21 = vld [vmem:[#allocation3 + $0x151] sm:$0xff] }
 0x6f9   : > { %v6408_v3 = vadd.f32 %v6252_v1, %v6038_v8  ;;  %v6947_v32 = vpop.f32.mrf.mxu1  ;;  %v6152_v1 = vld [vmem:[#allocation3 + $0x150] sm:$0xff] }
 0x6fa   : > { %v7133_v47 = vadd.f32 %v6947_v32, %v10070_v60  ;;  %6672 = vmatmul.f32.gmra.mxu0 %v6521_v40  ;;  %v6523_v32 = vld [vmem:[#allocation3 + $0x159] sm:$0xff] }
 0x6fb   : > { %5932 = vmatmul.f32.gmra.mxu2 %v10193_v11  ;;  %6302 = vmatmul.f32.gmra.mxu3 %v6151_v61  ;;  %v10196_v20 = vadd.f32 %v6622_v25, %v6408_v3  ;;  %v10204_v25 = vld [vmem:[#allocation3 + $0x13a] sm:$0xff] }
 0x6fc   : > { %v7238_v9 = vadd.f32 %v10164_v13, %v7133_v47  ;;  %6994 = vmatmul.f32.gmra.mxu1 %v10083_v4  ;;  %v6153_v47 = vld [vmem:[#allocation3 + $0x158] sm:$0xff] }
 0x6fe   : > { %7240 = vst [vmem:[%s7771_s14 + $0x10] sm:$0xff] %v7238_v9  ;;  %v5885_v10 = vpop.f32.mrf.mxu2  ;;  %v6255_v60 = vpop.f32.mrf.mxu3 }
 0x6ff   : > { %v6039_v41 = vadd.f32 %v5885_v10, %v5669_v45  ;;  %v6628_v62 = vpop.f32.mrf.mxu0  ;;  %v6524_v10 = vld [vmem:[#allocation3 + $0x161] sm:$0xff] }
 0x701   : > { %v6409_v54 = vadd.f32 %v6255_v60, %v6039_v41  ;;  %v6950_v27 = vpop.f32.mrf.mxu1 }
 0x702   : > { %v7134_v63 = vadd.f32 %v6950_v27, %v10080_v23  ;;  %6675 = vmatmul.f32.gmra.mxu0 %v6522_v21  ;;  %v10212_v23 = vld [vmem:[#allocation3 + $0x142] sm:$0xff] }
 0x703   : > { %5935 = vmatmul.f32.gmra.mxu2 %v10204_v25  ;;  %6305 = vmatmul.f32.gmra.mxu3 %v6152_v1  ;;  %v10207_v4 = vadd.f32 %v6625_v52, %v6409_v54  ;;  %v5671_v52 = vadd.f32 %v9940_v59, %v9763_v24  ;;  %v10219_v54 = vld [vmem:[#allocation3 + $0x14a] sm:$0xff]  ;;  %v6154_v27 = vld [vmem:[#allocation3 + $0x160] sm:$0xff]  ;;  %v5672_v59 = vadd.f32 %v9949_v22, %v9776_v50 }
 0x704   : > { %v7239_v34 = vadd.f32 %v10164_v13, %v7134_v63  ;;  %6997 = vmatmul.f32.gmra.mxu1 %v10091_v29 }
 0x706   : > { %7241 = vst [vmem:[%s7771_s14 + $0x18] sm:$0xff] %v7239_v34  ;;  %v5888_v48 = vpop.f32.mrf.mxu2  ;;  %v6258_v8 = vpop.f32.mrf.mxu3 }
 0x707   : > { %v6631_v40 = vpop.f32.mrf.mxu0  ;;  %v6525_v8 = vld [vmem:[#allocation3 + $0x169] sm:$0xff] }
 0x709   : > { %v6953_v3 = vpop.f32.mrf.mxu1 }
 0x70a   : > { %6678 = vmatmul.f32.gmra.mxu0 %v6523_v32  ;;  %v6155_v32 = vld [vmem:[#allocation3 + $0x168] sm:$0xff] }
 0x70b   : > { %5938 = vmatmul.f32.gmra.mxu2 %v10212_v23  ;;  %6308 = vmatmul.f32.gmra.mxu3 %v6153_v47 }
 0x70c   : > { %7000 = vmatmul.f32.gmra.mxu1 %v10101_v37 }
 0x70e   : > { %v5891_v61 = vpop.f32.mrf.mxu2  ;;  %v6261_v29 = vpop.f32.mrf.mxu3 }
 0x70f   : > { %v6041_v9 = vadd.f32 %v5891_v61, %v5671_v52  ;;  %v6634_v45 = vpop.f32.mrf.mxu0 }
 0x711   : > { %v6411_v60 = vadd.f32 %v6261_v29, %v6041_v9  ;;  %v6956_v41 = vpop.f32.mrf.mxu1  ;;  %v6526_v29 = vld [vmem:[#allocation3 + $0x171] sm:$0xff] }
 0x712   : > { %v7136_v62 = vadd.f32 %v6956_v41, %v10094_v31  ;;  %6681 = vmatmul.f32.gmra.mxu0 %v6524_v10  ;;  %v6156_v9 = vld [vmem:[#allocation3 + $0x170] sm:$0xff] }
 0x713   : > { %5941 = vmatmul.f32.gmra.mxu2 %v10219_v54  ;;  %6311 = vmatmul.f32.gmra.mxu3 %v6154_v27  ;;  %v10222_v37 = vadd.f32 %v6631_v40, %v6411_v60  ;;  %v10230_v40 = vld [vmem:[#allocation3 + $0x152] sm:$0xff] }
 0x714   : > { %v7244_v24 = vadd.f32 %v10164_v13, %v7136_v62  ;;  %7003 = vmatmul.f32.gmra.mxu1 %v10107_v19  ;;  %v6527_v62 = vld [vmem:[#allocation3 + $0x179] sm:$0xff] }
 0x716   : > { %7246 = vst [vmem:[%s7771_s14 + $0x20] sm:$0xff] %v7244_v24  ;;  %v5894_v21 = vpop.f32.mrf.mxu2  ;;  %v6264_v31 = vpop.f32.mrf.mxu3 }
 0x717   : > { %v6042_v63 = vadd.f32 %v5894_v21, %v5672_v59  ;;  %v6637_v1 = vpop.f32.mrf.mxu0  ;;  %v10245_v21 = vld [vmem:[#allocation3 + $0x162] sm:$0xff] }
 0x719   : > { %v6412_v34 = vadd.f32 %v6264_v31, %v6042_v63  ;;  %v6959_v48 = vpop.f32.mrf.mxu1  ;;  %v6157_v31 = vld [vmem:[#allocation3 + $0x178] sm:$0xff] }
 0x71a   : > { %v7137_v3 = vadd.f32 %v6959_v48, %v10104_v44  ;;  %6684 = vmatmul.f32.gmra.mxu0 %v6525_v8  ;;  %v10238_v44 = vld [vmem:[#allocation3 + $0x15a] sm:$0xff] }
 0x71b   : > { %5944 = vmatmul.f32.gmra.mxu2 %v10230_v40  ;;  %6314 = vmatmul.f32.gmra.mxu3 %v6155_v32  ;;  %v10233_v19 = vadd.f32 %v6634_v45, %v6412_v34  ;;  %v5674_v45 = vadd.f32 %v9965_v57, %v9800_v12  ;;  %v10486_v57 = vld [vmem:[#allocation7_spill] sm:$0xff] }
 0x71c   : > { %v7245_v50 = vadd.f32 %v10164_v13, %v7137_v3  ;;  %7006 = vmatmul.f32.gmra.mxu1 %v10115_v43  ;;  %v5675_v63 = vadd.f32 %v9974_v2, %v10486_v57 }
 0x71e   : > { %7247 = vst [vmem:[%s7771_s14 + $0x28] sm:$0xff] %v7245_v50  ;;  %v5897_v22 = vpop.f32.mrf.mxu2  ;;  %v6267_v47 = vpop.f32.mrf.mxu3  ;;  %v10256_v50 = vld [vmem:[#allocation3 + $0x16a] sm:$0xff] }
 0x71f   : > { %v6640_v52 = vpop.f32.mrf.mxu0  ;;  %v6158_v22 = vld [vmem:[#allocation3 + $0x180] sm:$0xff] }
 0x721   : > { %v6962_v61 = vpop.f32.mrf.mxu1 }
 0x722   : > { %6687 = vmatmul.f32.gmra.mxu0 %v6526_v29 }
 0x723   : > { %5947 = vmatmul.f32.gmra.mxu2 %v10238_v44  ;;  %6317 = vmatmul.f32.gmra.mxu3 %v6156_v9  ;;  %v6159_v9 = vld [vmem:[#allocation3 + $0x188] sm:$0xff] }
 0x724   : > { %7009 = vmatmul.f32.gmra.mxu1 %v10125_v58 }
 0x726   : > { %v5900_v10 = vpop.f32.mrf.mxu2  ;;  %v6270_v43 = vpop.f32.mrf.mxu3 }
 0x727   : > { %v6044_v60 = vadd.f32 %v5900_v10, %v5674_v45  ;;  %v6643_v41 = vpop.f32.mrf.mxu0 }
 0x729   : > { %v6414_v27 = vadd.f32 %v6270_v43, %v6044_v60  ;;  %v6965_v24 = vpop.f32.mrf.mxu1 }
 0x72a   : > { %v7139_v59 = vadd.f32 %v6965_v24, %v10118_v26  ;;  %6690 = vmatmul.f32.gmra.mxu0 %v6527_v62  ;;  %v10273_v24 = vld [vmem:[#allocation3 + $0x17a] sm:$0xff] }
 0x72b   : > { %5950 = vmatmul.f32.gmra.mxu2 %v10245_v21  ;;  %6320 = vmatmul.f32.gmra.mxu3 %v6157_v31  ;;  %v10248_v58 = vadd.f32 %v6640_v52, %v6414_v27 }
 0x72c   : > { %v7250_v12 = vadd.f32 %v10164_v13, %v7139_v59  ;;  %7012 = vmatmul.f32.gmra.mxu1 %v10131_v42  ;;  %v10488_v59 = vld [vmem:[#allocation5_spill] sm:$0xff] }
 0x72d   : > { %v5678_v31 = vadd.f32 %v9999_v49, %v10488_v59 }
 0x72e   : > { %7252 = vst [vmem:[%s7771_s14 + $0x30] sm:$0xff] %v7250_v12  ;;  %v5903_v1 = vpop.f32.mrf.mxu2  ;;  %v6273_v26 = vpop.f32.mrf.mxu3 }
 0x72f   : > { %v6045_v34 = vadd.f32 %v5903_v1, %v5675_v63  ;;  %v6646_v48 = vpop.f32.mrf.mxu0  ;;  %v6531_v1 = vld [vmem:[#allocation3 + $0x199] sm:$0xff] }
 0x731   : > { %v6415_v8 = vadd.f32 %v6273_v26, %v6045_v34  ;;  %v6968_v3 = vpop.f32.mrf.mxu1 }
 0x732   : > { %v7140_v32 = vadd.f32 %v6968_v3, %v10128_v5  ;;  %6693 = vmatmul.f32.gmra.mxu0 %v10009_v17  ;;  %v10265_v5 = vld [vmem:[#allocation3 + $0x172] sm:$0xff]  ;;  %v10487_v17 = vld [vmem:[#allocation9_spill] sm:$0xff] }
 0x733   : > { %5953 = vmatmul.f32.gmra.mxu2 %v10256_v50  ;;  %6323 = vmatmul.f32.gmra.mxu3 %v6158_v22  ;;  %v10260_v42 = vadd.f32 %v6643_v41, %v6415_v8  ;;  %v5677_v45 = vadd.f32 %v9990_v39, %v10487_v17  ;;  %v10285_v8 = vld [vmem:[#allocation3 + $0x182] sm:$0xff] }
 0x734   : > { %v7251_v2 = vadd.f32 %v10164_v13, %v7140_v32  ;;  %7015 = vmatmul.f32.gmra.mxu1 %v10139_v35 }
 0x736   : > { %7253 = vst [vmem:[%s7771_s14 + $0x38] sm:$0xff] %v7251_v2  ;;  %v5906_v47 = vpop.f32.mrf.mxu2  ;;  %v6276_v52 = vpop.f32.mrf.mxu3  ;;  %v6532_v2 = vld [vmem:[#allocation3 + $0x1a1] sm:$0xff] }
 0x737   : > { %v6649_v61 = vpop.f32.mrf.mxu0  ;;  %v6162_v47 = vld [vmem:[#allocation3 + $0x1a0] sm:$0xff] }
 0x739   : > { %v6971_v29 = vpop.f32.mrf.mxu1 }
 0x73a   : > { %6696 = vmatmul.f32.gmra.mxu0 %v10018_v51  ;;  %v6160_v51 = vld [vmem:[#allocation3 + $0x190] sm:$0xff] }
 0x73b   : > { %5956 = vmatmul.f32.gmra.mxu2 %v10265_v5  ;;  %6326 = vmatmul.f32.gmra.mxu3 %v6159_v9 }
 0x73c   : > { %7018 = vmatmul.f32.gmra.mxu1 %v10149_v18 }
 0x73e   : > { %v5909_v10 = vpop.f32.mrf.mxu2  ;;  %v6279_v35 = vpop.f32.mrf.mxu3 }
 0x73f   : > { %v6047_v43 = vadd.f32 %v5909_v10, %v5677_v45  ;;  %v6652_v60 = vpop.f32.mrf.mxu0 }
 0x741   : > { %v6417_v41 = vadd.f32 %v6279_v35, %v6047_v43  ;;  %v6974_v62 = vpop.f32.mrf.mxu1 }
 0x742   : > { %v7142_v27 = vadd.f32 %v6974_v62, %v10142_v15  ;;  %6699 = vmatmul.f32.gmra.mxu0 %v10027_v53  ;;  %v6161_v53 = vld [vmem:[#allocation3 + $0x198] sm:$0xff]  ;;  %v10490_v62 = vld [vmem:[#allocation6_spill] sm:$0xff] }
 0x743   : > { %5959 = vmatmul.f32.gmra.mxu2 %v10273_v24  ;;  %6329 = vmatmul.f32.gmra.mxu3 %v6160_v51  ;;  %v10277_v18 = vadd.f32 %v6649_v61, %v6417_v41  ;;  %v10489_v61 = vld [vmem:[#allocation21_spill] sm:$0xff] }
 0x744   : > { %v7256_v39 = vadd.f32 %v10164_v13, %v7142_v27  ;;  %7021 = vmatmul.f32.gmra.mxu1 %v10155_v55  ;;  %v5680_v29 = vadd.f32 %v10489_v61, %v9904_v7  ;;  %v10494_v61 = vld [vmem:[#allocation14_spill] sm:$0xff] }
 0x746   : > { %7258 = vst [vmem:[%s7771_s14 + $0x40] sm:$0xff] %v7256_v39  ;;  %v5912_v12 = vpop.f32.mrf.mxu2  ;;  %v6282_v15 = vpop.f32.mrf.mxu3 }
 0x747   : > { %v6048_v57 = vadd.f32 %v5912_v12, %v5678_v31  ;;  %v6655_v63 = vpop.f32.mrf.mxu0 }
 0x749   : > { %v6418_v26 = vadd.f32 %v6282_v15, %v6048_v57  ;;  %v6977_v34 = vpop.f32.mrf.mxu1 }
 0x74a   : > { %v7143_v48 = vadd.f32 %v6977_v34, %v10152_v16  ;;  %6702 = vmatmul.f32.gmra.mxu0 %v6531_v1  ;;  %v10293_v16 = vld [vmem:[#allocation3 + $0x18a] sm:$0xff] }
 0x74b   : > { %5962 = vmatmul.f32.gmra.mxu2 %v10285_v8  ;;  %6332 = vmatmul.f32.gmra.mxu3 %v6161_v53  ;;  %v10288_v55 = vadd.f32 %v6652_v60, %v6418_v26  ;;  %v10492_v26 = vld [vmem:[#allocation8_spill] sm:$0xff]  ;;  %v10493_v34 = vld [vmem:[#allocation25_spill] sm:$0xff] }
 0x74c   : > { %v7257_v49 = vadd.f32 %v10164_v13, %v7143_v48  ;;  %7024 = vmatmul.f32.gmra.mxu1 %v10167_v6  ;;  %v5683_v48 = vadd.f32 %v10493_v34, %v10492_v26 }
 0x74e   : > { %7259 = vst [vmem:[%s7771_s14 + $0x48] sm:$0xff] %v7257_v49  ;;  %v5915_v3 = vpop.f32.mrf.mxu2  ;;  %v6285_v32 = vpop.f32.mrf.mxu3 }
 0x74f   : > { %v6658_v22 = vpop.f32.mrf.mxu0 }
 0x751   : > { %v6980_v52 = vpop.f32.mrf.mxu1 }
 0x752   : > { %6705 = vmatmul.f32.gmra.mxu0 %v6532_v2 }
 0x753   : > { %5965 = vmatmul.f32.gmra.mxu2 %v10293_v16  ;;  %6335 = vmatmul.f32.gmra.mxu3 %v6162_v47 }
 0x754   : > { %7027 = vmatmul.f32.gmra.mxu1 %v10178_v0  ;;  %v10491_v0 = vld [vmem:[#allocation23_spill] sm:$0xff] }
 0x755   : > { %v5681_v27 = vadd.f32 %v10491_v0, %v10490_v62 }
 0x756   : > { %v5918_v6 = vpop.f32.mrf.mxu2  ;;  %v6288_v9 = vpop.f32.mrf.mxu3 }
 0x757   : > { %v6050_v17 = vadd.f32 %v5918_v6, %v5680_v29  ;;  %v6661_v45 = vpop.f32.mrf.mxu0 }
 0x759   : > { %v6420_v10 = vadd.f32 %v6288_v9, %v6050_v17  ;;  %v6983_v35 = vpop.f32.mrf.mxu1 }
 0x75a   : > { %v7145_v43 = vadd.f32 %v6983_v35, %v10170_v56 }
 0x75b   : > { %v10300_v60 = vadd.f32 %v6658_v22, %v6420_v10 }
 0x75c   : > { %v7262_v41 = vadd.f32 %v10164_v13, %v7145_v43  ;;  %7030 = vmatmul.f32.gmra.mxu1 %v10186_v46 }
 0x75e   : > { %7264 = vst [vmem:[%s7771_s14 + $0x50] sm:$0xff] %v7262_v41  ;;  %v5921_v7 = vpop.f32.mrf.mxu2  ;;  %v6291_v51 = vpop.f32.mrf.mxu3 }
 0x75f   : > { %v6051_v39 = vadd.f32 %v5921_v7, %v5681_v27  ;;  %v6664_v59 = vpop.f32.mrf.mxu0  ;;  %v10496_v7 = vld [vmem:[#allocation15_spill] sm:$0xff] }
 0x761   : > { %v6421_v31 = vadd.f32 %v6291_v51, %v6051_v39  ;;  %v6986_v12 = vpop.f32.mrf.mxu1  ;;  %v10497_v51 = vld [vmem:[#allocation11_spill] sm:$0xff] }
 0x762   : > { %v7146_v15 = vadd.f32 %v6986_v12, %v10181_v38  ;;  %v5686_v39 = vadd.f32 %v10497_v51, %v10496_v7 }
 0x763   : > { %v10308_v56 = vadd.f32 %v6661_v45, %v6421_v31 }
 0x764   : > { %v7263_v57 = vadd.f32 %v10164_v13, %v7146_v15  ;;  %7033 = vmatmul.f32.gmra.mxu1 %v10193_v11 }
 0x766   : > { %7265 = vst [vmem:[%s7771_s14 + $0x58] sm:$0xff] %v7263_v57  ;;  %v5924_v46 = vpop.f32.mrf.mxu2  ;;  %v6294_v63 = vpop.f32.mrf.mxu3 }
 0x767   : > { %v6667_v1 = vpop.f32.mrf.mxu0 }
 0x769   : > { %v6989_v53 = vpop.f32.mrf.mxu1 }
 0x76c   : > { %7036 = vmatmul.f32.gmra.mxu1 %v10204_v25  ;;  %v10495_v25 = vld [vmem:[#allocation26_spill] sm:$0xff] }
 0x76d   : > { %v5684_v29 = vadd.f32 %v10495_v25, %v10494_v61  ;;  %v10500_v61 = vld [vmem:[#allocation17_spill] sm:$0xff]  ;;  %v10501_v25 = vld [vmem:[#allocation10_spill] sm:$0xff] }
 0x76e   : > { %v5927_v49 = vpop.f32.mrf.mxu2  ;;  %v6297_v3 = vpop.f32.mrf.mxu3 }
 0x76f   : > { %v6053_v38 = vadd.f32 %v5927_v49, %v5683_v48  ;;  %v6670_v32 = vpop.f32.mrf.mxu0 }
 0x771   : > { %v6423_v22 = vadd.f32 %v6297_v3, %v6053_v38  ;;  %v6992_v2 = vpop.f32.mrf.mxu1 }
 0x772   : > { %v7148_v47 = vadd.f32 %v6992_v2, %v10196_v20 }
 0x773   : > { %v10317_v11 = vadd.f32 %v6667_v1, %v6423_v22  ;;  %v10498_v1 = vld [vmem:[#allocation16_spill] sm:$0xff] }
 0x774   : > { %v7268_v52 = vadd.f32 %v10164_v13, %v7148_v47  ;;  %7039 = vmatmul.f32.gmra.mxu1 %v10212_v23 }
 0x776   : > { %7270 = vst [vmem:[%s7771_s14 + $0x60] sm:$0xff] %v7268_v52  ;;  %v5930_v6 = vpop.f32.mrf.mxu2  ;;  %v6300_v9 = vpop.f32.mrf.mxu3 }
 0x777   : > { %v6054_v17 = vadd.f32 %v5930_v6, %v5684_v29  ;;  %v6673_v45 = vpop.f32.mrf.mxu0  ;;  %v5689_v29 = vadd.f32 %v10501_v25, %v10500_v61  ;;  %v6901_v25 = vld [vmem:[#allocation3 + $0x19a] sm:$0xff] }
 0x779   : > { %v6424_v10 = vadd.f32 %v6300_v9, %v6054_v17  ;;  %v6995_v35 = vpop.f32.mrf.mxu1 }
 0x77a   : > { %v7149_v43 = vadd.f32 %v6995_v35, %v10207_v4 }
 0x77b   : > { %v10325_v20 = vadd.f32 %v6670_v32, %v6424_v10 }
 0x77c   : > { %v7269_v41 = vadd.f32 %v10164_v13, %v7149_v43  ;;  %7042 = vmatmul.f32.gmra.mxu1 %v10219_v54 }
 0x77e   : > { %7271 = vst [vmem:[%s7771_s14 + $0x68] sm:$0xff] %v7269_v41  ;;  %v5933_v23 = vpop.f32.mrf.mxu2  ;;  %v6303_v62 = vpop.f32.mrf.mxu3  ;;  %v10502_v41 = vld [vmem:[#allocation18_spill] sm:$0xff] }
 0x77f   : > { %v6676_v0 = vpop.f32.mrf.mxu0 }
 0x781   : > { %v6998_v27 = vpop.f32.mrf.mxu1 }
 0x784   : > { %7045 = vmatmul.f32.gmra.mxu1 %v10230_v40  ;;  %v10499_v40 = vld [vmem:[#allocation12_spill] sm:$0xff] }
 0x785   : > { %v5687_v53 = vadd.f32 %v10499_v40, %v10498_v1 }
 0x786   : > { %v5936_v59 = vpop.f32.mrf.mxu2  ;;  %v6306_v31 = vpop.f32.mrf.mxu3 }
 0x787   : > { %v6056_v4 = vadd.f32 %v5936_v59, %v5686_v39  ;;  %v6679_v12 = vpop.f32.mrf.mxu0 }
 0x789   : > { %v6426_v15 = vadd.f32 %v6306_v31, %v6056_v4  ;;  %v7001_v57 = vpop.f32.mrf.mxu1 }
 0x78a   : > { %v7151_v46 = vadd.f32 %v7001_v57, %v10222_v37 }
 0x78b   : > { %v10334_v54 = vadd.f32 %v6676_v0, %v6426_v15  ;;  %v6900_v0 = vld [vmem:[#allocation3 + $0x192] sm:$0xff] }
 0x78c   : > { %v7274_v63 = vadd.f32 %v10164_v13, %v7151_v46  ;;  %7048 = vmatmul.f32.gmra.mxu1 %v10238_v44  ;;  %5968 = vmatmul.f32.gmra.mxu2 %v6900_v0  ;;  %v10503_v15 = vld [vmem:[#allocation19_spill] sm:$0xff] }
 0x78d   : > { %v5692_v57 = vadd.f32 %v10113_v36, %v10503_v15 }
 0x78e   : > { %7276 = vst [vmem:[%s7771_s14 + $0x70] sm:$0xff] %v7274_v63  ;;  %v5939_v26 = vpop.f32.mrf.mxu2  ;;  %v6309_v34 = vpop.f32.mrf.mxu3 }
 0x78f   : > { %v6057_v48 = vadd.f32 %v5939_v26, %v5687_v53  ;;  %v6682_v49 = vpop.f32.mrf.mxu0 }
 0x791   : > { %v6427_v3 = vadd.f32 %v6309_v34, %v6057_v48  ;;  %v7004_v38 = vpop.f32.mrf.mxu1 }
 0x792   : > { %v7152_v32 = vadd.f32 %v7004_v38, %v10233_v19  ;;  %v6533_v38 = vld [vmem:[#allocation3 + $0x1a9] sm:$0xff] }
 0x793   : > { %v10342_v37 = vadd.f32 %v6679_v12, %v6427_v3  ;;  %6708 = vmatmul.f32.gmra.mxu0 %v6533_v38 }
 0x794   : > { %v7275_v22 = vadd.f32 %v10164_v13, %v7152_v32  ;;  %7051 = vmatmul.f32.gmra.mxu1 %v10245_v21 }
 0x796   : > { %7277 = vst [vmem:[%s7771_s14 + $0x78] sm:$0xff] %v7275_v22  ;;  %v5942_v44 = vpop.f32.mrf.mxu2  ;;  %v6312_v2 = vpop.f32.mrf.mxu3 }
 0x797   : > { %v6685_v47 = vpop.f32.mrf.mxu0 }
 0x799   : > { %v7007_v52 = vpop.f32.mrf.mxu1 }
 0x79c   : > { %7054 = vmatmul.f32.gmra.mxu1 %v10256_v50  ;;  %v5690_v50 = vadd.f32 %v10099_v28, %v10502_v41 }
 0x79e   : > { %v5945_v6 = vpop.f32.mrf.mxu2  ;;  %v6315_v9 = vpop.f32.mrf.mxu3 }
 0x79f   : > { %v6059_v19 = vadd.f32 %v5945_v6, %v5689_v29  ;;  %v6688_v17 = vpop.f32.mrf.mxu0  ;;  %v6902_v6 = vld [vmem:[#allocation3 + $0x1a2] sm:$0xff] }
 0x7a1   : > { %v6429_v45 = vadd.f32 %v6315_v9, %v6059_v19  ;;  %v7010_v10 = vpop.f32.mrf.mxu1 }
 0x7a2   : > { %v7154_v35 = vadd.f32 %v7010_v10, %v10248_v58 }
 0x7a3   : > { %v10351_v21 = vadd.f32 %v6685_v47, %v6429_v45 }
 0x7a4   : > { %v7280_v43 = vadd.f32 %v10164_v13, %v7154_v35  ;;  %7057 = vmatmul.f32.gmra.mxu1 %v10265_v5 }
 0x7a6   : > { %7282 = vst [vmem:[%s7771_s14 + $0x80] sm:$0xff] %v7280_v43  ;;  %v5948_v23 = vpop.f32.mrf.mxu2  ;;  %v6318_v62 = vpop.f32.mrf.mxu3 }
 0x7a7   : > { %v6060_v27 = vadd.f32 %v5948_v23, %v5690_v50  ;;  %v6691_v7 = vpop.f32.mrf.mxu0 }
 0x7a9   : > { %v6430_v51 = vadd.f32 %v6318_v62, %v6060_v27  ;;  %v7013_v39 = vpop.f32.mrf.mxu1 }
 0x7aa   : > { %v7155_v58 = vadd.f32 %v7013_v39, %v10260_v42  ;;  %v6163_v42 = vld [vmem:[#allocation3 + $0x1a8] sm:$0xff] }
 0x7ab   : > { %v10359_v59 = vadd.f32 %v6688_v17, %v6430_v51  ;;  %6338 = vmatmul.f32.gmra.mxu3 %v6163_v42  ;;  %v6903_v17 = vld [vmem:[#allocation3 + $0x1aa] sm:$0xff] }
 0x7ac   : > { %v7281_v31 = vadd.f32 %v10164_v13, %v7155_v58  ;;  %7060 = vmatmul.f32.gmra.mxu1 %v10273_v24 }
 0x7ae   : > { %7283 = vst [vmem:[%s7771_s14 + $0x88] sm:$0xff] %v7281_v31  ;;  %v5951_v5 = vpop.f32.mrf.mxu2  ;;  %v6321_v28 = vpop.f32.mrf.mxu3 }
 0x7af   : > { %v6694_v4 = vpop.f32.mrf.mxu0 }
 0x7b1   : > { %v7016_v12 = vpop.f32.mrf.mxu1 }
 0x7b4   : > { %7063 = vmatmul.f32.gmra.mxu1 %v10285_v8  ;;  %v10504_v8 = vld [vmem:[#allocation20_spill] sm:$0xff] }
 0x7b5   : > { %v5693_v36 = vadd.f32 %v10123_v33, %v10504_v8 }
 0x7b6   : > { %v5954_v46 = vpop.f32.mrf.mxu2  ;;  %v6324_v63 = vpop.f32.mrf.mxu3 }
 0x7b7   : > { %v6062_v1 = vadd.f32 %v5954_v46, %v5692_v57  ;;  %v6697_v40 = vpop.f32.mrf.mxu0 }
 0x7b9   : > { %v6432_v53 = vadd.f32 %v6324_v63, %v6062_v1  ;;  %v7019_v26 = vpop.f32.mrf.mxu1 }
 0x7ba   : > { %v7157_v24 = vadd.f32 %v7019_v26, %v10277_v18 }
 0x7bb   : > { %v10368_v34 = vadd.f32 %v6694_v4, %v6432_v53 }
 0x7bc   : > { %v7286_v48 = vadd.f32 %v10164_v13, %v7157_v24  ;;  %7066 = vmatmul.f32.gmra.mxu1 %v10293_v16 }
 0x7be   : > { %7288 = vst [vmem:[%s7771_s14 + $0x90] sm:$0xff] %v7286_v48  ;;  %v5957_v49 = vpop.f32.mrf.mxu2  ;;  %v6327_v3 = vpop.f32.mrf.mxu3 }
 0x7bf   : > { %v6063_v32 = vadd.f32 %v5957_v49, %v5693_v36  ;;  %v6700_v22 = vpop.f32.mrf.mxu0  ;;  %v10505_v36 = vld [vmem:[#allocation22_spill] sm:$0xff] }
 0x7c0   : > { %v5695_v49 = vadd.f32 %v10137_v14, %v10505_v36 }
 0x7c1   : > { %v6433_v44 = vadd.f32 %v6327_v3, %v6063_v32  ;;  %v7022_v2 = vpop.f32.mrf.mxu1 }
 0x7c2   : > { %v7158_v18 = vadd.f32 %v7022_v2, %v10288_v55 }
 0x7c3   : > { %v6803_v47 = vadd.f32 %v6697_v40, %v6433_v44 }
 0x7c4   : > { %v7287_v52 = vadd.f32 %v10164_v13, %v7158_v18  ;;  %7069 = vmatmul.f32.gmra.mxu1 %v6900_v0 }
 0x7c6   : > { %7289 = vst [vmem:[%s7771_s14 + $0x98] sm:$0xff] %v7287_v52  ;;  %v5960_v16 = vpop.f32.mrf.mxu2  ;;  %v6330_v33 = vpop.f32.mrf.mxu3 }
 0x7c7   : > { %v6703_v46 = vpop.f32.mrf.mxu0 }
 0x7c9   : > { %v7025_v61 = vpop.f32.mrf.mxu1 }
 0x7cc   : > { %7072 = vmatmul.f32.gmra.mxu1 %v6901_v25 }
 0x7cf   : > { %v6706_v40 = vpop.f32.mrf.mxu0 }
 0x7d1   : > { %v7028_v29 = vpop.f32.mrf.mxu1 }
 0x7d2   : > { %v7160_v9 = vadd.f32 %v7028_v29, %v10300_v60 }
 0x7d4   : > { %v7292_v19 = vadd.f32 %v10164_v13, %v7160_v9  ;;  %7075 = vmatmul.f32.gmra.mxu1 %v6902_v6 }
 0x7d6   : > { %7294 = vst [vmem:[%s7771_s14 + $0xa0] sm:$0xff] %v7292_v19 }
 0x7d9   : > { %v7031_v55 = vpop.f32.mrf.mxu1 }
 0x7da   : > { %v7161_v45 = vadd.f32 %v7031_v55, %v10308_v56 }
 0x7dc   : > { %v7293_v10 = vadd.f32 %v10164_v13, %v7161_v45  ;;  %7078 = vmatmul.f32.gmra.mxu1 %v6903_v17 }
 0x7de   : > { %7295 = vst [vmem:[%s7771_s14 + $0xa8] sm:$0xff] %v7293_v10 }
 0x7e1   : > { %v7034_v35 = vpop.f32.mrf.mxu1 }
 0x7e9   : > { %v7037_v43 = vpop.f32.mrf.mxu1 }
 0x7ea   : > { %v7163_v41 = vadd.f32 %v7037_v43, %v10317_v11 }
 0x7ec   : > { %v7298_v60 = vadd.f32 %v10164_v13, %v7163_v41 }
 0x7ee   : > { %7300 = vst [vmem:[%s7771_s14 + $0xb0] sm:$0xff] %v7298_v60 }
 0x7f1   : > { %v7040_v50 = vpop.f32.mrf.mxu1 }
 0x7f2   : > { %v7164_v23 = vadd.f32 %v7040_v50, %v10325_v20  ;;  %v5963_v20 = vpop.f32.mrf.mxu2 }
 0x7f3   : > { %v6065_v3 = vadd.f32 %v5963_v20, %v5695_v49 }
 0x7f4   : > { %v7299_v62 = vadd.f32 %v10164_v13, %v7164_v23 }
 0x7f6   : > { %7301 = vst [vmem:[%s7771_s14 + $0xb8] sm:$0xff] %v7299_v62 }
 0x7f9   : > { %v7043_v56 = vpop.f32.mrf.mxu1 }
 0x7fa   : > { %v5966_v4 = vpop.f32.mrf.mxu2 }
 0x801   : > { %v7046_v0 = vpop.f32.mrf.mxu1 }
 0x802   : > { %v7166_v27 = vadd.f32 %v7046_v0, %v10334_v54 }
 0x804   : > { %v7304_v7 = vadd.f32 %v10164_v13, %v7166_v27 }
 0x806   : > { %7306 = vst [vmem:[%s7771_s14 + $0xc0] sm:$0xff] %v7304_v7 }
 0x809   : > { %v7049_v51 = vpop.f32.mrf.mxu1 }
 0x80a   : > { %v7167_v11 = vadd.f32 %v7049_v51, %v10342_v37  ;;  %v6333_v37 = vpop.f32.mrf.mxu3 }
 0x80b   : > { %v6435_v32 = vadd.f32 %v6333_v37, %v6065_v3 }
 0x80c   : > { %v7305_v39 = vadd.f32 %v10164_v13, %v7167_v11 }
 0x80d   : > { %v6805_v44 = vadd.f32 %v6703_v46, %v6435_v32 }
 0x80e   : > { %7307 = vst [vmem:[%s7771_s14 + $0xc8] sm:$0xff] %v7305_v39 }
 0x80f   : > { %v5969_v63 = vpop.f32.mrf.mxu2 }
 0x810   : > { %v6709_v8 = vpop.f32.mrf.mxu0 }
 0x811   : > { %v7052_v58 = vpop.f32.mrf.mxu1 }
 0x812   : > { %v6336_v1 = vpop.f32.mrf.mxu3 }
 0x819   : > { %v7055_v31 = vpop.f32.mrf.mxu1 }
 0x81a   : > { %v7169_v5 = vadd.f32 %v7055_v31, %v10351_v21 }
 0x81c   : > { %v7310_v28 = vadd.f32 %v10164_v13, %v7169_v5 }
 0x81e   : > { %7312 = vst [vmem:[%s7771_s14 + $0xd0] sm:$0xff] %v7310_v28 }
 0x821   : > { %v7058_v54 = vpop.f32.mrf.mxu1 }
 0x822   : > { %v7170_v12 = vadd.f32 %v7058_v54, %v10359_v59 }
 0x824   : > { %v7311_v15 = vadd.f32 %v10164_v13, %v7170_v12 }
 0x826   : > { %7313 = vst [vmem:[%s7771_s14 + $0xd8] sm:$0xff] %v7311_v15 }
 0x829   : > { %v7061_v57 = vpop.f32.mrf.mxu1 }
 0x82e   : > { %v6339_v59 = vpop.f32.mrf.mxu3 }
 0x831   : > { %v7064_v42 = vpop.f32.mrf.mxu1 }
 0x832   : > { %v7172_v21 = vadd.f32 %v7064_v42, %v10368_v34  ;;  %v10506_v34 = vld [vmem:[#allocation24_spill] sm:$0xff] }
 0x833   : > { %v5696_v22 = vadd.f32 %v10147_v30, %v10506_v34 }
 0x834   : > { %v7316_v53 = vadd.f32 %v10164_v13, %v7172_v21 }
 0x835   : > { %v6066_v2 = vadd.f32 %v5966_v4, %v5696_v22 }
 0x836   : > { %7318 = vst [vmem:[%s7771_s14 + $0xe0] sm:$0xff] %v7316_v53 }
 0x837   : > { %v6436_v52 = vadd.f32 %v6336_v1, %v6066_v2 }
 0x839   : > { %v7067_v26 = vpop.f32.mrf.mxu1  ;;  %v6806_v33 = vadd.f32 %v6706_v40, %v6436_v52 }
 0x83a   : > { %v7173_v24 = vadd.f32 %v7067_v26, %v6803_v47 }
 0x83c   : > { %v7317_v48 = vadd.f32 %v10164_v13, %v7173_v24 }
 0x83e   : > { %7319 = vst [vmem:[%s7771_s14 + $0xe8] sm:$0xff] %v7317_v48 }
 0x841   : > { %v7070_v38 = vpop.f32.mrf.mxu1 }
 0x849   : > { %v7073_v18 = vpop.f32.mrf.mxu1 }
 0x84a   : > { %v7175_v47 = vadd.f32 %v7073_v18, %v6805_v44 }
 0x84c   : > { %v7322_v16 = vadd.f32 %v10164_v13, %v7175_v47 }
 0x84e   : > { %7324 = vst [vmem:[%s7771_s14 + $0xf0] sm:$0xff] %v7322_v16 }
 0x851   : > { %v7076_v61 = vpop.f32.mrf.mxu1 }
 0x852   : > { %v7176_v25 = vadd.f32 %v7076_v61, %v6806_v33 }
 0x854   : > { %v7323_v14 = vadd.f32 %v10164_v13, %v7176_v25 }
 0x856   : > { %7325 = vst [vmem:[%s7771_s14 + $0xf8] sm:$0xff] %v7323_v14 }
 0x859   : > { %v7079_v29 = vpop.f32.mrf.mxu1 }
 0x85a PF: > { %s18_s27 = sadd.s32 1, %s7707_s27  }
 0x85b   : > { %p15_p5 = scmp.ge.s32.totalorder %s18_s27, 4  }
 0x85d   :  { %17 = sbr.rel (!%p15_p5) target bundleno = 1 (0x1), region = 102 }

</bundles_post_ra>
